<compile_context>
chip_gen: v5e
topology: v5e:2x2
jax: 0.10.0
libtpu: 0.0.40
codegen_flags: <defaults>
</compile_context>

<pallas_src>
import functools

import numpy as np
import jax
import jax.numpy as jnp
from jax.experimental import pallas as pl
from jax.experimental.pallas import tpu as pltpu


# ----------------------------------------------------------------------------
# Pallas kernel: all windows of one grid step (a window-column "band" of nb
# images in the fused path, or nwb raster-consecutive windows in the fallback).
# ----------------------------------------------------------------------------
def _wmsa_kernel(*refs, nwb, p2, n_heads, head_dim, mask_mode, compute_dtype):
    if mask_mode == "none":
        x_ref, wqkv_ref, bqkv_ref, rel_ref, wout_ref, bout_ref, o_ref = refs
        m_ref = None
    else:
        x_ref, wqkv_ref, bqkv_ref, rel_ref, m_ref, wout_ref, bout_ref, o_ref = refs

    C = n_heads * head_dim
    d = head_dim
    M = nwb * p2

    # Window partition fused into the BlockSpec: the x block arrives either as
    # (nb, H, ws, C) (column-band layout) or already as (M, C); in both cases
    # the row-major flattening is exactly window-major token order.
    x = x_ref[...].reshape(M, C).astype(compute_dtype)

    # QKV projection: ONE big MXU matmul for all windows of the step.
    # (attention scale is pre-folded into the Q columns of W_qkv / b_qkv)
    qkv = jnp.dot(x, wqkv_ref[...], preferred_element_type=jnp.float32)
    qkv = (qkv + bqkv_ref[...]).reshape(nwb, p2, 3 * C)

    # Head-batched attention: per-head lane slices (unavoidable while
    # head_dim < 128) are stacked along a NEW LEADING axis (no lane movement),
    # so QK^T, the softmax and P@V each run once with a single batch dim.
    q = jnp.stack([qkv[:, :, h * d:(h + 1) * d] for h in range(n_heads)], 0)
    k = jnp.stack([qkv[:, :, C + h * d:C + (h + 1) * d] for h in range(n_heads)], 0)
    v = jnp.stack([qkv[:, :, 2 * C + h * d:2 * C + (h + 1) * d] for h in range(n_heads)], 0)
    q = q.reshape(n_heads * nwb, p2, d).astype(compute_dtype)
    k = k.reshape(n_heads * nwb, p2, d).astype(compute_dtype)
    v = v.reshape(n_heads * nwb, p2, d).astype(compute_dtype)

    sim = jnp.einsum('bpd,bqd->bpq', q, k, preferred_element_type=jnp.float32)
    sim = sim.reshape(n_heads, nwb, p2, p2) + rel_ref[...][:, None]   # rel-pos bias

    if mask_mode == "synth":
        # Shift-window bias synthesized from a tiny resident table instead of
        # streaming a (nw, p2, p2) mask every step:
        #   m_ref[0]: per-window last-row pattern (always applied)
        #   m_ref[1]: last-column pattern (only on the last window-column band)
        is_last_col = (pl.program_id(1) == pl.num_programs(1) - 1)
        bias = m_ref[0] + is_last_col.astype(jnp.float32) * m_ref[1]   # (nwb, p2, p2)
        sim = sim + bias[None]
    elif mask_mode == "stream":
        sim = sim + m_ref[...][None]                                   # (nwb, p2, p2)

    # Single softmax over all heads & windows (f32 max-subtract, EUP reciprocal).
    mx = jnp.max(sim, axis=-1, keepdims=True)
    e = jnp.exp(sim - mx)
    inv = pl.reciprocal(jnp.sum(e, axis=-1, keepdims=True), approx=True)
    probs = (e * inv).astype(compute_dtype).reshape(n_heads * nwb, p2, p2)

    o = jnp.einsum('bpq,bqd->bpd', probs, v, preferred_element_type=jnp.float32)
    o = o.reshape(n_heads, nwb, p2, d)
    # Lane-concat the per-head strips back to (M, C): the output projection is
    # a single K=C MXU matmul instead of n_heads K=head_dim ones.
    o_all = jnp.concatenate([o[h] for h in range(n_heads)], axis=-1)   # (nwb, p2, C)
    o_all = o_all.reshape(M, C).astype(compute_dtype)

    y = jnp.dot(o_all, wout_ref[...], preferred_element_type=jnp.float32)
    y = y + bout_ref[...]
    o_ref[...] = y.astype(o_ref.dtype).reshape(o_ref.shape)


# ----------------------------------------------------------------------------
# Helpers (mask), replicating the PyTorch generate_mask for the reference.
# ----------------------------------------------------------------------------
def generate_mask_bool(hw, ww, ws, type_):
    """Boolean SW-MSA mask, shape (hw*ww, ws*ws, ws*ws). All False for 'W'."""
    m = np.zeros((hw, ww, ws, ws, ws, ws), dtype=bool)
    if type_ != 'W':
        shift = ws // 2
        s = ws - shift
        m[-1, :, :s, :, s:, :] = True
        m[-1, :, s:, :, :s, :] = True
        m[:, -1, :, :s, :, s:] = True
        m[:, -1, :, s:, :, :s] = True
    return m.reshape(hw * ww, ws * ws, ws * ws)


# ----------------------------------------------------------------------------
# WMSA module (JAX/Pallas version).
# ----------------------------------------------------------------------------
class WMSA:
    def __init__(self, input_dim, output_dim, head_dim, window_size, type_, key,
                 compute_dtype=jnp.float32, target_rows=1024):
        assert input_dim % head_dim == 0
        p2 = window_size * window_size
        if p2 % 8 != 0:
            # (8,128) sublane rule: window token count must be 8-aligned.
            raise NotImplementedError(
                f"window_size**2 must be a multiple of 8 (got ws={window_size})")
        self.input_dim = input_dim
        self.output_dim = output_dim
        self.head_dim = head_dim
        self.n_heads = input_dim // head_dim
        self.window_size = window_size
        self.type = type_
        self.scale = float(head_dim) ** (-0.5)
        self.compute_dtype = compute_dtype        # f32, or bf16 for MXU inputs
        self.target_rows = int(target_rows)

        k1, k2, k3, k4, k5 = jax.random.split(key, 5)
        # Linear(input_dim -> 3*input_dim), stored as [in, out] for x @ W.
        self.w_qkv = 0.05 * jax.random.normal(k1, (input_dim, 3 * input_dim), jnp.float32)
        self.b_qkv = 0.05 * jax.random.normal(k2, (1, 3 * input_dim), jnp.float32)
        # Linear(input_dim -> output_dim)
        self.w_out = 0.05 * jax.random.normal(k3, (input_dim, output_dim), jnp.float32)
        self.b_out = 0.05 * jax.random.normal(k4, (1, output_dim), jnp.float32)
        # relative_position_params after __init__ reshaping: (n_heads, 2ws-1, 2ws-1).
        rel = 0.02 * jax.random.normal(k5, (self.n_heads, 2 * window_size - 1,
                                            2 * window_size - 1), jnp.float32)
        self.rel_params = jnp.clip(rel, -0.04, 0.04)

        # Derived tensors cached at init (not rebuilt per forward).
        self.rel = self._relative_embedding()                        # (H, p2, p2) f32
        if self.type != 'W':
            self._row_pat_np, self._col_pat_np = self._shift_patterns()

        # Fold attention scale into Q columns; pre-cast weight matrices to the
        # MXU compute dtype (biases stay f32; they are added to f32 accums).
        self.w_qkv_folded = (self.w_qkv.at[:, :input_dim].multiply(self.scale)
                             ).astype(compute_dtype)
        self.b_qkv_folded = self.b_qkv.at[:, :input_dim].multiply(self.scale)
        self.w_out_c = self.w_out.astype(compute_dtype)

        self._forward = jax.jit(self._forward_impl)

    # --- parameter-derived tensors -------------------------------------------
    def _relative_embedding(self):
        ws = self.window_size
        cord = np.array([[i, j] for i in range(ws) for j in range(ws)])      # (P2, 2)
        relation = cord[:, None, :] - cord[None, :, :] + ws - 1              # (P2, P2, 2)
        return self.rel_params[:, relation[:, :, 0], relation[:, :, 1]]      # (H, P2, P2)

    def _shift_patterns(self):
        """(p2, p2) finite -1e9 biases for last-window-row / last-window-col."""
        ws = self.window_size
        p2 = ws * ws
        s = ws - ws // 2
        tok = np.arange(p2)
        row, col = tok // ws, tok % ws
        row_m = (row[:, None] < s) != (row[None, :] < s)
        col_m = (col[:, None] < s) != (col[None, :] < s)
        neg = np.float32(-1e9)
        return (np.where(row_m, neg, np.float32(0.0)).astype(np.float32),
                np.where(col_m, neg, np.float32(0.0)).astype(np.float32))

    def _full_mask_bias(self, hw, ww):
        """Full per-window bias (nw, p2, p2) for the fallback (streamed) path."""
        p2 = self.window_size ** 2
        bias = np.zeros((hw, ww, p2, p2), np.float32)
        bias[-1, :] += self._row_pat_np
        bias[:, -1] += self._col_pat_np
        return jnp.asarray(bias.reshape(hw * ww, p2, p2))

    # --- VMEM budget ----------------------------------------------------------
    def _vmem_limit(self, M, C, cout, nwb, p2):
        f32 = 4
        blocks = (M * C + M * cout                        # x / out tiles
                  + C * 3 * C + 3 * C + C * cout + cout   # weights / biases
                  + self.n_heads * p2 * p2                # rel bias
                  + 2 * nwb * p2 * p2) * f32              # mask / pattern table
        interm = (2 * M * 3 * C                           # qkv + stacked q/k/v
                  + 4 * self.n_heads * nwb * p2 * p2      # sim / e / probs
                  + 2 * M * C) * f32                      # head concat + cast
        # Cap at 64 MiB so the value is also valid on v7x (64 MiB VMEM).
        return int(min(64 * 2 ** 20, max(32 * 2 ** 20, 2 * blocks + interm)))

    # --- fused window-partition path (ws % 8 == 0) ----------------------------
    def _attn_fused(self, x, B, H, W, hw, ww):
        ws = self.window_size
        p2 = ws * ws
        C, cout = self.input_dim, self.output_dim
        band_rows = H * ws                 # rows (= tokens) in one window-column band
        # images per grid step: grow toward ~target_rows but keep >= 2 grid
        # blocks so v7x can shard across its two TensorCores.
        nb = 1
        for cand in range(1, B + 1):
            if (B % cand == 0
                    and cand * band_rows <= max(self.target_rows, band_rows)
                    and (B // cand) * ww >= 2):
                nb = cand
        nwb = nb * hw                      # windows per grid step
        M = nwb * p2

        x5 = x.reshape(B, H, ww, ws, C)    # free reshape (split of W only)
        grid = (B // nb, ww)

        in_specs = [
            pl.BlockSpec((nb, H, None, ws, C), lambda b, j: (b, 0, j, 0, 0)),
            pl.BlockSpec((C, 3 * C), lambda b, j: (0, 0)),
            pl.BlockSpec((1, 3 * C), lambda b, j: (0, 0)),
            pl.BlockSpec((self.n_heads, p2, p2), lambda b, j: (0, 0, 0)),
        ]
        inputs = [x5, self.w_qkv_folded, self.b_qkv_folded, self.rel]
        mask_mode = "none"
        if self.type != 'W':
            mask_mode = "synth"
            # (2, nwb, p2, p2) resident pattern table:
            #   [0] last-row bias of each window of the band (applies always)
            #   [1] last-column bias (applied only on the last band, in-kernel)
            row_tbl = np.zeros((nwb, p2, p2), np.float32)
            row_tbl[hw - 1::hw] = self._row_pat_np
            col_tbl = np.tile(self._col_pat_np[None], (nwb, 1, 1))
            pat = jnp.asarray(np.stack([row_tbl, col_tbl], axis=0))
            in_specs.append(pl.BlockSpec((2, nwb, p2, p2), lambda b, j: (0, 0, 0, 0)))
            inputs.append(pat)
        in_specs += [pl.BlockSpec((C, cout), lambda b, j: (0, 0)),
                     pl.BlockSpec((1, cout), lambda b, j: (0, 0))]
        inputs += [self.w_out_c, self.b_out]

        kernel = functools.partial(
            _wmsa_kernel, nwb=nwb, p2=p2, n_heads=self.n_heads,
            head_dim=self.head_dim, mask_mode=mask_mode,
            compute_dtype=self.compute_dtype)

        out5 = pl.pallas_call(
            kernel,
            out_shape=jax.ShapeDtypeStruct((B, H, ww, ws, cout), x.dtype),
            grid_spec=pltpu.PrefetchScalarGridSpec(
                num_scalar_prefetch=0, grid=grid, in_specs=in_specs,
                out_specs=pl.BlockSpec((nb, H, None, ws, cout),
                                       lambda b, j: (b, 0, j, 0, 0))),
            compiler_params=pltpu.CompilerParams(
                dimension_semantics=("parallel", "parallel"),
                vmem_limit_bytes=self._vmem_limit(M, C, cout, nwb, p2)),
        )(*inputs)
        return out5.reshape(B, H, W, cout)          # free reshape (merge ww, ws)

    # --- fallback path (ws % 8 != 0, e.g. ws = 4): wrapper-side rearrange -----
    def _attn_rearranged(self, x, B, H, W, hw, ww):
        ws = self.window_size
        p2 = ws * ws
        C, cout = self.input_dim, self.output_dim
        nw = hw * ww
        nwb = 1
        for cand in range(1, nw + 1):
            if (nw % cand == 0
                    and cand * p2 <= max(self.target_rows, p2)
                    and (B * nw) // cand >= 2):
                nwb = cand
        num_blocks = (B * nw) // nwb
        mrows = nwb * p2

        # TODO(synk): also fuse the window (un)partition into the BlockSpec for
        # window sizes not divisible by 8 (needs a sub-8-sublane relayout in VMEM).
        xw = x.reshape(B, hw, ws, ww, ws, C).transpose(0, 1, 3, 2, 4, 5)
        x2 = xw.reshape(B * nw * p2, C)

        in_specs = [
            pl.BlockSpec((mrows, C), lambda w: (w, 0)),
            pl.BlockSpec((C, 3 * C), lambda w: (0, 0)),
            pl.BlockSpec((1, 3 * C), lambda w: (0, 0)),
            pl.BlockSpec((self.n_heads, p2, p2), lambda w: (0, 0, 0)),
        ]
        inputs = [x2, self.w_qkv_folded, self.b_qkv_folded, self.rel]
        mask_mode = "none"
        if self.type != 'W':
            mask_mode = "stream"
            mask = self._full_mask_bias(hw, ww)                 # (nw, p2, p2)
            bpb = nw // nwb      # mask blocks per image (nwb divides nw)
            in_specs.append(pl.BlockSpec((nwb, p2, p2),
                                         lambda w, bpb=bpb: (w % bpb, 0, 0)))
            inputs.append(mask)
        in_specs += [pl.BlockSpec((C, cout), lambda w: (0, 0)),
                     pl.BlockSpec((1, cout), lambda w: (0, 0))]
        inputs += [self.w_out_c, self.b_out]

        kernel = functools.partial(
            _wmsa_kernel, nwb=nwb, p2=p2, n_heads=self.n_heads,
            head_dim=self.head_dim, mask_mode=mask_mode,
            compute_dtype=self.compute_dtype)

        out2 = pl.pallas_call(
            kernel,
            out_shape=jax.ShapeDtypeStruct((B * nw * p2, cout), x.dtype),
            grid_spec=pltpu.PrefetchScalarGridSpec(
                num_scalar_prefetch=0, grid=(num_blocks,), in_specs=in_specs,
                out_specs=pl.BlockSpec((mrows, cout), lambda w: (w, 0))),
            compiler_params=pltpu.CompilerParams(
                dimension_semantics=("parallel",),
                vmem_limit_bytes=self._vmem_limit(mrows, C, cout, nwb, p2)),
        )(*inputs)

        out = out2.reshape(B, hw, ww, ws, ws, cout).transpose(0, 1, 3, 2, 4, 5)
        return out.reshape(B, H, W, cout)

    # --- forward --------------------------------------------------------------
    def _forward_impl(self, x):
        ws = self.window_size
        shift = ws // 2
        if self.type != 'W':
            # TODO(synk): the cyclic shift stays as a plain-JAX roll (one HBM
            # copy); folding it into the index_map needs wrap-around blocks.
            x = jnp.roll(x, (-shift, -shift), axis=(1, 2))
        B, H, W, C = x.shape
        assert C == self.input_dim and H % ws == 0 and W % ws == 0
        hw, ww = H // ws, W // ws
        if ws % 8 == 0:
            out = self._attn_fused(x, B, H, W, hw, ww)
        else:
            out = self._attn_rearranged(x, B, H, W, hw, ww)
        if self.type != 'W':
            out = jnp.roll(out, (shift, shift), axis=(1, 2))
        return out

    def __call__(self, x):
        return self._forward(x)


# ----------------------------------------------------------------------------
# Pure-JAX reference (mirrors the PyTorch forward exactly) for validation.
# Uses the UNfolded f32 weights + explicit scale + -inf mask, so it validates
# the scale-folding / weight-cast / finite-mask rewrites inside the kernel.
# ----------------------------------------------------------------------------
def wmsa_reference(m, x):
    ws = m.window_size
    if m.type != 'W':
        x = jnp.roll(x, (-(ws // 2), -(ws // 2)), axis=(1, 2))
    B, H, W, C = x.shape
    hw, ww = H // ws, W // ws
    nw, p2 = hw * ww, ws * ws
    xw = x.reshape(B, hw, ws, ww, ws, C).transpose(0, 1, 3, 2, 4, 5).reshape(B, nw, p2, C)
    qkv = xw @ m.w_qkv + m.b_qkv[0]                                    # (B, nw, p2, 3C)
    qkv = qkv.reshape(B, nw, p2, 3 * m.n_heads, m.head_dim)
    qkv = jnp.transpose(qkv, (3, 0, 1, 2, 4))                          # (3H, B, nw, p2, d)
    q, k, v = (qkv[:m.n_heads], qkv[m.n_heads:2 * m.n_heads], qkv[2 * m.n_heads:])
    sim = jnp.einsum('hbwpc,hbwqc->hbwpq', q, k) * m.scale
    sim = sim + m.rel[:, None, None]
    if m.type != 'W':
        mask = jnp.asarray(generate_mask_bool(hw, ww, ws, m.type))
        sim = jnp.where(mask[None, None], -jnp.inf, sim)
    probs = jax.nn.softmax(sim, axis=-1)
    out = jnp.einsum('hbwij,hbwjc->hbwic', probs, v)
    out = jnp.transpose(out, (1, 2, 3, 0, 4)).reshape(B, nw, p2, C)
    out = out @ m.w_out + m.b_out[0]
    out = out.reshape(B, hw, ww, ws, ws, m.output_dim)
    out = out.transpose(0, 1, 3, 2, 4, 5).reshape(B, H, W, m.output_dim)
    if m.type != 'W':
        out = jnp.roll(out, (ws // 2, ws // 2), axis=(1, 2))
    return out


# ----------------------------------------------------------------------------
if __name__ == "__main__":
    key = jax.random.PRNGKey(0)
    kx, kp = jax.random.split(key)

    B, H, W = 2, 16, 16
    input_dim, output_dim, head_dim = 32, 32, 8

    x = jax.random.normal(kx, (B, H, W, input_dim), jnp.float32)

    # Fused window-partition path (ws = 8): plain and shifted windows, f32.
    for t in ("W", "SW"):
        mod = WMSA(input_dim, output_dim, head_dim, 8, t, kp)
        y = jax.block_until_ready(mod(x))
        y_ref = jax.block_until_ready(wmsa_reference(mod, x))
        np.testing.assert_allclose(np.asarray(y), np.asarray(y_ref),
                                   rtol=2e-2, atol=5e-3)

    # Fallback path (ws = 4 -> wrapper-side window rearrange), shifted, f32.
    mod4 = WMSA(input_dim, output_dim, head_dim, 4, "SW", kp)
    y = jax.block_until_ready(mod4(x))
    y_ref = jax.block_until_ready(wmsa_reference(mod4, x))
    np.testing.assert_allclose(np.asarray(y), np.asarray(y_ref),
                               rtol=2e-2, atol=5e-3)

    # bf16 MXU compute path (halves weight/activation bytes); accum stays f32.
    mod_bf16 = WMSA(input_dim, output_dim, head_dim, 8, "SW", kp,
                    compute_dtype=jnp.bfloat16)
    y = jax.block_until_ready(mod_bf16(x))
    y_ref = jax.block_until_ready(wmsa_reference(mod_bf16, x))
    np.testing.assert_allclose(np.asarray(y), np.asarray(y_ref),
                               rtol=1e-1, atol=2e-2)

    print("KERNEL_OK")
</pallas_src>

<mosaic_0001>
module attributes {stable_mosaic.version = 11 : i64} {
  func.func @_wmsa_kernel(%arg0: i32, %arg1: i32, %arg2: memref<2x16x1x8x32xf32, #tpu.memory_space<vmem>>, %arg3: memref<32x96xf32, #tpu.memory_space<vmem>>, %arg4: memref<1x96xf32, #tpu.memory_space<vmem>>, %arg5: memref<4x64x64xf32, #tpu.memory_space<vmem>>, %arg6: memref<32x32xf32, #tpu.memory_space<vmem>>, %arg7: memref<1x32xf32, #tpu.memory_space<vmem>>, %arg8: memref<2x16x1x8x32xf32, #tpu.memory_space<vmem>>) attributes {dimension_semantics = [#tpu.dimension_semantics<parallel>, #tpu.dimension_semantics<parallel>], iteration_bounds = array<i64: 1, 2>, scalar_prefetch = 0 : i64, scratch_operands = 0 : i64, tpu.core_type = #tpu.core_type<tc>, window_params = [{transform_indices = @transform_0, window_bounds = array<i64: 2, 16, 1, 8, 32>}, {pipeline_mode = #tpu.pipeline_mode<synchronous>, transform_indices = @transform_1, window_bounds = array<i64: 32, 96>}, {pipeline_mode = #tpu.pipeline_mode<synchronous>, transform_indices = @transform_2, window_bounds = array<i64: 1, 96>}, {pipeline_mode = #tpu.pipeline_mode<synchronous>, transform_indices = @transform_3, window_bounds = array<i64: 4, 64, 64>}, {pipeline_mode = #tpu.pipeline_mode<synchronous>, transform_indices = @transform_4, window_bounds = array<i64: 32, 32>}, {pipeline_mode = #tpu.pipeline_mode<synchronous>, transform_indices = @transform_5, window_bounds = array<i64: 1, 32>}, {transform_indices = @transform_6, window_bounds = array<i64: 2, 16, 1, 8, 32>}]} {
    %c0 = arith.constant 0 : index
    %c0_0 = arith.constant 0 : index
    %c0_1 = arith.constant 0 : index
    %c0_2 = arith.constant 0 : index
    %c0_3 = arith.constant 0 : index
    %0 = vector.load %arg2[%c0, %c0_0, %c0_1, %c0_2, %c0_3] : memref<2x16x1x8x32xf32, #tpu.memory_space<vmem>>, vector<2x16x1x8x32xf32>
    %1 = vector.shape_cast %0 : vector<2x16x1x8x32xf32> to vector<2x16x8x32xf32>
    %2 = vector.shape_cast %1 : vector<2x16x8x32xf32> to vector<256x32xf32>
    %c0_4 = arith.constant 0 : index
    %c0_5 = arith.constant 0 : index
    %3 = vector.load %arg3[%c0_4, %c0_5] : memref<32x96xf32, #tpu.memory_space<vmem>>, vector<32x96xf32>
    %cst = arith.constant dense<0.000000e+00> : vector<256x96xf32>
    %4 = tpu.matmul %2, %3, %cst {dimension_numbers = #tpu.dot_dimension_numbers<[1], [0], [0], [1], [0, 0, 1, 1], [], []>} : vector<256x32xf32>, vector<32x96xf32>, vector<256x96xf32> -> vector<256x96xf32>
    %c0_6 = arith.constant 0 : index
    %c0_7 = arith.constant 0 : index
    %5 = vector.load %arg4[%c0_6, %c0_7] : memref<1x96xf32, #tpu.memory_space<vmem>>, vector<1x96xf32>
    %6 = vector.broadcast %5 : vector<1x96xf32> to vector<256x96xf32>
    %7 = arith.addf %4, %6 : vector<256x96xf32>
    %8 = vector.shape_cast %7 : vector<256x96xf32> to vector<4x64x96xf32>
    %9 = vector.extract_strided_slice %8 {offsets = [0, 0, 0], sizes = [4, 64, 8], strides = [1, 1, 1]} : vector<4x64x96xf32> to vector<4x64x8xf32>
    %10 = vector.extract_strided_slice %8 {offsets = [0, 0, 8], sizes = [4, 64, 8], strides = [1, 1, 1]} : vector<4x64x96xf32> to vector<4x64x8xf32>
    %11 = vector.extract_strided_slice %8 {offsets = [0, 0, 16], sizes = [4, 64, 8], strides = [1, 1, 1]} : vector<4x64x96xf32> to vector<4x64x8xf32>
    %12 = vector.extract_strided_slice %8 {offsets = [0, 0, 24], sizes = [4, 64, 8], strides = [1, 1, 1]} : vector<4x64x96xf32> to vector<4x64x8xf32>
    %13 = vector.shape_cast %9 : vector<4x64x8xf32> to vector<1x4x64x8xf32>
    %14 = vector.shape_cast %10 : vector<4x64x8xf32> to vector<1x4x64x8xf32>
    %15 = vector.shape_cast %11 : vector<4x64x8xf32> to vector<1x4x64x8xf32>
    %16 = vector.shape_cast %12 : vector<4x64x8xf32> to vector<1x4x64x8xf32>
    %17 = tpu.concatenate %13, %14, %15, %16 in 0 : vector<1x4x64x8xf32>, vector<1x4x64x8xf32>, vector<1x4x64x8xf32>, vector<1x4x64x8xf32> -> vector<4x4x64x8xf32>
    %18 = vector.extract_strided_slice %8 {offsets = [0, 0, 32], sizes = [4, 64, 8], strides = [1, 1, 1]} : vector<4x64x96xf32> to vector<4x64x8xf32>
    %19 = vector.extract_strided_slice %8 {offsets = [0, 0, 40], sizes = [4, 64, 8], strides = [1, 1, 1]} : vector<4x64x96xf32> to vector<4x64x8xf32>
    %20 = vector.extract_strided_slice %8 {offsets = [0, 0, 48], sizes = [4, 64, 8], strides = [1, 1, 1]} : vector<4x64x96xf32> to vector<4x64x8xf32>
    %21 = vector.extract_strided_slice %8 {offsets = [0, 0, 56], sizes = [4, 64, 8], strides = [1, 1, 1]} : vector<4x64x96xf32> to vector<4x64x8xf32>
    %22 = vector.shape_cast %18 : vector<4x64x8xf32> to vector<1x4x64x8xf32>
    %23 = vector.shape_cast %19 : vector<4x64x8xf32> to vector<1x4x64x8xf32>
    %24 = vector.shape_cast %20 : vector<4x64x8xf32> to vector<1x4x64x8xf32>
    %25 = vector.shape_cast %21 : vector<4x64x8xf32> to vector<1x4x64x8xf32>
    %26 = tpu.concatenate %22, %23, %24, %25 in 0 : vector<1x4x64x8xf32>, vector<1x4x64x8xf32>, vector<1x4x64x8xf32>, vector<1x4x64x8xf32> -> vector<4x4x64x8xf32>
    %27 = vector.extract_strided_slice %8 {offsets = [0, 0, 64], sizes = [4, 64, 8], strides = [1, 1, 1]} : vector<4x64x96xf32> to vector<4x64x8xf32>
    %28 = vector.extract_strided_slice %8 {offsets = [0, 0, 72], sizes = [4, 64, 8], strides = [1, 1, 1]} : vector<4x64x96xf32> to vector<4x64x8xf32>
    %29 = vector.extract_strided_slice %8 {offsets = [0, 0, 80], sizes = [4, 64, 8], strides = [1, 1, 1]} : vector<4x64x96xf32> to vector<4x64x8xf32>
    %30 = vector.extract_strided_slice %8 {offsets = [0, 0, 88], sizes = [4, 64, 8], strides = [1, 1, 1]} : vector<4x64x96xf32> to vector<4x64x8xf32>
    %31 = vector.shape_cast %27 : vector<4x64x8xf32> to vector<1x4x64x8xf32>
    %32 = vector.shape_cast %28 : vector<4x64x8xf32> to vector<1x4x64x8xf32>
    %33 = vector.shape_cast %29 : vector<4x64x8xf32> to vector<1x4x64x8xf32>
    %34 = vector.shape_cast %30 : vector<4x64x8xf32> to vector<1x4x64x8xf32>
    %35 = tpu.concatenate %31, %32, %33, %34 in 0 : vector<1x4x64x8xf32>, vector<1x4x64x8xf32>, vector<1x4x64x8xf32>, vector<1x4x64x8xf32> -> vector<4x4x64x8xf32>
    %36 = vector.shape_cast %17 : vector<4x4x64x8xf32> to vector<16x64x8xf32>
    %37 = vector.shape_cast %26 : vector<4x4x64x8xf32> to vector<16x64x8xf32>
    %38 = vector.shape_cast %35 : vector<4x4x64x8xf32> to vector<16x64x8xf32>
    "tpu.trace_start"() <{level = 10 : i32, message = "bpd,bqd->bpq"}> : () -> ()
    %cst_8 = arith.constant dense<0.000000e+00> : vector<16x64x64xf32>
    %39 = tpu.matmul %36, %37, %cst_8 {dimension_numbers = #tpu.dot_dimension_numbers<[2], [2], [1], [1], [0, 0, 0, 1, 1, 1], [0], [0]>} : vector<16x64x8xf32>, vector<16x64x8xf32>, vector<16x64x64xf32> -> vector<16x64x64xf32>
    "tpu.trace_stop"() : () -> ()
    %40 = vector.shape_cast %39 : vector<16x64x64xf32> to vector<4x4x64x64xf32>
    %c0_9 = arith.constant 0 : index
    %c0_10 = arith.constant 0 : index
    %c0_11 = arith.constant 0 : index
    %41 = vector.load %arg5[%c0_9, %c0_10, %c0_11] : memref<4x64x64xf32, #tpu.memory_space<vmem>>, vector<4x64x64xf32>
    %42 = vector.shape_cast %41 : vector<4x64x64xf32> to vector<4x1x64x64xf32>
    %43 = vector.broadcast %42 : vector<4x1x64x64xf32> to vector<4x4x64x64xf32>
    %44 = arith.addf %40, %43 : vector<4x4x64x64xf32>
    %cst_12 = arith.constant dense<0xFF800000> : vector<4x4x64xf32>
    %45 = vector.multi_reduction <maximumf>, %44, %cst_12 [3] : vector<4x4x64x64xf32> to vector<4x4x64xf32>
    %46 = vector.shape_cast %45 : vector<4x4x64xf32> to vector<4x4x64x1xf32>
    %47 = vector.broadcast %46 : vector<4x4x64x1xf32> to vector<4x4x64x64xf32>
    %48 = arith.subf %44, %47 : vector<4x4x64x64xf32>
    %49 = math.exp %48 : vector<4x4x64x64xf32>
    %cst_13 = arith.constant dense<0.000000e+00> : vector<4x4x64xf32>
    %50 = vector.multi_reduction <add>, %49, %cst_13 [3] : vector<4x4x64x64xf32> to vector<4x4x64xf32>
    %51 = vector.shape_cast %50 : vector<4x4x64xf32> to vector<4x4x64x1xf32>
    %52 = tpu.reciprocal %51 {approx = true} : vector<4x4x64x1xf32> -> vector<4x4x64x1xf32>
    %53 = vector.broadcast %52 : vector<4x4x64x1xf32> to vector<4x4x64x64xf32>
    %54 = arith.mulf %49, %53 : vector<4x4x64x64xf32>
    %55 = vector.shape_cast %54 : vector<4x4x64x64xf32> to vector<16x64x64xf32>
    "tpu.trace_start"() <{level = 10 : i32, message = "bpq,bqd->bpd"}> : () -> ()
    %cst_14 = arith.constant dense<0.000000e+00> : vector<16x64x8xf32>
    %56 = tpu.matmul %55, %38, %cst_14 {dimension_numbers = #tpu.dot_dimension_numbers<[2], [1], [1], [2], [0, 0, 0, 1, 1, 2], [0], [0]>} : vector<16x64x64xf32>, vector<16x64x8xf32>, vector<16x64x8xf32> -> vector<16x64x8xf32>
    "tpu.trace_stop"() : () -> ()
    %57 = vector.shape_cast %56 : vector<16x64x8xf32> to vector<4x4x64x8xf32>
    %58 = vector.extract_strided_slice %57 {offsets = [0, 0, 0, 0], sizes = [1, 4, 64, 8], strides = [1, 1, 1, 1]} : vector<4x4x64x8xf32> to vector<1x4x64x8xf32>
    %59 = vector.shape_cast %58 : vector<1x4x64x8xf32> to vector<4x64x8xf32>
    %60 = vector.extract_strided_slice %57 {offsets = [1, 0, 0, 0], sizes = [1, 4, 64, 8], strides = [1, 1, 1, 1]} : vector<4x4x64x8xf32> to vector<1x4x64x8xf32>
    %61 = vector.shape_cast %60 : vector<1x4x64x8xf32> to vector<4x64x8xf32>
    %62 = vector.extract_strided_slice %57 {offsets = [2, 0, 0, 0], sizes = [1, 4, 64, 8], strides = [1, 1, 1, 1]} : vector<4x4x64x8xf32> to vector<1x4x64x8xf32>
    %63 = vector.shape_cast %62 : vector<1x4x64x8xf32> to vector<4x64x8xf32>
    %64 = vector.extract_strided_slice %57 {offsets = [3, 0, 0, 0], sizes = [1, 4, 64, 8], strides = [1, 1, 1, 1]} : vector<4x4x64x8xf32> to vector<1x4x64x8xf32>
    %65 = vector.shape_cast %64 : vector<1x4x64x8xf32> to vector<4x64x8xf32>
    %66 = tpu.concatenate %59, %61, %63, %65 in 2 : vector<4x64x8xf32>, vector<4x64x8xf32>, vector<4x64x8xf32>, vector<4x64x8xf32> -> vector<4x64x32xf32>
    %67 = vector.shape_cast %66 : vector<4x64x32xf32> to vector<256x32xf32>
    %c0_15 = arith.constant 0 : index
    %c0_16 = arith.constant 0 : index
    %68 = vector.load %arg6[%c0_15, %c0_16] : memref<32x32xf32, #tpu.memory_space<vmem>>, vector<32x32xf32>
    %cst_17 = arith.constant dense<0.000000e+00> : vector<256x32xf32>
    %69 = tpu.matmul %67, %68, %cst_17 {dimension_numbers = #tpu.dot_dimension_numbers<[1], [0], [0], [1], [0, 0, 1, 1], [], []>} : vector<256x32xf32>, vector<32x32xf32>, vector<256x32xf32> -> vector<256x32xf32>
    %c0_18 = arith.constant 0 : index
    %c0_19 = arith.constant 0 : index
    %70 = vector.load %arg7[%c0_18, %c0_19] : memref<1x32xf32, #tpu.memory_space<vmem>>, vector<1x32xf32>
    %71 = vector.broadcast %70 : vector<1x32xf32> to vector<256x32xf32>
    %72 = arith.addf %69, %71 : vector<256x32xf32>
    %73 = vector.shape_cast %72 : vector<256x32xf32> to vector<2x16x8x32xf32>
    %c0_20 = arith.constant 0 : index
    %c0_21 = arith.constant 0 : index
    %c0_22 = arith.constant 0 : index
    %c0_23 = arith.constant 0 : index
    %c0_24 = arith.constant 0 : index
    %74 = vector.load %arg8[%c0_20, %c0_21, %c0_22, %c0_23, %c0_24] : memref<2x16x1x8x32xf32, #tpu.memory_space<vmem>>, vector<2x16x1x8x32xf32>
    %75 = vector.shape_cast %74 : vector<2x16x1x8x32xf32> to vector<2x16x8x32xf32>
    %76 = vector.shape_cast %73 : vector<2x16x8x32xf32> to vector<2x16x1x8x32xf32>
    tpu.vector_store %arg8[%c0_20, %c0_21, %c0_22, %c0_23, %c0_24], %76 {strides = array<i32>} : memref<2x16x1x8x32xf32, #tpu.memory_space<vmem>>, vector<2x16x1x8x32xf32>,
    return
  }
  func.func @transform_0(%arg0: i32, %arg1: i32) -> (i32, i32, i32, i32, i32) {
    %c0_i32 = arith.constant 0 : i32
    %c0_i32_0 = arith.constant 0 : i32
    %c0_i32_1 = arith.constant 0 : i32
    %c0_i32_2 = arith.constant 0 : i32
    return %arg0, %c0_i32, %arg1, %c0_i32_0, %c0_i32_1 : i32, i32, i32, i32, i32
  }
  func.func @transform_1(%arg0: i32, %arg1: i32) -> (i32, i32) {
    %c0_i32 = arith.constant 0 : i32
    %c0_i32_0 = arith.constant 0 : i32
    %c0_i32_1 = arith.constant 0 : i32
    return %c0_i32, %c0_i32_0 : i32, i32
  }
  func.func @transform_2(%arg0: i32, %arg1: i32) -> (i32, i32) {
    %c0_i32 = arith.constant 0 : i32
    %c0_i32_0 = arith.constant 0 : i32
    %c0_i32_1 = arith.constant 0 : i32
    return %c0_i32, %c0_i32_0 : i32, i32
  }
  func.func @transform_3(%arg0: i32, %arg1: i32) -> (i32, i32, i32) {
    %c0_i32 = arith.constant 0 : i32
    %c0_i32_0 = arith.constant 0 : i32
    %c0_i32_1 = arith.constant 0 : i32
    %c0_i32_2 = arith.constant 0 : i32
    return %c0_i32, %c0_i32_0, %c0_i32_1 : i32, i32, i32
  }
  func.func @transform_4(%arg0: i32, %arg1: i32) -> (i32, i32) {
    %c0_i32 = arith.constant 0 : i32
    %c0_i32_0 = arith.constant 0 : i32
    %c0_i32_1 = arith.constant 0 : i32
    return %c0_i32, %c0_i32_0 : i32, i32
  }
  func.func @transform_5(%arg0: i32, %arg1: i32) -> (i32, i32) {
    %c0_i32 = arith.constant 0 : i32
    %c0_i32_0 = arith.constant 0 : i32
    %c0_i32_1 = arith.constant 0 : i32
    return %c0_i32, %c0_i32_0 : i32, i32
  }
  func.func @transform_6(%arg0: i32, %arg1: i32) -> (i32, i32, i32, i32, i32) {
    %c0_i32 = arith.constant 0 : i32
    %c0_i32_0 = arith.constant 0 : i32
    %c0_i32_1 = arith.constant 0 : i32
    %c0_i32_2 = arith.constant 0 : i32
    return %arg0, %c0_i32, %arg1, %c0_i32_0, %c0_i32_1 : i32, i32, i32, i32, i32
  }
}

</mosaic_0001>

<bundles_post_ra>
// kernel: _forward_impl.1
= control target key start
LH: loop header
LB: loop body
LE: loop exit
PB: predicated region body
PF: predicated region fallthrough
CT: control target
= control target key end

     0   :  { %s12673_s0 = inlined_call_operand.hbm [shape: f32[2,16,2,8,32], index: 0, kind: input, shape index: {}]   ;;  %s12674_s1 = inlined_call_operand.hbm [shape: f32[32,96], index: 1, kind: input, shape index: {}]   ;;  %s12675_s2 = inlined_call_operand.vmem [shape: f32[1,96], index: 2, kind: input, shape index: {}]   ;;  %s12676_s3 = inlined_call_operand.hbm [shape: f32[4,64,64], index: 3, kind: input, shape index: {}]   ;;  %s12677_s4 = inlined_call_operand.hbm [shape: f32[32,32], index: 4, kind: input, shape index: {}]   ;;  %s12678_s5 = inlined_call_operand.vmem [shape: f32[1,32], index: 5, kind: input, shape index: {}]   ;;  %s12679_s6 = inlined_call_operand.hbm [shape: f32[2,16,2,8,32], index: 6, kind: output, shape index: {}]  }
   0x1   :  { %13060 = sst [smem:[#allocation326_spill]] %s12674_s1 }
   0x2   :  { %13061 = sst [smem:[#allocation327_spill]] %s12676_s3 }
   0x3   :  { %13062 = sst [smem:[#allocation328_spill]] %s12677_s4 }
   0x4   :  { %11 = vsyncpa [#allocation3], 0 }
   0x5   :  { %13 = vsyncpa [#allocation3 + $0x1], 0 }
   0x6   :  { %14 = vsyncpa [#allocation6], 0 }
   0x7   :  { %15 = vsyncpa [#allocation9], 0 }
   0x8   :  { %16 = vsyncpa [#allocation4], 0 }
   0x9   :  { %18 = vsyncpa [#allocation4 + $0x1], 0  ;;  %s7787_s21 = smov 0   ;;  %s7789_s22 = smov 0  }
   0xa   :  { %s7791_s23 = smov 0   ;;  %s7793_s24 = smov 0  }
   0xb   :  { %s7795_s25 = smov 0   ;;  %s7797_s26 = smov 0  }
   0xc LB: > { %s6097_s27 = sadd.s32 4294967295, %s7734_s26   ;;  %s6098_s28 = sadd.s32 4294967294, %s7734_s26   ;;  %s7734_s26 = sphi %s7797_s26, %s24_s26   ;;  %s7730_s25 = sphi %s7795_s25, %s14145_s25   ;;  %s7726_s24 = sphi %s7793_s24, %s14144_s24   ;;  %s7722_s23 = sphi %s7791_s23, %s14143_s23   ;;  %s7718_s22 = sphi %s7789_s22, %s14142_s22   ;;  %s7714_s21 = sphi %s7787_s21, %s14141_s21  }
   0xd   : > { %p58_p0 = scmp.ne.s32.totalorder %s7718_s22, %s7714_s21  ;;  %p7821_p1 = scmp.eq.s32.totalorder %s6097_s27, 0 }
   0xe   : > { %p7825_p2 = scmp.eq.s32.totalorder %s6097_s27, 1  ;;  %p195_p3 = scmp.eq.s32.totalorder %s6098_s28, 1 }
   0xf   : > { %p7831_p4 = por %p7821_p1, %p58_p0  ;;  %p6099_p5 = scmp.ge.s32.totalorder %s7734_s26, 1 }
  0x10   : > { %p7836_p6 = por %p195_p3, %p58_p0  ;;  %p202_p7 = scmp.lt.s32.totalorder %s7734_s26, 3 }
  0x11   : > { %s13067_s1 = sld [smem:[#allocation326_spill]]  ;;  %s7736_s13 = smov [#allocation5]  }
  0x12   : > { %p7844_p8 = pnand %p6099_p5, %p202_p7  ;;  %s215_s14 = sshll.u32 %s7736_s13, 4  ;;  %s216_s14 = int_to_ptr.vmem [resolvable:$true] %s215_s14 }
  0x13   : > { %p6103_p11 = scmp.ge.s32.totalorder %s7734_s26, 2  ;;  %s13070_s3 = sld [smem:[#allocation327_spill]] }
  0x14   : > { %p6600_p9 = pneg %p7844_p8  ;;  %s12680_s19 = smov 128  }
  0x15   : > { %s12681_s20 = smov 8   ;;  %s7739_s27 = smov [#allocation7]  }
  0x16   : > { %p7852_p10 = pnand %p6600_p9, %p7821_p1  ;;  %s232_s28 = sshll.u32 %s7739_s27, 4  ;;  %s233_s28 = int_to_ptr.vmem [resolvable:$true] %s232_s28 }
  0x17   : > { %s213_s11 = sshll.u32 %s13067_s1, 4  ;;  %s13071_s4 = sld [smem:[#allocation328_spill]]  ;;  %s214_s11 = int_to_ptr.hbm [resolvable:$true] %s213_s11 }
  0x18   : > { %6603 = dma.hbm_to_vmem [thread:$0]  (!%p7852_p10), %s214_s11, 512, %s216_s14, [#allocation6], %s12680_s19, %s12680_s19, %s12681_s20  }
  0x19   : > { %s230_s18 = sshll.u32 %s13070_s3, 4  ;;  %s7740_s16 = smov [#allocation8]   ;;  %s231_s18 = int_to_ptr.hbm [resolvable:$true] %s230_s18 }
  0x1a   : > { %6606 = dma.hbm_to_vmem [thread:$0]  (!%p7852_p10), %s231_s18, 4096, %s233_s28, [#allocation6], %s12680_s19, %s12680_s19, %s12681_s20  }
  0x1b   : > { %s246_s17 = sshll.u32 %s7740_s16, 4  ;;  %s33_s11 = sadd.s32 1, %s7730_s25  ;;  %s247_s17 = int_to_ptr.vmem [resolvable:$true] %s246_s17 }
  0x1c   : > { %p34_p12 = scmp.ge.s32.totalorder %s33_s11, 2  ;;  %s45_s14 = sadd.s32 1, %s7722_s23 }
  0x1d   : > { %s244_s13 = sshll.u32 %s13071_s4, 4  ;;  %p52_p13 = scmp.ne.s32.totalorder %s7722_s23, %s7718_s22  ;;  %s245_s13 = int_to_ptr.hbm [resolvable:$true] %s244_s13 }
  0x1e   : > { %6609 = dma.hbm_to_vmem [thread:$0]  (!%p7852_p10), %s245_s13, 512, %s247_s17, [#allocation9], %s12680_s19, %s12680_s19, %s12681_s20  }
  0x1f   : > { %p53_p0 = scmp.eq.s32.totalorder %s7734_s26, 0  ;;  %s14147_s11 = smov (%p34_p12, %s33_s11), 0 }
  0x20   : > { %13072 = sst [smem:[#allocation15_spill]] %s14147_s11  ;;  %p7891_p5 = por %p7825_p2, %p52_p13 }
  0x21   : > { %p7885_p3 = por %p53_p0, %p52_p13  ;;  %s41_s27 = ssub.s32 %s7730_s25, %s14147_s11 }
  0x22   : > { %p6621_p7 = scmp.lt.s32.totalorder %s7734_s26, 2  ;;  %p43_p9 = scmp.eq.s32.totalorder %s41_s27, 0 }
  0x23   : > { %s263_s28 = sand.u32 1, %s7722_s23   ;;  %s6105_s13 = sshll.u32 %s7730_s25, 3 }
  0x24   : > { %s6104_s9 = sshll.u32 %s263_s28, 8  ;;  %s274_s19 = scalar_lea.hbm %s12673_s0, %s6105_s13 }
  0x25   : > { %s7900_s10 = scalar_select %p43_p9, %s7722_s23, %s45_s14  }
  0x26   : > { %s267_s20 = scalar_lea.vmem [#allocation2], %s6104_s9  ;;  %s275_s30 = sshll.u32 %s274_s19, 4  ;;  %s276_s30 = int_to_ptr.hbm [resolvable:$true] %s275_s30 }
  0x27   : > { %s277_s1 = sshll.u32 %s267_s20, 4  ;;  %p6611_p2 = pnand %p6621_p7, %p7885_p3  ;;  %s278_s1 = int_to_ptr.vmem [resolvable:$true] %s277_s1 }
  0x28   : > { %s264_s3 = scalar_lea.sflag [#allocation3], %s263_s28  ;;  %s7741_s4 = smov 256  }
  0x29   : > { %s13075_s11 = smov 8   ;;  %s13076_s27 = smov 128  }
  0x2a   : > { %6613 = dma.hbm_to_vmem [thread:$0]  (!%p6611_p2), %s276_s30, 4096, %s278_s1, %s264_s3, %s7741_s4, %s13076_s27, %s13075_s11  }
  0x2b   : > { %289 = sbr.rel (%p7844_p8) target bundleno = 2629 (0xa45), region = 44 }
  0x30   : > { %s7913_s14 = sand.u32 1, %s7718_s22  }
  0x31   : > { %s6107_s19 = sshll.u32 %s7913_s14, 8  ;;  %s292_s20 = scalar_lea.sflag [#allocation3], %s7913_s14 }
  0x32   : > { %s7919_s18 = scalar_lea.vmem [#allocation2], %s6107_s19 }
  0x33   : > { %7697 = dma.done.wait (%p7831_p4), %s292_s20, 4096  }
  0x34   : > { %7699 = vsyncadd (%p7831_p4), %s292_s20, 4294963200 }
  0x35   : > { %7701 = dma.done.wait (%p7821_p1), [#allocation6], 4608  }
  0x36   : > { %7703 = vsyncadd (%p7821_p1), [#allocation6], 4294962688 }
  0x37   : > { %7705 = dma.done.wait (%p7821_p1), [#allocation9], 512  }
  0x38   : > { %7707 = vsyncadd (%p7821_p1), [#allocation9], 4294966784  ;;  %v377_v0 = vld [vmem:[#allocation5 + $0x18] sm:$0xff]  ;;  %v376_v1 = vld [vmem:[#allocation5 + $0x10] sm:$0xff]  ;;  %vm382_vm0 = vcmask 261120   ;;  %s7742_s4 = smov 120  }
  0x39   : > { %491 = vmatpush.msra.mxu0 %v377_v0  ;;  %6564 = vmatpush.msra.mxu1 %v377_v0  ;;  %v375_v2 = vld [vmem:[#allocation5 + $0x8] sm:$0xff]  ;;  %v374_v3 = vld [vmem:[#allocation5] sm:$0xff]  ;;  %v352_v5 = vld [vmem:[%s7919_s18 + $0x50] sm:$0xff]  ;;  %s7743_s29 = smov 112   ;;  %s7744_s7 = smov 104   ;;  %vm832_vm1 = vcmask 64512  }
  0x3a   : > { %6565 = vmatpush.msra.mxu2 %v377_v0  ;;  %6566 = vmatpush.msra.mxu3 %v377_v0  ;;  %v342_v4 = vld [vmem:[%s7919_s18] sm:$0xff]  ;;  %v361_v6 = vld [vmem:[%s7919_s18 + $0x98] sm:$0xff]  ;;  %v343_v8 = vld [vmem:[%s7919_s18 + $0x8] sm:$0xff]  ;;  %s7745_s12 = smov 96   ;;  %vm2401_vm2 = vcmask 523264   ;;  %s7746_s11 = smov 64  }
  0x3b   : > { %492 = vmatpush.msra.mxu0 %v376_v1  ;;  %6567 = vmatpush.msra.mxu1 %v376_v1  ;;  %v369_v7 = vld [vmem:[%s7919_s18 + $0xd8] sm:$0xff]  ;;  %v362_v10 = vld [vmem:[%s7919_s18 + $0xa0] sm:$0xff]  ;;  %v344_v12 = vld [vmem:[%s7919_s18 + $0x10] sm:$0xff]  ;;  %s7747_s28 = smov 8   ;;  %s7748_s9 = smov 16   ;;  %vm5650_vm3 = vcmask 130048  }
  0x3c   : > { %6568 = vmatpush.msra.mxu2 %v376_v1  ;;  %6569 = vmatpush.msra.mxu3 %v376_v1  ;;  %v353_v9 = vld [vmem:[%s7919_s18 + $0x58] sm:$0xff]  ;;  %v370_v11 = vld [vmem:[%s7919_s18 + $0xe0] sm:$0xff]  ;;  %v363_v14 = vld [vmem:[%s7919_s18 + $0xa8] sm:$0xff]  ;;  %s7749_s13 = smov 24   ;;  %vm5683_vm4 = vcmask 195584   ;;  %s12257_s30 = scalar_lea.vmem [#allocation10], %s6107_s19 }
  0x3d   : > { %493 = vmatpush.msra.mxu0 %v375_v2  ;;  %6570 = vmatpush.msra.mxu1 %v375_v2  ;;  %v354_v13 = vld [vmem:[%s7919_s18 + $0x60] sm:$0xff]  ;;  %v371_v15 = vld [vmem:[%s7919_s18 + $0xe8] sm:$0xff]  ;;  %v345_v16 = vld [vmem:[%s7919_s18 + $0x18] sm:$0xff]  ;;  %s6561_s27 = sshll.u32 %s7726_s24, 3  ;;  %s5980_s1 = sshll.u32 %s12257_s30, 4  ;;  %s5981_s1 = int_to_ptr.vmem [resolvable:$true] %s5980_s1 }
  0x3e   : > { %6571 = vmatpush.msra.mxu2 %v375_v2  ;;  %6572 = vmatpush.msra.mxu3 %v375_v2  ;;  %v355_v17 = vld [vmem:[%s7919_s18 + $0x68] sm:$0xff]  ;;  %v372_v18 = vld [vmem:[%s7919_s18 + $0xf0] sm:$0xff]  ;;  %v346_v20 = vld [vmem:[%s7919_s18 + $0x20] sm:$0xff] }
  0x3f   : > { %494 = vmatpush.msra.mxu0 %v374_v3  ;;  %6573 = vmatpush.msra.mxu1 %v374_v3  ;;  %v364_v19 = vld [vmem:[%s7919_s18 + $0xb0] sm:$0xff]  ;;  %v365_v22 = vld [vmem:[%s7919_s18 + $0xb8] sm:$0xff]  ;;  %v347_v24 = vld [vmem:[%s7919_s18 + $0x28] sm:$0xff] }
  0x40   : > { %6112 = vmatmul.msk.f32.vlgmr.msra.gmra.mxu0 %vm382_vm0, %v342_v4  ;;  %6122 = vmatmul.msk.f32.vlgmr.msra.gmra.mxu1 %vm382_vm0, %v352_v5  ;;  %v356_v21 = vld [vmem:[%s7919_s18 + $0x70] sm:$0xff]  ;;  %v373_v23 = vld [vmem:[%s7919_s18 + $0xf8] sm:$0xff]  ;;  %v350_v27 = vld [vmem:[%s7919_s18 + $0x40] sm:$0xff] }
  0x41   : > { %6574 = vmatpush.msra.mxu2 %v374_v3  ;;  %6575 = vmatpush.msra.mxu3 %v374_v3  ;;  %v348_v25 = vld [vmem:[%s7919_s18 + $0x30] sm:$0xff]  ;;  %v349_v26 = vld [vmem:[%s7919_s18 + $0x38] sm:$0xff]  ;;  %v366_v29 = vld [vmem:[%s7919_s18 + $0xc0] sm:$0xff] }
  0x42   : > { %6131 = vmatmul.msk.f32.vlgmr.msra.gmra.mxu2 %vm382_vm0, %v361_v6  ;;  %6139 = vmatmul.msk.f32.vlgmr.msra.gmra.mxu3 %vm382_vm0, %v369_v7  ;;  %v357_v28 = vld [vmem:[%s7919_s18 + $0x78] sm:$0xff]  ;;  %v358_v30 = vld [vmem:[%s7919_s18 + $0x80] sm:$0xff]  ;;  %v351_v31 = vld [vmem:[%s7919_s18 + $0x48] sm:$0xff] }
  0x43   : > { %v7992_v32 = vld [vmem:[%s12675_s2] ss:$0 sm:$0xff]  ;;  %v367_v37 = vld [vmem:[%s7919_s18 + $0xc8] sm:$0xff]  ;;  %v368_v44 = vld [vmem:[%s7919_s18 + $0xd0] sm:$0xff] }
  0x44   : > { %v359_v38 = vld [vmem:[%s7919_s18 + $0x88] sm:$0xff]  ;;  %v360_v47 = vld [vmem:[%s7919_s18 + $0x90] sm:$0xff]  ;;  %s5979_s18 = scalar_lea.hbm %s12679_s6, %s6561_s27 }
  0x45   : > { %s5982_s3 = sshll.u32 %s5979_s18, 4  ;;  %s5983_s3 = int_to_ptr.hbm [resolvable:$true] %s5982_s3 }
  0x48   : > { %6113 = vmatmul.msk.f32.gmra.mxu0 %vm382_vm0, %v343_v8  ;;  %6123 = vmatmul.msk.f32.gmra.mxu1 %vm382_vm0, %v353_v9 }
  0x4a   : > { %6132 = vmatmul.msk.f32.gmra.mxu2 %vm382_vm0, %v362_v10  ;;  %6140 = vmatmul.msk.f32.gmra.mxu3 %vm382_vm0, %v370_v11 }
  0x50   : > { %6114 = vmatmul.msk.f32.gmra.mxu0 %vm382_vm0, %v344_v12  ;;  %6124 = vmatmul.msk.f32.gmra.mxu1 %vm382_vm0, %v354_v13 }
  0x52   : > { %6133 = vmatmul.msk.f32.gmra.mxu2 %vm382_vm0, %v363_v14  ;;  %6141 = vmatmul.msk.f32.gmra.mxu3 %vm382_vm0, %v371_v15 }
  0x58   : > { %6115 = vmatmul.msk.f32.gmra.mxu0 %vm382_vm0, %v345_v16  ;;  %6125 = vmatmul.msk.f32.gmra.mxu1 %vm382_vm0, %v355_v17 }
  0x5a   : > { %6142 = vmatmul.msk.f32.gmra.mxu3 %vm382_vm0, %v372_v18  ;;  %6134 = vmatmul.msk.f32.gmra.mxu2 %vm382_vm0, %v364_v19 }
  0x60   : > { %6116 = vmatmul.msk.f32.gmra.mxu0 %vm382_vm0, %v346_v20  ;;  %6126 = vmatmul.msk.f32.gmra.mxu1 %vm382_vm0, %v356_v21 }
  0x62   : > { %6135 = vmatmul.msk.f32.gmra.mxu2 %vm382_vm0, %v365_v22  ;;  %6143 = vmatmul.msk.f32.gmra.mxu3 %vm382_vm0, %v373_v23 }
  0x68   : > { %6117 = vmatmul.msk.f32.gmra.mxu0 %vm382_vm0, %v347_v24  ;;  %6127 = vmatmul.msk.f32.gmra.mxu1 %vm382_vm0, %v357_v28 }
  0x6a   : > { %6136 = vmatmul.msk.f32.gmra.mxu2 %vm382_vm0, %v366_v29 }
  0x70   : > { %6118 = vmatmul.msk.f32.gmra.mxu0 %vm382_vm0, %v348_v25  ;;  %6128 = vmatmul.msk.f32.gmra.mxu1 %vm382_vm0, %v358_v30 }
  0x72   : > { %6137 = vmatmul.msk.f32.gmra.mxu2 %vm382_vm0, %v367_v37 }
  0x78   : > { %6119 = vmatmul.msk.f32.gmra.mxu0 %vm382_vm0, %v349_v26  ;;  %6129 = vmatmul.msk.f32.gmra.mxu1 %vm382_vm0, %v359_v38 }
  0x7a   : > { %6138 = vmatmul.msk.f32.gmra.mxu2 %vm382_vm0, %v368_v44 }
  0x80   : > { %6120 = vmatmul.msk.f32.gmra.mxu0 %vm382_vm0, %v350_v27  ;;  %6130 = vmatmul.msk.f32.gmra.mxu1 %vm382_vm0, %v360_v47 }
  0x88   : > { %6121 = vmatmul.msk.f32.gmra.mxu0 %vm382_vm0, %v351_v31 }
  0xbd   : > { %v496_v33 = vpop.f32.mrf.mxu0  ;;  %v526_v34 = vpop.f32.mrf.mxu1 }
  0xbe   : > { %v7995_v35 = vadd.f32 %v7992_v32, %v496_v33  ;;  %v7998_v36 = vadd.f32 %v7992_v32, %v526_v34 }
  0xc0   : > { %13077 = vst [vmem:[#allocation16_spill] sm:$0xff] %v7995_v35  ;;  %644 = vrot.lane.b32.xlu1 %v7998_v36, %s7742_s4  ;;  %688 = vrot.lane.b32.xlu2 %v7995_v35, %s7743_s29 }
  0xc1   : > { %13078 = vst [vmem:[#allocation17_spill] sm:$0xff] %v7998_v36  ;;  %624 = vrot.lane.b32.xlu0 %v7995_v35, %s7742_s4 }
  0xc5   : > { %v553_v39 = vpop.f32.mrf.mxu2  ;;  %v577_v40 = vpop.f32.mrf.mxu3 }
  0xc6   : > { %v8017_v41 = vadd.f32 %v7992_v32, %v553_v39  ;;  %v8020_v42 = vadd.f32 %v7992_v32, %v577_v40  ;;  %v529_v43 = vpop.f32.mrf.mxu1  ;;  %v499_v48 = vpop.f32.mrf.mxu0 }
  0xc7   : > { %v8031_v45 = vadd.f32 %v7992_v32, %v529_v43  ;;  %v8045_v50 = vadd.f32 %v7992_v32, %v499_v48 }
  0xc8   : > { %752 = vrot.lane.b32.xlu1 %v7995_v35, %s7744_s7  ;;  %772 = vrot.lane.b32.xlu2 %v7998_v36, %s7744_s7  ;;  %13079 = vst [vmem:[#allocation18_spill] sm:$0xff] %v8017_v41 }
  0xc9   : > { %708 = vrot.lane.b32.xlu0 %v7998_v36, %s7743_s29  ;;  %13080 = vst [vmem:[#allocation19_spill] sm:$0xff] %v8020_v42 }
  0xca   : > { %13081 = vst [vmem:[#allocation20_spill] sm:$0xff] %v8031_v45 }
  0xcb   : > { %13083 = vst [vmem:[#allocation22_spill] sm:$0xff] %v8045_v50 }
  0xcd   : > { %v580_v46 = vpop.f32.mrf.mxu3  ;;  %v556_v51 = vpop.f32.mrf.mxu2 }
  0xce   : > { %v8042_v49 = vadd.f32 %v7992_v32, %v580_v46  ;;  %v8054_v52 = vadd.f32 %v7992_v32, %v556_v51  ;;  %v532_v53 = vpop.f32.mrf.mxu1  ;;  %v502_v54 = vpop.f32.mrf.mxu0 }
  0xcf   : > { %v8063_v55 = vadd.f32 %v7992_v32, %v502_v54  ;;  %v8066_v56 = vadd.f32 %v7992_v32, %v532_v53 }
  0xd0   : > { %662 = vrot.lane.b32.xlu1 %v8017_v41, %s7742_s4  ;;  %742 = vrot.lane.b32.xlu2 %v8020_v42, %s7743_s29  ;;  %13082 = vst [vmem:[#allocation21_spill] sm:$0xff] %v8042_v49 }
  0xd1   : > { %678 = vrot.lane.b32.xlu0 %v8020_v42, %s7742_s4  ;;  %13084 = vst [vmem:[#allocation23_spill] sm:$0xff] %v8054_v52 }
  0xd2   : > { %13085 = vst [vmem:[#allocation24_spill] sm:$0xff] %v8063_v55 }
  0xd3   : > { %13086 = vst [vmem:[#allocation25_spill] sm:$0xff] %v8066_v56 }
  0xd5   : > { %v583_v57 = vpop.f32.mrf.mxu3  ;;  %v559_v59 = vpop.f32.mrf.mxu2 }
  0xd6   : > { %v8075_v58 = vadd.f32 %v7992_v32, %v583_v57  ;;  %v8084_v60 = vadd.f32 %v7992_v32, %v559_v59  ;;  %v505_v61 = vpop.f32.mrf.mxu0  ;;  %v535_v63 = vpop.f32.mrf.mxu1 }
  0xd7   : > { %v8093_v62 = vadd.f32 %v7992_v32, %v505_v61  ;;  %v8102_v0 = vadd.f32 %v7992_v32, %v535_v63 }
  0xd8   : > { %710 = vrot.lane.b32.xlu1 %v8031_v45, %s7743_s29  ;;  %646 = vrot.lane.b32.xlu2 %v8031_v45, %s7742_s4  ;;  %13087 = vst [vmem:[#allocation26_spill] sm:$0xff] %v8075_v58 }
  0xd9   : > { %726 = vrot.lane.b32.xlu0 %v8017_v41, %s7743_s29  ;;  %13088 = vst [vmem:[#allocation27_spill] sm:$0xff] %v8084_v60 }
  0xda   : > { %13089 = vst [vmem:[#allocation28_spill] sm:$0xff] %v8093_v62 }
  0xdb   : > { %13090 = vst [vmem:[#allocation29_spill] sm:$0xff] %v8102_v0 }
  0xdd   : > { %v586_v1 = vpop.f32.mrf.mxu3  ;;  %v562_v8 = vpop.f32.mrf.mxu2 }
  0xde   : > { %v8111_v2 = vadd.f32 %v7992_v32, %v586_v1  ;;  %v508_v4 = vpop.f32.mrf.mxu0  ;;  %v538_v6 = vpop.f32.mrf.mxu1  ;;  %v8133_v9 = vadd.f32 %v7992_v32, %v562_v8 }
  0xdf   : > { %v8122_v5 = vadd.f32 %v7992_v32, %v508_v4  ;;  %v8136_v10 = vadd.f32 %v7992_v32, %v538_v6 }
  0xe0   : > { %680 = vrot.lane.b32.xlu1 %v8042_v49, %s7742_s4  ;;  %754 = vrot.lane.b32.xlu2 %v8045_v50, %s7744_s7  ;;  %13091 = vst [vmem:[#allocation30_spill] sm:$0xff] %v8111_v2 }
  0xe1   : > { %626 = vrot.lane.b32.xlu0 %v8045_v50, %s7742_s4  ;;  %13093 = vst [vmem:[#allocation32_spill] sm:$0xff] %v8122_v5 }
  0xe2   : > { %13095 = vst [vmem:[#allocation34_spill] sm:$0xff] %v8133_v9 }
  0xe3   : > { %13096 = vst [vmem:[#allocation35_spill] sm:$0xff] %v8136_v10 }
  0xe5   : > { %v589_v12 = vpop.f32.mrf.mxu3  ;;  %v565_v15 = vpop.f32.mrf.mxu2 }
  0xe6   : > { %v8159_v17 = vadd.f32 %v7992_v32, %v589_v12  ;;  %v8162_v18 = vadd.f32 %v7992_v32, %v565_v15  ;;  %v511_v22 = vpop.f32.mrf.mxu0  ;;  %v541_v24 = vpop.f32.mrf.mxu1 }
  0xe7   : > { %v8177_v23 = vadd.f32 %v7992_v32, %v511_v22  ;;  %v8192_v28 = vadd.f32 %v7992_v32, %v541_v24 }
  0xe8   : > { %728 = vrot.lane.b32.xlu1 %v8054_v52, %s7743_s29  ;;  %664 = vrot.lane.b32.xlu2 %v8054_v52, %s7742_s4  ;;  %13101 = vst [vmem:[#allocation40_spill] sm:$0xff] %v8159_v17 }
  0xe9   : > { %690 = vrot.lane.b32.xlu0 %v8045_v50, %s7743_s29  ;;  %13102 = vst [vmem:[#allocation41_spill] sm:$0xff] %v8162_v18 }
  0xea   : > { %13106 = vst [vmem:[#allocation45_spill] sm:$0xff] %v8177_v23 }
  0xeb   : > { %13110 = vst [vmem:[#allocation49_spill] sm:$0xff] %v8192_v28 }
  0xed   : > { %v568_v29 = vpop.f32.mrf.mxu2 }
  0xee   : > { %v8207_v34 = vadd.f32 %v7992_v32, %v568_v29  ;;  %v544_v37 = vpop.f32.mrf.mxu1  ;;  %v514_v40 = vpop.f32.mrf.mxu0 }
  0xef   : > { %v8222_v44 = vadd.f32 %v7992_v32, %v514_v40  ;;  %v8225_v46 = vadd.f32 %v7992_v32, %v544_v37 }
  0xf0   : > { %628 = vrot.lane.b32.xlu1 %v8063_v55, %s7742_s4  ;;  %712 = vrot.lane.b32.xlu2 %v8066_v56, %s7743_s29  ;;  %13114 = vst [vmem:[#allocation53_spill] sm:$0xff] %v8207_v34 }
  0xf1   : > { %774 = vrot.lane.b32.xlu0 %v8031_v45, %s7744_s7  ;;  %13118 = vst [vmem:[#allocation57_spill] sm:$0xff] %v8222_v44 }
  0xf2   : > { %13119 = vst [vmem:[#allocation58_spill] sm:$0xff] %v8225_v46 }
  0xf5   : > { %v571_v54 = vpop.f32.mrf.mxu2 }
  0xf6   : > { %v547_v53 = vpop.f32.mrf.mxu1  ;;  %v8255_v1 = vadd.f32 %v7992_v32, %v571_v54  ;;  %v517_v12 = vpop.f32.mrf.mxu0 }
  0xf7   : > { %v8252_v63 = vadd.f32 %v7992_v32, %v547_v53  ;;  %v8270_v15 = vadd.f32 %v7992_v32, %v517_v12 }
  0xf8   : > { %692 = vrot.lane.b32.xlu1 %v8063_v55, %s7743_s29  ;;  %682 = vrot.lane.b32.xlu2 %v8075_v58, %s7742_s4  ;;  %13127 = vst [vmem:[#allocation66_spill] sm:$0xff] %v8255_v1 }
  0xf9   : > { %744 = vrot.lane.b32.xlu0 %v8042_v49, %s7743_s29  ;;  %13126 = vst [vmem:[#allocation65_spill] sm:$0xff] %v8252_v63 }
  0xfa   : > { %13131 = vst [vmem:[#allocation70_spill] sm:$0xff] %v8270_v15 }
  0xfd   : > { %v574_v22 = vpop.f32.mrf.mxu2 }
  0xfe   : > { %v8285_v40 = vadd.f32 %v7992_v32, %v574_v22  ;;  %v550_v53 = vpop.f32.mrf.mxu1 }
  0xff   : > { %v8300_v22 = vadd.f32 %v7992_v32, %v550_v53 }
 0x100   : > { %776 = vrot.lane.b32.xlu1 %v8066_v56, %s7744_s7  ;;  %730 = vrot.lane.b32.xlu2 %v8084_v60, %s7743_s29  ;;  %13135 = vst [vmem:[#allocation74_spill] sm:$0xff] %v8285_v40 }
 0x101   : > { %648 = vrot.lane.b32.xlu0 %v8066_v56, %s7742_s4  ;;  %13139 = vst [vmem:[#allocation78_spill] sm:$0xff] %v8300_v22 }
 0x108   : > { %746 = vrot.lane.b32.xlu1 %v8075_v58, %s7743_s29  ;;  %694 = vrot.lane.b32.xlu2 %v8093_v62, %s7743_s29 }
 0x109   : > { %756 = vrot.lane.b32.xlu0 %v8063_v55, %s7744_s7 }
 0x110   : > { %630 = vrot.lane.b32.xlu1 %v8093_v62, %s7742_s4  ;;  %778 = vrot.lane.b32.xlu2 %v8102_v0, %s7744_s7 }
 0x111   : > { %666 = vrot.lane.b32.xlu0 %v8084_v60, %s7742_s4 }
 0x118   : > { %650 = vrot.lane.b32.xlu1 %v8102_v0, %s7742_s4  ;;  %748 = vrot.lane.b32.xlu2 %v8111_v2, %s7743_s29 }
 0x119   : > { %714 = vrot.lane.b32.xlu0 %v8102_v0, %s7743_s29 }
 0x11a   : > { %v8119_v3 = vpop.permute.xlu2 %688 }
 0x11b   : > { %13092 = vst [vmem:[#allocation31_spill] sm:$0xff] %v8119_v3 }
 0x120   : > { %758 = vrot.lane.b32.xlu1 %v8093_v62, %s7744_s7  ;;  %632 = vrot.lane.b32.xlu2 %v8122_v5, %s7742_s4 }
 0x121   : > { %684 = vrot.lane.b32.xlu0 %v8111_v2, %s7742_s4 }
 0x122   : > { %v8130_v7 = vpop.permute.xlu2 %772 }
 0x123   : > { %13094 = vst [vmem:[#allocation33_spill] sm:$0xff] %v8130_v7 }
 0x128   : > { %668 = vrot.lane.b32.xlu1 %v8133_v9, %s7742_s4  ;;  %652 = vrot.lane.b32.xlu2 %v8136_v10, %s7742_s4 }
 0x129   : > { %732 = vrot.lane.b32.xlu0 %v8133_v9, %s7743_s29 }
 0x12a   : > { %v8144_v11 = vpop.permute.xlu2 %742 }
 0x12b   : > { %13097 = vst [vmem:[#allocation36_spill] sm:$0xff] %v8144_v11 }
 0x130   : > { %716 = vrot.lane.b32.xlu1 %v8136_v10, %s7743_s29  ;;  %760 = vrot.lane.b32.xlu2 %v8122_v5, %s7744_s7 }
 0x131   : > { %696 = vrot.lane.b32.xlu0 %v8122_v5, %s7743_s29 }
 0x132   : > { %v8152_v13 = vpop.permute.xlu1 %644  ;;  %v8154_v14 = vpop.permute.xlu2 %646 }
 0x133   : > { %13098 = vst [vmem:[#allocation37_spill] sm:$0xff] %v8152_v13  ;;  %v8156_v16 = vpop.permute.xlu0 %624 }
 0x134   : > { %13099 = vst [vmem:[#allocation38_spill] sm:$0xff] %v8154_v14 }
 0x135   : > { %13100 = vst [vmem:[#allocation39_spill] sm:$0xff] %v8156_v16 }
 0x138   : > { %686 = vrot.lane.b32.xlu1 %v8159_v17, %s7742_s4  ;;  %670 = vrot.lane.b32.xlu2 %v8162_v18, %s7742_s4 }
 0x139   : > { %780 = vrot.lane.b32.xlu0 %v8136_v10, %s7744_s7 }
 0x13a   : > { %v8170_v19 = vpop.permute.xlu1 %752  ;;  %v8172_v20 = vpop.permute.xlu2 %754 }
 0x13b   : > { %13103 = vst [vmem:[#allocation42_spill] sm:$0xff] %v8170_v19  ;;  %v8174_v21 = vpop.permute.xlu0 %708 }
 0x13c   : > { %13104 = vst [vmem:[#allocation43_spill] sm:$0xff] %v8172_v20 }
 0x13d   : > { %13105 = vst [vmem:[#allocation44_spill] sm:$0xff] %v8174_v21 }
 0x140   : > { %734 = vrot.lane.b32.xlu1 %v8162_v18, %s7743_s29  ;;  %634 = vrot.lane.b32.xlu2 %v8177_v23, %s7742_s4 }
 0x141   : > { %750 = vrot.lane.b32.xlu0 %v8159_v17, %s7743_s29 }
 0x142   : > { %v8185_v25 = vpop.permute.xlu1 %662  ;;  %v8187_v26 = vpop.permute.xlu2 %664 }
 0x143   : > { %13107 = vst [vmem:[#allocation46_spill] sm:$0xff] %v8185_v25  ;;  %v8189_v27 = vpop.permute.xlu0 %678 }
 0x144   : > { %13108 = vst [vmem:[#allocation47_spill] sm:$0xff] %v8187_v26 }
 0x145   : > { %13109 = vst [vmem:[#allocation48_spill] sm:$0xff] %v8189_v27 }
 0x148   : > { %698 = vrot.lane.b32.xlu1 %v8177_v23, %s7743_s29  ;;  %718 = vrot.lane.b32.xlu2 %v8192_v28, %s7743_s29 }
 0x149   : > { %654 = vrot.lane.b32.xlu0 %v8192_v28, %s7742_s4 }
 0x14a   : > { %v8200_v30 = vpop.permute.xlu1 %710  ;;  %v8202_v31 = vpop.permute.xlu2 %712 }
 0x14b   : > { %13111 = vst [vmem:[#allocation50_spill] sm:$0xff] %v8200_v30  ;;  %v8204_v33 = vpop.permute.xlu0 %726 }
 0x14c   : > { %13112 = vst [vmem:[#allocation51_spill] sm:$0xff] %v8202_v31 }
 0x14d   : > { %13113 = vst [vmem:[#allocation52_spill] sm:$0xff] %v8204_v33 }
 0x150   : > { %782 = vrot.lane.b32.xlu1 %v8192_v28, %s7744_s7  ;;  %736 = vrot.lane.b32.xlu2 %v8207_v34, %s7743_s29 }
 0x151   : > { %762 = vrot.lane.b32.xlu0 %v8177_v23, %s7744_s7 }
 0x152   : > { %v8215_v38 = vpop.permute.xlu1 %680  ;;  %v8217_v39 = vpop.permute.xlu2 %682 }
 0x153   : > { %13115 = vst [vmem:[#allocation54_spill] sm:$0xff] %v8215_v38  ;;  %v8219_v43 = vpop.permute.xlu0 %626 }
 0x154   : > { %13116 = vst [vmem:[#allocation55_spill] sm:$0xff] %v8217_v39 }
 0x155   : > { %13117 = vst [vmem:[#allocation56_spill] sm:$0xff] %v8219_v43 }
 0x158   : > { %656 = vrot.lane.b32.xlu1 %v8225_v46, %s7742_s4  ;;  %700 = vrot.lane.b32.xlu2 %v8222_v44, %s7743_s29 }
 0x159   : > { %672 = vrot.lane.b32.xlu0 %v8207_v34, %s7742_s4 }
 0x15a   : > { %v8233_v47 = vpop.permute.xlu1 %728  ;;  %v8235_v48 = vpop.permute.xlu2 %730 }
 0x15b   : > { %13120 = vst [vmem:[#allocation59_spill] sm:$0xff] %v8233_v47  ;;  %v8237_v51 = vpop.permute.xlu0 %690 }
 0x15c   : > { %13121 = vst [vmem:[#allocation60_spill] sm:$0xff] %v8235_v48 }
 0x15d   : > { %13122 = vst [vmem:[#allocation61_spill] sm:$0xff] %v8237_v51 }
 0x160   : > { %764 = vrot.lane.b32.xlu1 %v8222_v44, %s7744_s7  ;;  %784 = vrot.lane.b32.xlu2 %v8225_v46, %s7744_s7 }
 0x161   : > { %636 = vrot.lane.b32.xlu0 %v8222_v44, %s7742_s4 }
 0x162   : > { %v8245_v57 = vpop.permute.xlu1 %628  ;;  %v8247_v59 = vpop.permute.xlu2 %694 }
 0x163   : > { %13123 = vst [vmem:[#allocation62_spill] sm:$0xff] %v8245_v57  ;;  %v8249_v61 = vpop.permute.xlu0 %774 }
 0x164   : > { %13124 = vst [vmem:[#allocation63_spill] sm:$0xff] %v8247_v59 }
 0x165   : > { %13125 = vst [vmem:[#allocation64_spill] sm:$0xff] %v8249_v61 }
 0x168   : > { %674 = vrot.lane.b32.xlu1 %v8255_v1, %s7742_s4  ;;  %658 = vrot.lane.b32.xlu2 %v8252_v63, %s7742_s4 }
 0x169   : > { %720 = vrot.lane.b32.xlu0 %v8225_v46, %s7743_s29 }
 0x16a   : > { %v8263_v4 = vpop.permute.xlu1 %692  ;;  %v8265_v6 = vpop.permute.xlu2 %778 }
 0x16b   : > { %13128 = vst [vmem:[#allocation67_spill] sm:$0xff] %v8263_v4  ;;  %v8267_v8 = vpop.permute.xlu0 %744 }
 0x16c   : > { %13129 = vst [vmem:[#allocation68_spill] sm:$0xff] %v8265_v6 }
 0x16d   : > { %13130 = vst [vmem:[#allocation69_spill] sm:$0xff] %v8267_v8 }
 0x170   : > { %638 = vrot.lane.b32.xlu1 %v8270_v15, %s7742_s4  ;;  %766 = vrot.lane.b32.xlu2 %v8270_v15, %s7744_s7 }
 0x171   : > { %738 = vrot.lane.b32.xlu0 %v8255_v1, %s7743_s29 }
 0x172   : > { %v8278_v24 = vpop.permute.xlu1 %776  ;;  %v8280_v29 = vpop.permute.xlu2 %748 }
 0x173   : > { %13132 = vst [vmem:[#allocation71_spill] sm:$0xff] %v8278_v24  ;;  %v8282_v37 = vpop.permute.xlu0 %648  ;;  %v520_v24 = vpop.f32.mrf.mxu0 }
 0x174   : > { %13133 = vst [vmem:[#allocation72_spill] sm:$0xff] %v8280_v29  ;;  %v8303_v61 = vadd.f32 %v7992_v32, %v520_v24 }
 0x175   : > { %13134 = vst [vmem:[#allocation73_spill] sm:$0xff] %v8282_v37 }
 0x176   : > { %13140 = vst [vmem:[#allocation79_spill] sm:$0xff] %v8303_v61 }
 0x178   : > { %722 = vrot.lane.b32.xlu1 %v8252_v63, %s7743_s29  ;;  %676 = vrot.lane.b32.xlu2 %v8285_v40, %s7742_s4 }
 0x179   : > { %702 = vrot.lane.b32.xlu0 %v8270_v15, %s7743_s29 }
 0x17a   : > { %v8293_v54 = vpop.permute.xlu1 %746  ;;  %v8295_v12 = vpop.permute.xlu2 %632 }
 0x17b   : > { %13136 = vst [vmem:[#allocation75_spill] sm:$0xff] %v8293_v54  ;;  %v8297_v6 = vpop.permute.xlu0 %756  ;;  %v523_v20 = vpop.f32.mrf.mxu0 }
 0x17c   : > { %13137 = vst [vmem:[#allocation76_spill] sm:$0xff] %v8295_v12  ;;  %v8330_v29 = vadd.f32 %v7992_v32, %v523_v20 }
 0x17d   : > { %13138 = vst [vmem:[#allocation77_spill] sm:$0xff] %v8297_v6 }
 0x17e   : > { %13147 = vst [vmem:[#allocation86_spill] sm:$0xff] %v8330_v29 }
 0x180   : > { %740 = vrot.lane.b32.xlu1 %v8285_v40, %s7743_s29  ;;  %640 = vrot.lane.b32.xlu2 %v8303_v61, %s7742_s4 }
 0x181   : > { %660 = vrot.lane.b32.xlu0 %v8300_v22, %s7742_s4 }
 0x182   : > { %v8311_v7 = vpop.permute.xlu1 %630  ;;  %v8313_v19 = vpop.permute.xlu2 %652 }
 0x183   : > { %13141 = vst [vmem:[#allocation80_spill] sm:$0xff] %v8311_v7  ;;  %v8315_v6 = vpop.permute.xlu0 %666 }
 0x184   : > { %13142 = vst [vmem:[#allocation81_spill] sm:$0xff] %v8313_v19 }
 0x185   : > { %13143 = vst [vmem:[#allocation82_spill] sm:$0xff] %v8315_v6 }
 0x188   : > { %704 = vrot.lane.b32.xlu1 %v8303_v61, %s7743_s29  ;;  %724 = vrot.lane.b32.xlu2 %v8300_v22, %s7743_s29 }
 0x189   : > { %768 = vrot.lane.b32.xlu0 %v8303_v61, %s7744_s7 }
 0x18a   : > { %v8323_v24 = vpop.permute.xlu1 %650  ;;  %v8325_v53 = vpop.permute.xlu2 %760 }
 0x18b   : > { %13144 = vst [vmem:[#allocation83_spill] sm:$0xff] %v8323_v24  ;;  %v8327_v54 = vpop.permute.xlu0 %714 }
 0x18c   : > { %13145 = vst [vmem:[#allocation84_spill] sm:$0xff] %v8325_v53 }
 0x18d   : > { %13146 = vst [vmem:[#allocation85_spill] sm:$0xff] %v8327_v54 }
 0x190   : > { %770 = vrot.lane.b32.xlu1 %v8330_v29, %s7744_s7  ;;  %706 = vrot.lane.b32.xlu2 %v8330_v29, %s7743_s29  ;;  %s7658_s29 = sshra.s32 %s5983_s3, 4  ;;  %s7659_s29 = int_to_ptr.hbm [resolvable:$true] %s7658_s29 }
 0x191   : > { %642 = vrot.lane.b32.xlu0 %v8330_v29, %s7742_s4  ;;  %s5966_s4 = scalar_lea.sflag [#allocation4], %s7913_s14  ;;  %p7665_p10 = scmp.lt.s32.totalorder %s7659_s29, %s12679_s6 }
 0x192   : > { %v8338_v8 = vpop.permute.xlu1 %758  ;;  %v8340_v11 = vpop.permute.xlu2 %670 }
 0x193   : > { %13148 = vst [vmem:[#allocation87_spill] sm:$0xff] %v8338_v8  ;;  %v8342_v53 = vpop.permute.xlu0 %684 }
 0x194   : > { %13149 = vst [vmem:[#allocation88_spill] sm:$0xff] %v8340_v11 }
 0x195   : > { %13150 = vst [vmem:[#allocation89_spill] sm:$0xff] %v8342_v53 }
 0x198   : > { %788 = vrot.lane.b32.xlu1 %v8300_v22, %s7744_s7  ;;  %790 = vrot.lane.b32.xlu2 %v8017_v41, %s7744_s7 }
 0x199   : > { %786 = vrot.lane.b32.xlu0 %v8252_v63, %s7744_s7 }
 0x19a   : > { %v8350_v32 = vpop.permute.xlu1 %668  ;;  %v8352_v20 = vpop.permute.xlu2 %634 }
 0x19b   : > { %13151 = vst [vmem:[#allocation90_spill] sm:$0xff] %v8350_v32  ;;  %v8354_v47 = vpop.permute.xlu0 %732 }
 0x19c   : > { %13152 = vst [vmem:[#allocation91_spill] sm:$0xff] %v8352_v20 }
 0x19d   : > { %13153 = vst [vmem:[#allocation92_spill] sm:$0xff] %v8354_v47 }
 0x1a0   : > { %794 = vrot.lane.b32.xlu1 %v8084_v60, %s7744_s7  ;;  %796 = vrot.lane.b32.xlu2 %v8133_v9, %s7744_s7 }
 0x1a1   : > { %792 = vrot.lane.b32.xlu0 %v8054_v52, %s7744_s7 }
 0x1a2   : > { %v8362_v8 = vpop.permute.xlu1 %716  ;;  %v8364_v48 = vpop.permute.xlu2 %718 }
 0x1a3   : > { %13154 = vst [vmem:[#allocation93_spill] sm:$0xff] %v8362_v8  ;;  %v8366_v33 = vpop.permute.xlu0 %696 }
 0x1a4   : > { %13155 = vst [vmem:[#allocation94_spill] sm:$0xff] %v8364_v48 }
 0x1a5   : > { %13156 = vst [vmem:[#allocation95_spill] sm:$0xff] %v8366_v33 }
 0x1a8   : > { %800 = vrot.lane.b32.xlu1 %v8207_v34, %s7744_s7  ;;  %802 = vrot.lane.b32.xlu2 %v8255_v1, %s7744_s7 }
 0x1a9   : > { %798 = vrot.lane.b32.xlu0 %v8162_v18, %s7744_s7 }
 0x1aa   : > { %v8374_v47 = vpop.permute.xlu1 %686  ;;  %v8376_v54 = vpop.permute.xlu2 %736 }
 0x1ab   : > { %13157 = vst [vmem:[#allocation96_spill] sm:$0xff] %v8374_v47  ;;  %v8378_v30 = vpop.permute.xlu0 %780 }
 0x1ac   : > { %13158 = vst [vmem:[#allocation97_spill] sm:$0xff] %v8376_v54 }
 0x1ad   : > { %13159 = vst [vmem:[#allocation98_spill] sm:$0xff] %v8378_v30 }
 0x1b0   : > { %806 = vrot.lane.b32.xlu1 %v8020_v42, %s7744_s7  ;;  %808 = vrot.lane.b32.xlu2 %v8042_v49, %s7744_s7 }
 0x1b1   : > { %804 = vrot.lane.b32.xlu0 %v8285_v40, %s7744_s7 }
 0x1b2   : > { %v8386_v8 = vpop.permute.xlu1 %734  ;;  %v8388_v48 = vpop.permute.xlu2 %700 }
 0x1b3   : > { %13160 = vst [vmem:[#allocation99_spill] sm:$0xff] %v8386_v8  ;;  %v8390_v31 = vpop.permute.xlu0 %750 }
 0x1b4   : > { %13161 = vst [vmem:[#allocation100_spill] sm:$0xff] %v8388_v48 }
 0x1b5   : > { %13162 = vst [vmem:[#allocation101_spill] sm:$0xff] %v8390_v31 }
 0x1b8   : > { %812 = vrot.lane.b32.xlu1 %v8111_v2, %s7744_s7  ;;  %814 = vrot.lane.b32.xlu2 %v8159_v17, %s7744_s7 }
 0x1b9   : > { %810 = vrot.lane.b32.xlu0 %v8075_v58, %s7744_s7  ;;  %s7660_s7 = scalar_lea.hbm %s7659_s29, 256 }
 0x1ba   : > { %v8398_v30 = vpop.permute.xlu1 %698  ;;  %v8400_v54 = vpop.permute.xlu2 %784  ;;  %p7661_p1 = scmp.ne.s32.totalorder %s7659_s29, %s7660_s7 }
 0x1bb   : > { %13163 = vst [vmem:[#allocation102_spill] sm:$0xff] %v8398_v30  ;;  %v8402_v21 = vpop.permute.xlu0 %654 }
 0x1bc   : > { %13164 = vst [vmem:[#allocation103_spill] sm:$0xff] %v8400_v54  ;;  %p7662_p4 = pnand %p7661_p1, %p7891_p5 }
 0x1bd   : > { %13165 = vst [vmem:[#allocation104_spill] sm:$0xff] %v8402_v21 }
 0x1be   : > { %p7663_p8 = pneg %p7662_p4 }
 0x1c0   : > { %818 = vrot.lane.b32.xlu1 %v8045_v50, %s7745_s12  ;;  %820 = vrot.lane.b32.xlu2 %v8063_v55, %s7745_s12 }
 0x1c1   : > { %816 = vrot.lane.b32.xlu0 %v7995_v35, %s7745_s12 }
 0x1c2   : > { %v8410_v31 = vpop.permute.xlu1 %782  ;;  %v8412_v8 = vpop.permute.xlu2 %658 }
 0x1c3   : > { %13166 = vst [vmem:[#allocation105_spill] sm:$0xff] %v8410_v31  ;;  %v8414_v48 = vpop.permute.xlu0 %762 }
 0x1c4   : > { %13167 = vst [vmem:[#allocation106_spill] sm:$0xff] %v8412_v8 }
 0x1c5   : > { %13168 = vst [vmem:[#allocation107_spill] sm:$0xff] %v8414_v48 }
 0x1c8   : > { %824 = vrot.lane.b32.xlu1 %v8122_v5, %s7745_s12  ;;  %826 = vrot.lane.b32.xlu2 %v8177_v23, %s7745_s12 }
 0x1c9   : > { %822 = vrot.lane.b32.xlu0 %v8093_v62, %s7745_s12 }
 0x1ca   : > { %v8422_v54 = vpop.permute.xlu1 %656  ;;  %v8424_v30 = vpop.permute.xlu2 %766 }
 0x1cb   : > { %13169 = vst [vmem:[#allocation108_spill] sm:$0xff] %v8422_v54  ;;  %v8426_v55 = vpop.permute.xlu0 %672 }
 0x1cc   : > { %13170 = vst [vmem:[#allocation109_spill] sm:$0xff] %v8424_v30 }
 0x1cd   : > { %13171 = vst [vmem:[#allocation110_spill] sm:$0xff] %v8426_v55 }
 0x1d0   : > { %830 = vrot.lane.b32.xlu1 %v8270_v15, %s7745_s12  ;;  %906 = vrot.lane.b32.xlu2 %v8303_v61, %s7745_s12 }
 0x1d1   : > { %828 = vrot.lane.b32.xlu0 %v8222_v44, %s7745_s12 }
 0x1d2   : > { %v8434_v31 = vpop.permute.xlu1 %764  ;;  %v8436_v48 = vpop.permute.xlu2 %676 }
 0x1d3   : > { %13172 = vst [vmem:[#allocation111_spill] sm:$0xff] %v8434_v31  ;;  %v8438_v23 = vpop.permute.xlu0 %636 }
 0x1d4   : > { %13173 = vst [vmem:[#allocation112_spill] sm:$0xff] %v8436_v48 }
 0x1d5   : > { %13174 = vst [vmem:[#allocation113_spill] sm:$0xff] %v8438_v23 }
 0x1d8   : > { %910 = vrot.lane.b32.xlu1 %v7998_v36, %s7745_s12  ;;  %912 = vrot.lane.b32.xlu2 %v8031_v45, %s7745_s12 }
 0x1d9   : > { %908 = vrot.lane.b32.xlu0 %v8330_v29, %s7745_s12 }
 0x1da   : > { %v8446_v30 = vpop.permute.xlu1 %674  ;;  %v8448_v15 = vpop.permute.xlu2 %640 }
 0x1db   : > { %13175 = vst [vmem:[#allocation114_spill] sm:$0xff] %v8446_v30  ;;  %v8450_v44 = vpop.permute.xlu0 %720 }
 0x1dc   : > { %13176 = vst [vmem:[#allocation115_spill] sm:$0xff] %v8448_v15 }
 0x1dd   : > { %13177 = vst [vmem:[#allocation116_spill] sm:$0xff] %v8450_v44 }
 0x1e0   : > { %916 = vrot.lane.b32.xlu1 %v8102_v0, %s7745_s12  ;;  %918 = vrot.lane.b32.xlu2 %v8136_v10, %s7745_s12 }
 0x1e1   : > { %914 = vrot.lane.b32.xlu0 %v8066_v56, %s7745_s12 }
 0x1e2   : > { %v8458_v31 = vpop.permute.xlu1 %638  ;;  %v8460_v45 = vpop.permute.xlu2 %724 }
 0x1e3   : > { %13178 = vst [vmem:[#allocation117_spill] sm:$0xff] %v8458_v31  ;;  %v8462_v36 = vpop.permute.xlu0 %738 }
 0x1e4   : > { %13179 = vst [vmem:[#allocation118_spill] sm:$0xff] %v8460_v45 }
 0x1e5   : > { %13180 = vst [vmem:[#allocation119_spill] sm:$0xff] %v8462_v36 }
 0x1e8   : > { %995 = vrot.lane.b32.xlu1 %v8225_v46, %s7745_s12  ;;  %997 = vrot.lane.b32.xlu2 %v8252_v63, %s7745_s12 }
 0x1e9   : > { %920 = vrot.lane.b32.xlu0 %v8192_v28, %s7745_s12 }
 0x1ea   : > { %v8470_v0 = vpop.permute.xlu1 %722  ;;  %v8472_v10 = vpop.permute.xlu2 %706 }
 0x1eb   : > { %13181 = vst [vmem:[#allocation120_spill] sm:$0xff] %v8470_v0  ;;  %v8474_v56 = vpop.permute.xlu0 %702 }
 0x1ec   : > { %13182 = vst [vmem:[#allocation121_spill] sm:$0xff] %v8472_v10 }
 0x1ed   : > { %13183 = vst [vmem:[#allocation122_spill] sm:$0xff] %v8474_v56 }
 0x1f0   : > { %1001 = vrot.lane.b32.xlu1 %v8017_v41, %s7745_s12  ;;  %1003 = vrot.lane.b32.xlu2 %v8054_v52, %s7745_s12 }
 0x1f1   : > { %999 = vrot.lane.b32.xlu0 %v8300_v22, %s7745_s12 }
 0x1f2   : > { %v8482_v36 = vpop.permute.xlu1 %740  ;;  %v8484_v45 = vpop.permute.xlu2 %790 }
 0x1f3   : > { %13184 = vst [vmem:[#allocation123_spill] sm:$0xff] %v8482_v36  ;;  %v8486_v28 = vpop.permute.xlu0 %660 }
 0x1f4   : > { %13185 = vst [vmem:[#allocation124_spill] sm:$0xff] %v8484_v45 }
 0x1f5   : > { %13186 = vst [vmem:[#allocation125_spill] sm:$0xff] %v8486_v28 }
 0x1f8   : > { %1007 = vrot.lane.b32.xlu1 %v8133_v9, %s7745_s12  ;;  %1009 = vrot.lane.b32.xlu2 %v8162_v18, %s7745_s12 }
 0x1f9   : > { %1005 = vrot.lane.b32.xlu0 %v8084_v60, %s7745_s12 }
 0x1fa   : > { %v8494_v41 = vpop.permute.xlu1 %704  ;;  %v8496_v52 = vpop.permute.xlu2 %796 }
 0x1fb   : > { %13187 = vst [vmem:[#allocation126_spill] sm:$0xff] %v8494_v41  ;;  %v8498_v0 = vpop.permute.xlu0 %768 }
 0x1fc   : > { %13188 = vst [vmem:[#allocation127_spill] sm:$0xff] %v8496_v52 }
 0x1fd   : > { %13189 = vst [vmem:[#allocation128_spill] sm:$0xff] %v8498_v0 }
 0x200   : > { %1086 = vrot.lane.b32.xlu1 %v8255_v1, %s7745_s12  ;;  %1088 = vrot.lane.b32.xlu2 %v8285_v40, %s7745_s12 }
 0x201   : > { %1084 = vrot.lane.b32.xlu0 %v8207_v34, %s7745_s12 }
 0x202   : > { %v8506_v45 = vpop.permute.xlu1 %770  ;;  %v8508_v18 = vpop.permute.xlu2 %802 }
 0x203   : > { %13190 = vst [vmem:[#allocation129_spill] sm:$0xff] %v8506_v45  ;;  %v8510_v9 = vpop.permute.xlu0 %642 }
 0x204   : > { %13191 = vst [vmem:[#allocation130_spill] sm:$0xff] %v8508_v18 }
 0x205   : > { %13192 = vst [vmem:[#allocation131_spill] sm:$0xff] %v8510_v9 }
 0x208   : > { %1092 = vrot.lane.b32.xlu1 %v8042_v49, %s7745_s12  ;;  %1094 = vrot.lane.b32.xlu2 %v8075_v58, %s7745_s12 }
 0x209   : > { %1090 = vrot.lane.b32.xlu0 %v8020_v42, %s7745_s12 }
 0x20a   : > { %v8518_v52 = vpop.permute.xlu1 %788  ;;  %v8520_v0 = vpop.permute.xlu2 %808 }
 0x20b   : > { %13193 = vst [vmem:[#allocation132_spill] sm:$0xff] %v8518_v52  ;;  %v8522_v40 = vpop.permute.xlu0 %786 }
 0x20c   : > { %13194 = vst [vmem:[#allocation133_spill] sm:$0xff] %v8520_v0 }
 0x20d   : > { %13195 = vst [vmem:[#allocation134_spill] sm:$0xff] %v8522_v40 }
 0x210   : > { %1098 = vrot.lane.b32.xlu1 %v8159_v17, %s7745_s12  ;;  %1173 = vrot.lane.b32.xlu2 %v8156_v16, %s7745_s12 }
 0x211   : > { %1096 = vrot.lane.b32.xlu0 %v8111_v2, %s7745_s12 }
 0x212   : > { %v8530_v18 = vpop.permute.xlu1 %794  ;;  %v8532_v45 = vpop.permute.xlu2 %814 }
 0x213   : > { %13196 = vst [vmem:[#allocation135_spill] sm:$0xff] %v8530_v18  ;;  %v8534_v58 = vpop.permute.xlu0 %792 }
 0x214   : > { %13197 = vst [vmem:[#allocation136_spill] sm:$0xff] %v8532_v45 }
 0x215   : > { %13198 = vst [vmem:[#allocation137_spill] sm:$0xff] %v8534_v58 }
 0x218   : > { %1177 = vrot.lane.b32.xlu1 %v8245_v57, %s7745_s12  ;;  %1179 = vrot.lane.b32.xlu2 %v8311_v7, %s7745_s12 }
 0x219   : > { %1175 = vrot.lane.b32.xlu0 %v8219_v43, %s7745_s12 }
 0x21a   : > { %v8542_v0 = vpop.permute.xlu1 %800  ;;  %v821_v52 = vpop.permute.xlu2 %820 }
 0x21b   : > { %13199 = vst [vmem:[#allocation138_spill] sm:$0xff] %v8542_v0  ;;  %v8544_v40 = vpop.permute.xlu0 %798 }
 0x21c   : > { %13200 = vst [vmem:[#allocation139_spill] sm:$0xff] %v8544_v40 }
 0x220   : > { %1183 = vrot.lane.b32.xlu1 %v8352_v20, %s7745_s12  ;;  %1185 = vrot.lane.b32.xlu2 %v8438_v23, %s7745_s12 }
 0x221   : > { %1181 = vrot.lane.b32.xlu0 %v8295_v12, %s7745_s12 }
 0x222   : > { %v8552_v45 = vpop.permute.xlu1 %806  ;;  %v827_v18 = vpop.permute.xlu2 %826 }
 0x223   : > { %13201 = vst [vmem:[#allocation140_spill] sm:$0xff] %v8552_v45  ;;  %v8554_v58 = vpop.permute.xlu0 %804 }
 0x224   : > { %13202 = vst [vmem:[#allocation141_spill] sm:$0xff] %v8554_v58 }
 0x228   : > { %1262 = vrot.lane.b32.xlu1 %v8448_v15, %s7745_s12  ;;  %1264 = vrot.lane.b32.xlu2 %v8510_v9, %s7745_s12 }
 0x229   : > { %1187 = vrot.lane.b32.xlu0 %v8458_v31, %s7745_s12 }
 0x22a   : > { %v8562_v0 = vpop.permute.xlu1 %812  ;;  %v8564_v40 = vpop.permute.xlu2 %906 }
 0x22b   : > { %13203 = vst [vmem:[#allocation142_spill] sm:$0xff] %v8562_v0  ;;  %v8566_v23 = vpop.permute.xlu0 %810 }
 0x22c   : > { %13204 = vst [vmem:[#allocation143_spill] sm:$0xff] %v8566_v23 }
 0x230   : > { %1268 = vrot.lane.b32.xlu1 %v8154_v14, %s7745_s12  ;;  %1270 = vrot.lane.b32.xlu2 %v8282_v37, %s7745_s12 }
 0x231   : > { %1266 = vrot.lane.b32.xlu0 %v8152_v13, %s7745_s12 }
 0x232   : > { %v819_v45 = vpop.permute.xlu1 %818  ;;  %v913_v58 = vpop.permute.xlu2 %912 }
 0x233   : > { %v817_v20 = vpop.permute.xlu0 %816 }
 0x238   : > { %1274 = vrot.lane.b32.xlu1 %v8313_v19, %s7745_s12  ;;  %1276 = vrot.lane.b32.xlu2 %v8402_v21, %s7745_s12 }
 0x239   : > { %1272 = vrot.lane.b32.xlu0 %v8323_v24, %s7745_s12 }
 0x23a   : > { %v825_v0 = vpop.permute.xlu1 %824  ;;  %v919_v23 = vpop.permute.xlu2 %918 }
 0x23b   : > { %v823_v31 = vpop.permute.xlu0 %822 }
 0x240   : > { %1353 = vrot.lane.b32.xlu1 %v8412_v8, %s7745_s12  ;;  %1355 = vrot.lane.b32.xlu2 %v8486_v28, %s7745_s12 }
 0x241   : > { %1351 = vrot.lane.b32.xlu0 %v8422_v54, %s7745_s12 }
 0x242   : > { %v831_v19 = vpop.permute.xlu1 %830  ;;  %v8586_v37 = vpop.permute.xlu2 %997 }
 0x243   : > { %v829_v21 = vpop.permute.xlu0 %828  ;;  %6144 = vmatpush.xpose.msk.msrb.mxu1 %vm832_vm1, %v831_v19 }
 0x247   : > { %6145 = vmatpush.xpose.msk.msrb.mxu1 %vm832_vm1, %v829_v21 }
 0x248   : > { %1359 = vrot.lane.b32.xlu1 %v8187_v26, %s7745_s12  ;;  %1361 = vrot.lane.b32.xlu2 %v8315_v6, %s7745_s12 }
 0x249   : > { %1357 = vrot.lane.b32.xlu0 %v8185_v25, %s7745_s12 }
 0x24a   : > { %v911_v28 = vpop.permute.xlu1 %910  ;;  %v1004_v24 = vpop.permute.xlu2 %1003 }
 0x24b   : > { %v909_v8 = vpop.permute.xlu0 %908  ;;  %6146 = vmatpush.xpose.msk.msrb.mxu1 %vm832_vm1, %v827_v18 }
 0x24f   : > { %6147 = vmatpush.xpose.msk.msrb.mxu1 %vm832_vm1, %v825_v0 }
 0x250   : > { %1365 = vrot.lane.b32.xlu1 %v8340_v11, %s7745_s12  ;;  %1440 = vrot.lane.b32.xlu2 %v8426_v55, %s7745_s12 }
 0x251   : > { %1363 = vrot.lane.b32.xlu0 %v8350_v32, %s7745_s12 }
 0x252   : > { %v917_v19 = vpop.permute.xlu1 %916  ;;  %v1010_v21 = vpop.permute.xlu2 %1009 }
 0x253   : > { %v915_v6 = vpop.permute.xlu0 %914  ;;  %6148 = vmatpush.xpose.msk.msrb.mxu1 %vm832_vm1, %v823_v31  ;;  %6176 = vmatpush.xpose.msk.msrb.mxu3 %vm832_vm1, %v1010_v21  ;;  %v13205_v21 = vld [vmem:[#allocation24_spill] sm:$0xff] }
 0x257   : > { %6149 = vmatpush.xpose.msk.msrb.mxu1 %vm832_vm1, %v821_v52 }
 0x258   : > { %1444 = vrot.lane.b32.xlu1 %v8436_v48, %s7745_s12  ;;  %1446 = vrot.lane.b32.xlu2 %v8189_v27, %s7745_s12 }
 0x259   : > { %1442 = vrot.lane.b32.xlu0 %v8446_v30, %s7745_s12 }
 0x25a   : > { %v996_v0 = vpop.permute.xlu1 %995  ;;  %v8613_v18 = vpop.permute.xlu2 %1088 }
 0x25b   : > { %v921_v11 = vpop.permute.xlu0 %920  ;;  %6150 = vmatpush.xpose.msk.msrb.mxu1 %vm832_vm1, %v819_v45 }
 0x25c   : > { %6160 = vmatpush.xpose.msk.msrb.mxu2 %vm832_vm1, %v921_v11 }
 0x25f   : > { %6151 = vmatpush.xpose.msk.msrb.mxu1 %vm832_vm1, %v817_v20 }
 0x260   : > { %6161 = vmatpush.xpose.msk.msrb.mxu2 %vm832_vm1, %v919_v23  ;;  %1450 = vrot.lane.b32.xlu1 %v8217_v39, %s7745_s12 }
 0x261   : > { %1448 = vrot.lane.b32.xlu0 %v8215_v38, %s7745_s12  ;;  %1452 = vrot.lane.b32.xlu2 %v8342_v53, %s7745_s12 }
 0x262   : > { %v1002_v52 = vpop.permute.xlu1 %1001  ;;  %v1095_v31 = vpop.permute.xlu2 %1094  ;;  %6152 = vmatmul.msk.f32.vlgmr.msrb.gmra.mxu1 %vm832_vm1, %v7995_v35 }
 0x263   : > { %v1000_v45 = vpop.permute.xlu0 %999 }
 0x264   : > { %6162 = vmatpush.xpose.msk.msrb.mxu2 %vm832_vm1, %v917_v19 }
 0x268   : > { %6163 = vmatpush.xpose.msk.msrb.mxu2 %vm832_vm1, %v915_v6  ;;  %1529 = vrot.lane.b32.xlu1 %v8119_v3, %s7745_s12 }
 0x269   : > { %1454 = vrot.lane.b32.xlu0 %v8374_v47, %s7745_s12  ;;  %1531 = vrot.lane.b32.xlu2 %v8237_v51, %s7745_s12 }
 0x26a   : > { %v1008_v11 = vpop.permute.xlu1 %1007  ;;  %v8635_v23 = vpop.permute.xlu2 %1173  ;;  %6153 = vmatmul.msk.f32.gmra.mxu1 %vm832_vm1, %v8045_v50  ;;  %v13215_v50 = vld [vmem:[#allocation93_spill] sm:$0xff] }
 0x26b   : > { %v1006_v20 = vpop.permute.xlu0 %1005  ;;  %6177 = vmatpush.xpose.msk.msrb.mxu3 %vm832_vm1, %v1008_v11  ;;  %v13207_v11 = vld [vmem:[#allocation102_spill] sm:$0xff] }
 0x26c   : > { %6164 = vmatpush.xpose.msk.msrb.mxu2 %vm832_vm1, %v913_v58 }
 0x26f   : > { %6178 = vmatpush.xpose.msk.msrb.mxu3 %vm832_vm1, %v1006_v20 }
 0x270   : > { %6165 = vmatpush.xpose.msk.msrb.mxu2 %vm832_vm1, %v911_v28  ;;  %1535 = vrot.lane.b32.xlu1 %v8247_v59, %s7745_s12  ;;  %v13206_v28 = vld [vmem:[#allocation100_spill] sm:$0xff] }
 0x271   : > { %1533 = vrot.lane.b32.xlu0 %v8263_v4, %s7745_s12  ;;  %1537 = vrot.lane.b32.xlu2 %v8366_v33, %s7745_s12 }
 0x272   : > { %v1087_v6 = vpop.permute.xlu1 %1086  ;;  %v8649_v19 = vpop.permute.xlu2 %1179  ;;  %6154 = vmatmul.msk.f32.gmra.mxu1 %vm832_vm1, %v13205_v21 }
 0x273   : > { %v1085_v58 = vpop.permute.xlu0 %1084  ;;  %6179 = vmatpush.xpose.msk.msrb.mxu3 %vm832_vm1, %v1004_v24 }
 0x274   : > { %6166 = vmatpush.xpose.msk.msrb.mxu2 %vm832_vm1, %v909_v8 }
 0x277   : > { %6180 = vmatpush.xpose.msk.msrb.mxu3 %vm832_vm1, %v1002_v52 }
 0x278   : > { %6167 = vmatpush.xpose.msk.msrb.mxu2 %vm832_vm1, %v8564_v40  ;;  %1541 = vrot.lane.b32.xlu1 %v13206_v28, %s7745_s12  ;;  %v13208_v40 = vld [vmem:[#allocation44_spill] sm:$0xff] }
 0x279   : > { %1539 = vrot.lane.b32.xlu0 %v13207_v11, %s7745_s12  ;;  %1543 = vrot.lane.b32.xlu2 %v8474_v56, %s7745_s12 }
 0x27a   : > { %v1093_v20 = vpop.permute.xlu1 %1092  ;;  %v1186_v21 = vpop.permute.xlu2 %1185  ;;  %6155 = vmatmul.msk.f32.gmra.mxu1 %vm832_vm1, %v8093_v62  ;;  %v13211_v62 = vld [vmem:[#allocation85_spill] sm:$0xff] }
 0x27b   : > { %6168 = vmatmul.msk.f32.vlgmr.msrb.gmra.mxu2 %vm832_vm1, %v8303_v61  ;;  %v1091_v8 = vpop.permute.xlu0 %1090  ;;  %6181 = vmatpush.xpose.msk.msrb.mxu3 %vm832_vm1, %v1000_v45  ;;  %v13210_v61 = vld [vmem:[#allocation50_spill] sm:$0xff] }
 0x27f   : > { %6182 = vmatpush.xpose.msk.msrb.mxu3 %vm832_vm1, %v8586_v37  ;;  %v13209_v37 = vld [vmem:[#allocation51_spill] sm:$0xff] }
 0x280   : > { %1620 = vrot.lane.b32.xlu1 %v8472_v10, %s7745_s12 }
 0x281   : > { %1618 = vrot.lane.b32.xlu0 %v8494_v41, %s7745_s12  ;;  %1622 = vrot.lane.b32.xlu2 %v13208_v40, %s7745_s12 }
 0x282   : > { %v1099_v24 = vpop.permute.xlu1 %1098  ;;  %v8677_v52 = vpop.permute.xlu2 %1264  ;;  %6156 = vmatmul.msk.f32.gmra.mxu1 %vm832_vm1, %v8122_v5 }
 0x283   : > { %6169 = vmatmul.msk.f32.gmra.mxu2 %vm832_vm1, %v8330_v29  ;;  %v1097_v45 = vpop.permute.xlu0 %1096  ;;  %6183 = vmatpush.xpose.msk.msrb.mxu3 %vm832_vm1, %v996_v0  ;;  %v13212_v0 = vld [vmem:[#allocation45_spill] sm:$0xff] }
 0x284   : > { %6192 = vmatpush.xpose.msk.msra.mxu1 %vm832_vm1, %v1099_v24  ;;  %v13213_v24 = vld [vmem:[#allocation17_spill] sm:$0xff] }
 0x286   : > { %6184 = vmatmul.msk.f32.vlgmr.msrb.gmra.mxu3 %vm832_vm1, %v8225_v46 }
 0x288   : > { %6193 = vmatpush.xpose.msk.msra.mxu1 %vm832_vm1, %v1097_v45  ;;  %1626 = vrot.lane.b32.xlu1 %v13209_v37, %s7745_s12  ;;  %v13214_v45 = vld [vmem:[#allocation94_spill] sm:$0xff] }
 0x289   : > { %1624 = vrot.lane.b32.xlu0 %v13210_v61, %s7745_s12  ;;  %1628 = vrot.lane.b32.xlu2 %v13211_v62, %s7745_s12 }
 0x28a   : > { %v1178_v29 = vpop.permute.xlu1 %1177  ;;  %v8694_v35 = vpop.permute.xlu2 %1270  ;;  %6157 = vmatmul.msk.f32.gmra.mxu1 %vm832_vm1, %v13212_v0 }
 0x28b   : > { %6170 = vmatmul.msk.f32.gmra.mxu2 %vm832_vm1, %v13213_v24  ;;  %v1176_v46 = vpop.permute.xlu0 %1175  ;;  %v13216_v24 = vld [vmem:[#allocation57_spill] sm:$0xff] }
 0x28c   : > { %6194 = vmatpush.xpose.msk.msra.mxu1 %vm832_vm1, %v1095_v31  ;;  %v13217_v31 = vld [vmem:[#allocation20_spill] sm:$0xff] }
 0x28e   : > { %6185 = vmatmul.msk.f32.gmra.mxu3 %vm832_vm1, %v8252_v63 }
 0x290   : > { %6195 = vmatpush.xpose.msk.msra.mxu1 %vm832_vm1, %v1093_v20  ;;  %1632 = vrot.lane.b32.xlu1 %v13214_v45, %s7745_s12  ;;  %v13218_v20 = vld [vmem:[#allocation118_spill] sm:$0xff]  ;;  %v13219_v45 = vld [vmem:[#allocation120_spill] sm:$0xff] }
 0x291   : > { %1630 = vrot.lane.b32.xlu0 %v13215_v50, %s7745_s12  ;;  %1707 = vrot.lane.b32.xlu2 %v8450_v44, %s7745_s12  ;;  %v13223_v50 = vld [vmem:[#allocation18_spill] sm:$0xff] }
 0x292   : > { %v1184_v5 = vpop.permute.xlu1 %1183  ;;  %v1277_v0 = vpop.permute.xlu2 %1276  ;;  %6158 = vmatmul.msk.f32.gmra.mxu1 %vm832_vm1, %v13216_v24  ;;  %v13220_v24 = vld [vmem:[#allocation52_spill] sm:$0xff] }
 0x293   : > { %6171 = vmatmul.msk.f32.gmra.mxu2 %vm832_vm1, %v13217_v31  ;;  %v1182_v63 = vpop.permute.xlu0 %1181  ;;  %6224 = vmatpush.xpose.msk.msra.mxu3 %vm832_vm1, %v1277_v0 }
 0x294   : > { %6196 = vmatpush.xpose.msk.msra.mxu1 %vm832_vm1, %v1091_v8  ;;  %v13221_v8 = vld [vmem:[#allocation70_spill] sm:$0xff] }
 0x296   : > { %6186 = vmatmul.msk.f32.gmra.mxu3 %vm832_vm1, %v8300_v22  ;;  %v13222_v22 = vld [vmem:[#allocation25_spill] sm:$0xff] }
 0x298   : > { %6197 = vmatpush.xpose.msk.msra.mxu1 %vm832_vm1, %v8613_v18  ;;  %1711 = vrot.lane.b32.xlu1 %v13218_v20, %s7745_s12 }
 0x299   : > { %1709 = vrot.lane.b32.xlu0 %v13219_v45, %s7745_s12  ;;  %1713 = vrot.lane.b32.xlu2 %v13220_v24, %s7745_s12  ;;  %v13224_v24 = vld [vmem:[#allocation60_spill] sm:$0xff] }
 0x29a   : > { %v8726_v31 = vpop.permute.xlu1 %1262  ;;  %v8728_v0 = vpop.permute.xlu2 %1355  ;;  %6159 = vmatmul.msk.f32.gmra.mxu1 %vm832_vm1, %v13221_v8  ;;  %v13225_v8 = vld [vmem:[#allocation59_spill] sm:$0xff] }
 0x29b   : > { %6172 = vmatmul.msk.f32.gmra.mxu2 %vm832_vm1, %v13222_v22  ;;  %v1188_v18 = vpop.permute.xlu0 %1187  ;;  %v13226_v22 = vld [vmem:[#allocation92_spill] sm:$0xff] }
 0x29c   : > { %6198 = vmatpush.xpose.msk.msra.mxu1 %vm832_vm1, %v1087_v6  ;;  %6208 = vmatpush.xpose.msk.msra.mxu2 %vm832_vm1, %v1188_v18  ;;  %v13227_v18 = vld [vmem:[#allocation29_spill] sm:$0xff] }
 0x29e   : > { %6187 = vmatmul.msk.f32.gmra.mxu3 %vm832_vm1, %v13223_v50  ;;  %v13229_v50 = vld [vmem:[#allocation97_spill] sm:$0xff] }
 0x2a0   : > { %6199 = vmatpush.xpose.msk.msra.mxu1 %vm832_vm1, %v1085_v58  ;;  %6209 = vmatpush.xpose.msk.msra.mxu2 %vm832_vm1, %v1186_v21  ;;  %v13228_v21 = vld [vmem:[#allocation23_spill] sm:$0xff] }
 0x2a1   : > { %1717 = vrot.lane.b32.xlu1 %v13224_v24, %s7745_s12  ;;  %1715 = vrot.lane.b32.xlu0 %v13225_v8, %s7745_s12  ;;  %v13231_v24 = vld [vmem:[#allocation119_spill] sm:$0xff] }
 0x2a2   : > { %1719 = vrot.lane.b32.xlu2 %v13226_v22, %s7745_s12  ;;  %v1269_v20 = vpop.permute.xlu1 %1268  ;;  %v8746_v6 = vpop.permute.xlu2 %1361  ;;  %v13230_v22 = vld [vmem:[#allocation99_spill] sm:$0xff] }
 0x2a3   : > { %6173 = vmatmul.msk.f32.gmra.mxu2 %vm832_vm1, %v13227_v18  ;;  %6200 = vmatmul.msk.f32.vlgmr.msra.gmra.mxu1 %vm832_vm1, %v8207_v34  ;;  %v1267_v58 = vpop.permute.xlu0 %1266  ;;  %v13232_v34 = vld [vmem:[#allocation35_spill] sm:$0xff] }
 0x2a4   : > { %6210 = vmatpush.xpose.msk.msra.mxu2 %vm832_vm1, %v1184_v5 }
 0x2a6   : > { %6188 = vmatmul.msk.f32.gmra.mxu3 %vm832_vm1, %v13228_v21 }
 0x2a8   : > { %6211 = vmatpush.xpose.msk.msra.mxu2 %vm832_vm1, %v1182_v63  ;;  %v13233_v63 = vld [vmem:[#allocation36_spill] sm:$0xff] }
 0x2a9   : > { %1796 = vrot.lane.b32.xlu1 %v13229_v50, %s7745_s12  ;;  %1721 = vrot.lane.b32.xlu0 %v13230_v22, %s7745_s12 }
 0x2aa   : > { %1798 = vrot.lane.b32.xlu2 %v13231_v24, %s7745_s12  ;;  %v1275_v18 = vpop.permute.xlu1 %1274  ;;  %v8762_v8 = vpop.permute.xlu2 %1440 }
 0x2ab   : > { %6174 = vmatmul.msk.f32.gmra.mxu2 %vm832_vm1, %v13232_v34  ;;  %6201 = vmatmul.msk.f32.gmra.mxu1 %vm832_vm1, %v8255_v1  ;;  %v1273_v5 = vpop.permute.xlu0 %1272  ;;  %v13234_v1 = vld [vmem:[#allocation69_spill] sm:$0xff] }
 0x2ac   : > { %6212 = vmatpush.xpose.msk.msra.mxu2 %vm832_vm1, %v8649_v19  ;;  %6225 = vmatpush.xpose.msk.msra.mxu3 %vm832_vm1, %v1275_v18  ;;  %v13235_v18 = vld [vmem:[#allocation49_spill] sm:$0xff] }
 0x2ad   : > { %v13240_v34 = vld [vmem:[#allocation101_spill] sm:$0xff] }
 0x2ae   : > { %6189 = vmatmul.msk.f32.gmra.mxu3 %vm832_vm1, %v8084_v60  ;;  %v13236_v60 = vld [vmem:[#allocation74_spill] sm:$0xff] }
 0x2b0   : > { %6213 = vmatpush.xpose.msk.msra.mxu2 %vm832_vm1, %v1178_v29  ;;  %6226 = vmatpush.xpose.msk.msra.mxu3 %vm832_vm1, %v1273_v5  ;;  %v13237_v5 = vld [vmem:[#allocation34_spill] sm:$0xff] }
 0x2b1   : > { %1802 = vrot.lane.b32.xlu1 %v13233_v63, %s7745_s12  ;;  %1800 = vrot.lane.b32.xlu0 %v8482_v36, %s7745_s12 }
 0x2b2   : > { %1804 = vrot.lane.b32.xlu2 %v13234_v1, %s7745_s12  ;;  %v8781_v21 = vpop.permute.xlu1 %1353  ;;  %v8783_v19 = vpop.permute.xlu2 %1446 }
 0x2b3   : > { %6175 = vmatmul.msk.f32.gmra.mxu2 %vm832_vm1, %v13235_v18  ;;  %6202 = vmatmul.msk.f32.gmra.mxu1 %vm832_vm1, %v13236_v60  ;;  %v8789_v29 = vpop.permute.xlu0 %1351  ;;  %v13238_v18 = vld [vmem:[#allocation72_spill] sm:$0xff]  ;;  %v13239_v60 = vld [vmem:[#allocation75_spill] sm:$0xff] }
 0x2b4   : > { %6214 = vmatpush.xpose.msk.msra.mxu2 %vm832_vm1, %v1176_v46  ;;  %6227 = vmatpush.xpose.msk.msra.mxu3 %vm832_vm1, %v8694_v35 }
 0x2b6   : > { %6190 = vmatmul.msk.f32.gmra.mxu3 %vm832_vm1, %v13237_v5  ;;  %v13243_v5 = vld [vmem:[#allocation42_spill] sm:$0xff] }
 0x2b8   : > { %6215 = vmatpush.xpose.msk.msra.mxu2 %vm832_vm1, %v8635_v23  ;;  %6228 = vmatpush.xpose.msk.msra.mxu3 %vm832_vm1, %v1269_v20  ;;  %v13241_v23 = vld [vmem:[#allocation41_spill] sm:$0xff]  ;;  %v13242_v20 = vld [vmem:[#allocation43_spill] sm:$0xff] }
 0x2b9   : > { %1808 = vrot.lane.b32.xlu1 %v13238_v18, %s7745_s12  ;;  %1806 = vrot.lane.b32.xlu0 %v13239_v60, %s7745_s12 }
 0x2ba   : > { %1810 = vrot.lane.b32.xlu2 %v13240_v34, %s7745_s12  ;;  %v1360_v46 = vpop.permute.xlu1 %1359 }
 0x2bb   : > { %v1453_v22 = vpop.permute.xlu2 %1452  ;;  %6203 = vmatmul.msk.f32.gmra.mxu1 %vm832_vm1, %v8020_v42  ;;  %6216 = vmatmul.msk.f32.vlgmr.msra.gmra.mxu2 %vm832_vm1, %v8156_v16  ;;  %v1358_v35 = vpop.permute.xlu0 %1357  ;;  %v13244_v42 = vld [vmem:[#allocation77_spill] sm:$0xff] }
 0x2bc   : > { %6229 = vmatpush.xpose.msk.msra.mxu3 %vm832_vm1, %v1267_v58 }
 0x2be   : > { %6191 = vmatmul.msk.f32.gmra.mxu3 %vm832_vm1, %v13241_v23  ;;  %v13246_v23 = vld [vmem:[#allocation87_spill] sm:$0xff] }
 0x2c0   : > { %6230 = vmatpush.xpose.msk.msra.mxu3 %vm832_vm1, %v8677_v52  ;;  %v13245_v52 = vld [vmem:[#allocation84_spill] sm:$0xff] }
 0x2c1   : > { %1887 = vrot.lane.b32.xlu1 %v13242_v20, %s7745_s12  ;;  %1885 = vrot.lane.b32.xlu0 %v13243_v5, %s7745_s12 }
 0x2c2   : > { %1889 = vrot.lane.b32.xlu2 %v13244_v42, %s7745_s12  ;;  %v1366_v34 = vpop.permute.xlu1 %1365 }
 0x2c3   : > { %v8820_v16 = vpop.permute.xlu2 %1531  ;;  %6204 = vmatmul.msk.f32.gmra.mxu1 %vm832_vm1, %v8042_v49  ;;  %6217 = vmatmul.msk.f32.gmra.mxu2 %vm832_vm1, %v8219_v43  ;;  %v1364_v58 = vpop.permute.xlu0 %1363  ;;  %v13247_v49 = vld [vmem:[#allocation107_spill] sm:$0xff] }
 0x2c4   : > { %6231 = vmatpush.xpose.msk.msra.mxu3 %vm832_vm1, %v8726_v31  ;;  %6240 = vmatpush.xpose.msk.msrb.mxu1 %vm832_vm1, %v1366_v34  ;;  %v13248_v31 = vld [vmem:[#allocation26_spill] sm:$0xff] }
 0x2c7   : > { %6232 = vmatmul.msk.f32.vlgmr.msra.gmra.mxu3 %vm832_vm1, %v8448_v15  ;;  %v13250_v15 = vld [vmem:[#allocation111_spill] sm:$0xff] }
 0x2c8   : > { %6241 = vmatpush.xpose.msk.msrb.mxu1 %vm832_vm1, %v1364_v58  ;;  %v13249_v58 = vld [vmem:[#allocation109_spill] sm:$0xff] }
 0x2c9   : > { %1893 = vrot.lane.b32.xlu1 %v13245_v52, %s7745_s12  ;;  %1891 = vrot.lane.b32.xlu0 %v13246_v23, %s7745_s12 }
 0x2ca   : > { %1895 = vrot.lane.b32.xlu2 %v13247_v49, %s7745_s12  ;;  %v1445_v43 = vpop.permute.xlu1 %1444 }
 0x2cb   : > { %v8838_v18 = vpop.permute.xlu2 %1537  ;;  %6205 = vmatmul.msk.f32.gmra.mxu1 %vm832_vm1, %v13248_v31  ;;  %6218 = vmatmul.msk.f32.gmra.mxu2 %vm832_vm1, %v8245_v57  ;;  %v8844_v34 = vpop.permute.xlu0 %1442  ;;  %v13251_v31 = vld [vmem:[#allocation128_spill] sm:$0xff] }
 0x2cc   : > { %6242 = vmatpush.xpose.msk.msrb.mxu1 %vm832_vm1, %v8746_v6 }
 0x2cf   : > { %6233 = vmatmul.msk.f32.gmra.mxu3 %vm832_vm1, %v8510_v9  ;;  %v13253_v9 = vld [vmem:[#allocation129_spill] sm:$0xff] }
 0x2d0   : > { %6243 = vmatpush.xpose.msk.msrb.mxu1 %vm832_vm1, %v1360_v46  ;;  %v13252_v46 = vld [vmem:[#allocation33_spill] sm:$0xff] }
 0x2d1   : > { %1899 = vrot.lane.b32.xlu1 %v13249_v58, %s7745_s12  ;;  %1897 = vrot.lane.b32.xlu0 %v13250_v15, %s7745_s12  ;;  %v13268_v15 = vld [vmem:[#allocation137_spill] sm:$0xff] }
 0x2d2   : > { %1974 = vrot.lane.b32.xlu2 %v13251_v31, %s7745_s12  ;;  %v1451_v57 = vpop.permute.xlu1 %1450 }
 0x2d3   : > { %v1544_v49 = vpop.permute.xlu2 %1543  ;;  %6206 = vmatmul.msk.f32.gmra.mxu1 %vm832_vm1, %v8111_v2  ;;  %6219 = vmatmul.msk.f32.gmra.mxu2 %vm832_vm1, %v8311_v7  ;;  %v1449_v6 = vpop.permute.xlu0 %1448  ;;  %v13254_v2 = vld [vmem:[#allocation64_spill] sm:$0xff] }
 0x2d4   : > { %6244 = vmatpush.xpose.msk.msrb.mxu1 %vm832_vm1, %v1358_v35  ;;  %6272 = vmatpush.xpose.msk.msrb.mxu3 %vm832_vm1, %v1544_v49 }
 0x2d7   : > { %6234 = vmatmul.msk.f32.gmra.mxu3 %vm832_vm1, %v8152_v13  ;;  %v13256_v13 = vld [vmem:[#allocation71_spill] sm:$0xff] }
 0x2d8   : > { %6245 = vmatpush.xpose.msk.msrb.mxu1 %vm832_vm1, %v8728_v0 }
 0x2d9   : > { %1978 = vrot.lane.b32.xlu1 %v13252_v46, %s7745_s12  ;;  %1976 = vrot.lane.b32.xlu0 %v13253_v9, %s7745_s12 }
 0x2da   : > { %1980 = vrot.lane.b32.xlu2 %v13254_v2, %s7745_s12  ;;  %v8873_v7 = vpop.permute.xlu1 %1529 }
 0x2db   : > { %v8875_v35 = vpop.permute.xlu2 %1622  ;;  %6207 = vmatmul.msk.f32.gmra.mxu1 %vm832_vm1, %v8159_v17  ;;  %6220 = vmatmul.msk.f32.gmra.mxu2 %vm832_vm1, %v8295_v12  ;;  %v1455_v49 = vpop.permute.xlu0 %1454  ;;  %v13255_v17 = vld [vmem:[#allocation68_spill] sm:$0xff] }
 0x2dc   : > { %6246 = vmatpush.xpose.msk.msrb.mxu1 %vm832_vm1, %v8781_v21  ;;  %6256 = vmatpush.xpose.msk.msrb.mxu2 %vm832_vm1, %v1455_v49  ;;  %v13257_v21 = vld [vmem:[#allocation98_spill] sm:$0xff] }
 0x2df   : > { %6235 = vmatmul.msk.f32.gmra.mxu3 %vm832_vm1, %v8154_v14  ;;  %v8886_v0 = vpop.f32.mrf.mxu1  ;;  %v13258_v14 = vld [vmem:[#allocation91_spill] sm:$0xff] }
 0x2e0   : > { %6247 = vmatpush.xpose.msk.msrb.mxu1 %vm832_vm1, %v8789_v29  ;;  %6257 = vmatpush.xpose.msk.msrb.mxu2 %vm832_vm1, %v1453_v22  ;;  %v13259_v22 = vld [vmem:[#allocation73_spill] sm:$0xff] }
 0x2e1   : > { %1984 = vrot.lane.b32.xlu1 %v13255_v17, %s7745_s12  ;;  %1982 = vrot.lane.b32.xlu0 %v13256_v13, %s7745_s12  ;;  %v13261_v13 = vld [vmem:[#allocation105_spill] sm:$0xff] }
 0x2e2   : > { %1986 = vrot.lane.b32.xlu2 %v13257_v21, %s7745_s12  ;;  %v1536_v49 = vpop.permute.xlu1 %1535  ;;  %v13260_v21 = vld [vmem:[#allocation103_spill] sm:$0xff] }
 0x2e3   : > { %v8897_v12 = vpop.permute.xlu2 %1628  ;;  %6221 = vmatmul.msk.f32.gmra.mxu2 %vm832_vm1, %v13258_v14  ;;  %6248 = vmatmul.msk.f32.vlgmr.msrb.gmra.mxu1 %vm832_vm1, %v8422_v54  ;;  %v1534_v29 = vpop.permute.xlu0 %1533  ;;  %v13262_v14 = vld [vmem:[#allocation134_spill] sm:$0xff] }
 0x2e4   : > { %6258 = vmatpush.xpose.msk.msrb.mxu2 %vm832_vm1, %v1451_v57  ;;  %v13263_v57 = vld [vmem:[#allocation113_spill] sm:$0xff] }
 0x2e7   : > { %6236 = vmatmul.msk.f32.gmra.mxu3 %vm832_vm1, %v13259_v22  ;;  %v8906_v17 = vpop.f32.mrf.mxu1  ;;  %v13264_v22 = vld [vmem:[#allocation106_spill] sm:$0xff] }
 0x2e8   : > { %6259 = vmatpush.xpose.msk.msrb.mxu2 %vm832_vm1, %v1449_v6  ;;  %v13265_v6 = vld [vmem:[#allocation83_spill] sm:$0xff] }
 0x2e9   : > { %2063 = vrot.lane.b32.xlu1 %v13260_v21, %s7745_s12  ;;  %1988 = vrot.lane.b32.xlu0 %v13261_v13, %s7745_s12 }
 0x2ea   : > { %2065 = vrot.lane.b32.xlu2 %v13262_v14, %s7745_s12  ;;  %v1542_v54 = vpop.permute.xlu1 %1541  ;;  %v13270_v14 = vld [vmem:[#allocation125_spill] sm:$0xff] }
 0x2eb   : > { %v8915_v58 = vpop.permute.xlu2 %1707  ;;  %6222 = vmatmul.msk.f32.gmra.mxu2 %vm832_vm1, %v13263_v57  ;;  %6249 = vmatmul.msk.f32.gmra.mxu1 %vm832_vm1, %v13264_v22  ;;  %v1540_v2 = vpop.permute.xlu0 %1539  ;;  %v13266_v57 = vld [vmem:[#allocation124_spill] sm:$0xff] }
 0x2ec   : > { %6260 = vmatpush.xpose.msk.msrb.mxu2 %vm832_vm1, %v8783_v19  ;;  %6273 = vmatpush.xpose.msk.msrb.mxu3 %vm832_vm1, %v1542_v54  ;;  %v13267_v22 = vld [vmem:[#allocation132_spill] sm:$0xff] }
 0x2ef   : > { %6237 = vmatmul.msk.f32.gmra.mxu3 %vm832_vm1, %v13265_v6  ;;  %v8926_v13 = vpop.f32.mrf.mxu1  ;;  %v13269_v6 = vld [vmem:[#allocation117_spill] sm:$0xff] }
 0x2f0   : > { %6261 = vmatpush.xpose.msk.msrb.mxu2 %vm832_vm1, %v1445_v43  ;;  %6274 = vmatpush.xpose.msk.msrb.mxu3 %vm832_vm1, %v1540_v2  ;;  %v13271_v43 = vld [vmem:[#allocation81_spill] sm:$0xff] }
 0x2f1   : > { %2069 = vrot.lane.b32.xlu1 %v13266_v57, %s7745_s12  ;;  %2067 = vrot.lane.b32.xlu0 %v13267_v22, %s7745_s12 }
 0x2f2   : > { %2071 = vrot.lane.b32.xlu2 %v13268_v15, %s7745_s12  ;;  %v8936_v19 = vpop.permute.xlu1 %1620 }
 0x2f3   : > { %v8938_v54 = vpop.permute.xlu2 %1713  ;;  %6223 = vmatmul.msk.f32.gmra.mxu2 %vm832_vm1, %v13269_v6  ;;  %6250 = vmatmul.msk.f32.gmra.mxu1 %vm832_vm1, %v13270_v14  ;;  %v8944_v2 = vpop.permute.xlu0 %1618  ;;  %v13272_v14 = vld [vmem:[#allocation127_spill] sm:$0xff] }
 0x2f4   : > { %6262 = vmatpush.xpose.msk.msrb.mxu2 %vm832_vm1, %v8844_v34  ;;  %6275 = vmatpush.xpose.msk.msrb.mxu3 %vm832_vm1, %v8838_v18  ;;  %v13273_v6 = vld [vmem:[#allocation135_spill] sm:$0xff] }
 0x2f5   : > { %v13274_v34 = vld [vmem:[#allocation139_spill] sm:$0xff] }
 0x2f7   : > { %6238 = vmatmul.msk.f32.gmra.mxu3 %vm832_vm1, %v13271_v43  ;;  %v8952_v15 = vpop.f32.mrf.mxu1 }
 0x2f8   : > { %6263 = vmatpush.xpose.msk.msrb.mxu2 %vm832_vm1, %v8762_v8  ;;  %6276 = vmatpush.xpose.msk.msrb.mxu3 %vm832_vm1, %v1536_v49 }
 0x2f9   : > { %2075 = vrot.lane.b32.xlu1 %v13272_v14, %s7745_s12  ;;  %2073 = vrot.lane.b32.xlu0 %v13273_v6, %s7745_s12  ;;  %v13275_v14 = vld [vmem:[#allocation104_spill] sm:$0xff] }
 0x2fa   : > { %2077 = vrot.lane.b32.xlu2 %v13274_v34, %s7745_s12  ;;  %v1627_v18 = vpop.permute.xlu1 %1626  ;;  %v13276_v34 = vld [vmem:[#allocation130_spill] sm:$0xff] }
 0x2fb   : > { %6251 = vmatmul.msk.f32.gmra.mxu1 %vm832_vm1, %v8185_v25  ;;  %6264 = vmatmul.msk.f32.vlgmr.msrb.gmra.mxu2 %vm832_vm1, %v8426_v55  ;;  %v1625_v43 = vpop.permute.xlu0 %1624  ;;  %v13277_v25 = vld [vmem:[#allocation138_spill] sm:$0xff]  ;;  %v13278_v55 = vld [vmem:[#allocation141_spill] sm:$0xff] }
 0x2fc   : > { %v1720_v8 = vpop.permute.xlu2 %1719  ;;  %6277 = vmatpush.xpose.msk.msrb.mxu3 %vm832_vm1, %v1534_v29 }
 0x2fe   : > { %v8968_v49 = vpop.f32.mrf.mxu2 }
 0x2ff   : > { %6239 = vmatmul.msk.f32.gmra.mxu3 %vm832_vm1, %v13275_v14  ;;  %v8972_v6 = vpop.f32.mrf.mxu1 }
 0x300   : > { %6278 = vmatpush.xpose.msk.msrb.mxu3 %vm832_vm1, %v8820_v16 }
 0x301   : > { %2154 = vrot.lane.b32.xlu1 %v13276_v34, %s7745_s12  ;;  %2152 = vrot.lane.b32.xlu0 %v13277_v25, %s7745_s12  ;;  %v13282_v25 = vld [vmem:[#allocation82_spill] sm:$0xff] }
 0x302   : > { %2156 = vrot.lane.b32.xlu2 %v13278_v55, %s7745_s12  ;;  %v1633_v29 = vpop.permute.xlu1 %1632 }
 0x303   : > { %6252 = vmatmul.msk.f32.gmra.mxu1 %vm832_vm1, %v8187_v26  ;;  %6265 = vmatmul.msk.f32.gmra.mxu2 %vm832_vm1, %v8446_v30  ;;  %v1631_v14 = vpop.permute.xlu0 %1630  ;;  %v13279_v26 = vld [vmem:[#allocation133_spill] sm:$0xff]  ;;  %v13280_v30 = vld [vmem:[#allocation140_spill] sm:$0xff] }
 0x304   : > { %v8986_v57 = vpop.permute.xlu2 %1798  ;;  %6279 = vmatpush.xpose.msk.msrb.mxu3 %vm832_vm1, %v8873_v7  ;;  %6288 = vmatpush.xpose.msk.msra.mxu1 %vm832_vm1, %v1633_v29  ;;  %v13281_v7 = vld [vmem:[#allocation143_spill] sm:$0xff] }
 0x306   : > { %v8991_v16 = vpop.f32.mrf.mxu2 }
 0x307   : > { %6280 = vmatmul.msk.f32.vlgmr.msrb.gmra.mxu3 %vm832_vm1, %v8119_v3  ;;  %v8995_v55 = vpop.f32.mrf.mxu1 }
 0x308   : > { %6289 = vmatpush.xpose.msk.msra.mxu1 %vm832_vm1, %v1631_v14 }
 0x309   : > { %2160 = vrot.lane.b32.xlu1 %v13279_v26, %s7745_s12  ;;  %2158 = vrot.lane.b32.xlu0 %v13280_v30, %s7745_s12  ;;  %v9002_v34 = vpop.f32.mrf.mxu3 }
 0x30a   : > { %2162 = vrot.lane.b32.xlu2 %v13281_v7, %s7745_s12  ;;  %v1712_v29 = vpop.permute.xlu1 %1711 }
 0x30b   : > { %6253 = vmatmul.msk.f32.gmra.mxu1 %vm832_vm1, %v13282_v25  ;;  %6266 = vmatmul.msk.f32.gmra.mxu2 %vm832_vm1, %v8436_v48  ;;  %v9010_v3 = vpop.permute.xlu0 %1709  ;;  %v13283_v25 = vld [vmem:[#allocation136_spill] sm:$0xff]  ;;  %v13284_v48 = vld [vmem:[#allocation142_spill] sm:$0xff] }
 0x30c   : > { %v9012_v14 = vpop.permute.xlu2 %1804  ;;  %6290 = vmatpush.xpose.msk.msra.mxu1 %vm832_vm1, %v8897_v12 }
 0x30e   : > { %v9016_v26 = vpop.f32.mrf.mxu2 }
 0x30f   : > { %6281 = vmatmul.msk.f32.gmra.mxu3 %vm832_vm1, %v8237_v51  ;;  %v9020_v7 = vpop.f32.mrf.mxu1 }
 0x310   : > { %6291 = vmatpush.xpose.msk.msra.mxu1 %vm832_vm1, %v1627_v18 }
 0x311   : > { %2166 = vrot.lane.b32.xlu1 %v13283_v25, %s7745_s12  ;;  %2164 = vrot.lane.b32.xlu0 %v13284_v48, %s7745_s12  ;;  %v9027_v30 = vpop.f32.mrf.mxu3 }
 0x313   : > { %v1718_v22 = vpop.permute.xlu1 %1717  ;;  %6254 = vmatmul.msk.f32.gmra.mxu1 %vm832_vm1, %v8350_v32  ;;  %6267 = vmatmul.msk.f32.gmra.mxu2 %vm832_vm1, %v8189_v27  ;;  %v1716_v12 = vpop.permute.xlu0 %1715  ;;  %v13285_v27 = vld [vmem:[#allocation88_spill] sm:$0xff] }
 0x314   : > { %v1811_v51 = vpop.permute.xlu2 %1810  ;;  %6292 = vmatpush.xpose.msk.msra.mxu1 %vm832_vm1, %v1625_v43 }
 0x315   : > { %6320 = vmatpush.xpose.msk.msra.mxu3 %vm832_vm1, %v1811_v51 }
 0x316   : > { %v9035_v18 = vpop.f32.mrf.mxu2 }
 0x317   : > { %6282 = vmatmul.msk.f32.gmra.mxu3 %vm832_vm1, %v8263_v4  ;;  %v9039_v25 = vpop.f32.mrf.mxu1 }
 0x318   : > { %6293 = vmatpush.xpose.msk.msra.mxu1 %vm832_vm1, %v8875_v35 }
 0x319   : > { %v9043_v32 = vpop.f32.mrf.mxu3 }
 0x31b   : > { %v9045_v48 = vpop.permute.xlu1 %1796  ;;  %6255 = vmatmul.msk.f32.gmra.mxu1 %vm832_vm1, %v13285_v27  ;;  %6268 = vmatmul.msk.f32.gmra.mxu2 %vm832_vm1, %v8215_v38  ;;  %v1722_v51 = vpop.permute.xlu0 %1721 }
 0x31c   : > { %v9051_v43 = vpop.permute.xlu2 %1889  ;;  %6294 = vmatpush.xpose.msk.msra.mxu1 %vm832_vm1, %v8936_v19  ;;  %6304 = vmatpush.xpose.msk.msra.mxu2 %vm832_vm1, %v1722_v51 }
 0x31e   : > { %v9056_v4 = vpop.f32.mrf.mxu2 }
 0x31f   : > { %6283 = vmatmul.msk.f32.gmra.mxu3 %vm832_vm1, %v8247_v59 }
 0x320   : > { %v9060_v35 = vpop.f32.mrf.mxu1  ;;  %6295 = vmatpush.xpose.msk.msra.mxu1 %vm832_vm1, %v8944_v2  ;;  %6305 = vmatpush.xpose.msk.msra.mxu2 %vm832_vm1, %v1720_v8 }
 0x321   : > { %v9065_v38 = vpop.f32.mrf.mxu3 }
 0x323   : > { %v1803_v27 = vpop.permute.xlu1 %1802  ;;  %6269 = vmatmul.msk.f32.gmra.mxu2 %vm832_vm1, %v8217_v39  ;;  %6296 = vmatmul.msk.f32.vlgmr.msra.gmra.mxu1 %vm832_vm1, %v8494_v41  ;;  %v1801_v19 = vpop.permute.xlu0 %1800  ;;  %v9083_v39 = vld [vmem:[#allocation7] sm:$0xff] }
 0x324   : > { %v9071_v51 = vpop.permute.xlu2 %1895  ;;  %6306 = vmatpush.xpose.msk.msra.mxu2 %vm832_vm1, %v1718_v22 }
 0x326   : > { %v9074_v59 = vpop.f32.mrf.mxu2 }
 0x327   : > { %6284 = vmatmul.msk.f32.gmra.mxu3 %vm832_vm1, %v8366_v33 }
 0x328   : > { %v9078_v2 = vpop.f32.mrf.mxu1  ;;  %6307 = vmatpush.xpose.msk.msra.mxu2 %vm832_vm1, %v1716_v12  ;;  %v9096_v12 = vadd.f32 %v9083_v39, %v8886_v0  ;;  %v9112_v0 = vld [vmem:[#allocation7 + $0x18] sm:$0xff] }
 0x329   : > { %v9081_v8 = vpop.f32.mrf.mxu3 }
 0x32a   : > { %13286 = vst [vmem:[#allocation144_spill] sm:$0xff] %v9096_v12 }
 0x32b   : > { %v1809_v46 = vpop.permute.xlu1 %1808  ;;  %6270 = vmatmul.msk.f32.gmra.mxu2 %vm832_vm1, %v8342_v53  ;;  %6297 = vmatmul.msk.f32.gmra.mxu1 %vm832_vm1, %v8472_v10  ;;  %v1807_v22 = vpop.permute.xlu0 %1806 }
 0x32c   : > { %v9089_v41 = vpop.permute.xlu2 %1974  ;;  %6308 = vmatpush.xpose.msk.msra.mxu2 %vm832_vm1, %v8938_v54  ;;  %6321 = vmatpush.xpose.msk.msra.mxu3 %vm832_vm1, %v1809_v46  ;;  %v2402_v46 = vsel %vm2401_vm2, %v9096_v12, -inf  ;;  %v9110_v54 = vld [vmem:[#allocation7 + $0x8] sm:$0xff] }
 0x32e   : > { %v9098_v33 = vpop.f32.mrf.mxu2 }
 0x32f   : > { %6285 = vmatmul.msk.f32.gmra.mxu3 %vm832_vm1, %v13207_v11 }
 0x330   : > { %v9102_v53 = vpop.f32.mrf.mxu1  ;;  %6309 = vmatpush.xpose.msk.msra.mxu2 %vm832_vm1, %v1712_v29  ;;  %6322 = vmatpush.xpose.msk.msra.mxu3 %vm832_vm1, %v1807_v22  ;;  %v9120_v29 = vld [vmem:[#allocation7 + $0x10] sm:$0xff] }
 0x331   : > { %v9106_v10 = vpop.f32.mrf.mxu3  ;;  %v9142_v9 = vadd.f32 %v9120_v29, %v8926_v13  ;;  %v9157_v13 = vld [vmem:[#allocation7 + $0x20] sm:$0xff] }
 0x333   : > { %2403 = vmax.xlane.f32.xlu2 %v2402_v46  ;;  %v9114_v21 = vpop.permute.xlu1 %1887  ;;  %6271 = vmatmul.msk.f32.gmra.mxu2 %vm832_vm1, %v8374_v47  ;;  %v9118_v11 = vpop.permute.xlu0 %1885  ;;  %v9132_v46 = vadd.f32 %v9110_v54, %v8906_v17  ;;  %v9136_v47 = vadd.f32 %v9112_v0, %v8952_v15  ;;  %13289 = vst [vmem:[#allocation147_spill] sm:$0xff] %v9142_v9 }
 0x334   : > { %v9122_v22 = vpop.permute.xlu2 %1980  ;;  %6298 = vmatmul.msk.f32.gmra.mxu1 %vm832_vm1, %v13208_v40  ;;  %6310 = vmatpush.xpose.msk.msra.mxu2 %vm832_vm1, %v9010_v3  ;;  %v9159_v40 = vld [vmem:[#allocation7 + $0x28] sm:$0xff] }
 0x335   : > { %6323 = vmatpush.xpose.msk.msra.mxu3 %vm832_vm1, %v9012_v14  ;;  %13287 = vst [vmem:[#allocation145_spill] sm:$0xff] %v9132_v46  ;;  %v2411_v15 = vsel %vm2401_vm2, %v9136_v47, -inf  ;;  %v2405_v14 = vsel %vm2401_vm2, %v9132_v46, -inf }
 0x336   : > { %13288 = vst [vmem:[#allocation146_spill] sm:$0xff] %v9136_v47  ;;  %v9138_v12 = vpop.f32.mrf.mxu2 }
 0x337   : > { %6286 = vmatmul.msk.f32.gmra.mxu3 %vm832_vm1, %v13206_v28 }
 0x338   : > { %v9146_v3 = vpop.f32.mrf.mxu1  ;;  %6311 = vmatpush.xpose.msk.msra.mxu2 %vm832_vm1, %v8915_v58  ;;  %v2408_v58 = vsel %vm2401_vm2, %v9142_v9, -inf }
 0x339   : > { %6324 = vmatpush.xpose.msk.msra.mxu3 %vm832_vm1, %v1803_v27  ;;  %v9151_v17 = vpop.f32.mrf.mxu3  ;;  %v9165_v27 = vld [vmem:[#allocation7 + $0x30] sm:$0xff] }
 0x33b   : > { %2412 = vmax.xlane.f32.xlu2 %v2411_v15  ;;  %v1894_v28 = vpop.permute.xlu1 %1893  ;;  %2406 = vmax.xlane.f32.xlu0 %v2405_v14  ;;  %v9163_v52 = vpop.permute.xlu0 %1891  ;;  %v9176_v15 = vadd.f32 %v9157_v13, %v8972_v6  ;;  %v9180_v14 = vadd.f32 %v9159_v40, %v8995_v55 }
 0x33c   : > { %v9167_v31 = vpop.permute.xlu2 %1986  ;;  %2409 = vmax.xlane.f32.xlu1 %v2408_v58  ;;  %6299 = vmatmul.msk.f32.gmra.mxu1 %vm832_vm1, %v13210_v61  ;;  %v9186_v58 = vadd.f32 %v9165_v27, %v9020_v7  ;;  %v9200_v61 = vld [vmem:[#allocation7 + $0x38] sm:$0xff] }
 0x33d   : > { %6312 = vmatmul.msk.f32.vlgmr.msra.gmra.mxu2 %vm832_vm1, %v8450_v44  ;;  %6325 = vmatpush.xpose.msk.msra.mxu3 %vm832_vm1, %v1801_v19  ;;  %v2414_v55 = vsel %vm2401_vm2, %v9176_v15, -inf  ;;  %v2417_v19 = vsel %vm2401_vm2, %v9180_v14, -inf }
 0x33e   : > { %v9182_v9 = vpop.f32.mrf.mxu2 }
 0x33f   : > { %6287 = vmatmul.msk.f32.gmra.mxu3 %vm832_vm1, %v8474_v56  ;;  %v2420_v56 = vsel %vm2401_vm2, %v9186_v58, -inf }
 0x340   : > { %v9190_v44 = vpop.f32.mrf.mxu1 }
 0x341   : > { %6326 = vmatpush.xpose.msk.msra.mxu3 %vm832_vm1, %v8986_v57  ;;  %v9194_v6 = vpop.f32.mrf.mxu3  ;;  %v9214_v57 = vadd.f32 %v9083_v39, %v8968_v49 }
 0x343   : > { %2415 = vmax.xlane.f32.xlu2 %v2414_v55  ;;  %v1900_v7 = vpop.permute.xlu1 %1899  ;;  %2418 = vmax.xlane.f32.xlu0 %v2417_v19  ;;  %v1898_v47 = vpop.permute.xlu0 %1897  ;;  %13290 = vst [vmem:[#allocation148_spill] sm:$0xff] %v9214_v57  ;;  %v9218_v55 = vadd.f32 %v9200_v61, %v9039_v25  ;;  %v9225_v19 = vadd.f32 %v9110_v54, %v8991_v16 }
 0x344   : > { %v9204_v46 = vpop.permute.xlu2 %2065  ;;  %2421 = vmax.xlane.f32.xlu1 %v2420_v56  ;;  %6300 = vmatmul.msk.f32.gmra.mxu1 %vm832_vm1, %v13209_v37 }
 0x345   : > { %6313 = vmatmul.msk.f32.gmra.mxu2 %vm832_vm1, %v13219_v45  ;;  %6327 = vmatpush.xpose.msk.msra.mxu3 %vm832_vm1, %v9045_v48  ;;  %13291 = vst [vmem:[#allocation149_spill] sm:$0xff] %v9225_v19  ;;  %v2423_v49 = vsel %vm2401_vm2, %v9218_v55, -inf  ;;  %v2429_v16 = vsel %vm2401_vm2, %v9225_v19, -inf }
 0x346   : > { %6336 = vmatpush.xpose.msk.msrb.mxu0 %vm832_vm1, %v1900_v7  ;;  %v9221_v56 = vpop.f32.mrf.mxu2  ;;  %v2426_v7 = vsel %vm2401_vm2, %v9214_v57, -inf }
 0x348   : > { %6328 = vmatmul.msk.f32.vlgmr.msra.gmra.mxu3 %vm832_vm1, %v13229_v50  ;;  %v9229_v48 = vpop.f32.mrf.mxu1 }
 0x34a   : > { %6337 = vmatpush.xpose.msk.msrb.mxu0 %vm832_vm1, %v1898_v47  ;;  %v9234_v25 = vpop.f32.mrf.mxu3  ;;  %v13292_v47 = vld [vmem:[#allocation118_spill] sm:$0xff] }
 0x34b   : > { %2424 = vmax.xlane.f32.xlu2 %v2423_v49  ;;  %v9238_v45 = vpop.permute.xlu1 %1978  ;;  %2427 = vmax.xlane.f32.xlu0 %v2426_v7  ;;  %v9242_v50 = vpop.permute.xlu0 %1976  ;;  %v9252_v49 = vadd.f32 %v9120_v29, %v9016_v26  ;;  %v9256_v7 = vadd.f32 %v9112_v0, %v9035_v18 }
 0x34c   : > { %v9244_v37 = vpop.permute.xlu2 %2071  ;;  %2430 = vmax.xlane.f32.xlu1 %v2429_v16  ;;  %6301 = vmatmul.msk.f32.gmra.mxu1 %vm832_vm1, %v13211_v62  ;;  %v9264_v16 = vadd.f32 %v9157_v13, %v9056_v4 }
 0x34d   : > { %6314 = vmatmul.msk.f32.gmra.mxu2 %vm832_vm1, %v13292_v47  ;;  %13293 = vst [vmem:[#allocation150_spill] sm:$0xff] %v9252_v49  ;;  %v2432_v26 = vsel %vm2401_vm2, %v9252_v49, -inf  ;;  %v2435_v18 = vsel %vm2401_vm2, %v9256_v7, -inf  ;;  %v13296_v49 = vld [vmem:[#allocation52_spill] sm:$0xff] }
 0x34e   : > { %13294 = vst [vmem:[#allocation151_spill] sm:$0xff] %v9256_v7  ;;  %6338 = vmatpush.xpose.msk.msrb.mxu0 %vm832_vm1, %v9071_v51  ;;  %v9260_v57 = vpop.f32.mrf.mxu2  ;;  %v2438_v4 = vsel %vm2401_vm2, %v9264_v16, -inf  ;;  %v9285_v7 = vadd.f32 %v9159_v40, %v9074_v59 }
 0x350   : > { %6329 = vmatmul.msk.f32.gmra.mxu3 %vm832_vm1, %v13231_v24  ;;  %v9277_v19 = vpop.f32.mrf.mxu1 }
 0x352   : > { %6339 = vmatpush.xpose.msk.msrb.mxu0 %vm832_vm1, %v1894_v28  ;;  %v9271_v47 = vpop.f32.mrf.mxu3  ;;  %v13295_v28 = vld [vmem:[#allocation93_spill] sm:$0xff] }
 0x353   : > { %2433 = vmax.xlane.f32.xlu2 %v2432_v26  ;;  %v1985_v51 = vpop.permute.xlu1 %1984  ;;  %2436 = vmax.xlane.f32.xlu0 %v2435_v18  ;;  %v1983_v62 = vpop.permute.xlu0 %1982  ;;  %v9289_v26 = vadd.f32 %v9165_v27, %v9098_v33  ;;  %v2441_v33 = vsel %vm2401_vm2, %v9285_v7, -inf }
 0x354   : > { %v2078_v24 = vpop.permute.xlu2 %2077  ;;  %2439 = vmax.xlane.f32.xlu1 %v2438_v4  ;;  %6302 = vmatmul.msk.f32.gmra.mxu1 %vm832_vm1, %v13295_v28  ;;  %v9298_v4 = vadd.f32 %v9200_v61, %v9138_v12  ;;  %v9321_v28 = vadd.f32 %v9083_v39, %v9002_v34 }
 0x355   : > { %6315 = vmatmul.msk.f32.gmra.mxu2 %vm832_vm1, %v13296_v49 }
 0x356   : > { %6340 = vmatpush.xpose.msk.msrb.mxu0 %vm832_vm1, %v9163_v52  ;;  %6368 = vmatpush.xpose.msk.msrb.mxu2 %vm832_vm1, %v2078_v24  ;;  %v9294_v18 = vpop.f32.mrf.mxu2  ;;  %v2444_v24 = vsel %vm2401_vm2, %v9289_v26, -inf  ;;  %v2447_v12 = vsel %vm2401_vm2, %v9298_v4, -inf }
 0x358   : > { %6330 = vmatmul.msk.f32.gmra.mxu3 %vm832_vm1, %v8482_v36  ;;  %v13297_v36 = vld [vmem:[#allocation94_spill] sm:$0xff] }
 0x35a   : > { %6341 = vmatpush.xpose.msk.msrb.mxu0 %vm832_vm1, %v9051_v43  ;;  %v9306_v59 = vpop.f32.mrf.mxu3  ;;  %v13298_v43 = vld [vmem:[#allocation59_spill] sm:$0xff] }
 0x35b   : > { %2442 = vmax.xlane.f32.xlu2 %v2441_v33  ;;  %v9310_v52 = vpop.permute.xlu1 %2063  ;;  %2445 = vmax.xlane.f32.xlu0 %v2444_v24  ;;  %v1989_v49 = vpop.permute.xlu0 %1988  ;;  %v9325_v33 = vadd.f32 %v9110_v54, %v9027_v30  ;;  %v2450_v30 = vsel %vm2401_vm2, %v9321_v28, -inf }
 0x35c   : > { %2448 = vmax.xlane.f32.xlu1 %v2447_v12  ;;  %6303 = vmatmul.msk.f32.gmra.mxu1 %vm832_vm1, %v13297_v36  ;;  %v9327_v24 = vpop.f32.mrf.mxu1 }
 0x35d   : > { %6316 = vmatmul.msk.f32.gmra.mxu2 %vm832_vm1, %v13298_v43  ;;  %6352 = vmatpush.xpose.msk.msrb.mxu1 %vm832_vm1, %v1989_v49  ;;  %v9335_v43 = vadd.f32 %v9120_v29, %v9043_v32 }
 0x35e   : > { %6342 = vmatpush.xpose.msk.msrb.mxu0 %vm832_vm1, %v9114_v21  ;;  %v9331_v12 = vpop.f32.mrf.mxu2  ;;  %v2453_v21 = vsel %vm2401_vm2, %v9325_v33, -inf }
 0x35f   : > { %v2456_v49 = vsel %vm2401_vm2, %v9335_v43, -inf }
 0x360   : > { %6331 = vmatmul.msk.f32.gmra.mxu3 %vm832_vm1, %v13233_v63 }
 0x361   : > { %6353 = vmatpush.xpose.msk.msrb.mxu1 %vm832_vm1, %v9167_v31  ;;  %v13299_v31 = vld [vmem:[#allocation60_spill] sm:$0xff] }
 0x362   : > { %6343 = vmatpush.xpose.msk.msrb.mxu0 %vm832_vm1, %v9118_v11  ;;  %v9345_v34 = vpop.f32.mrf.mxu3  ;;  %v9357_v11 = vadd.f32 %v9112_v0, %v9065_v38 }
 0x363   : > { %2451 = vmax.xlane.f32.xlu2 %v2450_v30  ;;  %v2070_v32 = vpop.permute.xlu1 %2069  ;;  %2454 = vmax.xlane.f32.xlu0 %v2453_v21  ;;  %v2068_v63 = vpop.permute.xlu0 %2067  ;;  %v9361_v30 = vadd.f32 %v9157_v13, %v9081_v8 }
 0x364   : > { %2457 = vmax.xlane.f32.xlu1 %v2456_v49  ;;  %v9368_v49 = vadd.f32 %v9159_v40, %v9106_v10  ;;  %v2459_v38 = vsel %vm2401_vm2, %v9357_v11, -inf }
 0x365   : > { %6317 = vmatmul.msk.f32.gmra.mxu2 %vm832_vm1, %v13299_v31  ;;  %6344 = vmatmul.msk.f32.vlgmr.msrb.gmra.mxu0 %vm832_vm1, %v13243_v5  ;;  %13300 = vst [vmem:[#allocation152_spill] sm:$0xff] %v9361_v30  ;;  %v9370_v31 = vpop.f32.mrf.mxu1  ;;  %v2462_v8 = vsel %vm2401_vm2, %v9361_v30, -inf }
 0x366   : > { %6354 = vmatpush.xpose.msk.msrb.mxu1 %vm832_vm1, %v1985_v51  ;;  %v9364_v21 = vpop.f32.mrf.mxu2  ;;  %v2465_v10 = vsel %vm2401_vm2, %v9368_v49, -inf }
 0x368   : > { %6332 = vmatmul.msk.f32.gmra.mxu3 %vm832_vm1, %v13234_v1  ;;  %v13301_v1 = vld [vmem:[#allocation92_spill] sm:$0xff] }
 0x36a   : > { %6355 = vmatpush.xpose.msk.msrb.mxu1 %vm832_vm1, %v1983_v62  ;;  %v9381_v36 = vpop.f32.mrf.mxu3  ;;  %v9390_v62 = vadd.f32 %v9165_v27, %v9151_v17 }
 0x36b   : > { %2460 = vmax.xlane.f32.xlu2 %v2459_v38  ;;  %v2076_v51 = vpop.permute.xlu1 %2075  ;;  %2463 = vmax.xlane.f32.xlu0 %v2462_v8  ;;  %v2074_v5 = vpop.permute.xlu0 %2073  ;;  %v9394_v38 = vadd.f32 %v9200_v61, %v9194_v6 }
 0x36c   : > { %2466 = vmax.xlane.f32.xlu1 %v2465_v10  ;;  %6369 = vmatpush.xpose.msk.msrb.mxu2 %vm832_vm1, %v2076_v51  ;;  %13302 = vst [vmem:[#allocation153_spill] sm:$0xff] %v9390_v62  ;;  %v9402_v51 = vadd.f32 %v9083_v39, %v9060_v35  ;;  %v2468_v6 = vsel %vm2401_vm2, %v9390_v62, -inf  ;;  %v9429_v35 = vadd.f32 %v9110_v54, %v9078_v2  ;;  %v9907_v62 = vld [vmem:[#allocation7 + $0xb0] sm:$0xff] }
 0x36d   : > { %6318 = vmatmul.msk.f32.gmra.mxu2 %vm832_vm1, %v13301_v1  ;;  %6345 = vmatmul.msk.f32.gmra.mxu0 %vm832_vm1, %v13242_v20  ;;  %13303 = vst [vmem:[#allocation154_spill] sm:$0xff] %v9394_v38  ;;  %v9407_v17 = vpop.f32.mrf.mxu1 }
 0x36e   : > { %6356 = vmatpush.xpose.msk.msrb.mxu1 %vm832_vm1, %v9122_v22  ;;  %v9398_v8 = vpop.f32.mrf.mxu2  ;;  %13304 = vst [vmem:[#allocation155_spill] sm:$0xff] %v9402_v51  ;;  %v2471_v22 = vsel %vm2401_vm2, %v9394_v38, -inf  ;;  %v2474_v39 = vsel %vm2401_vm2, %v9402_v51, -inf }
 0x36f   : > { %13306 = vst [vmem:[#allocation156_spill] sm:$0xff] %v9429_v35 }
 0x370   : > { %6333 = vmatmul.msk.f32.gmra.mxu3 %vm832_vm1, %v13239_v60  ;;  %6370 = vmatpush.xpose.msk.msrb.mxu2 %vm832_vm1, %v2074_v5  ;;  %v13305_v5 = vld [vmem:[#allocation99_spill] sm:$0xff]  ;;  %v13309_v60 = vld [vmem:[#allocation72_spill] sm:$0xff] }
 0x372   : > { %6357 = vmatpush.xpose.msk.msrb.mxu1 %vm832_vm1, %v9238_v45 }
 0x373   : > { %2469 = vmax.xlane.f32.xlu2 %v2468_v6  ;;  %v9415_v10 = vpop.permute.xlu1 %2154  ;;  %2472 = vmax.xlane.f32.xlu0 %v2471_v22  ;;  %v9425_v45 = vpop.permute.xlu0 %2152  ;;  %v9433_v6 = vadd.f32 %v9120_v29, %v9102_v53  ;;  %v2477_v53 = vsel %vm2401_vm2, %v9429_v35, -inf  ;;  %v9465_v29 = vadd.f32 %v9157_v13, %v9190_v44  ;;  %v9487_v13 = vld [vmem:[#allocation7 + $0x40] sm:$0xff]  ;;  %v9881_v35 = vld [vmem:[#allocation7 + $0xa8] sm:$0xff] }
 0x374   : > { %2475 = vmax.xlane.f32.xlu1 %v2474_v39  ;;  %6371 = vmatpush.xpose.msk.msrb.mxu2 %vm832_vm1, %v9244_v37  ;;  %v9435_v22 = vpop.f32.mrf.mxu3  ;;  %v9443_v39 = vadd.f32 %v9112_v0, %v9146_v3  ;;  %v9469_v3 = vadd.f32 %v9159_v40, %v9229_v48  ;;  %v2157_v48 = vpop.permute.xlu2 %2156 }
 0x375   : > { %6319 = vmatmul.msk.f32.gmra.mxu2 %vm832_vm1, %v13305_v5  ;;  %6346 = vmatmul.msk.f32.gmra.mxu0 %vm832_vm1, %v13244_v42  ;;  %13307 = vst [vmem:[#allocation157_spill] sm:$0xff] %v9433_v6  ;;  %v9456_v0 = vpop.f32.mrf.mxu1  ;;  %v2486_v44 = vsel %vm2401_vm2, %v9465_v29, -inf  ;;  %v9531_v5 = vld [vmem:[#allocation7 + $0x60] sm:$0xff]  ;;  %v13322_v42 = vld [vmem:[#allocation33_spill] sm:$0xff] }
 0x376   : > { %6358 = vmatpush.xpose.msk.msrb.mxu1 %vm832_vm1, %v9242_v50  ;;  %v9439_v37 = vpop.f32.mrf.mxu2  ;;  %13308 = vst [vmem:[#allocation158_spill] sm:$0xff] %v9443_v39  ;;  %v2480_v50 = vsel %vm2401_vm2, %v9433_v6, -inf  ;;  %v2483_v54 = vsel %vm2401_vm2, %v9443_v39, -inf  ;;  %v2489_v40 = vsel %vm2401_vm2, %v9469_v3, -inf  ;;  %v9877_v6 = vld [vmem:[#allocation7 + $0xa0] sm:$0xff] }
 0x377   : > { %13311 = vst [vmem:[#allocation159_spill] sm:$0xff] %v9465_v29 }
 0x378   : > { %6334 = vmatmul.msk.f32.gmra.mxu3 %vm832_vm1, %v13309_v60  ;;  %6372 = vmatpush.xpose.msk.msrb.mxu2 %vm832_vm1, %v2070_v32  ;;  %13312 = vst [vmem:[#allocation160_spill] sm:$0xff] %v9469_v3  ;;  %v9491_v60 = vld [vmem:[#allocation7 + $0x48] sm:$0xff] }
 0x379   : > { %v13362_v3 = vld [vmem:[#allocation133_spill] sm:$0xff] }
 0x37a   : > { %6359 = vmatpush.xpose.msk.msrb.mxu1 %vm832_vm1, %v9089_v41  ;;  %v13310_v41 = vld [vmem:[#allocation128_spill] sm:$0xff] }
 0x37b   : > { %2478 = vmax.xlane.f32.xlu2 %v2477_v53  ;;  %v2161_v2 = vpop.permute.xlu1 %2160  ;;  %2481 = vmax.xlane.f32.xlu0 %v2480_v50  ;;  %v9475_v53 = vadd.f32 %v9165_v27, %v9277_v19 }
 0x37c   : > { %2484 = vmax.xlane.f32.xlu1 %v2483_v54  ;;  %6373 = vmatpush.xpose.msk.msrb.mxu2 %vm832_vm1, %v2068_v63  ;;  %v2159_v63 = vpop.permute.xlu0 %2158  ;;  %v9477_v50 = vpop.f32.mrf.mxu3  ;;  %v13314_v54 = vld [vmem:[#allocation101_spill] sm:$0xff] }
 0x37d   : > { %6347 = vmatmul.msk.f32.gmra.mxu0 %vm832_vm1, %v13246_v23  ;;  %6360 = vmatmul.msk.f32.vlgmr.msrb.gmra.mxu1 %vm832_vm1, %v13310_v41  ;;  %13313 = vst [vmem:[#allocation161_spill] sm:$0xff] %v9475_v53  ;;  %v2492_v19 = vsel %vm2401_vm2, %v9475_v53, -inf  ;;  %v9507_v41 = vpop.f32.mrf.mxu1  ;;  %v2163_v20 = vpop.permute.xlu2 %2162 }
 0x37e   : > { %v9471_v32 = vpop.f32.mrf.mxu2 }
 0x380   : > { %6335 = vmatmul.msk.f32.gmra.mxu3 %vm832_vm1, %v13314_v54  ;;  %6374 = vmatpush.xpose.msk.msrb.mxu2 %vm832_vm1, %v9204_v46  ;;  %v13315_v46 = vld [vmem:[#allocation84_spill] sm:$0xff]  ;;  %v13316_v54 = vld [vmem:[#allocation129_spill] sm:$0xff] }
 0x383   : > { %2487 = vmax.xlane.f32.xlu2 %v2486_v44  ;;  %v2167_v27 = vpop.permute.xlu1 %2166  ;;  %2490 = vmax.xlane.f32.xlu0 %v2489_v40  ;;  %v9501_v44 = vadd.f32 %v9487_v13, %v9182_v9  ;;  %v9505_v40 = vadd.f32 %v9200_v61, %v9327_v24 }
 0x384   : > { %2493 = vmax.xlane.f32.xlu1 %v2492_v19  ;;  %6375 = vmatpush.xpose.msk.msrb.mxu2 %vm832_vm1, %v9310_v52  ;;  %v9512_v52 = vadd.f32 %v9491_v60, %v9221_v56  ;;  %v13320_v19 = vld [vmem:[#allocation103_spill] sm:$0xff]  ;;  %v2165_v1 = vpop.permute.xlu0 %2164  ;;  %v9518_v9 = vpop.f32.mrf.mxu3 }
 0x385   : > { %6348 = vmatmul.msk.f32.gmra.mxu0 %vm832_vm1, %v13315_v46  ;;  %6361 = vmatmul.msk.f32.gmra.mxu1 %vm832_vm1, %v13316_v54  ;;  %13317 = vst [vmem:[#allocation162_spill] sm:$0xff] %v9501_v44  ;;  %v2495_v61 = vsel %vm2401_vm2, %v9505_v40, -inf  ;;  %v2498_v24 = vsel %vm2401_vm2, %v9501_v44, -inf  ;;  %v9527_v56 = vld [vmem:[#allocation7 + $0x58] sm:$0xff]  ;;  %v9552_v46 = vpop.f32.mrf.mxu1 }
 0x386   : > { %13318 = vst [vmem:[#allocation163_spill] sm:$0xff] %v9505_v40  ;;  %6384 = vmatpush.xpose.msk.msrb.mxu3 %vm832_vm1, %v2167_v27  ;;  %v9516_v54 = vpop.f32.mrf.mxu2  ;;  %v9525_v27 = vld [vmem:[#allocation7 + $0x50] sm:$0xff] }
 0x387   : > { %13319 = vst [vmem:[#allocation164_spill] sm:$0xff] %v9512_v52  ;;  %6376 = vmatmul.msk.f32.vlgmr.msrb.gmra.mxu2 %vm832_vm1, %v13320_v19  ;;  %v2501_v19 = vsel %vm2401_vm2, %v9512_v52, -inf  ;;  %v9539_v23 = vadd.f32 %v9525_v27, %v9260_v57  ;;  %v13357_v52 = vld [vmem:[#allocation140_spill] sm:$0xff] }
 0x389   : > { %13323 = vst [vmem:[#allocation165_spill] sm:$0xff] %v9539_v23  ;;  %v2504_v57 = vsel %vm2401_vm2, %v9539_v23, -inf  ;;  %v13328_v23 = vld [vmem:[#allocation64_spill] sm:$0xff] }
 0x38a   : > { %6385 = vmatpush.xpose.msk.msrb.mxu3 %vm832_vm1, %v2165_v1  ;;  %v13321_v1 = vld [vmem:[#allocation107_spill] sm:$0xff] }
 0x38b   : > { %2496 = vmax.xlane.f32.xlu2 %v2495_v61  ;;  %2499 = vmax.xlane.f32.xlu0 %v2498_v24  ;;  %v9543_v61 = vadd.f32 %v9527_v56, %v9294_v18  ;;  %v13326_v24 = vld [vmem:[#allocation134_spill] sm:$0xff] }
 0x38c   : > { %2502 = vmax.xlane.f32.xlu1 %v2501_v19  ;;  %v9548_v19 = vadd.f32 %v9531_v5, %v9331_v12  ;;  %v9569_v44 = vpop.f32.mrf.mxu3 }
 0x38d   : > { %6349 = vmatmul.msk.f32.gmra.mxu0 %vm832_vm1, %v13321_v1  ;;  %6362 = vmatmul.msk.f32.gmra.mxu1 %vm832_vm1, %v13322_v42  ;;  %13324 = vst [vmem:[#allocation166_spill] sm:$0xff] %v9543_v61  ;;  %v2507_v18 = vsel %vm2401_vm2, %v9543_v61, -inf  ;;  %v9563_v1 = vld [vmem:[#allocation7 + $0x70] sm:$0xff] }
 0x38e   : > { %6386 = vmatpush.xpose.msk.msrb.mxu3 %vm832_vm1, %v2163_v20  ;;  %13325 = vst [vmem:[#allocation167_spill] sm:$0xff] %v9548_v19  ;;  %v9554_v42 = vpop.f32.mrf.mxu2  ;;  %v9561_v20 = vld [vmem:[#allocation7 + $0x68] sm:$0xff]  ;;  %v2510_v12 = vsel %vm2401_vm2, %v9548_v19, -inf }
 0x38f   : > { %6377 = vmatmul.msk.f32.gmra.mxu2 %vm832_vm1, %v13326_v24  ;;  %v9567_v24 = vld [vmem:[#allocation7 + $0x78] sm:$0xff]  ;;  %v9577_v61 = vadd.f32 %v9561_v20, %v9364_v21 }
 0x391   : > { %13329 = vst [vmem:[#allocation168_spill] sm:$0xff] %v9577_v61  ;;  %v2513_v21 = vsel %vm2401_vm2, %v9577_v61, -inf  ;;  %v9701_v61 = vadd.f32 %v9491_v60, %v9407_v17 }
 0x392   : > { %6387 = vmatpush.xpose.msk.msrb.mxu3 %vm832_vm1, %v2161_v2  ;;  %v13327_v2 = vld [vmem:[#allocation111_spill] sm:$0xff] }
 0x393   : > { %2505 = vmax.xlane.f32.xlu2 %v2504_v57  ;;  %2508 = vmax.xlane.f32.xlu0 %v2507_v18  ;;  %v9581_v57 = vadd.f32 %v9563_v1, %v9398_v8  ;;  %v9586_v18 = vadd.f32 %v9567_v24, %v9439_v37  ;;  %13353 = vst [vmem:[#allocation180_spill] sm:$0xff] %v9701_v61 }
 0x394   : > { %2511 = vmax.xlane.f32.xlu1 %v2510_v12  ;;  %v13332_v12 = vld [vmem:[#allocation132_spill] sm:$0xff] }
 0x395   : > { %6350 = vmatmul.msk.f32.gmra.mxu0 %vm832_vm1, %v13327_v2  ;;  %6363 = vmatmul.msk.f32.gmra.mxu1 %vm832_vm1, %v13328_v23  ;;  %13330 = vst [vmem:[#allocation169_spill] sm:$0xff] %v9581_v57  ;;  %v9590_v2 = vpop.f32.mrf.mxu1  ;;  %v2516_v8 = vsel %vm2401_vm2, %v9581_v57, -inf  ;;  %v13333_v23 = vld [vmem:[#allocation109_spill] sm:$0xff] }
 0x396   : > { %6388 = vmatpush.xpose.msk.msrb.mxu3 %vm832_vm1, %v2159_v63  ;;  %13331 = vst [vmem:[#allocation170_spill] sm:$0xff] %v9586_v18  ;;  %v2519_v63 = vsel %vm2401_vm2, %v9586_v18, -inf  ;;  %v9599_v37 = vpop.f32.mrf.mxu2  ;;  %v13351_v18 = vld [vmem:[#allocation105_spill] sm:$0xff] }
 0x397   : > { %6378 = vmatmul.msk.f32.gmra.mxu2 %vm832_vm1, %v13332_v12  ;;  %v13334_v12 = vld [vmem:[#allocation71_spill] sm:$0xff] }
 0x39a   : > { %6389 = vmatpush.xpose.msk.msrb.mxu3 %vm832_vm1, %v2157_v48  ;;  %v9607_v48 = vadd.f32 %v9487_v13, %v9234_v25 }
 0x39b   : > { %2514 = vmax.xlane.f32.xlu2 %v2513_v21  ;;  %2517 = vmax.xlane.f32.xlu0 %v2516_v8  ;;  %v9611_v21 = vadd.f32 %v9491_v60, %v9271_v47  ;;  %v9613_v8 = vpop.f32.mrf.mxu3 }
 0x39c   : > { %2520 = vmax.xlane.f32.xlu1 %v2519_v63  ;;  %13335 = vst [vmem:[#allocation171_spill] sm:$0xff] %v9607_v48  ;;  %v9619_v63 = vadd.f32 %v9525_v27, %v9306_v59  ;;  %v2522_v25 = vsel %vm2401_vm2, %v9607_v48, -inf  ;;  %v13339_v59 = vld [vmem:[#allocation68_spill] sm:$0xff]  ;;  %v13345_v48 = vld [vmem:[#allocation98_spill] sm:$0xff] }
 0x39d   : > { %6351 = vmatmul.msk.f32.gmra.mxu0 %vm832_vm1, %v13333_v23  ;;  %6364 = vmatmul.msk.f32.gmra.mxu1 %vm832_vm1, %v13334_v12  ;;  %13336 = vst [vmem:[#allocation172_spill] sm:$0xff] %v9611_v21  ;;  %v13338_v23 = vld [vmem:[#allocation124_spill] sm:$0xff]  ;;  %v2525_v47 = vsel %vm2401_vm2, %v9611_v21, -inf  ;;  %v1434_v12 = vpop.f32.mrf.mxu1  ;;  %v9641_v21 = vadd.f32 %v9531_v5, %v9381_v36 }
 0x39e   : > { %6390 = vmatpush.xpose.msk.msrb.mxu3 %vm832_vm1, %v9415_v10  ;;  %13337 = vst [vmem:[#allocation173_spill] sm:$0xff] %v9619_v63  ;;  %v2528_v10 = vsel %vm2401_vm2, %v9619_v63, -inf }
 0x39f   : > { %6379 = vmatmul.msk.f32.gmra.mxu2 %vm832_vm1, %v13338_v23  ;;  %v13340_v23 = vld [vmem:[#allocation138_spill] sm:$0xff]  ;;  %13342 = vst [vmem:[#allocation175_spill] sm:$0xff] %v9641_v21  ;;  %v2534_v36 = vsel %vm2401_vm2, %v9641_v21, -inf }
 0x3a2   : > { %6391 = vmatpush.xpose.msk.msrb.mxu3 %vm832_vm1, %v9425_v45  ;;  %v9637_v45 = vadd.f32 %v9527_v56, %v9345_v34 }
 0x3a3   : > { %2523 = vmax.xlane.f32.xlu2 %v2522_v25  ;;  %2526 = vmax.xlane.f32.xlu0 %v2525_v47  ;;  %v9643_v25 = vpop.f32.mrf.mxu2 }
 0x3a4   : > { %2529 = vmax.xlane.f32.xlu1 %v2528_v10  ;;  %13341 = vst [vmem:[#allocation174_spill] sm:$0xff] %v9637_v45  ;;  %v9649_v10 = vadd.f32 %v9561_v20, %v9435_v22  ;;  %v2531_v34 = vsel %vm2401_vm2, %v9637_v45, -inf  ;;  %v13346_v22 = vld [vmem:[#allocation130_spill] sm:$0xff]  ;;  %v9671_v45 = vadd.f32 %v9567_v24, %v9518_v9 }
 0x3a5   : > { %6365 = vmatmul.msk.f32.gmra.mxu1 %vm832_vm1, %v13339_v59  ;;  %6392 = vmatmul.msk.f32.vlgmr.msrb.gmra.mxu3 %vm832_vm1, %v13340_v23  ;;  %v13344_v59 = vld [vmem:[#allocation137_spill] sm:$0xff]  ;;  %v9653_v23 = vpop.f32.mrf.mxu3 }
 0x3a6   : > { %v9645_v47 = vpop.xlane.xlu2 %2403  ;;  %13343 = vst [vmem:[#allocation176_spill] sm:$0xff] %v9649_v10  ;;  %v2537_v63 = vsel %vm2401_vm2, %v9649_v10, -inf  ;;  %v2543_v57 = vsel %vm2401_vm2, %v9671_v45, -inf }
 0x3a7   : > { %6380 = vmatmul.msk.f32.gmra.mxu2 %vm832_vm1, %v13344_v59  ;;  %v9667_v59 = vadd.f32 %v9563_v1, %v9477_v50  ;;  %13348 = vst [vmem:[#allocation178_spill] sm:$0xff] %v9671_v45  ;;  %v13356_v45 = vld [vmem:[#allocation127_spill] sm:$0xff] }
 0x3a9   : > { %13347 = vst [vmem:[#allocation177_spill] sm:$0xff] %v9667_v59  ;;  %v2540_v9 = vsel %vm2401_vm2, %v9667_v59, -inf  ;;  %v9705_v59 = vadd.f32 %v9525_v27, %v9456_v0  ;;  %v2549_v0 = vsel %vm2401_vm2, %v9701_v61, -inf  ;;  %v9737_v61 = vadd.f32 %v9561_v20, %v9590_v2 }
 0x3ab   : > { %2532 = vmax.xlane.f32.xlu2 %v2531_v34  ;;  %2535 = vmax.xlane.f32.xlu0 %v2534_v36  ;;  %v1437_v34 = vpop.f32.mrf.mxu1  ;;  %v9685_v50 = vpop.f32.mrf.mxu2  ;;  %13354 = vst [vmem:[#allocation181_spill] sm:$0xff] %v9705_v59 }
 0x3ac   : > { %2538 = vmax.xlane.f32.xlu1 %v2537_v63  ;;  %v9677_v63 = vadd.f32 %v9487_v13, %v9370_v31  ;;  %13359 = vst [vmem:[#allocation184_spill] sm:$0xff] %v9737_v61 }
 0x3ad   : > { %6366 = vmatmul.msk.f32.gmra.mxu1 %vm832_vm1, %v13345_v48  ;;  %6393 = vmatmul.msk.f32.gmra.mxu3 %vm832_vm1, %v13346_v22  ;;  %v13350_v22 = vld [vmem:[#allocation135_spill] sm:$0xff]  ;;  %v9687_v10 = vpop.f32.mrf.mxu3 }
 0x3ae   : > { %v9673_v36 = vpop.xlane.xlu2 %2412  ;;  %13349 = vst [vmem:[#allocation179_spill] sm:$0xff] %v9677_v63  ;;  %v9681_v48 = vpop.xlane.xlu0 %2406  ;;  %v2546_v31 = vsel %vm2401_vm2, %v9677_v63, -inf  ;;  %v2552_v63 = vsel %vm2401_vm2, %v9705_v59, -inf }
 0x3af   : > { %v9679_v21 = vpop.xlane.xlu1 %2409  ;;  %6381 = vmatmul.msk.f32.gmra.mxu2 %vm832_vm1, %v13350_v22  ;;  %v13352_v22 = vld [vmem:[#allocation141_spill] sm:$0xff] }
 0x3b3   : > { %2541 = vmax.xlane.f32.xlu2 %v2540_v9  ;;  %2544 = vmax.xlane.f32.xlu0 %v2543_v57  ;;  %v9711_v57 = vadd.f32 %v9527_v56, %v9507_v41  ;;  %v1523_v17 = vpop.f32.mrf.mxu2 }
 0x3b4   : > { %2547 = vmax.xlane.f32.xlu1 %v2546_v31 }
 0x3b5   : > { %6367 = vmatmul.msk.f32.gmra.mxu1 %vm832_vm1, %v13351_v18  ;;  %6394 = vmatmul.msk.f32.gmra.mxu3 %vm832_vm1, %v13352_v22  ;;  %13355 = vst [vmem:[#allocation182_spill] sm:$0xff] %v9711_v57  ;;  %v9719_v22 = vpop.f32.mrf.mxu1  ;;  %v2555_v41 = vsel %vm2401_vm2, %v9711_v57, -inf  ;;  %v9727_v19 = vpop.f32.mrf.mxu3 }
 0x3b6   : > { %v9707_v9 = vpop.xlane.xlu2 %2415  ;;  %v9715_v18 = vpop.xlane.xlu0 %2418 }
 0x3b7   : > { %v9713_v31 = vpop.xlane.xlu1 %2421  ;;  %6382 = vmatmul.msk.f32.gmra.mxu2 %vm832_vm1, %v13356_v45  ;;  %v9733_v45 = vadd.f32 %v9531_v5, %v9552_v46 }
 0x3b9   : > { %13358 = vst [vmem:[#allocation183_spill] sm:$0xff] %v9733_v45  ;;  %v2558_v46 = vsel %vm2401_vm2, %v9733_v45, -inf  ;;  %v9765_v45 = vadd.f32 %v9567_v24, %v1437_v34 }
 0x3bb   : > { %2550 = vmax.xlane.f32.xlu2 %v2549_v0  ;;  %2553 = vmax.xlane.f32.xlu0 %v2552_v63  ;;  %v9742_v63 = vadd.f32 %v9563_v1, %v1434_v12  ;;  %v1526_v40 = vpop.f32.mrf.mxu2  ;;  %13364 = vst [vmem:[#allocation187_spill] sm:$0xff] %v9765_v45 }
 0x3bc   : > { %2556 = vmax.xlane.f32.xlu1 %v2555_v41  ;;  %v13361_v41 = vld [vmem:[#allocation139_spill] sm:$0xff] }
 0x3bd   : > { %6395 = vmatmul.msk.f32.gmra.mxu3 %vm832_vm1, %v13357_v52  ;;  %13360 = vst [vmem:[#allocation185_spill] sm:$0xff] %v9742_v63  ;;  %v2561_v52 = vsel %vm2401_vm2, %v9737_v61, -inf  ;;  %v9754_v2 = vpop.f32.mrf.mxu1  ;;  %v2564_v12 = vsel %vm2401_vm2, %v9742_v63, -inf  ;;  %v9767_v61 = vpop.f32.mrf.mxu3  ;;  %v13374_v63 = vld [vmem:[#allocation136_spill] sm:$0xff] }
 0x3be   : > { %v9739_v59 = vpop.xlane.xlu2 %2424  ;;  %v9746_v57 = vpop.xlane.xlu0 %2427 }
 0x3bf   : > { %v9744_v0 = vpop.xlane.xlu1 %2430  ;;  %6383 = vmatmul.msk.f32.gmra.mxu2 %vm832_vm1, %v13361_v41  ;;  %v9762_v41 = vadd.f32 %v9487_v13, %v9471_v32 }
 0x3c1   : > { %13363 = vst [vmem:[#allocation186_spill] sm:$0xff] %v9762_v41  ;;  %v2570_v32 = vsel %vm2401_vm2, %v9762_v41, -inf }
 0x3c3   : > { %2559 = vmax.xlane.f32.xlu2 %v2558_v46  ;;  %2562 = vmax.xlane.f32.xlu0 %v2561_v52  ;;  %v9773_v52 = vadd.f32 %v9491_v60, %v9516_v54  ;;  %v13366_v60 = vld [vmem:[#allocation143_spill] sm:$0xff]  ;;  %v9791_v54 = vadd.f32 %v9525_v27, %v9554_v42  ;;  %v9797_v41 = vpop.f32.mrf.mxu2 }
 0x3c4   : > { %2565 = vmax.xlane.f32.xlu1 %v2564_v12 }
 0x3c5   : > { %6396 = vmatmul.msk.f32.gmra.mxu3 %vm832_vm1, %v13362_v3  ;;  %13365 = vst [vmem:[#allocation188_spill] sm:$0xff] %v9773_v52  ;;  %v2567_v3 = vsel %vm2401_vm2, %v9765_v45, -inf  ;;  %v2573_v13 = vsel %vm2401_vm2, %v9773_v52, -inf  ;;  %v9785_v34 = vpop.f32.mrf.mxu1  ;;  %v9795_v45 = vadd.f32 %v9527_v56, %v9599_v37  ;;  %v2576_v42 = vsel %vm2401_vm2, %v9791_v54, -inf  ;;  %v13370_v37 = vld [vmem:[#allocation142_spill] sm:$0xff] }
 0x3c6   : > { %v9769_v53 = vpop.xlane.xlu2 %2433  ;;  %v9777_v12 = vpop.xlane.xlu0 %2436  ;;  %13367 = vst [vmem:[#allocation189_spill] sm:$0xff] %v9791_v54 }
 0x3c7   : > { %v9775_v46 = vpop.xlane.xlu1 %2439  ;;  %13368 = vst [vmem:[#allocation190_spill] sm:$0xff] %v9795_v45  ;;  %v2579_v27 = vsel %vm2401_vm2, %v9795_v45, -inf  ;;  %v9827_v45 = vadd.f32 %v9567_v24, %v1526_v40  ;;  %v9847_v24 = vld [vmem:[#allocation7 + $0x90] sm:$0xff] }
 0x3c9   : > { %13373 = vst [vmem:[#allocation194_spill] sm:$0xff] %v9827_v45  ;;  %v2591_v40 = vsel %vm2401_vm2, %v9827_v45, -inf }
 0x3cb   : > { %2568 = vmax.xlane.f32.xlu2 %v2567_v3  ;;  %2571 = vmax.xlane.f32.xlu0 %v2570_v32  ;;  %v9803_v32 = vadd.f32 %v9531_v5, %v9643_v25  ;;  %v9819_v5 = vadd.f32 %v9561_v20, %v9685_v50  ;;  %v9822_v25 = vadd.f32 %v9563_v1, %v1523_v17  ;;  %v9841_v50 = vld [vmem:[#allocation7 + $0x80] sm:$0xff]  ;;  %v9843_v17 = vld [vmem:[#allocation7 + $0x88] sm:$0xff] }
 0x3cc   : > { %2574 = vmax.xlane.f32.xlu1 %v2573_v13 }
 0x3cd   : > { %6397 = vmatmul.msk.f32.gmra.mxu3 %vm832_vm1, %v13366_v60  ;;  %13369 = vst [vmem:[#allocation191_spill] sm:$0xff] %v9803_v32  ;;  %v1612_v60 = vpop.f32.mrf.mxu3  ;;  %v2582_v56 = vsel %vm2401_vm2, %v9803_v32, -inf  ;;  %v9835_v32 = vpop.f32.mrf.mxu1  ;;  %v2585_v20 = vsel %vm2401_vm2, %v9819_v5, -inf  ;;  %v2588_v1 = vsel %vm2401_vm2, %v9822_v25, -inf }
 0x3ce   : > { %v9799_v3 = vpop.xlane.xlu2 %2442  ;;  %v9807_v52 = vpop.xlane.xlu0 %2445  ;;  %13371 = vst [vmem:[#allocation192_spill] sm:$0xff] %v9819_v5  ;;  %v9853_v5 = vadd.f32 %v9841_v50, %v9569_v44 }
 0x3cf   : > { %v9805_v13 = vpop.xlane.xlu1 %2448  ;;  %13372 = vst [vmem:[#allocation193_spill] sm:$0xff] %v9822_v25  ;;  %v9857_v25 = vadd.f32 %v9843_v17, %v9613_v8  ;;  %v9875_v8 = vld [vmem:[#allocation7 + $0x98] sm:$0xff] }
 0x3d0   : > { %13375 = vst [vmem:[#allocation195_spill] sm:$0xff] %v9853_v5  ;;  %v2594_v44 = vsel %vm2401_vm2, %v9853_v5, -inf  ;;  %v9887_v5 = vadd.f32 %v9875_v8, %v9687_v10 }
 0x3d1   : > { %13376 = vst [vmem:[#allocation196_spill] sm:$0xff] %v9857_v25 }
 0x3d2   : > { %13379 = vst [vmem:[#allocation199_spill] sm:$0xff] %v9887_v5 }
 0x3d3   : > { %2577 = vmax.xlane.f32.xlu2 %v2576_v42  ;;  %2580 = vmax.xlane.f32.xlu0 %v2579_v27 }
 0x3d4   : > { %2583 = vmax.xlane.f32.xlu1 %v2582_v56  ;;  %v9833_v56 = vpop.f32.mrf.mxu2 }
 0x3d5   : > { %6398 = vmatmul.msk.f32.gmra.mxu3 %vm832_vm1, %v13370_v37  ;;  %v1615_v37 = vpop.f32.mrf.mxu3  ;;  %v1695_v39 = vpop.f32.mrf.mxu1 }
 0x3d6   : > { %v9824_v54 = vpop.xlane.xlu2 %2451  ;;  %v9831_v27 = vpop.xlane.xlu0 %2454 }
 0x3d7   : > { %v9829_v42 = vpop.xlane.xlu1 %2457 }
 0x3db   : > { %2586 = vmax.xlane.f32.xlu2 %v2585_v20  ;;  %2589 = vmax.xlane.f32.xlu0 %v2588_v1  ;;  %v9863_v20 = vadd.f32 %v9847_v24, %v9653_v23 }
 0x3dc   : > { %2592 = vmax.xlane.f32.xlu1 %v2591_v40  ;;  %v9869_v45 = vpop.f32.mrf.mxu2 }
 0x3dd   : > { %6399 = vmatmul.msk.f32.gmra.mxu3 %vm832_vm1, %v13374_v63  ;;  %13377 = vst [vmem:[#allocation197_spill] sm:$0xff] %v9863_v20  ;;  %v2597_v63 = vsel %vm2401_vm2, %v9857_v25, -inf  ;;  %v2600_v23 = vsel %vm2401_vm2, %v9863_v20, -inf  ;;  %v9883_v38 = vpop.f32.mrf.mxu3  ;;  %v9891_v25 = vadd.f32 %v9877_v6, %v9727_v19  ;;  %v9909_v19 = vld [vmem:[#allocation7 + $0xb8] sm:$0xff] }
 0x3de   : > { %v9859_v29 = vpop.xlane.xlu2 %2460  ;;  %v9867_v40 = vpop.xlane.xlu0 %2463 }
 0x3df   : > { %v9865_v1 = vpop.xlane.xlu1 %2466  ;;  %13378 = vst [vmem:[#allocation198_spill] sm:$0xff] %v9867_v40  ;;  %v2606_v10 = vsel %vm2401_vm2, %v9891_v25, -inf }
 0x3e0   : > { %13380 = vst [vmem:[#allocation200_spill] sm:$0xff] %v9891_v25 }
 0x3e3   : > { %2595 = vmax.xlane.f32.xlu2 %v2594_v44  ;;  %2598 = vmax.xlane.f32.xlu0 %v2597_v63  ;;  %v9897_v63 = vadd.f32 %v9881_v35, %v9767_v61 }
 0x3e4   : > { %2601 = vmax.xlane.f32.xlu1 %v2600_v23  ;;  %v2603_v23 = vsel %vm2401_vm2, %v9887_v5, -inf  ;;  %v9919_v5 = vadd.f32 %v9909_v19, %v1615_v37 }
 0x3e5   : > { %13382 = vst [vmem:[#allocation202_spill] sm:$0xff] %v9897_v63  ;;  %v2609_v61 = vsel %vm2401_vm2, %v9897_v63, -inf  ;;  %v9921_v25 = vpop.f32.mrf.mxu3 }
 0x3e6   : > { %v9893_v51 = vpop.xlane.xlu2 %2469  ;;  %v9901_v20 = vpop.xlane.xlu0 %2472  ;;  %13386 = vst [vmem:[#allocation206_spill] sm:$0xff] %v9919_v5 }
 0x3e7   : > { %13381 = vst [vmem:[#allocation201_spill] sm:$0xff] %v9893_v51  ;;  %v9899_v44 = vpop.xlane.xlu1 %2475  ;;  %v9913_v51 = vpop.f32.mrf.mxu2 }
 0x3e8   : > { %13383 = vst [vmem:[#allocation203_spill] sm:$0xff] %v9899_v44  ;;  %v1698_v44 = vpop.f32.mrf.mxu1 }
 0x3e9   : > { %13384 = vst [vmem:[#allocation204_spill] sm:$0xff] %v9901_v20  ;;  %v9916_v20 = vadd.f32 %v9907_v62, %v1612_v60  ;;  %v2615_v60 = vsel %vm2401_vm2, %v9919_v5, -inf  ;;  %v9951_v5 = vadd.f32 %v9875_v8, %v9835_v32 }
 0x3eb   : > { %2604 = vmax.xlane.f32.xlu2 %v2603_v23  ;;  %2607 = vmax.xlane.f32.xlu0 %v2606_v10  ;;  %13385 = vst [vmem:[#allocation205_spill] sm:$0xff] %v9916_v20  ;;  %v9927_v23 = vadd.f32 %v9841_v50, %v9719_v22  ;;  %v9941_v22 = vadd.f32 %v9843_v17, %v9754_v2  ;;  %v9959_v2 = vpop.f32.mrf.mxu0  ;;  %v2627_v32 = vsel %vm2401_vm2, %v9951_v5, -inf }
 0x3ec   : > { %2610 = vmax.xlane.f32.xlu1 %v2609_v61  ;;  %v2612_v61 = vsel %vm2401_vm2, %v9916_v20, -inf  ;;  %13394 = vst [vmem:[#allocation214_spill] sm:$0xff] %v9951_v5 }
 0x3ed   : > { %13388 = vst [vmem:[#allocation208_spill] sm:$0xff] %v9927_v23  ;;  %v2618_v37 = vsel %vm2401_vm2, %v9927_v23, -inf }
 0x3ee   : > { %v9923_v30 = vpop.xlane.xlu2 %2478  ;;  %v9931_v63 = vpop.xlane.xlu0 %2481  ;;  %13391 = vst [vmem:[#allocation211_spill] sm:$0xff] %v9941_v22 }
 0x3ef   : > { %13387 = vst [vmem:[#allocation207_spill] sm:$0xff] %v9923_v30  ;;  %v9929_v10 = vpop.xlane.xlu1 %2484 }
 0x3f0   : > { %13389 = vst [vmem:[#allocation209_spill] sm:$0xff] %v9929_v10  ;;  %v9945_v10 = vadd.f32 %v9847_v24, %v9785_v34  ;;  %v1701_v23 = vpop.f32.mrf.mxu1  ;;  %v2621_v34 = vsel %vm2401_vm2, %v9941_v22, -inf }
 0x3f1   : > { %13390 = vst [vmem:[#allocation210_spill] sm:$0xff] %v9931_v63  ;;  %v1784_v63 = vpop.f32.mrf.mxu2  ;;  %v9976_v40 = vadd.f32 %v9907_v62, %v1701_v23 }
 0x3f2   : > { %13392 = vst [vmem:[#allocation212_spill] sm:$0xff] %v9945_v10  ;;  %v2624_v20 = vsel %vm2401_vm2, %v9945_v10, -inf }
 0x3f3   : > { %2613 = vmax.xlane.f32.xlu2 %v2612_v61  ;;  %2616 = vmax.xlane.f32.xlu0 %v2615_v60  ;;  %13400 = vst [vmem:[#allocation220_spill] sm:$0xff] %v9976_v40  ;;  %v9988_v5 = vpop.f32.mrf.mxu0  ;;  %v2636_v23 = vsel %vm2401_vm2, %v9976_v40, -inf }
 0x3f4   : > { %2619 = vmax.xlane.f32.xlu1 %v2618_v37  ;;  %v9957_v37 = vpop.f32.mrf.mxu3 }
 0x3f6   : > { %v9947_v30 = vpop.xlane.xlu2 %2487  ;;  %v9955_v60 = vpop.xlane.xlu0 %2490 }
 0x3f7   : > { %13393 = vst [vmem:[#allocation213_spill] sm:$0xff] %v9947_v30  ;;  %v9953_v61 = vpop.xlane.xlu1 %2493 }
 0x3f8   : > { %13395 = vst [vmem:[#allocation215_spill] sm:$0xff] %v9953_v61  ;;  %v9968_v61 = vadd.f32 %v9877_v6, %v1695_v39 }
 0x3f9   : > { %13396 = vst [vmem:[#allocation216_spill] sm:$0xff] %v9955_v60  ;;  %v9971_v60 = vadd.f32 %v9881_v35, %v1698_v44  ;;  %v1704_v44 = vpop.f32.mrf.mxu1 }
 0x3fa   : > { %13397 = vst [vmem:[#allocation217_spill] sm:$0xff] %v9968_v61 }
 0x3fb   : > { %2622 = vmax.xlane.f32.xlu2 %v2621_v34  ;;  %2625 = vmax.xlane.f32.xlu0 %v2624_v20  ;;  %13398 = vst [vmem:[#allocation218_spill] sm:$0xff] %v9971_v60  ;;  %v1787_v20 = vpop.f32.mrf.mxu2  ;;  %v2633_v39 = vsel %vm2401_vm2, %v9971_v60, -inf  ;;  %v10003_v60 = vadd.f32 %v9843_v17, %v9833_v56  ;;  %v10015_v56 = vpop.f32.mrf.mxu0 }
 0x3fc   : > { %2628 = vmax.xlane.f32.xlu1 %v2627_v32  ;;  %v9982_v34 = vpop.f32.mrf.mxu3  ;;  %v2630_v32 = vsel %vm2401_vm2, %v9968_v61, -inf }
 0x3fd   : > { %13406 = vst [vmem:[#allocation226_spill] sm:$0xff] %v10003_v60 }
 0x3fe   : > { %v9973_v30 = vpop.xlane.xlu2 %2496  ;;  %v9980_v10 = vpop.xlane.xlu0 %2499 }
 0x3ff   : > { %13399 = vst [vmem:[#allocation219_spill] sm:$0xff] %v9973_v30  ;;  %v9978_v22 = vpop.xlane.xlu1 %2502 }
 0x400   : > { %13401 = vst [vmem:[#allocation221_spill] sm:$0xff] %v9978_v22  ;;  %v9997_v22 = vadd.f32 %v9909_v19, %v1704_v44  ;;  %v2645_v44 = vsel %vm2401_vm2, %v10003_v60, -inf }
 0x401   : > { %13402 = vst [vmem:[#allocation222_spill] sm:$0xff] %v9980_v10  ;;  %v9994_v10 = vadd.f32 %v9841_v50, %v9797_v41 }
 0x402   : > { %13404 = vst [vmem:[#allocation224_spill] sm:$0xff] %v9997_v22 }
 0x403   : > { %2631 = vmax.xlane.f32.xlu2 %v2630_v32  ;;  %2634 = vmax.xlane.f32.xlu0 %v2633_v39  ;;  %13403 = vst [vmem:[#allocation223_spill] sm:$0xff] %v9994_v10  ;;  %v1790_v39 = vpop.f32.mrf.mxu2  ;;  %v2642_v41 = vsel %vm2401_vm2, %v9994_v10, -inf }
 0x404   : > { %2637 = vmax.xlane.f32.xlu1 %v2636_v23  ;;  %v2639_v23 = vsel %vm2401_vm2, %v9997_v22, -inf  ;;  %v1873_v40 = vpop.f32.mrf.mxu3  ;;  %v10025_v22 = vpop.f32.mrf.mxu1 }
 0x406   : > { %v9999_v61 = vpop.xlane.xlu2 %2505  ;;  %v10007_v32 = vpop.xlane.xlu0 %2508 }
 0x407   : > { %13405 = vst [vmem:[#allocation225_spill] sm:$0xff] %v9999_v61  ;;  %v10005_v30 = vpop.xlane.xlu1 %2511 }
 0x408   : > { %13407 = vst [vmem:[#allocation227_spill] sm:$0xff] %v10005_v30  ;;  %v10019_v30 = vadd.f32 %v9847_v24, %v9869_v45 }
 0x409   : > { %13408 = vst [vmem:[#allocation228_spill] sm:$0xff] %v10007_v32  ;;  %v10023_v32 = vadd.f32 %v9875_v8, %v9913_v51 }
 0x40a   : > { %13409 = vst [vmem:[#allocation229_spill] sm:$0xff] %v10019_v30  ;;  %v2648_v60 = vsel %vm2401_vm2, %v10019_v30, -inf }
 0x40b   : > { %2640 = vmax.xlane.f32.xlu2 %v2639_v23  ;;  %2643 = vmax.xlane.f32.xlu0 %v2642_v41  ;;  %13410 = vst [vmem:[#allocation230_spill] sm:$0xff] %v10023_v32  ;;  %v10030_v23 = vadd.f32 %v9877_v6, %v1784_v63  ;;  %v2651_v45 = vsel %vm2401_vm2, %v10023_v32, -inf  ;;  %v1793_v61 = vpop.f32.mrf.mxu2  ;;  %v10043_v63 = vadd.f32 %v9881_v35, %v1787_v20 }
 0x40c   : > { %2646 = vmax.xlane.f32.xlu1 %v2645_v44  ;;  %v10051_v30 = vadd.f32 %v9909_v19, %v1793_v61  ;;  %v10067_v61 = vadd.f32 %v9841_v50, %v9883_v38 }
 0x40d   : > { %13412 = vst [vmem:[#allocation232_spill] sm:$0xff] %v10030_v23  ;;  %v2654_v51 = vsel %vm2401_vm2, %v10030_v23, -inf  ;;  %v1959_v23 = vpop.f32.mrf.mxu0  ;;  %v2657_v20 = vsel %vm2401_vm2, %v10043_v63, -inf }
 0x40e   : > { %v10027_v10 = vpop.xlane.xlu2 %2514  ;;  %v10034_v44 = vpop.xlane.xlu0 %2517  ;;  %13415 = vst [vmem:[#allocation235_spill] sm:$0xff] %v10043_v63  ;;  %v10077_v63 = vadd.f32 %v9847_v24, %v9957_v37  ;;  %v2666_v38 = vsel %vm2401_vm2, %v10067_v61, -inf  ;;  %v10095_v37 = vadd.f32 %v9875_v8, %v9982_v34 }
 0x40f   : > { %13411 = vst [vmem:[#allocation231_spill] sm:$0xff] %v10027_v10  ;;  %v10032_v41 = vpop.xlane.xlu1 %2520 }
 0x410   : > { %13413 = vst [vmem:[#allocation233_spill] sm:$0xff] %v10032_v41  ;;  %v10046_v41 = vadd.f32 %v9907_v62, %v1790_v39 }
 0x411   : > { %13414 = vst [vmem:[#allocation234_spill] sm:$0xff] %v10034_v44  ;;  %v1876_v44 = vpop.f32.mrf.mxu3 }
 0x412   : > { %13416 = vst [vmem:[#allocation236_spill] sm:$0xff] %v10046_v41  ;;  %v2660_v39 = vsel %vm2401_vm2, %v10046_v41, -inf }
 0x413   : > { %2649 = vmax.xlane.f32.xlu2 %v2648_v60  ;;  %2652 = vmax.xlane.f32.xlu0 %v2651_v45  ;;  %13417 = vst [vmem:[#allocation237_spill] sm:$0xff] %v10051_v30  ;;  %v10057_v45 = vpop.f32.mrf.mxu1  ;;  %v10091_v24 = vpop.f32.mrf.mxu2 }
 0x414   : > { %2655 = vmax.xlane.f32.xlu1 %v2654_v51  ;;  %v2663_v51 = vsel %vm2401_vm2, %v10051_v30, -inf  ;;  %13420 = vst [vmem:[#allocation240_spill] sm:$0xff] %v10067_v61  ;;  %v10098_v30 = vadd.f32 %v9877_v6, %v1873_v40  ;;  %v10115_v40 = vld [vmem:[#allocation7 + $0xc0] sm:$0xff] }
 0x415   : > { %13423 = vst [vmem:[#allocation243_spill] sm:$0xff] %v10077_v63  ;;  %v1962_v50 = vpop.f32.mrf.mxu0 }
 0x416   : > { %v10048_v10 = vpop.xlane.xlu2 %2523  ;;  %v10055_v60 = vpop.xlane.xlu0 %2526  ;;  %13426 = vst [vmem:[#allocation246_spill] sm:$0xff] %v10095_v37 }
 0x417   : > { %v10053_v32 = vpop.xlane.xlu1 %2529  ;;  %13419 = vst [vmem:[#allocation239_spill] sm:$0xff] %v10055_v60  ;;  %v10071_v60 = vadd.f32 %v9843_v17, %v9921_v25  ;;  %v2672_v17 = vsel %vm2401_vm2, %v10077_v63, -inf  ;;  %v2675_v63 = vsel %vm2401_vm2, %v10095_v37, -inf }
 0x418   : > { %13418 = vst [vmem:[#allocation238_spill] sm:$0xff] %v10053_v32 }
 0x419   : > { %13421 = vst [vmem:[#allocation241_spill] sm:$0xff] %v10071_v60  ;;  %v1879_v41 = vpop.f32.mrf.mxu3  ;;  %v2669_v25 = vsel %vm2401_vm2, %v10071_v60, -inf  ;;  %v10103_v60 = vadd.f32 %v9881_v35, %v1876_v44 }
 0x41a   : > { %13427 = vst [vmem:[#allocation247_spill] sm:$0xff] %v10098_v30  ;;  %v10120_v44 = vadd.f32 %v9907_v62, %v1879_v41  ;;  %v10143_v41 = vld [vmem:[#allocation7 + $0xd0] sm:$0xff] }
 0x41b   : > { %2658 = vmax.xlane.f32.xlu2 %v2657_v20  ;;  %2661 = vmax.xlane.f32.xlu0 %v2660_v39  ;;  %13429 = vst [vmem:[#allocation249_spill] sm:$0xff] %v10103_v60  ;;  %v2681_v6 = vsel %vm2401_vm2, %v10103_v60, -inf }
 0x41c   : > { %2664 = vmax.xlane.f32.xlu1 %v2663_v51  ;;  %v10083_v51 = vpop.f32.mrf.mxu1  ;;  %13432 = vst [vmem:[#allocation252_spill] sm:$0xff] %v10120_v44 }
 0x41d   : > { %v1965_v34 = vpop.f32.mrf.mxu0 }
 0x41e   : > { %v10073_v32 = vpop.xlane.xlu2 %2532  ;;  %v10081_v39 = vpop.xlane.xlu0 %2535 }
 0x41f   : > { %13422 = vst [vmem:[#allocation242_spill] sm:$0xff] %v10073_v32  ;;  %v10079_v20 = vpop.xlane.xlu1 %2538  ;;  %v10203_v32 = vld [vmem:[#allocation7 + $0xf8] sm:$0xff] }
 0x420   : > { %13424 = vst [vmem:[#allocation244_spill] sm:$0xff] %v10079_v20 }
 0x421   : > { %13425 = vst [vmem:[#allocation245_spill] sm:$0xff] %v10081_v39  ;;  %v1882_v8 = vpop.f32.mrf.mxu3 }
 0x422   : > { %v10123_v37 = vadd.f32 %v9909_v19, %v1882_v8  ;;  %v10141_v19 = vld [vmem:[#allocation7 + $0xc8] sm:$0xff]  ;;  %v10147_v8 = vld [vmem:[#allocation7 + $0xd8] sm:$0xff] }
 0x423   : > { %2667 = vmax.xlane.f32.xlu2 %v2666_v38  ;;  %2670 = vmax.xlane.f32.xlu0 %v2669_v25 }
 0x424   : > { %2673 = vmax.xlane.f32.xlu1 %v2672_v17  ;;  %v2678_v17 = vsel %vm2401_vm2, %v10098_v30, -inf  ;;  %v10117_v35 = vpop.f32.mrf.mxu1  ;;  %13433 = vst [vmem:[#allocation253_spill] sm:$0xff] %v10123_v37  ;;  %v2687_v62 = vsel %vm2401_vm2, %v10123_v37, -inf }
 0x426   : > { %v10100_v61 = vpop.xlane.xlu2 %2541  ;;  %v10107_v25 = vpop.xlane.xlu0 %2544 }
 0x427   : > { %13428 = vst [vmem:[#allocation248_spill] sm:$0xff] %v10100_v61  ;;  %v10105_v38 = vpop.xlane.xlu1 %2547  ;;  %v10174_v61 = vld [vmem:[#allocation7 + $0xe8] sm:$0xff] }
 0x428   : > { %13430 = vst [vmem:[#allocation250_spill] sm:$0xff] %v10105_v38  ;;  %v10172_v38 = vld [vmem:[#allocation7 + $0xe0] sm:$0xff] }
 0x429   : > { %13431 = vst [vmem:[#allocation251_spill] sm:$0xff] %v10107_v25  ;;  %v10125_v25 = vpop.f32.mrf.mxu2 }
 0x42b   : > { %2676 = vmax.xlane.f32.xlu2 %v2675_v63  ;;  %2679 = vmax.xlane.f32.xlu0 %v2678_v17  ;;  %v10131_v63 = vadd.f32 %v10115_v40, %v9959_v2 }
 0x42c   : > { %2682 = vmax.xlane.f32.xlu1 %v2681_v6  ;;  %v2684_v6 = vsel %vm2401_vm2, %v10120_v44, -inf  ;;  %v10155_v44 = vadd.f32 %v10143_v41, %v10015_v56  ;;  %v2051_v37 = vpop.f32.mrf.mxu1 }
 0x42d   : > { %13435 = vst [vmem:[#allocation255_spill] sm:$0xff] %v10131_v63  ;;  %v2690_v2 = vsel %vm2401_vm2, %v10131_v63, -inf }
 0x42e   : > { %v10127_v30 = vpop.xlane.xlu2 %2550  ;;  %v10135_v60 = vpop.xlane.xlu0 %2553  ;;  %13439 = vst [vmem:[#allocation259_spill] sm:$0xff] %v10155_v44  ;;  %v2696_v56 = vsel %vm2401_vm2, %v10155_v44, -inf }
 0x42f   : > { %13434 = vst [vmem:[#allocation254_spill] sm:$0xff] %v10127_v30  ;;  %v10133_v17 = vpop.xlane.xlu1 %2556 }
 0x430   : > { %13436 = vst [vmem:[#allocation256_spill] sm:$0xff] %v10133_v17 }
 0x431   : > { %13437 = vst [vmem:[#allocation257_spill] sm:$0xff] %v10135_v60  ;;  %v10151_v60 = vadd.f32 %v10141_v19, %v9988_v5  ;;  %v10166_v30 = vpop.f32.mrf.mxu2 }
 0x433   : > { %2685 = vmax.xlane.f32.xlu2 %v2684_v6  ;;  %2688 = vmax.xlane.f32.xlu0 %v2687_v62  ;;  %13438 = vst [vmem:[#allocation258_spill] sm:$0xff] %v10151_v60  ;;  %v10160_v6 = vadd.f32 %v10147_v8, %v1959_v23  ;;  %v2693_v5 = vsel %vm2401_vm2, %v10151_v60, -inf  ;;  %v10186_v60 = vadd.f32 %v10174_v61, %v1965_v34 }
 0x434   : > { %2691 = vmax.xlane.f32.xlu1 %v2690_v2  ;;  %v1968_v2 = vpop.f32.mrf.mxu0 }
 0x435   : > { %13441 = vst [vmem:[#allocation261_spill] sm:$0xff] %v10160_v6  ;;  %v2699_v23 = vsel %vm2401_vm2, %v10160_v6, -inf  ;;  %v2054_v6 = vpop.f32.mrf.mxu1 }
 0x436   : > { %v10157_v17 = vpop.xlane.xlu2 %2559  ;;  %v10164_v63 = vpop.xlane.xlu0 %2562  ;;  %13445 = vst [vmem:[#allocation265_spill] sm:$0xff] %v10186_v60 }
 0x437   : > { %13440 = vst [vmem:[#allocation260_spill] sm:$0xff] %v10157_v17  ;;  %v10162_v62 = vpop.xlane.xlu1 %2565  ;;  %v10183_v17 = vadd.f32 %v10172_v38, %v1962_v50  ;;  %v2705_v50 = vsel %vm2401_vm2, %v10186_v60, -inf  ;;  %v10220_v60 = vadd.f32 %v10141_v19, %v10057_v45  ;;  %v10234_v45 = vadd.f32 %v10143_v41, %v10083_v51 }
 0x438   : > { %13442 = vst [vmem:[#allocation262_spill] sm:$0xff] %v10162_v62  ;;  %v10178_v62 = vld [vmem:[#allocation7 + $0xf0] sm:$0xff] }
 0x439   : > { %13443 = vst [vmem:[#allocation263_spill] sm:$0xff] %v10164_v63  ;;  %v10180_v63 = vpop.f32.mrf.mxu3  ;;  %v10191_v39 = vadd.f32 %v10178_v62, %v1968_v2  ;;  %v10197_v20 = vpop.f32.mrf.mxu2 }
 0x43a   : > { %13444 = vst [vmem:[#allocation264_spill] sm:$0xff] %v10183_v17 }
 0x43b   : > { %2694 = vmax.xlane.f32.xlu2 %v2693_v5  ;;  %2697 = vmax.xlane.f32.xlu0 %v2696_v56  ;;  %13447 = vst [vmem:[#allocation267_spill] sm:$0xff] %v10191_v39  ;;  %v2708_v2 = vsel %vm2401_vm2, %v10191_v39, -inf  ;;  %v2717_v39 = vsel %vm2401_vm2, %v10220_v60, -inf }
 0x43c   : > { %2700 = vmax.xlane.f32.xlu1 %v2699_v23  ;;  %v2702_v23 = vsel %vm2401_vm2, %v10183_v17, -inf  ;;  %v1971_v34 = vpop.f32.mrf.mxu0  ;;  %13453 = vst [vmem:[#allocation273_spill] sm:$0xff] %v10220_v60 }
 0x43d   : > { %13456 = vst [vmem:[#allocation276_spill] sm:$0xff] %v10234_v45 }
 0x43e   : > { %v10188_v44 = vpop.xlane.xlu2 %2568  ;;  %v10195_v56 = vpop.xlane.xlu0 %2571 }
 0x43f   : > { %13446 = vst [vmem:[#allocation266_spill] sm:$0xff] %v10188_v44  ;;  %v10193_v5 = vpop.xlane.xlu1 %2574 }
 0x440   : > { %13448 = vst [vmem:[#allocation268_spill] sm:$0xff] %v10193_v5  ;;  %v10212_v5 = vadd.f32 %v10203_v32, %v1971_v34 }
 0x441   : > { %13449 = vst [vmem:[#allocation269_spill] sm:$0xff] %v10195_v56  ;;  %v10209_v56 = vadd.f32 %v10115_v40, %v10025_v22  ;;  %v10214_v17 = vpop.f32.mrf.mxu3 }
 0x442   : > { %13451 = vst [vmem:[#allocation271_spill] sm:$0xff] %v10212_v5  ;;  %v2711_v22 = vsel %vm2401_vm2, %v10212_v5, -inf  ;;  %v10243_v5 = vadd.f32 %v10172_v38, %v2051_v37  ;;  %v10258_v37 = vadd.f32 %v10174_v61, %v2054_v6 }
 0x443   : > { %2703 = vmax.xlane.f32.xlu2 %v2702_v23  ;;  %2706 = vmax.xlane.f32.xlu0 %v2705_v50  ;;  %13450 = vst [vmem:[#allocation270_spill] sm:$0xff] %v10209_v56  ;;  %v2714_v34 = vsel %vm2401_vm2, %v10209_v56, -inf }
 0x444   : > { %2709 = vmax.xlane.f32.xlu1 %v2708_v2  ;;  %v2057_v2 = vpop.f32.mrf.mxu1  ;;  %13459 = vst [vmem:[#allocation279_spill] sm:$0xff] %v10243_v5 }
 0x445   : > { %13462 = vst [vmem:[#allocation282_spill] sm:$0xff] %v10258_v37 }
 0x446   : > { %v10216_v44 = vpop.xlane.xlu2 %2577  ;;  %v10224_v50 = vpop.xlane.xlu0 %2580 }
 0x447   : > { %13452 = vst [vmem:[#allocation272_spill] sm:$0xff] %v10216_v44  ;;  %v10222_v23 = vpop.xlane.xlu1 %2583  ;;  %v2140_v44 = vpop.f32.mrf.mxu2 }
 0x448   : > { %13454 = vst [vmem:[#allocation274_spill] sm:$0xff] %v10222_v23 }
 0x449   : > { %13455 = vst [vmem:[#allocation275_spill] sm:$0xff] %v10224_v50  ;;  %v10238_v50 = vadd.f32 %v10147_v8, %v10117_v35  ;;  %v10249_v60 = vpop.f32.mrf.mxu3  ;;  %v2726_v35 = vsel %vm2401_vm2, %v10243_v5, -inf  ;;  %v10284_v5 = vadd.f32 %v10141_v19, %v10125_v25 }
 0x44b   : > { %2712 = vmax.xlane.f32.xlu2 %v2711_v22  ;;  %2715 = vmax.xlane.f32.xlu0 %v2714_v34  ;;  %13457 = vst [vmem:[#allocation277_spill] sm:$0xff] %v10238_v50  ;;  %v2723_v51 = vsel %vm2401_vm2, %v10238_v50, -inf }
 0x44c   : > { %2718 = vmax.xlane.f32.xlu1 %v2717_v39  ;;  %v2720_v39 = vsel %vm2401_vm2, %v10234_v45, -inf  ;;  %v2060_v56 = vpop.f32.mrf.mxu1  ;;  %13467 = vst [vmem:[#allocation287_spill] sm:$0xff] %v10284_v5 }
 0x44d   : > { %v10266_v45 = vadd.f32 %v10203_v32, %v2060_v56  ;;  %v10280_v56 = vadd.f32 %v10115_v40, %v10091_v24  ;;  %v2741_v24 = vsel %vm2401_vm2, %v10284_v5, -inf }
 0x44e   : > { %v10240_v23 = vpop.xlane.xlu2 %2586  ;;  %v10247_v34 = vpop.xlane.xlu0 %2589 }
 0x44f   : > { %13458 = vst [vmem:[#allocation278_spill] sm:$0xff] %v10240_v23  ;;  %v10245_v22 = vpop.xlane.xlu1 %2592 }
 0x450   : > { %13460 = vst [vmem:[#allocation280_spill] sm:$0xff] %v10245_v22  ;;  %v2143_v22 = vpop.f32.mrf.mxu2 }
 0x451   : > { %13461 = vst [vmem:[#allocation281_spill] sm:$0xff] %v10247_v34  ;;  %v10261_v34 = vadd.f32 %v10178_v62, %v2057_v2  ;;  %v2735_v2 = vsel %vm2401_vm2, %v10266_v45, -inf }
 0x452   : > { %13464 = vst [vmem:[#allocation284_spill] sm:$0xff] %v10266_v45 }
 0x453   : > { %2721 = vmax.xlane.f32.xlu2 %v2720_v39  ;;  %2724 = vmax.xlane.f32.xlu0 %v2723_v51  ;;  %13463 = vst [vmem:[#allocation283_spill] sm:$0xff] %v10261_v34  ;;  %v2226_v51 = vpop.f32.mrf.mxu3  ;;  %v2732_v6 = vsel %vm2401_vm2, %v10261_v34, -inf }
 0x454   : > { %2727 = vmax.xlane.f32.xlu1 %v2726_v35  ;;  %v2729_v35 = vsel %vm2401_vm2, %v10258_v37, -inf  ;;  %13466 = vst [vmem:[#allocation286_spill] sm:$0xff] %v10280_v56  ;;  %v10290_v37 = vadd.f32 %v10143_v41, %v10166_v30  ;;  %v10304_v30 = vadd.f32 %v10147_v8, %v10197_v20 }
 0x456   : > { %v10263_v23 = vpop.xlane.xlu2 %2595  ;;  %v10270_v39 = vpop.xlane.xlu0 %2598  ;;  %13468 = vst [vmem:[#allocation288_spill] sm:$0xff] %v10290_v37  ;;  %v2744_v25 = vsel %vm2401_vm2, %v10290_v37, -inf }
 0x457   : > { %v10268_v50 = vpop.xlane.xlu1 %2601  ;;  %13465 = vst [vmem:[#allocation285_spill] sm:$0xff] %v10270_v39 }
 0x458   : > { %v2146_v45 = vpop.f32.mrf.mxu2  ;;  %13471 = vst [vmem:[#allocation291_spill] sm:$0xff] %v10304_v30 }
 0x45b   : > { %2730 = vmax.xlane.f32.xlu2 %v2729_v35  ;;  %2733 = vmax.xlane.f32.xlu0 %v2732_v6  ;;  %v2229_v34 = vpop.f32.mrf.mxu3 }
 0x45c   : > { %2736 = vmax.xlane.f32.xlu1 %v2735_v2  ;;  %v2738_v2 = vsel %vm2401_vm2, %v10280_v56, -inf  ;;  %v10312_v56 = vadd.f32 %v10174_v61, %v2143_v22  ;;  %v10325_v22 = vadd.f32 %v10178_v62, %v2146_v45 }
 0x45e   : > { %v10286_v39 = vpop.xlane.xlu2 %2604  ;;  %v10294_v6 = vpop.xlane.xlu0 %2607  ;;  %13473 = vst [vmem:[#allocation293_spill] sm:$0xff] %v10312_v56 }
 0x45f   : > { %v10292_v35 = vpop.xlane.xlu1 %2610  ;;  %13470 = vst [vmem:[#allocation290_spill] sm:$0xff] %v10294_v6  ;;  %v10307_v6 = vadd.f32 %v10172_v38, %v2140_v44  ;;  %v2753_v44 = vsel %vm2401_vm2, %v10312_v56, -inf }
 0x460   : > { %13469 = vst [vmem:[#allocation289_spill] sm:$0xff] %v10292_v35  ;;  %v2149_v20 = vpop.f32.mrf.mxu2 }
 0x461   : > { %13472 = vst [vmem:[#allocation292_spill] sm:$0xff] %v10307_v6  ;;  %v10328_v37 = vadd.f32 %v10203_v32, %v2149_v20 }
 0x462   : > { %13476 = vst [vmem:[#allocation296_spill] sm:$0xff] %v10325_v22 }
 0x463   : > { %2739 = vmax.xlane.f32.xlu2 %v2738_v2  ;;  %2742 = vmax.xlane.f32.xlu0 %v2741_v24  ;;  %v2747_v24 = vsel %vm2401_vm2, %v10304_v30, -inf  ;;  %13477 = vst [vmem:[#allocation297_spill] sm:$0xff] %v10328_v37  ;;  %v10334_v30 = vadd.f32 %v10115_v40, %v10180_v63  ;;  %v2759_v45 = vsel %vm2401_vm2, %v10328_v37, -inf  ;;  %v10348_v40 = vadd.f32 %v10141_v19, %v10214_v17  ;;  %v13483_v17 = vld [vmem:[#allocation145_spill] sm:$0xff] }
 0x464   : > { %2745 = vmax.xlane.f32.xlu1 %v2744_v25  ;;  %v2750_v25 = vsel %vm2401_vm2, %v10307_v6, -inf  ;;  %v10352_v63 = vadd.f32 %v10143_v41, %v10249_v60  ;;  %v2787_v19 = vsub.f32 %v13483_v17, %v9681_v48 }
 0x465   : > { %13478 = vst [vmem:[#allocation298_spill] sm:$0xff] %v10334_v30  ;;  %v2762_v20 = vsel %vm2401_vm2, %v10334_v30, -inf  ;;  %v2765_v60 = vsel %vm2401_vm2, %v10348_v40, -inf }
 0x466   : > { %v10309_v35 = vpop.xlane.xlu2 %2613  ;;  %v10316_v2 = vpop.xlane.xlu0 %2616  ;;  %13479 = vst [vmem:[#allocation299_spill] sm:$0xff] %v10348_v40  ;;  %v2768_v41 = vsel %vm2401_vm2, %v10352_v63, -inf  ;;  %v2916_v56 = vmul.f32 1.442695, %v2787_v19 }
 0x467   : > { %v10314_v5 = vpop.xlane.xlu1 %2619  ;;  %13475 = vst [vmem:[#allocation295_spill] sm:$0xff] %v10316_v2  ;;  %v2232_v2 = vpop.f32.mrf.mxu3 }
 0x468   : > { %13474 = vst [vmem:[#allocation294_spill] sm:$0xff] %v10314_v5 }
 0x469   : > { %13480 = vst [vmem:[#allocation300_spill] sm:$0xff] %v10352_v63 }
 0x46b   : > { %2748 = vmax.xlane.f32.xlu2 %v2747_v24  ;;  %2751 = vmax.xlane.f32.xlu0 %v2750_v25  ;;  %v2756_v25 = vsel %vm2401_vm2, %v10325_v22, -inf  ;;  %v10357_v22 = vadd.f32 %v10147_v8, %v2226_v51 }
 0x46c   : > { %2754 = vmax.xlane.f32.xlu1 %v2753_v44 }
 0x46d   : > { %13481 = vst [vmem:[#allocation301_spill] sm:$0xff] %v10357_v22  ;;  %v2771_v8 = vsel %vm2401_vm2, %v10357_v22, -inf }
 0x46e   : > { %v10330_v5 = vpop.xlane.xlu2 %2622  ;;  %v10338_v24 = vpop.xlane.xlu0 %2625 }
 0x46f   : > { %v10336_v6 = vpop.xlane.xlu1 %2628  ;;  %v2235_v30 = vpop.f32.mrf.mxu3 }
 0x470   : > { %v10382_v17 = vadd.f32 %v10178_v62, %v2235_v30 }
 0x472   : > { %13486 = vst [vmem:[#allocation302_spill] sm:$0xff] %v10382_v17 }
 0x473   : > { %2757 = vmax.xlane.f32.xlu2 %v2756_v25  ;;  %2760 = vmax.xlane.f32.xlu0 %v2759_v45  ;;  %v13482_v45 = vld [vmem:[#allocation144_spill] sm:$0xff] }
 0x474   : > { %2763 = vmax.xlane.f32.xlu1 %v2762_v20  ;;  %v2786_v20 = vsub.f32 %v13482_v45, %v9645_v47  ;;  %v10374_v47 = vadd.f32 %v10172_v38, %v2229_v34  ;;  %v10377_v45 = vadd.f32 %v10174_v61, %v2232_v2  ;;  %v2790_v61 = vsub.f32 %v9176_v15, %v9707_v9 }
 0x476   : > { %v10354_v44 = vpop.xlane.xlu2 %2631  ;;  %v10361_v25 = vpop.xlane.xlu0 %2634  ;;  %v2914_v51 = vmul.f32 1.442695, %v2786_v20  ;;  %13484 = vst [vmem:[#allocation144_spill] sm:$0xff] %v10374_v47  ;;  %v13488_v20 = vld [vmem:[#allocation147_spill] sm:$0xff]  ;;  %v2774_v34 = vsel %vm2401_vm2, %v10374_v47, -inf  ;;  %v2777_v62 = vsel %vm2401_vm2, %v10377_v45, -inf }
 0x477   : > { %v10359_v37 = vpop.xlane.xlu1 %2637  ;;  %13485 = vst [vmem:[#allocation145_spill] sm:$0xff] %v10377_v45  ;;  %v2788_v38 = vsub.f32 %v13488_v20, %v9679_v21  ;;  %v2238_v30 = vpop.f32.mrf.mxu3  ;;  %v2922_v21 = vmul.f32 1.442695, %v2790_v61 }
 0x478   : > { %7012 = vpow2.f32 %v2914_v51 }
 0x479   : > { %7014 = vpow2.f32 %v2916_v56  ;;  %v2918_v19 = vmul.f32 1.442695, %v2788_v38  ;;  %v10401_v56 = vadd.f32 %v10203_v32, %v2238_v30  ;;  %v2791_v38 = vsub.f32 %v9180_v14, %v9715_v18 }
 0x47a   : > { %v2793_v32 = vsub.f32 %v9218_v55, %v9739_v59 }
 0x47b   : > { %2766 = vmax.xlane.f32.xlu2 %v2765_v60  ;;  %2769 = vmax.xlane.f32.xlu0 %v2768_v41  ;;  %v13487_v41 = vld [vmem:[#allocation146_spill] sm:$0xff]  ;;  %v2783_v61 = vsel %vm2401_vm2, %v10401_v56, -inf }
 0x47c   : > { %2772 = vmax.xlane.f32.xlu1 %v2771_v8  ;;  %v2789_v8 = vsub.f32 %v13487_v41, %v9673_v36  ;;  %v2780_v36 = vsel %vm2401_vm2, %v10382_v17, -inf  ;;  %13489 = vst [vmem:[#allocation146_spill] sm:$0xff] %v10401_v56  ;;  %v2928_v14 = vmul.f32 1.442695, %v2793_v32  ;;  %v13492_v32 = vld [vmem:[#allocation150_spill] sm:$0xff] }
 0x47e   : > { %v10379_v48 = vpop.xlane.xlu2 %2640  ;;  %v10386_v60 = vpop.xlane.xlu0 %2643  ;;  %v2920_v2 = vmul.f32 1.442695, %v2789_v8  ;;  %v2792_v8 = vsub.f32 %v9186_v58, %v9713_v31  ;;  %v2924_v31 = vmul.f32 1.442695, %v2791_v38 }
 0x47f   : > { %v10384_v40 = vpop.xlane.xlu1 %2646  ;;  %v10405_v9 = vpop.eup %7012 }
 0x480   : > { %v10411_v20 = vpop.eup %7014  ;;  %7016 = vpow2.f32 %v2920_v2  ;;  %v2926_v58 = vmul.f32 1.442695, %v2792_v8  ;;  %v13491_v8 = vld [vmem:[#allocation148_spill] sm:$0xff] }
 0x481   : > { %7018 = vpow2.f32 %v2918_v19  ;;  %v13490_v19 = vld [vmem:[#allocation149_spill] sm:$0xff]  ;;  %v2794_v38 = vsub.f32 %v13491_v8, %v9746_v57 }
 0x482   : > { %7020 = vpow2.f32 %v2922_v21  ;;  %v2795_v21 = vsub.f32 %v13490_v19, %v9744_v0 }
 0x483   : > { %2775 = vmax.xlane.f32.xlu2 %v2774_v34  ;;  %2778 = vmax.xlane.f32.xlu0 %v2777_v62  ;;  %v3170_v34 = vsel %vm2401_vm2, %v10405_v9, 0.0  ;;  %v3173_v62 = vsel %vm2401_vm2, %v10411_v20, 0.0  ;;  %7022 = vpow2.f32 %v2926_v58 }
 0x484   : > { %2781 = vmax.xlane.f32.xlu1 %v2780_v36  ;;  %7024 = vpow2.f32 %v2924_v31  ;;  %v2932_v0 = vmul.f32 1.442695, %v2795_v21  ;;  %v2930_v31 = vmul.f32 1.442695, %v2794_v38  ;;  %v13494_v21 = vld [vmem:[#allocation151_spill] sm:$0xff] }
 0x485   : > { %7026 = vpow2.f32 %v2928_v14  ;;  %v2797_v38 = vsub.f32 %v13494_v21, %v9777_v12 }
 0x486   : > { %v10403_v15 = vpop.xlane.xlu2 %2649  ;;  %v10409_v41 = vpop.xlane.xlu0 %2652  ;;  %7028 = vpow2.f32 %v2932_v0 }
 0x487   : > { %v10407_v51 = vpop.xlane.xlu1 %2655  ;;  %v10425_v30 = vpop.eup %7016  ;;  %7030 = vpow2.f32 %v2930_v31 }
 0x488   : > { %v10429_v55 = vpop.eup %7018 }
 0x489   : > { %v10435_v2 = vpop.eup %7020 }
 0x48a   : > { %v3182_v58 = vsel %vm2401_vm2, %v10435_v2, 0.0  ;;  %v10449_v19 = vpop.eup %7022 }
 0x48b   : > { %2784 = vmax.xlane.f32.xlu2 %v2783_v61  ;;  %3171 = vadd.xlane.f32.xlu0 %v3170_v34  ;;  %v2796_v61 = vsub.f32 %v13492_v32, %v9769_v53  ;;  %v3176_v34 = vsel %vm2401_vm2, %v10429_v55, 0.0  ;;  %v10453_v53 = vpop.eup %7024 }
 0x48c   : > { %3174 = vadd.xlane.f32.xlu1 %v3173_v62  ;;  %v3179_v62 = vsel %vm2401_vm2, %v10425_v30, 0.0  ;;  %13493 = vst [vmem:[#allocation147_spill] sm:$0xff] %v10453_v53  ;;  %v10459_v56 = vpop.eup %7026 }
 0x48d   : > { %v2934_v57 = vmul.f32 1.442695, %v2796_v61  ;;  %v2799_v61 = vsub.f32 %v9285_v7, %v9799_v3  ;;  %v3191_v0 = vsel %vm2401_vm2, %v10459_v56, 0.0  ;;  %v10473_v31 = vpop.eup %7028 }
 0x48e   : > { %v10427_v18 = vpop.xlane.xlu2 %2658  ;;  %v10433_v36 = vpop.xlane.xlu0 %2661  ;;  %13495 = vst [vmem:[#allocation149_spill] sm:$0xff] %v10473_v31 }
 0x48f   : > { %v10431_v59 = vpop.xlane.xlu1 %2664  ;;  %7032 = vpow2.f32 %v2934_v57  ;;  %v2940_v12 = vmul.f32 1.442695, %v2799_v61  ;;  %v10477_v7 = vpop.eup %7030 }
 0x490   : > { %13496 = vst [vmem:[#allocation148_spill] sm:$0xff] %v10477_v7  ;;  %v3194_v61 = vsel %vm2401_vm2, %v10477_v7, 0.0 }
 0x493   : > { %3177 = vadd.xlane.f32.xlu2 %v3176_v34  ;;  %3180 = vadd.xlane.f32.xlu0 %v3179_v62  ;;  %v2798_v34 = vsub.f32 %v9264_v16, %v9775_v46  ;;  %v3185_v62 = vsel %vm2401_vm2, %v10453_v53, 0.0  ;;  %v2936_v46 = vmul.f32 1.442695, %v2797_v38  ;;  %v2802_v38 = vsub.f32 %v9321_v28, %v9824_v54 }
 0x494   : > { %3183 = vadd.xlane.f32.xlu1 %v3182_v58  ;;  %v3188_v58 = vsel %vm2401_vm2, %v10449_v19, 0.0 }
 0x495   : > { %v2938_v16 = vmul.f32 1.442695, %v2798_v34  ;;  %v10483_v17 = vpop.eup %7032  ;;  %v2800_v34 = vsub.f32 %v9289_v26, %v9807_v52  ;;  %v2946_v26 = vmul.f32 1.442695, %v2802_v38 }
 0x496   : > { %v10451_v14 = vpop.xlane.xlu2 %2667  ;;  %v10457_v32 = vpop.xlane.xlu0 %2670  ;;  %13497 = vst [vmem:[#allocation150_spill] sm:$0xff] %v10483_v17 }
 0x497   : > { %v10455_v8 = vpop.xlane.xlu1 %2673  ;;  %7034 = vpow2.f32 %v2938_v16 }
 0x498   : > { %7036 = vpow2.f32 %v2936_v46 }
 0x499   : > { %7038 = vpow2.f32 %v2940_v12 }
 0x49b   : > { %3186 = vadd.xlane.f32.xlu2 %v3185_v62  ;;  %3189 = vadd.xlane.f32.xlu0 %v3188_v58  ;;  %v2801_v62 = vsub.f32 %v9298_v4, %v9805_v13  ;;  %v3197_v58 = vsel %vm2401_vm2, %v10473_v31, 0.0  ;;  %v2942_v13 = vmul.f32 1.442695, %v2800_v34  ;;  %v2805_v34 = vsub.f32 %v9357_v11, %v9859_v29 }
 0x49c   : > { %3192 = vadd.xlane.f32.xlu1 %v3191_v0  ;;  %v3200_v0 = vsel %vm2401_vm2, %v10483_v17, 0.0 }
 0x49d   : > { %v2944_v4 = vmul.f32 1.442695, %v2801_v62  ;;  %v10497_v16 = vpop.eup %7034  ;;  %v2803_v62 = vsub.f32 %v9325_v33, %v9831_v27  ;;  %v2952_v33 = vmul.f32 1.442695, %v2805_v34  ;;  %v13506_v34 = vld [vmem:[#allocation201_spill] sm:$0xff] }
 0x49e   : > { %v10475_v57 = vpop.xlane.xlu2 %2676  ;;  %v10481_v21 = vpop.xlane.xlu0 %2679  ;;  %13498 = vst [vmem:[#allocation151_spill] sm:$0xff] %v10497_v16 }
 0x49f   : > { %v10479_v3 = vpop.xlane.xlu1 %2682  ;;  %v10501_v28 = vpop.eup %7036  ;;  %7040 = vpow2.f32 %v2944_v4 }
 0x4a0   : > { %13499 = vst [vmem:[#allocation303_spill] sm:$0xff] %v10501_v28  ;;  %v10507_v12 = vpop.eup %7038  ;;  %7042 = vpow2.f32 %v2942_v13  ;;  %v3203_v38 = vsel %vm2401_vm2, %v10501_v28, 0.0 }
 0x4a1   : > { %13500 = vst [vmem:[#allocation304_spill] sm:$0xff] %v10507_v12  ;;  %7044 = vpow2.f32 %v2946_v26 }
 0x4a3   : > { %3195 = vadd.xlane.f32.xlu2 %v3194_v61  ;;  %3198 = vadd.xlane.f32.xlu0 %v3197_v58  ;;  %v2804_v61 = vsub.f32 %v9335_v43, %v9829_v42  ;;  %v3206_v58 = vsel %vm2401_vm2, %v10497_v16, 0.0  ;;  %v2948_v42 = vmul.f32 1.442695, %v2803_v62  ;;  %v13505_v62 = vld [vmem:[#allocation152_spill] sm:$0xff] }
 0x4a4   : > { %3201 = vadd.xlane.f32.xlu1 %v3200_v0  ;;  %v3209_v0 = vsel %vm2401_vm2, %v10507_v12, 0.0 }
 0x4a5   : > { %v2950_v43 = vmul.f32 1.442695, %v2804_v61  ;;  %v10521_v4 = vpop.eup %7040  ;;  %v13504_v61 = vld [vmem:[#allocation198_spill] sm:$0xff] }
 0x4a6   : > { %v10499_v52 = vpop.xlane.xlu2 %2685  ;;  %v10505_v46 = vpop.xlane.xlu0 %2688  ;;  %13501 = vst [vmem:[#allocation305_spill] sm:$0xff] %v10521_v4  ;;  %v3215_v22 = vsel %vm2401_vm2, %v10521_v4, 0.0 }
 0x4a7   : > { %v10503_v54 = vpop.xlane.xlu1 %2691  ;;  %v10525_v11 = vpop.eup %7042  ;;  %7046 = vpow2.f32 %v2950_v43 }
 0x4a8   : > { %13502 = vst [vmem:[#allocation306_spill] sm:$0xff] %v10525_v11  ;;  %v10531_v26 = vpop.eup %7044  ;;  %7048 = vpow2.f32 %v2948_v42  ;;  %v3212_v47 = vsel %vm2401_vm2, %v10525_v11, 0.0  ;;  %v13519_v11 = vld [vmem:[#allocation156_spill] sm:$0xff] }
 0x4a9   : > { %13503 = vst [vmem:[#allocation307_spill] sm:$0xff] %v10531_v26  ;;  %7050 = vpow2.f32 %v2952_v33  ;;  %v3218_v43 = vsel %vm2401_vm2, %v10531_v26, 0.0 }
 0x4ab   : > { %3204 = vadd.xlane.f32.xlu2 %v3203_v38  ;;  %3207 = vadd.xlane.f32.xlu0 %v3206_v58  ;;  %v2807_v38 = vsub.f32 %v9368_v49, %v9865_v1  ;;  %v2806_v58 = vsub.f32 %v13505_v62, %v13504_v61 }
 0x4ac   : > { %3210 = vadd.xlane.f32.xlu1 %v3209_v0  ;;  %v13507_v0 = vld [vmem:[#allocation153_spill] sm:$0xff] }
 0x4ad   : > { %v2808_v45 = vsub.f32 %v13507_v0, %v13506_v34  ;;  %v2956_v49 = vmul.f32 1.442695, %v2807_v38  ;;  %v2954_v1 = vmul.f32 1.442695, %v2806_v58  ;;  %v10545_v42 = vpop.eup %7046  ;;  %v13516_v38 = vld [vmem:[#allocation204_spill] sm:$0xff]  ;;  %v13517_v58 = vld [vmem:[#allocation154_spill] sm:$0xff] }
 0x4ae   : > { %v10523_v27 = vpop.xlane.xlu2 %2694  ;;  %v10529_v13 = vpop.xlane.xlu0 %2697  ;;  %13508 = vst [vmem:[#allocation198_spill] sm:$0xff] %v10545_v42  ;;  %v3224_v26 = vsel %vm2401_vm2, %v10545_v42, 0.0 }
 0x4af   : > { %v10527_v29 = vpop.xlane.xlu1 %2700  ;;  %v2958_v33 = vmul.f32 1.442695, %v2808_v45  ;;  %v10549_v62 = vpop.eup %7048  ;;  %7052 = vpow2.f32 %v2956_v49  ;;  %v13518_v45 = vld [vmem:[#allocation207_spill] sm:$0xff] }
 0x4b0   : > { %13510 = vst [vmem:[#allocation201_spill] sm:$0xff] %v10549_v62  ;;  %v10555_v63 = vpop.eup %7050  ;;  %7054 = vpow2.f32 %v2954_v1  ;;  %v2811_v12 = vsub.f32 %v13519_v11, %v13518_v45  ;;  %v3221_v16 = vsel %vm2401_vm2, %v10549_v62, 0.0  ;;  %v13531_v62 = vld [vmem:[#allocation159_spill] sm:$0xff] }
 0x4b1   : > { %13513 = vst [vmem:[#allocation309_spill] sm:$0xff] %v10555_v63  ;;  %7056 = vpow2.f32 %v2958_v33  ;;  %v3227_v49 = vsel %vm2401_vm2, %v10555_v63, 0.0 }
 0x4b2   : > { %v2964_v33 = vmul.f32 1.442695, %v2811_v12  ;;  %v13530_v12 = vld [vmem:[#allocation213_spill] sm:$0xff] }
 0x4b3   : > { %3213 = vadd.xlane.f32.xlu2 %v3212_v47  ;;  %3216 = vadd.xlane.f32.xlu0 %v3215_v22  ;;  %v13514_v22 = vld [vmem:[#allocation203_spill] sm:$0xff]  ;;  %v2814_v28 = vsub.f32 %v13531_v62, %v13530_v12 }
 0x4b4   : > { %3219 = vadd.xlane.f32.xlu1 %v3218_v43  ;;  %v13515_v47 = vld [vmem:[#allocation155_spill] sm:$0xff]  ;;  %v2809_v43 = vsub.f32 %v13517_v58, %v13516_v38 }
 0x4b5   : > { %v2810_v4 = vsub.f32 %v13515_v47, %v13514_v22  ;;  %v10569_v47 = vpop.eup %7052 }
 0x4b6   : > { %v10547_v61 = vpop.xlane.xlu2 %2703  ;;  %v10553_v0 = vpop.xlane.xlu0 %2706  ;;  %v2960_v1 = vmul.f32 1.442695, %v2809_v43  ;;  %13520 = vst [vmem:[#allocation203_spill] sm:$0xff] %v10569_v47  ;;  %v13529_v43 = vld [vmem:[#allocation157_spill] sm:$0xff] }
 0x4b7   : > { %13509 = vst [vmem:[#allocation152_spill] sm:$0xff] %v10547_v61  ;;  %v10551_v34 = vpop.xlane.xlu1 %2709  ;;  %v2962_v22 = vmul.f32 1.442695, %v2810_v4  ;;  %v10573_v11 = vpop.eup %7054  ;;  %v13528_v4 = vld [vmem:[#allocation210_spill] sm:$0xff] }
 0x4b8   : > { %13511 = vst [vmem:[#allocation153_spill] sm:$0xff] %v10551_v34  ;;  %v10579_v42 = vpop.eup %7056  ;;  %v3230_v17 = vsel %vm2401_vm2, %v10573_v11, 0.0 }
 0x4b9   : > { %13512 = vst [vmem:[#allocation308_spill] sm:$0xff] %v10553_v0  ;;  %7058 = vpow2.f32 %v2962_v22  ;;  %v3236_v22 = vsel %vm2401_vm2, %v10579_v42, 0.0 }
 0x4ba   : > { %13522 = vst [vmem:[#allocation204_spill] sm:$0xff] %v10573_v11  ;;  %7060 = vpow2.f32 %v2960_v1 }
 0x4bb   : > { %3222 = vadd.xlane.f32.xlu2 %v3221_v16  ;;  %3225 = vadd.xlane.f32.xlu0 %v3224_v26  ;;  %13525 = vst [vmem:[#allocation156_spill] sm:$0xff] %v10579_v42  ;;  %v13526_v16 = vld [vmem:[#allocation209_spill] sm:$0xff]  ;;  %v13527_v26 = vld [vmem:[#allocation158_spill] sm:$0xff]  ;;  %7062 = vpow2.f32 %v2964_v33  ;;  %v2970_v33 = vmul.f32 1.442695, %v2814_v28  ;;  %v13542_v28 = vld [vmem:[#allocation219_spill] sm:$0xff] }
 0x4bc   : > { %3228 = vadd.xlane.f32.xlu1 %v3227_v49  ;;  %v2813_v63 = vsub.f32 %v13527_v26, %v13526_v16  ;;  %v2812_v49 = vsub.f32 %v13529_v43, %v13528_v4  ;;  %v13539_v42 = vld [vmem:[#allocation161_spill] sm:$0xff] }
 0x4be   : > { %v10571_v38 = vpop.xlane.xlu2 %2712  ;;  %v10577_v45 = vpop.xlane.xlu0 %2715  ;;  %v2968_v16 = vmul.f32 1.442695, %v2813_v63  ;;  %v2966_v1 = vmul.f32 1.442695, %v2812_v49  ;;  %v13540_v63 = vld [vmem:[#allocation216_spill] sm:$0xff] }
 0x4bf   : > { %13521 = vst [vmem:[#allocation155_spill] sm:$0xff] %v10571_v38  ;;  %v10575_v58 = vpop.xlane.xlu1 %2718  ;;  %v10593_v26 = vpop.eup %7058  ;;  %v13541_v49 = vld [vmem:[#allocation160_spill] sm:$0xff] }
 0x4c0   : > { %13523 = vst [vmem:[#allocation154_spill] sm:$0xff] %v10575_v58  ;;  %v3233_v58 = vsel %vm2401_vm2, %v10569_v47, 0.0  ;;  %v10597_v62 = vpop.eup %7060  ;;  %7064 = vpow2.f32 %v2968_v16  ;;  %v13543_v47 = vld [vmem:[#allocation163_spill] sm:$0xff] }
 0x4c1   : > { %13524 = vst [vmem:[#allocation207_spill] sm:$0xff] %v10577_v45  ;;  %v10603_v45 = vpop.eup %7062  ;;  %7066 = vpow2.f32 %v2966_v1  ;;  %v3239_v11 = vsel %vm2401_vm2, %v10597_v62, 0.0 }
 0x4c2   : > { %13532 = vst [vmem:[#allocation209_spill] sm:$0xff] %v10593_v26  ;;  %7068 = vpow2.f32 %v2970_v33  ;;  %v3245_v16 = vsel %vm2401_vm2, %v10603_v45, 0.0 }
 0x4c3   : > { %3231 = vadd.xlane.f32.xlu2 %v3230_v17  ;;  %3234 = vadd.xlane.f32.xlu0 %v3233_v58  ;;  %13534 = vst [vmem:[#allocation210_spill] sm:$0xff] %v10597_v62  ;;  %v13538_v17 = vld [vmem:[#allocation215_spill] sm:$0xff] }
 0x4c4   : > { %3237 = vadd.xlane.f32.xlu1 %v3236_v22  ;;  %13537 = vst [vmem:[#allocation159_spill] sm:$0xff] %v10603_v45  ;;  %v2816_v58 = vsub.f32 %v13539_v42, %v13538_v17  ;;  %v2815_v22 = vsub.f32 %v13541_v49, %v13540_v63  ;;  %v13551_v45 = vld [vmem:[#allocation164_spill] sm:$0xff] }
 0x4c6   : > { %v10595_v4 = vpop.xlane.xlu2 %2721  ;;  %v10601_v12 = vpop.xlane.xlu0 %2724  ;;  %v2974_v42 = vmul.f32 1.442695, %v2816_v58  ;;  %v2972_v1 = vmul.f32 1.442695, %v2815_v22  ;;  %v13552_v58 = vld [vmem:[#allocation222_spill] sm:$0xff] }
 0x4c7   : > { %13533 = vst [vmem:[#allocation158_spill] sm:$0xff] %v10595_v4  ;;  %v10599_v43 = vpop.xlane.xlu1 %2727  ;;  %v2817_v4 = vsub.f32 %v13543_v47, %v13542_v28  ;;  %v10617_v17 = vpop.eup %7064  ;;  %v13553_v22 = vld [vmem:[#allocation162_spill] sm:$0xff] }
 0x4c8   : > { %13535 = vst [vmem:[#allocation157_spill] sm:$0xff] %v10599_v43  ;;  %v3242_v43 = vsel %vm2401_vm2, %v10593_v26, 0.0  ;;  %v10621_v47 = vpop.eup %7066  ;;  %7070 = vpow2.f32 %v2974_v42 }
 0x4c9   : > { %13536 = vst [vmem:[#allocation213_spill] sm:$0xff] %v10601_v12  ;;  %v2976_v33 = vmul.f32 1.442695, %v2817_v4  ;;  %v10627_v62 = vpop.eup %7068  ;;  %7072 = vpow2.f32 %v2972_v1  ;;  %v13554_v4 = vld [vmem:[#allocation225_spill] sm:$0xff]  ;;  %v3248_v26 = vsel %vm2401_vm2, %v10621_v47, 0.0 }
 0x4ca   : > { %13544 = vst [vmem:[#allocation215_spill] sm:$0xff] %v10617_v17  ;;  %v13555_v12 = vld [vmem:[#allocation165_spill] sm:$0xff]  ;;  %v3254_v42 = vsel %vm2401_vm2, %v10627_v62, 0.0 }
 0x4cb   : > { %3240 = vadd.xlane.f32.xlu2 %v3239_v11  ;;  %3243 = vadd.xlane.f32.xlu0 %v3242_v43  ;;  %13546 = vst [vmem:[#allocation216_spill] sm:$0xff] %v10621_v47  ;;  %v13550_v11 = vld [vmem:[#allocation221_spill] sm:$0xff]  ;;  %7074 = vpow2.f32 %v2976_v33 }
 0x4cc   : > { %3246 = vadd.xlane.f32.xlu1 %v3245_v16  ;;  %13549 = vst [vmem:[#allocation163_spill] sm:$0xff] %v10627_v62  ;;  %v2819_v43 = vsub.f32 %v13551_v45, %v13550_v11  ;;  %v2818_v16 = vsub.f32 %v13553_v22, %v13552_v58  ;;  %v13563_v62 = vld [vmem:[#allocation167_spill] sm:$0xff] }
 0x4ce   : > { %v10619_v63 = vpop.xlane.xlu2 %2730  ;;  %v10625_v28 = vpop.xlane.xlu0 %2733  ;;  %v2980_v45 = vmul.f32 1.442695, %v2819_v43  ;;  %v2978_v1 = vmul.f32 1.442695, %v2818_v16  ;;  %v13564_v43 = vld [vmem:[#allocation228_spill] sm:$0xff]  ;;  %v13565_v16 = vld [vmem:[#allocation166_spill] sm:$0xff] }
 0x4cf   : > { %13545 = vst [vmem:[#allocation161_spill] sm:$0xff] %v10619_v63  ;;  %v10623_v49 = vpop.xlane.xlu1 %2736  ;;  %v2820_v63 = vsub.f32 %v13555_v12, %v13554_v4  ;;  %v10641_v11 = vpop.eup %7070 }
 0x4d0   : > { %13547 = vst [vmem:[#allocation160_spill] sm:$0xff] %v10623_v49  ;;  %v3251_v49 = vsel %vm2401_vm2, %v10617_v17, 0.0  ;;  %v10645_v12 = vpop.eup %7072  ;;  %7076 = vpow2.f32 %v2980_v45 }
 0x4d1   : > { %13548 = vst [vmem:[#allocation219_spill] sm:$0xff] %v10625_v28  ;;  %v2982_v33 = vmul.f32 1.442695, %v2820_v63  ;;  %v10651_v17 = vpop.eup %7074  ;;  %7078 = vpow2.f32 %v2978_v1  ;;  %v13566_v63 = vld [vmem:[#allocation231_spill] sm:$0xff]  ;;  %v13567_v28 = vld [vmem:[#allocation168_spill] sm:$0xff]  ;;  %v3257_v47 = vsel %vm2401_vm2, %v10645_v12, 0.0 }
 0x4d2   : > { %13556 = vst [vmem:[#allocation221_spill] sm:$0xff] %v10641_v11  ;;  %v3263_v45 = vsel %vm2401_vm2, %v10651_v17, 0.0 }
 0x4d3   : > { %3249 = vadd.xlane.f32.xlu2 %v3248_v26  ;;  %3252 = vadd.xlane.f32.xlu0 %v3251_v49  ;;  %13558 = vst [vmem:[#allocation222_spill] sm:$0xff] %v10645_v12  ;;  %v13562_v26 = vld [vmem:[#allocation227_spill] sm:$0xff]  ;;  %7080 = vpow2.f32 %v2982_v33  ;;  %v13586_v12 = vld [vmem:[#allocation173_spill] sm:$0xff] }
 0x4d4   : > { %3255 = vadd.xlane.f32.xlu1 %v3254_v42  ;;  %13561 = vst [vmem:[#allocation165_spill] sm:$0xff] %v10651_v17  ;;  %v2822_v49 = vsub.f32 %v13563_v62, %v13562_v26  ;;  %v2821_v42 = vsub.f32 %v13565_v16, %v13564_v43  ;;  %v13575_v17 = vld [vmem:[#allocation170_spill] sm:$0xff] }
 0x4d6   : > { %v10643_v58 = vpop.xlane.xlu2 %2739  ;;  %v10649_v4 = vpop.xlane.xlu0 %2742  ;;  %v2986_v62 = vmul.f32 1.442695, %v2822_v49  ;;  %v2984_v1 = vmul.f32 1.442695, %v2821_v42  ;;  %v13576_v49 = vld [vmem:[#allocation234_spill] sm:$0xff]  ;;  %v13577_v42 = vld [vmem:[#allocation169_spill] sm:$0xff] }
 0x4d7   : > { %13557 = vst [vmem:[#allocation164_spill] sm:$0xff] %v10643_v58  ;;  %v10647_v22 = vpop.xlane.xlu1 %2745  ;;  %v2823_v58 = vsub.f32 %v13567_v28, %v13566_v63  ;;  %v10665_v26 = vpop.eup %7076 }
 0x4d8   : > { %13559 = vst [vmem:[#allocation162_spill] sm:$0xff] %v10647_v22  ;;  %v3260_v22 = vsel %vm2401_vm2, %v10641_v11, 0.0  ;;  %v10669_v28 = vpop.eup %7078  ;;  %7082 = vpow2.f32 %v2986_v62 }
 0x4d9   : > { %13560 = vst [vmem:[#allocation225_spill] sm:$0xff] %v10649_v4  ;;  %v2988_v33 = vmul.f32 1.442695, %v2823_v58  ;;  %v10675_v4 = vpop.eup %7080  ;;  %7084 = vpow2.f32 %v2984_v1  ;;  %v13578_v58 = vld [vmem:[#allocation171_spill] sm:$0xff]  ;;  %v3266_v11 = vsel %vm2401_vm2, %v10669_v28, 0.0 }
 0x4da   : > { %13568 = vst [vmem:[#allocation227_spill] sm:$0xff] %v10665_v26  ;;  %v3272_v62 = vsel %vm2401_vm2, %v10675_v4, 0.0 }
 0x4db   : > { %3258 = vadd.xlane.f32.xlu2 %v3257_v47  ;;  %3261 = vadd.xlane.f32.xlu0 %v3260_v22  ;;  %13570 = vst [vmem:[#allocation228_spill] sm:$0xff] %v10669_v28  ;;  %v13574_v47 = vld [vmem:[#allocation233_spill] sm:$0xff]  ;;  %7086 = vpow2.f32 %v2988_v33 }
 0x4dc   : > { %3264 = vadd.xlane.f32.xlu1 %v3263_v45  ;;  %13573 = vst [vmem:[#allocation168_spill] sm:$0xff] %v10675_v4  ;;  %v2825_v22 = vsub.f32 %v13575_v17, %v13574_v47  ;;  %v2824_v45 = vsub.f32 %v13577_v42, %v13576_v49  ;;  %v13590_v4 = vld [vmem:[#allocation174_spill] sm:$0xff] }
 0x4de   : > { %v10667_v43 = vpop.xlane.xlu2 %2748  ;;  %v10673_v63 = vpop.xlane.xlu0 %2751  ;;  %v2992_v17 = vmul.f32 1.442695, %v2825_v22  ;;  %v2990_v1 = vmul.f32 1.442695, %v2824_v45  ;;  %v13587_v22 = vld [vmem:[#allocation239_spill] sm:$0xff]  ;;  %v13588_v45 = vld [vmem:[#allocation172_spill] sm:$0xff] }
 0x4df   : > { %13569 = vst [vmem:[#allocation167_spill] sm:$0xff] %v10667_v43  ;;  %v10671_v16 = vpop.xlane.xlu1 %2754  ;;  %v2826_v43 = vsub.f32 %v13578_v58, %v10048_v10  ;;  %v10689_v47 = vpop.eup %7082 }
 0x4e0   : > { %13571 = vst [vmem:[#allocation166_spill] sm:$0xff] %v10671_v16  ;;  %v3269_v16 = vsel %vm2401_vm2, %v10665_v26, 0.0  ;;  %v10693_v10 = vpop.eup %7084  ;;  %7088 = vpow2.f32 %v2992_v17 }
 0x4e1   : > { %13572 = vst [vmem:[#allocation231_spill] sm:$0xff] %v10673_v63  ;;  %v2994_v33 = vmul.f32 1.442695, %v2826_v43  ;;  %v10699_v63 = vpop.eup %7086  ;;  %7090 = vpow2.f32 %v2990_v1  ;;  %v13589_v43 = vld [vmem:[#allocation242_spill] sm:$0xff]  ;;  %v3275_v38 = vsel %vm2401_vm2, %v10693_v10, 0.0 }
 0x4e2   : > { %13579 = vst [vmem:[#allocation233_spill] sm:$0xff] %v10689_v47  ;;  %v3281_v17 = vsel %vm2401_vm2, %v10699_v63, 0.0 }
 0x4e3   : > { %3267 = vadd.xlane.f32.xlu2 %v3266_v11  ;;  %3270 = vadd.xlane.f32.xlu0 %v3269_v16  ;;  %13581 = vst [vmem:[#allocation234_spill] sm:$0xff] %v10693_v10  ;;  %v13585_v11 = vld [vmem:[#allocation238_spill] sm:$0xff]  ;;  %7092 = vpow2.f32 %v2994_v33 }
 0x4e4   : > { %3273 = vadd.xlane.f32.xlu1 %v3272_v62  ;;  %13584 = vst [vmem:[#allocation310_spill] sm:$0xff] %v10699_v63  ;;  %v2828_v16 = vsub.f32 %v13586_v12, %v13585_v11  ;;  %v2827_v62 = vsub.f32 %v13588_v45, %v13587_v22  ;;  %v13598_v63 = vld [vmem:[#allocation176_spill] sm:$0xff] }
 0x4e6   : > { %v10691_v49 = vpop.xlane.xlu2 %2757  ;;  %v10697_v58 = vpop.xlane.xlu0 %2760  ;;  %v2998_v12 = vmul.f32 1.442695, %v2828_v16  ;;  %v2996_v1 = vmul.f32 1.442695, %v2827_v62  ;;  %v13599_v16 = vld [vmem:[#allocation245_spill] sm:$0xff]  ;;  %v13600_v62 = vld [vmem:[#allocation175_spill] sm:$0xff] }
 0x4e7   : > { %13580 = vst [vmem:[#allocation170_spill] sm:$0xff] %v10691_v49  ;;  %v10695_v42 = vpop.xlane.xlu1 %2763  ;;  %v2829_v49 = vsub.f32 %v13590_v4, %v13589_v43  ;;  %v10713_v11 = vpop.eup %7088 }
 0x4e8   : > { %13582 = vst [vmem:[#allocation169_spill] sm:$0xff] %v10695_v42  ;;  %v3278_v42 = vsel %vm2401_vm2, %v10689_v47, 0.0  ;;  %v10717_v4 = vpop.eup %7090  ;;  %7094 = vpow2.f32 %v2998_v12  ;;  %v13602_v47 = vld [vmem:[#allocation177_spill] sm:$0xff] }
 0x4e9   : > { %13583 = vst [vmem:[#allocation171_spill] sm:$0xff] %v10697_v58  ;;  %v3000_v33 = vmul.f32 1.442695, %v2829_v49  ;;  %v10723_v58 = vpop.eup %7092  ;;  %7096 = vpow2.f32 %v2996_v1  ;;  %v13601_v49 = vld [vmem:[#allocation248_spill] sm:$0xff]  ;;  %v3284_v10 = vsel %vm2401_vm2, %v10717_v4, 0.0 }
 0x4ea   : > { %13591 = vst [vmem:[#allocation238_spill] sm:$0xff] %v10713_v11  ;;  %v3290_v12 = vsel %vm2401_vm2, %v10723_v58, 0.0 }
 0x4eb   : > { %3276 = vadd.xlane.f32.xlu2 %v3275_v38  ;;  %3279 = vadd.xlane.f32.xlu0 %v3278_v42  ;;  %13593 = vst [vmem:[#allocation239_spill] sm:$0xff] %v10717_v4  ;;  %v13597_v38 = vld [vmem:[#allocation244_spill] sm:$0xff]  ;;  %7098 = vpow2.f32 %v3000_v33 }
 0x4ec   : > { %3282 = vadd.xlane.f32.xlu1 %v3281_v17  ;;  %13596 = vst [vmem:[#allocation174_spill] sm:$0xff] %v10723_v58  ;;  %v2831_v42 = vsub.f32 %v13598_v63, %v13597_v38  ;;  %v2830_v17 = vsub.f32 %v13600_v62, %v13599_v16  ;;  %v13610_v58 = vld [vmem:[#allocation179_spill] sm:$0xff] }
 0x4ee   : > { %v10715_v22 = vpop.xlane.xlu2 %2766  ;;  %v10721_v43 = vpop.xlane.xlu0 %2769  ;;  %v3004_v63 = vmul.f32 1.442695, %v2831_v42  ;;  %v3002_v1 = vmul.f32 1.442695, %v2830_v17  ;;  %v13611_v42 = vld [vmem:[#allocation251_spill] sm:$0xff]  ;;  %v13612_v17 = vld [vmem:[#allocation178_spill] sm:$0xff] }
 0x4ef   : > { %13592 = vst [vmem:[#allocation173_spill] sm:$0xff] %v10715_v22  ;;  %v10719_v45 = vpop.xlane.xlu1 %2772  ;;  %v2832_v22 = vsub.f32 %v13602_v47, %v13601_v49  ;;  %v10737_v38 = vpop.eup %7094 }
 0x4f0   : > { %13594 = vst [vmem:[#allocation172_spill] sm:$0xff] %v10719_v45  ;;  %v3287_v45 = vsel %vm2401_vm2, %v10713_v11, 0.0  ;;  %v10741_v47 = vpop.eup %7096  ;;  %7100 = vpow2.f32 %v3004_v63  ;;  %v13614_v11 = vld [vmem:[#allocation180_spill] sm:$0xff] }
 0x4f1   : > { %13595 = vst [vmem:[#allocation242_spill] sm:$0xff] %v10721_v43  ;;  %v3006_v33 = vmul.f32 1.442695, %v2832_v22  ;;  %v10747_v43 = vpop.eup %7098  ;;  %7102 = vpow2.f32 %v3002_v1  ;;  %v13613_v22 = vld [vmem:[#allocation254_spill] sm:$0xff]  ;;  %v3293_v4 = vsel %vm2401_vm2, %v10741_v47, 0.0 }
 0x4f2   : > { %13603 = vst [vmem:[#allocation244_spill] sm:$0xff] %v10737_v38  ;;  %v3299_v63 = vsel %vm2401_vm2, %v10747_v43, 0.0 }
 0x4f3   : > { %3285 = vadd.xlane.f32.xlu2 %v3284_v10  ;;  %3288 = vadd.xlane.f32.xlu0 %v3287_v45  ;;  %13605 = vst [vmem:[#allocation245_spill] sm:$0xff] %v10741_v47  ;;  %v13609_v10 = vld [vmem:[#allocation250_spill] sm:$0xff]  ;;  %7104 = vpow2.f32 %v3006_v33 }
 0x4f4   : > { %3291 = vadd.xlane.f32.xlu1 %v3290_v12  ;;  %13608 = vst [vmem:[#allocation177_spill] sm:$0xff] %v10747_v43  ;;  %v2834_v45 = vsub.f32 %v13610_v58, %v13609_v10  ;;  %v2833_v12 = vsub.f32 %v13612_v17, %v13611_v42  ;;  %v13620_v43 = vld [vmem:[#allocation182_spill] sm:$0xff] }
 0x4f6   : > { %v10739_v16 = vpop.xlane.xlu2 %2775  ;;  %v10745_v49 = vpop.xlane.xlu0 %2778  ;;  %v3010_v58 = vmul.f32 1.442695, %v2834_v45  ;;  %v3008_v1 = vmul.f32 1.442695, %v2833_v12  ;;  %v13621_v45 = vld [vmem:[#allocation257_spill] sm:$0xff] }
 0x4f7   : > { %13604 = vst [vmem:[#allocation176_spill] sm:$0xff] %v10739_v16  ;;  %v10743_v62 = vpop.xlane.xlu1 %2781  ;;  %v2835_v16 = vsub.f32 %v13614_v11, %v13613_v22  ;;  %v10761_v10 = vpop.eup %7100  ;;  %v13622_v12 = vld [vmem:[#allocation181_spill] sm:$0xff] }
 0x4f8   : > { %13606 = vst [vmem:[#allocation175_spill] sm:$0xff] %v10743_v62  ;;  %v3296_v62 = vsel %vm2401_vm2, %v10737_v38, 0.0  ;;  %v10765_v11 = vpop.eup %7102  ;;  %7106 = vpow2.f32 %v3010_v58  ;;  %v13624_v38 = vld [vmem:[#allocation183_spill] sm:$0xff]  ;;  %v3305_v26 = vsel %vm2401_vm2, %v10761_v10, 0.0 }
 0x4f9   : > { %13607 = vst [vmem:[#allocation248_spill] sm:$0xff] %v10745_v49  ;;  %v3012_v33 = vmul.f32 1.442695, %v2835_v16  ;;  %v10771_v49 = vpop.eup %7104  ;;  %7108 = vpow2.f32 %v3008_v1  ;;  %v13623_v16 = vld [vmem:[#allocation260_spill] sm:$0xff]  ;;  %v3302_v47 = vsel %vm2401_vm2, %v10765_v11, 0.0 }
 0x4fa   : > { %13615 = vst [vmem:[#allocation250_spill] sm:$0xff] %v10761_v10  ;;  %v3308_v58 = vsel %vm2401_vm2, %v10771_v49, 0.0 }
 0x4fb   : > { %3294 = vadd.xlane.f32.xlu2 %v3293_v4  ;;  %3297 = vadd.xlane.f32.xlu0 %v3296_v62  ;;  %13617 = vst [vmem:[#allocation251_spill] sm:$0xff] %v10765_v11  ;;  %v13619_v4 = vld [vmem:[#allocation256_spill] sm:$0xff]  ;;  %7110 = vpow2.f32 %v3012_v33  ;;  %v13633_v11 = vld [vmem:[#allocation187_spill] sm:$0xff] }
 0x4fc   : > { %3300 = vadd.xlane.f32.xlu1 %v3299_v63  ;;  %13618 = vst [vmem:[#allocation178_spill] sm:$0xff] %v10771_v49  ;;  %v2837_v62 = vsub.f32 %v13620_v43, %v13619_v4  ;;  %v2836_v63 = vsub.f32 %v13622_v12, %v13621_v45  ;;  %v13629_v49 = vld [vmem:[#allocation185_spill] sm:$0xff] }
 0x4fe   : > { %v10763_v42 = vpop.xlane.xlu2 %2784  ;;  %v10769_v22 = vpop.xlane.xlu0 %3171  ;;  %v3016_v43 = vmul.f32 1.442695, %v2837_v62  ;;  %v3014_v1 = vmul.f32 1.442695, %v2836_v63  ;;  %v13630_v62 = vld [vmem:[#allocation263_spill] sm:$0xff]  ;;  %v13631_v63 = vld [vmem:[#allocation184_spill] sm:$0xff] }
 0x4ff   : > { %13616 = vst [vmem:[#allocation179_spill] sm:$0xff] %v10763_v42  ;;  %v10767_v17 = vpop.xlane.xlu1 %3174  ;;  %v2838_v42 = vsub.f32 %v13624_v38, %v13623_v16  ;;  %v10785_v4 = vpop.eup %7106 }
 0x500   : > { %13625 = vst [vmem:[#allocation254_spill] sm:$0xff] %v10785_v4  ;;  %v10789_v38 = vpop.eup %7108  ;;  %7112 = vpow2.f32 %v3016_v43  ;;  %v3314_v28 = vsel %vm2401_vm2, %v10785_v4, 0.0  ;;  %v13642_v4 = vld [vmem:[#allocation189_spill] sm:$0xff] }
 0x501   : > { %v3018_v33 = vmul.f32 1.442695, %v2838_v42  ;;  %13626 = vst [vmem:[#allocation180_spill] sm:$0xff] %v10789_v38  ;;  %v10795_v10 = vpop.eup %7110  ;;  %7114 = vpow2.f32 %v3014_v1  ;;  %v13632_v42 = vld [vmem:[#allocation266_spill] sm:$0xff]  ;;  %v3311_v34 = vsel %vm2401_vm2, %v10789_v38, 0.0 }
 0x502   : > { %13627 = vst [vmem:[#allocation256_spill] sm:$0xff] %v10795_v10  ;;  %v2841_v31 = vsub.f32 %v13633_v11, %v13632_v42  ;;  %v3317_v43 = vsel %vm2401_vm2, %v10795_v10, 0.0  ;;  %v13638_v10 = vld [vmem:[#allocation188_spill] sm:$0xff] }
 0x503   : > { %3303 = vadd.xlane.f32.xlu2 %v3302_v47  ;;  %3306 = vadd.xlane.f32.xlu0 %v3305_v26  ;;  %v13628_v47 = vld [vmem:[#allocation262_spill] sm:$0xff]  ;;  %7116 = vpow2.f32 %v3018_v33 }
 0x504   : > { %3309 = vadd.xlane.f32.xlu1 %v3308_v58  ;;  %v2840_v26 = vsub.f32 %v13629_v49, %v13628_v47  ;;  %v2839_v58 = vsub.f32 %v13631_v63, %v13630_v62  ;;  %v3024_v33 = vmul.f32 1.442695, %v2841_v31  ;;  %v13641_v31 = vld [vmem:[#allocation272_spill] sm:$0xff] }
 0x505   : > { %v2844_v7 = vsub.f32 %v13642_v4, %v13641_v31 }
 0x506   : > { %v10787_v45 = vpop.xlane.xlu2 %3177  ;;  %v10793_v16 = vpop.xlane.xlu0 %3180  ;;  %v3022_v49 = vmul.f32 1.442695, %v2840_v26  ;;  %v3020_v1 = vmul.f32 1.442695, %v2839_v58  ;;  %v13639_v26 = vld [vmem:[#allocation269_spill] sm:$0xff]  ;;  %v13640_v58 = vld [vmem:[#allocation186_spill] sm:$0xff] }
 0x507   : > { %v10791_v12 = vpop.xlane.xlu1 %3183  ;;  %v10809_v47 = vpop.eup %7112 }
 0x508   : > { %13634 = vst [vmem:[#allocation182_spill] sm:$0xff] %v10809_v47  ;;  %v10813_v11 = vpop.eup %7114  ;;  %7118 = vpow2.f32 %v3022_v49  ;;  %v3323_v61 = vsel %vm2401_vm2, %v10809_v47, 0.0 }
 0x509   : > { %13635 = vst [vmem:[#allocation257_spill] sm:$0xff] %v10813_v11  ;;  %v10819_v38 = vpop.eup %7116  ;;  %7120 = vpow2.f32 %v3020_v1  ;;  %v3320_v0 = vsel %vm2401_vm2, %v10813_v11, 0.0  ;;  %v13653_v11 = vld [vmem:[#allocation192_spill] sm:$0xff] }
 0x50a   : > { %13636 = vst [vmem:[#allocation181_spill] sm:$0xff] %v10819_v38  ;;  %7122 = vpow2.f32 %v3024_v33  ;;  %v3326_v49 = vsel %vm2401_vm2, %v10819_v38, 0.0  ;;  %v3030_v33 = vmul.f32 1.442695, %v2844_v7  ;;  %v13649_v38 = vld [vmem:[#allocation191_spill] sm:$0xff]  ;;  %v13652_v7 = vld [vmem:[#allocation278_spill] sm:$0xff] }
 0x50b   : > { %3312 = vadd.xlane.f32.xlu2 %v3311_v34  ;;  %3315 = vadd.xlane.f32.xlu0 %v3314_v28  ;;  %v13637_v34 = vld [vmem:[#allocation268_spill] sm:$0xff] }
 0x50c   : > { %3318 = vadd.xlane.f32.xlu1 %v3317_v43  ;;  %v2843_v28 = vsub.f32 %v13638_v10, %v13637_v34  ;;  %v2842_v43 = vsub.f32 %v13640_v58, %v13639_v26 }
 0x50e   : > { %v10811_v62 = vpop.xlane.xlu2 %3186  ;;  %v10817_v42 = vpop.xlane.xlu0 %3189  ;;  %v3028_v10 = vmul.f32 1.442695, %v2843_v28  ;;  %v3026_v1 = vmul.f32 1.442695, %v2842_v43  ;;  %v13650_v28 = vld [vmem:[#allocation275_spill] sm:$0xff]  ;;  %v13651_v43 = vld [vmem:[#allocation190_spill] sm:$0xff] }
 0x50f   : > { %v10815_v63 = vpop.xlane.xlu1 %3192  ;;  %v10833_v34 = vpop.eup %7118 }
 0x510   : > { %13643 = vst [vmem:[#allocation260_spill] sm:$0xff] %v10833_v34  ;;  %v10837_v4 = vpop.eup %7120  ;;  %7124 = vpow2.f32 %v3028_v10 }
 0x511   : > { %13645 = vst [vmem:[#allocation262_spill] sm:$0xff] %v10837_v4  ;;  %v10843_v47 = vpop.eup %7122  ;;  %7126 = vpow2.f32 %v3026_v1  ;;  %v3329_v53 = vsel %vm2401_vm2, %v10837_v4, 0.0 }
 0x512   : > { %13647 = vst [vmem:[#allocation263_spill] sm:$0xff] %v10843_v47  ;;  %7128 = vpow2.f32 %v3030_v33  ;;  %v3335_v10 = vsel %vm2401_vm2, %v10843_v47, 0.0  ;;  %v13660_v47 = vld [vmem:[#allocation194_spill] sm:$0xff] }
 0x513   : > { %3321 = vadd.xlane.f32.xlu2 %v3320_v0  ;;  %3324 = vadd.xlane.f32.xlu0 %v3323_v61  ;;  %v13648_v0 = vld [vmem:[#allocation274_spill] sm:$0xff] }
 0x514   : > { %3327 = vadd.xlane.f32.xlu1 %v3326_v49  ;;  %v2846_v61 = vsub.f32 %v13649_v38, %v13648_v0  ;;  %v2845_v49 = vsub.f32 %v13651_v43, %v13650_v28 }
 0x516   : > { %v10835_v26 = vpop.xlane.xlu2 %3195  ;;  %v10841_v31 = vpop.xlane.xlu0 %3198  ;;  %v3034_v38 = vmul.f32 1.442695, %v2846_v61  ;;  %v3032_v1 = vmul.f32 1.442695, %v2845_v49  ;;  %v13661_v61 = vld [vmem:[#allocation281_spill] sm:$0xff] }
 0x517   : > { %13644 = vst [vmem:[#allocation183_spill] sm:$0xff] %v10835_v26  ;;  %v10839_v58 = vpop.xlane.xlu1 %3201  ;;  %v2847_v26 = vsub.f32 %v13653_v11, %v13652_v7  ;;  %v10857_v0 = vpop.eup %7124  ;;  %v13662_v49 = vld [vmem:[#allocation193_spill] sm:$0xff] }
 0x518   : > { %13646 = vst [vmem:[#allocation185_spill] sm:$0xff] %v10839_v58  ;;  %v3332_v58 = vsel %vm2401_vm2, %v10833_v34, 0.0  ;;  %v10861_v11 = vpop.eup %7126  ;;  %7130 = vpow2.f32 %v3034_v38 }
 0x519   : > { %13654 = vst [vmem:[#allocation184_spill] sm:$0xff] %v10857_v0  ;;  %v3036_v33 = vmul.f32 1.442695, %v2847_v26  ;;  %v10867_v34 = vpop.eup %7128  ;;  %7132 = vpow2.f32 %v3032_v1  ;;  %v13663_v26 = vld [vmem:[#allocation195_spill] sm:$0xff] }
 0x51a   : > { %13656 = vst [vmem:[#allocation187_spill] sm:$0xff] %v10861_v11  ;;  %v2850_v4 = vsub.f32 %v13663_v26, %v10263_v23  ;;  %v3344_v38 = vsel %vm2401_vm2, %v10867_v34, 0.0 }
 0x51b   : > { %3330 = vadd.xlane.f32.xlu2 %v3329_v53  ;;  %3333 = vadd.xlane.f32.xlu0 %v3332_v58  ;;  %13658 = vst [vmem:[#allocation188_spill] sm:$0xff] %v10867_v34  ;;  %v13659_v53 = vld [vmem:[#allocation280_spill] sm:$0xff]  ;;  %7134 = vpow2.f32 %v3036_v33 }
 0x51c   : > { %3336 = vadd.xlane.f32.xlu1 %v3335_v10  ;;  %v2849_v58 = vsub.f32 %v13660_v47, %v13659_v53  ;;  %v2848_v10 = vsub.f32 %v13662_v49, %v13661_v61  ;;  %v3042_v33 = vmul.f32 1.442695, %v2850_v4  ;;  %v13672_v4 = vld [vmem:[#allocation199_spill] sm:$0xff] }
 0x51d   : > { %v2853_v34 = vsub.f32 %v13672_v4, %v10286_v39 }
 0x51e   : > { %v10859_v28 = vpop.xlane.xlu2 %3204  ;;  %v10865_v7 = vpop.xlane.xlu0 %3207  ;;  %v3040_v47 = vmul.f32 1.442695, %v2849_v58  ;;  %v3038_v1 = vmul.f32 1.442695, %v2848_v10  ;;  %v13670_v58 = vld [vmem:[#allocation285_spill] sm:$0xff]  ;;  %v13671_v10 = vld [vmem:[#allocation196_spill] sm:$0xff] }
 0x51f   : > { %13655 = vst [vmem:[#allocation266_spill] sm:$0xff] %v10859_v28  ;;  %v10863_v43 = vpop.xlane.xlu1 %3210  ;;  %v3338_v28 = vsel %vm2401_vm2, %v10861_v11, 0.0  ;;  %v10881_v53 = vpop.eup %7130 }
 0x520   : > { %13657 = vst [vmem:[#allocation268_spill] sm:$0xff] %v10863_v43  ;;  %v3341_v43 = vsel %vm2401_vm2, %v10857_v0, 0.0  ;;  %v10885_v23 = vpop.eup %7132  ;;  %7136 = vpow2.f32 %v3040_v47 }
 0x521   : > { %13664 = vst [vmem:[#allocation269_spill] sm:$0xff] %v10881_v53  ;;  %v10891_v0 = vpop.eup %7134  ;;  %7138 = vpow2.f32 %v3038_v1  ;;  %v3347_v11 = vsel %vm2401_vm2, %v10885_v23, 0.0 }
 0x522   : > { %13666 = vst [vmem:[#allocation272_spill] sm:$0xff] %v10885_v23  ;;  %7140 = vpow2.f32 %v3042_v33  ;;  %v3353_v47 = vsel %vm2401_vm2, %v10891_v0, 0.0  ;;  %v3048_v33 = vmul.f32 1.442695, %v2853_v34  ;;  %v13681_v34 = vld [vmem:[#allocation205_spill] sm:$0xff] }
 0x523   : > { %3339 = vadd.xlane.f32.xlu2 %v3338_v28  ;;  %3342 = vadd.xlane.f32.xlu0 %v3341_v43  ;;  %13668 = vst [vmem:[#allocation274_spill] sm:$0xff] %v10891_v0  ;;  %v13669_v28 = vld [vmem:[#allocation197_spill] sm:$0xff]  ;;  %v13678_v0 = vld [vmem:[#allocation202_spill] sm:$0xff]  ;;  %v2856_v23 = vsub.f32 %v13681_v34, %v10309_v35 }
 0x524   : > { %3345 = vadd.xlane.f32.xlu1 %v3344_v38  ;;  %v2852_v43 = vsub.f32 %v13669_v28, %v10268_v50  ;;  %v2851_v38 = vsub.f32 %v13671_v10, %v13670_v58 }
 0x526   : > { %v10883_v61 = vpop.xlane.xlu2 %3213  ;;  %v10889_v26 = vpop.xlane.xlu0 %3216  ;;  %v3046_v50 = vmul.f32 1.442695, %v2852_v43  ;;  %v3044_v1 = vmul.f32 1.442695, %v2851_v38  ;;  %v13679_v43 = vld [vmem:[#allocation290_spill] sm:$0xff]  ;;  %v13680_v38 = vld [vmem:[#allocation200_spill] sm:$0xff] }
 0x527   : > { %13665 = vst [vmem:[#allocation186_spill] sm:$0xff] %v10883_v61  ;;  %v10887_v49 = vpop.xlane.xlu1 %3219  ;;  %v10905_v28 = vpop.eup %7136 }
 0x528   : > { %13667 = vst [vmem:[#allocation189_spill] sm:$0xff] %v10889_v26  ;;  %v3350_v26 = vsel %vm2401_vm2, %v10881_v53, 0.0  ;;  %v10909_v39 = vpop.eup %7138  ;;  %7142 = vpow2.f32 %v3046_v50 }
 0x529   : > { %13673 = vst [vmem:[#allocation191_spill] sm:$0xff] %v10905_v28  ;;  %v10915_v53 = vpop.eup %7140  ;;  %7144 = vpow2.f32 %v3044_v1  ;;  %v3356_v61 = vsel %vm2401_vm2, %v10909_v39, 0.0 }
 0x52a   : > { %13674 = vst [vmem:[#allocation275_spill] sm:$0xff] %v10909_v39  ;;  %7146 = vpow2.f32 %v3048_v33  ;;  %v3362_v50 = vsel %vm2401_vm2, %v10915_v53, 0.0  ;;  %v3054_v33 = vmul.f32 1.442695, %v2856_v23  ;;  %v13687_v39 = vld [vmem:[#allocation208_spill] sm:$0xff]  ;;  %v13690_v23 = vld [vmem:[#allocation211_spill] sm:$0xff] }
 0x52b   : > { %3348 = vadd.xlane.f32.xlu2 %v3347_v11  ;;  %3351 = vadd.xlane.f32.xlu0 %v3350_v26  ;;  %13676 = vst [vmem:[#allocation278_spill] sm:$0xff] %v10915_v53  ;;  %v13677_v11 = vld [vmem:[#allocation289_spill] sm:$0xff]  ;;  %v2859_v53 = vsub.f32 %v13690_v23, %v10330_v5 }
 0x52c   : > { %3354 = vadd.xlane.f32.xlu1 %v3353_v47  ;;  %v2855_v26 = vsub.f32 %v13678_v0, %v13677_v11  ;;  %v2854_v47 = vsub.f32 %v13680_v38, %v13679_v43 }
 0x52e   : > { %v10907_v58 = vpop.xlane.xlu2 %3222  ;;  %v10913_v4 = vpop.xlane.xlu0 %3225  ;;  %v3052_v0 = vmul.f32 1.442695, %v2855_v26  ;;  %v3050_v1 = vmul.f32 1.442695, %v2854_v47  ;;  %v13688_v26 = vld [vmem:[#allocation295_spill] sm:$0xff]  ;;  %v13689_v47 = vld [vmem:[#allocation206_spill] sm:$0xff] }
 0x52f   : > { %v10911_v10 = vpop.xlane.xlu1 %3228  ;;  %v10929_v11 = vpop.eup %7142 }
 0x530   : > { %13675 = vst [vmem:[#allocation190_spill] sm:$0xff] %v10911_v10  ;;  %v3359_v10 = vsel %vm2401_vm2, %v10905_v28, 0.0  ;;  %v10933_v35 = vpop.eup %7144  ;;  %7148 = vpow2.f32 %v3052_v0 }
 0x531   : > { %13682 = vst [vmem:[#allocation192_spill] sm:$0xff] %v10929_v11  ;;  %v10939_v28 = vpop.eup %7146  ;;  %7150 = vpow2.f32 %v3050_v1 }
 0x532   : > { %13685 = vst [vmem:[#allocation281_spill] sm:$0xff] %v10939_v28  ;;  %7152 = vpow2.f32 %v3054_v33  ;;  %v3371_v0 = vsel %vm2401_vm2, %v10939_v28, 0.0  ;;  %v3060_v33 = vmul.f32 1.442695, %v2859_v53  ;;  %v13697_v53 = vld [vmem:[#allocation217_spill] sm:$0xff] }
 0x533   : > { %3357 = vadd.xlane.f32.xlu2 %v3356_v61  ;;  %3360 = vadd.xlane.f32.xlu0 %v3359_v10  ;;  %v13686_v61 = vld [vmem:[#allocation294_spill] sm:$0xff] }
 0x534   : > { %3363 = vadd.xlane.f32.xlu1 %v3362_v50  ;;  %v2858_v10 = vsub.f32 %v13687_v39, %v13686_v61  ;;  %v2857_v50 = vsub.f32 %v13689_v47, %v13688_v26 }
 0x536   : > { %v10931_v43 = vpop.xlane.xlu2 %3231  ;;  %v10937_v34 = vpop.xlane.xlu0 %3234  ;;  %v3058_v39 = vmul.f32 1.442695, %v2858_v10  ;;  %v3056_v1 = vmul.f32 1.442695, %v2857_v50  ;;  %v13696_v10 = vld [vmem:[#allocation212_spill] sm:$0xff] }
 0x537   : > { %13683 = vst [vmem:[#allocation280_spill] sm:$0xff] %v10931_v43  ;;  %v10935_v38 = vpop.xlane.xlu1 %3237  ;;  %v3365_v43 = vsel %vm2401_vm2, %v10933_v35, 0.0  ;;  %v10953_v61 = vpop.eup %7148  ;;  %v2860_v50 = vsub.f32 %v13696_v10, %v10338_v24 }
 0x538   : > { %13684 = vst [vmem:[#allocation194_spill] sm:$0xff] %v10935_v38  ;;  %v3368_v38 = vsel %vm2401_vm2, %v10929_v11, 0.0  ;;  %v10957_v5 = vpop.eup %7150  ;;  %7154 = vpow2.f32 %v3058_v39 }
 0x539   : > { %13691 = vst [vmem:[#allocation193_spill] sm:$0xff] %v10953_v61  ;;  %v10963_v11 = vpop.eup %7152  ;;  %7156 = vpow2.f32 %v3056_v1  ;;  %v3374_v28 = vsel %vm2401_vm2, %v10957_v5, 0.0  ;;  %v3062_v1 = vmul.f32 1.442695, %v2860_v50 }
 0x53a   : > { %13692 = vst [vmem:[#allocation195_spill] sm:$0xff] %v10957_v5  ;;  %7158 = vpow2.f32 %v3060_v33  ;;  %v3380_v39 = vsel %vm2401_vm2, %v10963_v11, 0.0 }
 0x53b   : > { %3366 = vadd.xlane.f32.xlu2 %v3365_v43  ;;  %3369 = vadd.xlane.f32.xlu0 %v3368_v38  ;;  %13694 = vst [vmem:[#allocation285_spill] sm:$0xff] %v10963_v11  ;;  %v13695_v43 = vld [vmem:[#allocation214_spill] sm:$0xff] }
 0x53c   : > { %3372 = vadd.xlane.f32.xlu1 %v3371_v0  ;;  %v2861_v38 = vsub.f32 %v13695_v43, %v10336_v6  ;;  %v2862_v0 = vsub.f32 %v13697_v53, %v10354_v44 }
 0x53e   : > { %v10955_v26 = vpop.xlane.xlu2 %3240  ;;  %v10961_v23 = vpop.xlane.xlu0 %3243  ;;  %v3064_v6 = vmul.f32 1.442695, %v2861_v38  ;;  %v3066_v24 = vmul.f32 1.442695, %v2862_v0  ;;  %v13703_v38 = vld [vmem:[#allocation218_spill] sm:$0xff]  ;;  %v13704_v0 = vld [vmem:[#allocation224_spill] sm:$0xff] }
 0x53f   : > { %v10959_v47 = vpop.xlane.xlu1 %3246  ;;  %v10977_v43 = vpop.eup %7154  ;;  %v2863_v50 = vsub.f32 %v13703_v38, %v10361_v25 }
 0x540   : > { %13693 = vst [vmem:[#allocation197_spill] sm:$0xff] %v10959_v47  ;;  %v3377_v47 = vsel %vm2401_vm2, %v10953_v61, 0.0  ;;  %v10981_v44 = vpop.eup %7156  ;;  %7160 = vpow2.f32 %v3064_v6 }
 0x541   : > { %13698 = vst [vmem:[#allocation196_spill] sm:$0xff] %v10977_v43  ;;  %v10987_v61 = vpop.eup %7158  ;;  %7162 = vpow2.f32 %v3062_v1  ;;  %v3383_v11 = vsel %vm2401_vm2, %v10981_v44, 0.0  ;;  %v3068_v1 = vmul.f32 1.442695, %v2863_v50 }
 0x542   : > { %13699 = vst [vmem:[#allocation199_spill] sm:$0xff] %v10981_v44  ;;  %7164 = vpow2.f32 %v3066_v24  ;;  %v3389_v6 = vsel %vm2401_vm2, %v10987_v61, 0.0 }
 0x543   : > { %3375 = vadd.xlane.f32.xlu2 %v3374_v28  ;;  %3378 = vadd.xlane.f32.xlu0 %v3377_v47  ;;  %13701 = vst [vmem:[#allocation202_spill] sm:$0xff] %v10987_v61  ;;  %v13702_v28 = vld [vmem:[#allocation220_spill] sm:$0xff] }
 0x544   : > { %3381 = vadd.xlane.f32.xlu1 %v3380_v39  ;;  %v2864_v47 = vsub.f32 %v13702_v28, %v10359_v37  ;;  %v2865_v39 = vsub.f32 %v13704_v0, %v10379_v48 }
 0x546   : > { %v10979_v33 = vpop.xlane.xlu2 %3249  ;;  %v10985_v53 = vpop.xlane.xlu0 %3252  ;;  %v3070_v37 = vmul.f32 1.442695, %v2864_v47  ;;  %v3072_v25 = vmul.f32 1.442695, %v2865_v39  ;;  %v13712_v47 = vld [vmem:[#allocation223_spill] sm:$0xff]  ;;  %v13713_v39 = vld [vmem:[#allocation229_spill] sm:$0xff] }
 0x547   : > { %v10983_v10 = vpop.xlane.xlu1 %3255  ;;  %v11001_v28 = vpop.eup %7160  ;;  %v2866_v50 = vsub.f32 %v13712_v47, %v10386_v60 }
 0x548   : > { %13700 = vst [vmem:[#allocation289_spill] sm:$0xff] %v10983_v10  ;;  %v3386_v10 = vsel %vm2401_vm2, %v10977_v43, 0.0  ;;  %v11005_v48 = vpop.eup %7162  ;;  %7166 = vpow2.f32 %v3070_v37 }
 0x549   : > { %13705 = vst [vmem:[#allocation290_spill] sm:$0xff] %v11001_v28  ;;  %v11011_v43 = vpop.eup %7164  ;;  %7168 = vpow2.f32 %v3068_v1  ;;  %v3392_v61 = vsel %vm2401_vm2, %v11005_v48, 0.0  ;;  %v3074_v1 = vmul.f32 1.442695, %v2866_v50 }
 0x54a   : > { %13707 = vst [vmem:[#allocation205_spill] sm:$0xff] %v11005_v48  ;;  %7170 = vpow2.f32 %v3072_v25  ;;  %v3398_v37 = vsel %vm2401_vm2, %v11011_v43, 0.0 }
 0x54b   : > { %3384 = vadd.xlane.f32.xlu2 %v3383_v11  ;;  %3387 = vadd.xlane.f32.xlu0 %v3386_v10  ;;  %13710 = vst [vmem:[#allocation295_spill] sm:$0xff] %v11011_v43  ;;  %v13711_v11 = vld [vmem:[#allocation226_spill] sm:$0xff] }
 0x54c   : > { %3390 = vadd.xlane.f32.xlu1 %v3389_v6  ;;  %v2867_v10 = vsub.f32 %v13711_v11, %v10384_v40  ;;  %v2868_v6 = vsub.f32 %v13713_v39, %v10403_v15 }
 0x54e   : > { %v11003_v24 = vpop.xlane.xlu2 %3258  ;;  %v11009_v0 = vpop.xlane.xlu0 %3261  ;;  %v3076_v40 = vmul.f32 1.442695, %v2867_v10  ;;  %v3078_v60 = vmul.f32 1.442695, %v2868_v6  ;;  %v13718_v10 = vld [vmem:[#allocation230_spill] sm:$0xff]  ;;  %v13719_v6 = vld [vmem:[#allocation235_spill] sm:$0xff] }
 0x54f   : > { %13706 = vst [vmem:[#allocation200_spill] sm:$0xff] %v11003_v24  ;;  %v11007_v38 = vpop.xlane.xlu1 %3264  ;;  %v11025_v11 = vpop.eup %7166  ;;  %v2869_v50 = vsub.f32 %v13718_v10, %v10409_v41 }
 0x550   : > { %13708 = vst [vmem:[#allocation294_spill] sm:$0xff] %v11007_v38  ;;  %v3395_v38 = vsel %vm2401_vm2, %v11001_v28, 0.0  ;;  %v11029_v15 = vpop.eup %7168  ;;  %7172 = vpow2.f32 %v3076_v40  ;;  %v3404_v48 = vsel %vm2401_vm2, %v11025_v11, 0.0 }
 0x551   : > { %13709 = vst [vmem:[#allocation208_spill] sm:$0xff] %v11009_v0  ;;  %v11035_v28 = vpop.eup %7170  ;;  %7174 = vpow2.f32 %v3074_v1  ;;  %v3401_v43 = vsel %vm2401_vm2, %v11029_v15, 0.0  ;;  %v3080_v1 = vmul.f32 1.442695, %v2869_v50 }
 0x552   : > { %13714 = vst [vmem:[#allocation206_spill] sm:$0xff] %v11025_v11  ;;  %7176 = vpow2.f32 %v3078_v60  ;;  %v3407_v40 = vsel %vm2401_vm2, %v11035_v28, 0.0 }
 0x553   : > { %3393 = vadd.xlane.f32.xlu2 %v3392_v61  ;;  %3396 = vadd.xlane.f32.xlu0 %v3395_v38  ;;  %13715 = vst [vmem:[#allocation211_spill] sm:$0xff] %v11029_v15  ;;  %v13717_v61 = vld [vmem:[#allocation232_spill] sm:$0xff] }
 0x554   : > { %3399 = vadd.xlane.f32.xlu1 %v3398_v37  ;;  %13716 = vst [vmem:[#allocation214_spill] sm:$0xff] %v11035_v28  ;;  %v2870_v38 = vsub.f32 %v13717_v61, %v10407_v51  ;;  %v2871_v37 = vsub.f32 %v13719_v6, %v10427_v18 }
 0x556   : > { %v11027_v25 = vpop.xlane.xlu2 %3267  ;;  %v11033_v39 = vpop.xlane.xlu0 %3270  ;;  %v3082_v51 = vmul.f32 1.442695, %v2870_v38  ;;  %v3084_v41 = vmul.f32 1.442695, %v2871_v37  ;;  %v13724_v38 = vld [vmem:[#allocation236_spill] sm:$0xff] }
 0x557   : > { %v11031_v47 = vpop.xlane.xlu1 %3273  ;;  %v11049_v61 = vpop.eup %7172  ;;  %v2872_v50 = vsub.f32 %v13724_v38, %v10433_v36  ;;  %v13725_v37 = vld [vmem:[#allocation240_spill] sm:$0xff] }
 0x558   : > { %13720 = vst [vmem:[#allocation212_spill] sm:$0xff] %v11049_v61  ;;  %v11053_v18 = vpop.eup %7174  ;;  %7178 = vpow2.f32 %v3082_v51  ;;  %v3413_v15 = vsel %vm2401_vm2, %v11049_v61, 0.0 }
 0x559   : > { %13721 = vst [vmem:[#allocation217_spill] sm:$0xff] %v11053_v18  ;;  %v11059_v11 = vpop.eup %7176  ;;  %7180 = vpow2.f32 %v3080_v1  ;;  %v3410_v28 = vsel %vm2401_vm2, %v11053_v18, 0.0  ;;  %v3086_v1 = vmul.f32 1.442695, %v2872_v50 }
 0x55a   : > { %13722 = vst [vmem:[#allocation220_spill] sm:$0xff] %v11059_v11  ;;  %7182 = vpow2.f32 %v3084_v41  ;;  %v3416_v51 = vsel %vm2401_vm2, %v11059_v11, 0.0 }
 0x55b   : > { %3402 = vadd.xlane.f32.xlu2 %v3401_v43  ;;  %3405 = vadd.xlane.f32.xlu0 %v3404_v48  ;;  %v13723_v43 = vld [vmem:[#allocation237_spill] sm:$0xff] }
 0x55c   : > { %3408 = vadd.xlane.f32.xlu1 %v3407_v40  ;;  %v2873_v48 = vsub.f32 %v13723_v43, %v10431_v59  ;;  %v2874_v40 = vsub.f32 %v13725_v37, %v10451_v14 }
 0x55e   : > { %v11051_v60 = vpop.xlane.xlu2 %3276  ;;  %v11057_v6 = vpop.xlane.xlu0 %3279  ;;  %v3088_v59 = vmul.f32 1.442695, %v2873_v48  ;;  %v3090_v36 = vmul.f32 1.442695, %v2874_v40  ;;  %v13730_v48 = vld [vmem:[#allocation241_spill] sm:$0xff]  ;;  %v13731_v40 = vld [vmem:[#allocation246_spill] sm:$0xff] }
 0x55f   : > { %v11055_v10 = vpop.xlane.xlu1 %3282  ;;  %v11073_v43 = vpop.eup %7178  ;;  %v2875_v50 = vsub.f32 %v13730_v48, %v10457_v32 }
 0x560   : > { %13726 = vst [vmem:[#allocation218_spill] sm:$0xff] %v11073_v43  ;;  %v11077_v14 = vpop.eup %7180  ;;  %7184 = vpow2.f32 %v3088_v59  ;;  %v3422_v18 = vsel %vm2401_vm2, %v11073_v43, 0.0 }
 0x561   : > { %13727 = vst [vmem:[#allocation224_spill] sm:$0xff] %v11077_v14  ;;  %v11083_v61 = vpop.eup %7182  ;;  %7186 = vpow2.f32 %v3086_v1  ;;  %v3419_v11 = vsel %vm2401_vm2, %v11077_v14, 0.0  ;;  %v3092_v1 = vmul.f32 1.442695, %v2875_v50 }
 0x562   : > { %13728 = vst [vmem:[#allocation226_spill] sm:$0xff] %v11083_v61  ;;  %7188 = vpow2.f32 %v3090_v36  ;;  %v3425_v59 = vsel %vm2401_vm2, %v11083_v61, 0.0 }
 0x563   : > { %3411 = vadd.xlane.f32.xlu2 %v3410_v28  ;;  %3414 = vadd.xlane.f32.xlu0 %v3413_v15  ;;  %v13729_v28 = vld [vmem:[#allocation243_spill] sm:$0xff] }
 0x564   : > { %3417 = vadd.xlane.f32.xlu1 %v3416_v51  ;;  %v2876_v15 = vsub.f32 %v13729_v28, %v10455_v8  ;;  %v2877_v51 = vsub.f32 %v13731_v40, %v10475_v57 }
 0x566   : > { %v11075_v41 = vpop.xlane.xlu2 %3285  ;;  %v11081_v37 = vpop.xlane.xlu0 %3288  ;;  %v3094_v8 = vmul.f32 1.442695, %v2876_v15  ;;  %v3096_v32 = vmul.f32 1.442695, %v2877_v51  ;;  %v13736_v15 = vld [vmem:[#allocation247_spill] sm:$0xff]  ;;  %v13737_v51 = vld [vmem:[#allocation252_spill] sm:$0xff] }
 0x567   : > { %v11079_v38 = vpop.xlane.xlu1 %3291  ;;  %v11097_v28 = vpop.eup %7184  ;;  %v2878_v50 = vsub.f32 %v13736_v15, %v10481_v21 }
 0x568   : > { %13732 = vst [vmem:[#allocation223_spill] sm:$0xff] %v11097_v28  ;;  %v11101_v57 = vpop.eup %7186  ;;  %7190 = vpow2.f32 %v3094_v8  ;;  %v3431_v14 = vsel %vm2401_vm2, %v11097_v28, 0.0 }
 0x569   : > { %13733 = vst [vmem:[#allocation229_spill] sm:$0xff] %v11101_v57  ;;  %v11107_v43 = vpop.eup %7188  ;;  %7192 = vpow2.f32 %v3092_v1  ;;  %v3428_v61 = vsel %vm2401_vm2, %v11101_v57, 0.0  ;;  %v3098_v1 = vmul.f32 1.442695, %v2878_v50 }
 0x56a   : > { %13734 = vst [vmem:[#allocation232_spill] sm:$0xff] %v11107_v43  ;;  %7194 = vpow2.f32 %v3096_v32  ;;  %v3434_v8 = vsel %vm2401_vm2, %v11107_v43, 0.0 }
 0x56b   : > { %3420 = vadd.xlane.f32.xlu2 %v3419_v11  ;;  %3423 = vadd.xlane.f32.xlu0 %v3422_v18  ;;  %v13735_v11 = vld [vmem:[#allocation249_spill] sm:$0xff] }
 0x56c   : > { %3426 = vadd.xlane.f32.xlu1 %v3425_v59  ;;  %v2879_v18 = vsub.f32 %v13735_v11, %v10479_v3  ;;  %v2880_v59 = vsub.f32 %v13737_v51, %v10499_v52 }
 0x56e   : > { %v11099_v36 = vpop.xlane.xlu2 %3294  ;;  %v11105_v40 = vpop.xlane.xlu0 %3297  ;;  %v3100_v3 = vmul.f32 1.442695, %v2879_v18  ;;  %v3102_v21 = vmul.f32 1.442695, %v2880_v59 }
 0x56f   : > { %v11103_v48 = vpop.xlane.xlu1 %3300  ;;  %v11121_v11 = vpop.eup %7190 }
 0x570   : > { %13738 = vst [vmem:[#allocation230_spill] sm:$0xff] %v11121_v11  ;;  %v11125_v52 = vpop.eup %7192  ;;  %7196 = vpow2.f32 %v3100_v3  ;;  %v3440_v50 = vsel %vm2401_vm2, %v11121_v11, 0.0 }
 0x571   : > { %13739 = vst [vmem:[#allocation235_spill] sm:$0xff] %v11125_v52  ;;  %v11131_v28 = vpop.eup %7194  ;;  %7198 = vpow2.f32 %v3098_v1  ;;  %v3437_v18 = vsel %vm2401_vm2, %v11125_v52, 0.0 }
 0x572   : > { %13741 = vst [vmem:[#allocation236_spill] sm:$0xff] %v11131_v28  ;;  %7200 = vpow2.f32 %v3102_v21  ;;  %v3443_v59 = vsel %vm2401_vm2, %v11131_v28, 0.0 }
 0x573   : > { %3429 = vadd.xlane.f32.xlu2 %v3428_v61  ;;  %3432 = vadd.xlane.f32.xlu0 %v3431_v14  ;;  %v13742_v61 = vld [vmem:[#allocation253_spill] sm:$0xff] }
 0x574   : > { %3435 = vadd.xlane.f32.xlu1 %v3434_v8  ;;  %v2881_v14 = vsub.f32 %v13742_v61, %v10505_v46 }
 0x576   : > { %v11123_v32 = vpop.xlane.xlu2 %3303  ;;  %v11129_v51 = vpop.xlane.xlu0 %3306  ;;  %v3104_v8 = vmul.f32 1.442695, %v2881_v14 }
 0x577   : > { %v11127_v15 = vpop.xlane.xlu1 %3309  ;;  %v11141_v43 = vpop.eup %7196 }
 0x578   : > { %13740 = vst [vmem:[#allocation237_spill] sm:$0xff] %v11127_v15  ;;  %v11145_v1 = vpop.eup %7198  ;;  %7202 = vpow2.f32 %v3104_v8 }
 0x579   : > { %13743 = vst [vmem:[#allocation240_spill] sm:$0xff] %v11141_v43  ;;  %v11151_v61 = vpop.eup %7200 }
 0x57a   : > { %13745 = vst [vmem:[#allocation241_spill] sm:$0xff] %v11145_v1  ;;  %v3452_v14 = vsel %vm2401_vm2, %v11151_v61, 0.0 }
 0x57b   : > { %3438 = vadd.xlane.f32.xlu2 %v3437_v18  ;;  %3441 = vadd.xlane.f32.xlu0 %v3440_v50  ;;  %13746 = vst [vmem:[#allocation246_spill] sm:$0xff] %v11151_v61  ;;  %v3446_v18 = vsel %vm2401_vm2, %v11145_v1, 0.0  ;;  %v3449_v50 = vsel %vm2401_vm2, %v11141_v43, 0.0 }
 0x57c   : > { %3444 = vadd.xlane.f32.xlu1 %v3443_v59 }
 0x57e   : > { %v11143_v3 = vpop.xlane.xlu2 %3312  ;;  %v11149_v21 = vpop.xlane.xlu0 %3315 }
 0x57f   : > { %13744 = vst [vmem:[#allocation243_spill] sm:$0xff] %v11143_v3  ;;  %v11147_v46 = vpop.xlane.xlu1 %3318  ;;  %v11161_v28 = vpop.eup %7202 }
 0x580   : > { %13748 = vst [vmem:[#allocation247_spill] sm:$0xff] %v11161_v28  ;;  %v3455_v8 = vsel %vm2401_vm2, %v11161_v28, 0.0  ;;  %v13759_v28 = vld [vmem:[#allocation45_spill] sm:$0xff] }
 0x583   : > { %3447 = vadd.xlane.f32.xlu2 %v3446_v18  ;;  %3450 = vadd.xlane.f32.xlu0 %v3449_v50  ;;  %v13754_v50 = vld [vmem:[#allocation70_spill] sm:$0xff] }
 0x584   : > { %3453 = vadd.xlane.f32.xlu1 %v3452_v14  ;;  %v13755_v14 = vld [vmem:[#allocation57_spill] sm:$0xff] }
 0x585   : > { %v6690_v61 = vpack.i.bf16 %v13755_v14, %v13754_v50 }
 0x586   : > { %v11159_v59 = vpop.xlane.xlu2 %3321  ;;  %v11165_v52 = vpop.xlane.xlu0 %3324 }
 0x587   : > { %13747 = vst [vmem:[#allocation249_spill] sm:$0xff] %v11159_v59  ;;  %v11163_v11 = vpop.xlane.xlu1 %3327 }
 0x588   : > { %13749 = vst [vmem:[#allocation252_spill] sm:$0xff] %v11163_v11 }
 0x589   : > { %13750 = vst [vmem:[#allocation253_spill] sm:$0xff] %v11165_v52 }
 0x58b   : > { %3456 = vadd.xlane.f32.xlu2 %v3455_v8  ;;  %v13760_v8 = vld [vmem:[#allocation32_spill] sm:$0xff] }
 0x58c   : > { %v6695_v0 = vpack.i.bf16 %v13760_v8, %v13759_v28 }
 0x58e   : > { %v11169_v1 = vpop.xlane.xlu2 %3330  ;;  %v11173_v43 = vpop.xlane.xlu0 %3333 }
 0x58f   : > { %13751 = vst [vmem:[#allocation311_spill] sm:$0xff] %v11169_v1  ;;  %v11171_v18 = vpop.xlane.xlu1 %3336  ;;  %v13762_v1 = vld [vmem:[#allocation16_spill] sm:$0xff] }
 0x590   : > { %13752 = vst [vmem:[#allocation312_spill] sm:$0xff] %v11171_v18  ;;  %v13761_v18 = vld [vmem:[#allocation22_spill] sm:$0xff] }
 0x591   : > { %13753 = vst [vmem:[#allocation313_spill] sm:$0xff] %v11173_v43  ;;  %v6705_v43 = vpack.i.bf16 %v13762_v1, %v13761_v18 }
 0x596   : > { %v11177_v57 = vpop.xlane.xlu2 %3339  ;;  %v11181_v11 = vpop.xlane.xlu0 %3342 }
 0x597   : > { %13756 = vst [vmem:[#allocation70_spill] sm:$0xff] %v11177_v57  ;;  %v11179_v44 = vpop.xlane.xlu1 %3345  ;;  %6691 = vrot.lane.b32.xlu0 %v6690_v61, %s7746_s11 }
 0x598   : > { %13757 = vst [vmem:[#allocation57_spill] sm:$0xff] %v11179_v44  ;;  %v13766_v44 = vld [vmem:[#allocation28_spill] sm:$0xff] }
 0x599   : > { %13758 = vst [vmem:[#allocation314_spill] sm:$0xff] %v11181_v11  ;;  %v13767_v11 = vld [vmem:[#allocation24_spill] sm:$0xff] }
 0x59a   : > { %v6700_v57 = vpack.i.bf16 %v13767_v11, %v13766_v44  ;;  %v13771_v44 = vld [vmem:[#allocation258_spill] sm:$0xff] }
 0x59d   : > { %6696 = vrot.lane.b32.xlu1 %v6695_v0, %s7746_s11 }
 0x59e   : > { %v11189_v52 = vpop.xlane.xlu2 %3348  ;;  %v11193_v14 = vpop.xlane.xlu0 %3351 }
 0x59f   : > { %13763 = vst [vmem:[#allocation45_spill] sm:$0xff] %v11189_v52  ;;  %v11191_v50 = vpop.xlane.xlu1 %3354  ;;  %6706 = vrot.lane.b32.xlu0 %v6705_v43, %s7746_s11 }
 0x5a0   : > { %13764 = vst [vmem:[#allocation32_spill] sm:$0xff] %v11191_v50  ;;  %v13770_v50 = vld [vmem:[#allocation255_spill] sm:$0xff] }
 0x5a1   : > { %13765 = vst [vmem:[#allocation22_spill] sm:$0xff] %v11193_v14  ;;  %v2882_v43 = vsub.f32 %v13770_v50, %v10503_v54 }
 0x5a3   : > { %6701 = vrot.lane.b32.xlu2 %v6700_v57, %s7746_s11  ;;  %v2883_v57 = vsub.f32 %v13771_v44, %v10523_v27  ;;  %v3106_v52 = vmul.f32 1.442695, %v2882_v43 }
 0x5a5   : > { %v3108_v24 = vmul.f32 1.442695, %v2883_v57  ;;  %7204 = vpow2.f32 %v3106_v52 }
 0x5a6   : > { %v11199_v61 = vpop.xlane.xlu2 %3357  ;;  %v11203_v0 = vpop.xlane.xlu0 %3360 }
 0x5a7   : > { %13768 = vst [vmem:[#allocation16_spill] sm:$0xff] %v11199_v61  ;;  %v11201_v28 = vpop.xlane.xlu1 %3363  ;;  %7206 = vpow2.f32 %v3108_v24 }
 0x5a8   : > { %13769 = vst [vmem:[#allocation28_spill] sm:$0xff] %v11203_v0  ;;  %v13773_v0 = vld [vmem:[#allocation259_spill] sm:$0xff] }
 0x5a9   : > { %v2884_v3 = vsub.f32 %v13773_v0, %v10529_v13 }
 0x5ab   : > { %v3110_v59 = vmul.f32 1.442695, %v2884_v3  ;;  %v11229_v27 = vpop.eup %7204 }
 0x5ac   : > { %13777 = vst [vmem:[#allocation315_spill] sm:$0xff] %v11229_v27  ;;  %v3458_v13 = vsel %vm2401_vm2, %v11229_v27, 0.0  ;;  %v13788_v27 = vld [vmem:[#allocation35_spill] sm:$0xff] }
 0x5ad   : > { %7208 = vpow2.f32 %v3110_v59  ;;  %v11231_v44 = vpop.eup %7206 }
 0x5ae   : > { %v11205_v1 = vpop.xlane.xlu2 %3366  ;;  %v11209_v8 = vpop.xlane.xlu0 %3369  ;;  %13778 = vst [vmem:[#allocation316_spill] sm:$0xff] %v11231_v44  ;;  %v3461_v24 = vsel %vm2401_vm2, %v11231_v44, 0.0 }
 0x5af   : > { %v11207_v18 = vpop.xlane.xlu1 %3372 }
 0x5b3   : > { %v11239_v3 = vpop.eup %7208 }
 0x5b4   : > { %13781 = vst [vmem:[#allocation319_spill] sm:$0xff] %v11239_v3  ;;  %v3464_v59 = vsel %vm2401_vm2, %v11239_v3, 0.0 }
 0x5b6   : > { %v11213_v14 = vpop.xlane.xlu2 %3375  ;;  %v11219_v61 = vpop.xlane.xlu0 %3378 }
 0x5b7   : > { %v11217_v11 = vpop.xlane.xlu1 %3381 }
 0x5b8   : > { %13772 = vst [vmem:[#allocation24_spill] sm:$0xff] %v11217_v11 }
 0x5be   : > { %v11223_v15 = vpop.xlane.xlu2 %3384  ;;  %v11225_v54 = vpop.xlane.xlu0 %3387 }
 0x5bf   : > { %13774 = vst [vmem:[#allocation255_spill] sm:$0xff] %v11223_v15  ;;  %v11227_v50 = vpop.xlane.xlu1 %3390  ;;  %v13797_v15 = vld [vmem:[#allocation76_spill] sm:$0xff] }
 0x5c0   : > { %13775 = vst [vmem:[#allocation258_spill] sm:$0xff] %v11225_v54 }
 0x5c1   : > { %13776 = vst [vmem:[#allocation259_spill] sm:$0xff] %v11227_v50  ;;  %v13789_v50 = vld [vmem:[#allocation113_spill] sm:$0xff] }
 0x5c2   : > { %v6715_v44 = vpack.i.bf16 %v13789_v50, %v13788_v27  ;;  %v13799_v50 = vld [vmem:[#allocation20_spill] sm:$0xff] }
 0x5c3   : > { %v13800_v27 = vld [vmem:[#allocation80_spill] sm:$0xff] }
 0x5c6   : > { %v11233_v11 = vpop.xlane.xlu2 %3393  ;;  %v11237_v52 = vpop.xlane.xlu0 %3396 }
 0x5c7   : > { %13779 = vst [vmem:[#allocation317_spill] sm:$0xff] %v11233_v11  ;;  %3459 = vadd.xlane.f32.xlu1 %v3458_v13  ;;  %v11243_v0 = vpop.xlane.xlu1 %3399 }
 0x5c8   : > { %13780 = vst [vmem:[#allocation318_spill] sm:$0xff] %v11237_v52 }
 0x5c9   : > { %3462 = vadd.xlane.f32.xlu0 %v3461_v24  ;;  %13782 = vst [vmem:[#allocation320_spill] sm:$0xff] %v11243_v0  ;;  %v13790_v24 = vld [vmem:[#allocation49_spill] sm:$0xff] }
 0x5ca   : > { %v13791_v0 = vld [vmem:[#allocation117_spill] sm:$0xff] }
 0x5cb   : > { %v6710_v54 = vpack.i.bf16 %v13791_v0, %v13790_v24  ;;  %v13803_v24 = vld [vmem:[#allocation17_spill] sm:$0xff] }
 0x5cc   : > { %3465 = vadd.xlane.f32.xlu2 %v3464_v59 }
 0x5ce   : > { %v11247_v43 = vpop.xlane.xlu2 %3402  ;;  %v11249_v57 = vpop.xlane.xlu0 %3405 }
 0x5cf   : > { %13783 = vst [vmem:[#allocation321_spill] sm:$0xff] %v11247_v43  ;;  %v11251_v11 = vpop.xlane.xlu1 %3408 }
 0x5d0   : > { %13784 = vst [vmem:[#allocation322_spill] sm:$0xff] %v11249_v57  ;;  %v13794_v57 = vld [vmem:[#allocation29_spill] sm:$0xff] }
 0x5d1   : > { %13785 = vst [vmem:[#allocation323_spill] sm:$0xff] %v11251_v11  ;;  %v13795_v11 = vld [vmem:[#allocation91_spill] sm:$0xff] }
 0x5d2   : > { %v6720_v43 = vpack.i.bf16 %v13795_v11, %v13794_v57  ;;  %v13804_v11 = vld [vmem:[#allocation62_spill] sm:$0xff] }
 0x5d3   : > { %v6735_v57 = vpack.i.bf16 %v13804_v11, %v13803_v24  ;;  %v13813_v24 = vld [vmem:[#allocation34_spill] sm:$0xff] }
 0x5d6   : > { %v11253_v13 = vpop.xlane.xlu2 %3411  ;;  %v11255_v52 = vpop.xlane.xlu0 %3414 }
 0x5d7   : > { %13786 = vst [vmem:[#allocation324_spill] sm:$0xff] %v11253_v13  ;;  %v11262_v3 = vpop.xlane.xlu1 %3417  ;;  %v13796_v13 = vld [vmem:[#allocation25_spill] sm:$0xff] }
 0x5d8   : > { %13787 = vst [vmem:[#allocation325_spill] sm:$0xff] %v11255_v52  ;;  %v6725_v52 = vpack.i.bf16 %v13797_v15, %v13796_v13  ;;  %v13806_v15 = vld [vmem:[#allocation56_spill] sm:$0xff] }
 0x5d9   : > { %13792 = vst [vmem:[#allocation35_spill] sm:$0xff] %v11262_v3 }
 0x5dd   : > { %6716 = vrot.lane.b32.xlu0 %v6715_v44, %s7746_s11  ;;  %v6730_v44 = vpack.i.bf16 %v13800_v27, %v13799_v50  ;;  %v13809_v50 = vld [vmem:[#allocation39_spill] sm:$0xff] }
 0x5de   : > { %v11264_v59 = vpop.xlane.xlu2 %3420  ;;  %v11271_v5 = vpop.xlane.xlu0 %3423 }
 0x5df   : > { %13793 = vst [vmem:[#allocation113_spill] sm:$0xff] %v11264_v59  ;;  %v11278_v0 = vpop.xlane.xlu1 %3426  ;;  %v13805_v59 = vld [vmem:[#allocation86_spill] sm:$0xff] }
 0x5e0   : > { %6711 = vrot.lane.b32.xlu1 %v6710_v54, %s7746_s11  ;;  %13798 = vst [vmem:[#allocation49_spill] sm:$0xff] %v11271_v5  ;;  %v6740_v13 = vpack.i.bf16 %v13806_v15, %v13805_v59  ;;  %v13814_v59 = vld [vmem:[#allocation27_spill] sm:$0xff] }
 0x5e1   : > { %13801 = vst [vmem:[#allocation117_spill] sm:$0xff] %v11278_v0  ;;  %v13812_v0 = vld [vmem:[#allocation41_spill] sm:$0xff] }
 0x5e2   : > { %v6750_v11 = vpack.i.bf16 %v13813_v24, %v13812_v0  ;;  %v13822_v0 = vld [vmem:[#allocation81_spill] sm:$0xff] }
 0x5e4   : > { %6721 = vrot.lane.b32.xlu2 %v6720_v43, %s7746_s11 }
 0x5e5   : > { %6726 = vrot.lane.b32.xlu0 %v6725_v52, %s7746_s11  ;;  %v13808_v52 = vld [vmem:[#allocation79_spill] sm:$0xff] }
 0x5e6   : > { %v11280_v54 = vpop.xlane.xlu2 %3429  ;;  %v11287_v43 = vpop.xlane.xlu0 %3432  ;;  %v6745_v27 = vpack.i.bf16 %v13809_v50, %v13808_v52  ;;  %v13818_v52 = vld [vmem:[#allocation122_spill] sm:$0xff] }
 0x5e7   : > { %13802 = vst [vmem:[#allocation29_spill] sm:$0xff] %v11280_v54 }
 0x5e8   : > { %6731 = vrot.lane.b32.xlu1 %v6730_v44, %s7746_s11  ;;  %13807 = vst [vmem:[#allocation91_spill] sm:$0xff] %v11287_v43  ;;  %v11293_v44 = vpop.xlane.xlu1 %3435 }
 0x5e9   : > { %13810 = vst [vmem:[#allocation25_spill] sm:$0xff] %v11293_v44 }
 0x5ec   : > { %6736 = vrot.lane.b32.xlu2 %v6735_v57, %s7746_s11  ;;  %v13815_v57 = vld [vmem:[#allocation23_spill] sm:$0xff] }
 0x5ed   : > { %6741 = vrot.lane.b32.xlu0 %v6740_v13, %s7746_s11  ;;  %v6755_v15 = vpack.i.bf16 %v13815_v57, %v13814_v59  ;;  %v13817_v13 = vld [vmem:[#allocation104_spill] sm:$0xff]  ;;  %v13825_v57 = vld [vmem:[#allocation78_spill] sm:$0xff] }
 0x5ee   : > { %v11295_v54 = vpop.xlane.xlu2 %3438  ;;  %v11302_v43 = vpop.xlane.xlu0 %3441  ;;  %v6760_v50 = vpack.i.bf16 %v13818_v52, %v13817_v13  ;;  %v13824_v59 = vld [vmem:[#allocation100_spill] sm:$0xff]  ;;  %v13827_v13 = vld [vmem:[#allocation83_spill] sm:$0xff]  ;;  %v13828_v52 = vld [vmem:[#allocation102_spill] sm:$0xff] }
 0x5ef   : > { %13811 = vst [vmem:[#allocation76_spill] sm:$0xff] %v11295_v54  ;;  %v13821_v54 = vld [vmem:[#allocation18_spill] sm:$0xff] }
 0x5f0   : > { %6746 = vrot.lane.b32.xlu1 %v6745_v27, %s7746_s11  ;;  %13816 = vst [vmem:[#allocation20_spill] sm:$0xff] %v11302_v43  ;;  %v11307_v27 = vpop.xlane.xlu1 %3444  ;;  %v6765_v24 = vpack.i.bf16 %v13822_v0, %v13821_v54  ;;  %v6770_v43 = vpack.i.bf16 %v13825_v57, %v13824_v59 }
 0x5f1   : > { %13819 = vst [vmem:[#allocation80_spill] sm:$0xff] %v11307_v27 }
 0x5f5   : > { %6751 = vrot.lane.b32.xlu0 %v6750_v11, %s7746_s11 }
 0x5f6   : > { %v11309_v44 = vpop.xlane.xlu2 %3447  ;;  %v11315_v11 = vpop.xlane.xlu0 %3450 }
 0x5f7   : > { %13820 = vst [vmem:[#allocation17_spill] sm:$0xff] %v11309_v44  ;;  %v6775_v44 = vpack.i.bf16 %v13828_v52, %v13827_v13 }
 0x5f8   : > { %6756 = vrot.lane.b32.xlu1 %v6755_v15, %s7746_s11  ;;  %13823 = vst [vmem:[#allocation62_spill] sm:$0xff] %v11315_v11  ;;  %v13826_v15 = vld [vmem:[#allocation261_spill] sm:$0xff] }
 0x5f9   : > { %v2885_v5 = vsub.f32 %v13826_v15, %v10527_v29  ;;  %v13830_v11 = vld [vmem:[#allocation73_spill] sm:$0xff]  ;;  %v13831_v29 = vld [vmem:[#allocation95_spill] sm:$0xff] }
 0x5fb   : > { %v3112_v27 = vmul.f32 1.442695, %v2885_v5 }
 0x5fd   : > { %6761 = vrot.lane.b32.xlu0 %v6760_v50, %s7746_s11  ;;  %v11324_v50 = vpop.xlane.xlu1 %3453  ;;  %7210 = vpow2.f32 %v3112_v27 }
 0x5fe   : > { %v11326_v3 = vpop.xlane.xlu2 %3456  ;;  %7212 = vrcp.f32 %v10769_v22  ;;  %v13836_v22 = vld [vmem:[#allocation67_spill] sm:$0xff] }
 0x5ff   : > { %7214 = vrcp.f32 %v10817_v42 }
 0x600   : > { %6766 = vrot.lane.b32.xlu1 %v6765_v24, %s7746_s11  ;;  %v13829_v24 = vld [vmem:[#allocation65_spill] sm:$0xff]  ;;  %7216 = vrcp.f32 %v10767_v17 }
 0x601   : > { %v6780_v59 = vpack.i.bf16 %v13830_v11, %v13829_v24  ;;  %v13833_v11 = vld [vmem:[#allocation38_spill] sm:$0xff]  ;;  %7218 = vrcp.f32 %v10815_v63 }
 0x602   : > { %7220 = vrcp.f32 %v10787_v45  ;;  %v13846_v45 = vld [vmem:[#allocation61_spill] sm:$0xff] }
 0x603   : > { %7222 = vrcp.f32 %v10793_v16  ;;  %v13851_v16 = vld [vmem:[#allocation19_spill] sm:$0xff] }
 0x604   : > { %7224 = vrcp.f32 %v10791_v12  ;;  %v13857_v12 = vld [vmem:[#allocation85_spill] sm:$0xff] }
 0x605   : > { %6771 = vrot.lane.b32.xlu0 %v6770_v43, %s7746_s11  ;;  %v13832_v43 = vld [vmem:[#allocation58_spill] sm:$0xff]  ;;  %7226 = vrcp.f32 %v10811_v62  ;;  %v13863_v62 = vld [vmem:[#allocation53_spill] sm:$0xff] }
 0x606   : > { %v6785_v5 = vpack.i.bf16 %v13832_v43, %v13831_v29  ;;  %v6702_v52 = vpop.permute.xlu2 %6701  ;;  %v13835_v29 = vld [vmem:[#allocation37_spill] sm:$0xff] }
 0x607   : > { %v6703_v24 = vunpack.i.l.bf16 %v6702_v52  ;;  %v6795_v43 = vpack.i.bf16 %v13836_v22, %v13835_v29  ;;  %v13840_v29 = vld [vmem:[#allocation88_spill] sm:$0xff] }
 0x608   : > { %6776 = vrot.lane.b32.xlu1 %v6775_v44, %s7746_s11  ;;  %v11335_v44 = vpop.eup %7210 }
 0x609   : > { %v6692_v54 = vpop.permute.xlu0 %6691 }
 0x60a   : > { %v6693_v0 = vunpack.i.l.bf16 %v6692_v54  ;;  %v6694_v57 = vunpack.i.h.bf16 %v6692_v54  ;;  %v13834_v54 = vld [vmem:[#allocation63_spill] sm:$0xff] }
 0x60c   : > { %3866 = vmatpush.msra.mxu0 %v6693_v0  ;;  %6576 = vmatpush.msra.mxu3 %v6693_v0  ;;  %v6790_v0 = vpack.i.bf16 %v13834_v54, %v13833_v11  ;;  %v13837_v54 = vld [vmem:[#allocation115_spill] sm:$0xff] }
 0x60d   : > { %6781 = vrot.lane.b32.xlu0 %v6780_v59, %s7746_s11  ;;  %v3467_v59 = vsel %vm2401_vm2, %v11335_v44, 0.0 }
 0x60e   : > { %3867 = vmatpush.msra.mxu0 %v6694_v57  ;;  %6577 = vmatpush.msra.mxu3 %v6694_v57 }
 0x60f   : > { %v6697_v15 = vpop.permute.xlu1 %6696 }
 0x610   : > { %v6698_v13 = vunpack.i.l.bf16 %v6697_v15  ;;  %6786 = vrot.lane.b32.xlu1 %v6785_v5, %s7746_s11  ;;  %v6699_v27 = vunpack.i.h.bf16 %v6697_v15  ;;  %v6704_v5 = vunpack.i.h.bf16 %v6702_v52  ;;  %v7213_v15 = vpop.eup %7212  ;;  %v13838_v52 = vld [vmem:[#allocation31_spill] sm:$0xff] }
 0x611   : > { %v6707_v57 = vpop.permute.xlu0 %6706  ;;  %v7215_v42 = vpop.eup %7214  ;;  %v3682_v11 = vmul.f32 %v7213_v15, %v10405_v9  ;;  %v13843_v15 = vld [vmem:[#allocation26_spill] sm:$0xff] }
 0x612   : > { %3868 = vmatpush.msra.mxu0 %v6698_v13  ;;  %6578 = vmatpush.msra.mxu3 %v6698_v13  ;;  %v6708_v13 = vunpack.i.l.bf16 %v6707_v57  ;;  %v7217_v9 = vpop.eup %7216 }
 0x613   : > { %v7219_v17 = vpop.eup %7218  ;;  %v3683_v63 = vmul.f32 %v7217_v9, %v10411_v20  ;;  %v13845_v20 = vld [vmem:[#allocation131_spill] sm:$0xff]  ;;  %v13852_v9 = vld [vmem:[#allocation46_spill] sm:$0xff] }
 0x614   : > { %3869 = vmatpush.msra.mxu0 %v6699_v27  ;;  %6579 = vmatpush.msra.mxu3 %v6699_v27  ;;  %v6709_v27 = vunpack.i.h.bf16 %v6707_v57  ;;  %v13842_v57 = vld [vmem:[#allocation90_spill] sm:$0xff] }
 0x615   : > { %3468 = vadd.xlane.f32.xlu2 %v3467_v59  ;;  %6791 = vrot.lane.b32.xlu0 %v6790_v0, %s7746_s11  ;;  %v6805_v0 = vpack.i.bf16 %v13838_v52, %v13837_v54  ;;  %v13839_v59 = vld [vmem:[#allocation40_spill] sm:$0xff]  ;;  %v13848_v52 = vld [vmem:[#allocation47_spill] sm:$0xff] }
 0x616   : > { %3870 = vmatpush.msra.mxu0 %v6703_v24  ;;  %6580 = vmatpush.msra.mxu3 %v6703_v24  ;;  %v3688_v24 = vmul.f32 %v7215_v42, %v10449_v19  ;;  %v6810_v22 = vpack.i.bf16 %v13840_v29, %v13839_v59  ;;  %v13841_v19 = vld [vmem:[#allocation30_spill] sm:$0xff]  ;;  %v13850_v59 = vld [vmem:[#allocation109_spill] sm:$0xff] }
 0x618   : > { %6796 = vrot.lane.b32.xlu1 %v6795_v43, %s7746_s11  ;;  %3871 = vmatpush.msra.mxu0 %v6704_v5  ;;  %v6815_v43 = vpack.i.bf16 %v13842_v57, %v13841_v19  ;;  %v13854_v19 = vld [vmem:[#allocation111_spill] sm:$0xff] }
 0x619   : > { %6581 = vmatpush.msra.mxu3 %v6704_v5  ;;  %v3689_v5 = vmul.f32 %v7219_v17, %v10459_v56  ;;  %v13847_v56 = vld [vmem:[#allocation21_spill] sm:$0xff] }
 0x61a   : > { %3872 = vmatpush.msra.mxu0 %v6708_v13 }
 0x61b   : > { %6582 = vmatpush.msra.mxu3 %v6708_v13  ;;  %v13844_v13 = vld [vmem:[#allocation82_spill] sm:$0xff] }
 0x61c   : > { %3873 = vmatpush.msra.mxu0 %v6709_v27  ;;  %v6820_v42 = vpack.i.bf16 %v13844_v13, %v13843_v15 }
 0x61d   : > { %6583 = vmatpush.msra.mxu3 %v6709_v27  ;;  %6400 = vmatmul.msk.f32.vlgmr.msra.gmra.mxu0 %vm2401_vm2, %v3682_v11  ;;  %v7221_v27 = vpop.eup %7220  ;;  %v6800_v11 = vpack.i.bf16 %v13846_v45, %v13845_v20  ;;  %v13859_v20 = vld [vmem:[#allocation66_spill] sm:$0xff] }
 0x61e   : > { %6406 = vmatmul.msk.f32.vlgmr.msra.gmra.mxu3 %vm2401_vm2, %v3688_v24  ;;  %6806 = vrot.lane.b32.xlu0 %v6805_v0, %s7746_s11  ;;  %v3684_v54 = vmul.f32 %v7221_v27, %v10429_v55  ;;  %v6825_v0 = vpack.i.bf16 %v13848_v52, %v13847_v56  ;;  %v13849_v24 = vld [vmem:[#allocation94_spill] sm:$0xff]  ;;  %v6835_v55 = vpack.i.bf16 %v13852_v9, %v13851_v16  ;;  %v13862_v56 = vld [vmem:[#allocation84_spill] sm:$0xff]  ;;  %v13867_v16 = vld [vmem:[#allocation87_spill] sm:$0xff] }
 0x61f   : > { %v6830_v29 = vpack.i.bf16 %v13850_v59, %v13849_v24  ;;  %v13860_v45 = vld [vmem:[#allocation106_spill] sm:$0xff]  ;;  %v13864_v24 = vld [vmem:[#allocation108_spill] sm:$0xff] }
 0x620   : > { %6811 = vrot.lane.b32.xlu1 %v6810_v22, %s7746_s11  ;;  %v7223_v22 = vpop.eup %7222  ;;  %v6865_v59 = vpack.i.bf16 %v13864_v24, %v13863_v62 }
 0x621   : > { %v3685_v17 = vmul.f32 %v7223_v22, %v10425_v30  ;;  %v7225_v13 = vpop.eup %7224  ;;  %v13866_v22 = vld [vmem:[#allocation50_spill] sm:$0xff] }
 0x622   : > { %v3686_v27 = vmul.f32 %v7225_v13, %v10435_v2  ;;  %v6870_v9 = vpack.i.bf16 %v13867_v16, %v13866_v22 }
 0x625   : > { %6401 = vmatmul.msk.f32.gmra.mxu0 %vm2401_vm2, %v3683_v63  ;;  %v13853_v63 = vld [vmem:[#allocation93_spill] sm:$0xff] }
 0x626   : > { %6407 = vmatmul.msk.f32.gmra.mxu3 %vm2401_vm2, %v3689_v5  ;;  %6816 = vrot.lane.b32.xlu0 %v6815_v43, %s7746_s11  ;;  %v6840_v57 = vpack.i.bf16 %v13854_v19, %v13853_v63  ;;  %v13855_v43 = vld [vmem:[#allocation74_spill] sm:$0xff]  ;;  %v13856_v5 = vld [vmem:[#allocation125_spill] sm:$0xff] }
 0x627   : > { %v6845_v15 = vpack.i.bf16 %v13856_v5, %v13855_v43  ;;  %v13870_v5 = vld [vmem:[#allocation121_spill] sm:$0xff] }
 0x628   : > { %6821 = vrot.lane.b32.xlu1 %v6820_v42, %s7746_s11  ;;  %v13858_v42 = vld [vmem:[#allocation107_spill] sm:$0xff] }
 0x629   : > { %v6850_v30 = vpack.i.bf16 %v13858_v42, %v13857_v12  ;;  %v13872_v12 = vld [vmem:[#allocation126_spill] sm:$0xff] }
 0x62a   : > { %v13873_v42 = vld [vmem:[#allocation42_spill] sm:$0xff] }
 0x62d   : > { %6801 = vrot.lane.b32.xlu2 %v6800_v11, %s7746_s11  ;;  %6402 = vmatmul.msk.f32.gmra.mxu0 %vm2401_vm2, %v3684_v54  ;;  %v6855_v11 = vpack.i.bf16 %v13860_v45, %v13859_v20  ;;  %v13861_v54 = vld [vmem:[#allocation51_spill] sm:$0xff] }
 0x62e   : > { %6826 = vrot.lane.b32.xlu0 %v6825_v0, %s7746_s11  ;;  %v6860_v52 = vpack.i.bf16 %v13862_v56, %v13861_v54  ;;  %v7227_v0 = vpop.eup %7226 }
 0x630   : > { %6831 = vrot.lane.b32.xlu1 %v6830_v29, %s7746_s11  ;;  %v13865_v29 = vld [vmem:[#allocation147_spill] sm:$0xff] }
 0x631   : > { %v3687_v2 = vmul.f32 %v7227_v0, %v13865_v29 }
 0x635   : > { %6836 = vrot.lane.b32.xlu2 %v6835_v55, %s7746_s11  ;;  %6403 = vmatmul.msk.f32.gmra.mxu0 %vm2401_vm2, %v3685_v17  ;;  %v13868_v55 = vld [vmem:[#allocation44_spill] sm:$0xff]  ;;  %v13869_v17 = vld [vmem:[#allocation77_spill] sm:$0xff] }
 0x636   : > { %6841 = vrot.lane.b32.xlu0 %v6840_v57, %s7746_s11  ;;  %v6875_v63 = vpack.i.bf16 %v13869_v17, %v13868_v55 }
 0x638   : > { %6846 = vrot.lane.b32.xlu1 %v6845_v15, %s7746_s11  ;;  %v13871_v15 = vld [vmem:[#allocation43_spill] sm:$0xff] }
 0x639   : > { %v6880_v13 = vpack.i.bf16 %v13871_v15, %v13870_v5 }
 0x63a   : > { %v11421_v43 = vpop.xlane.xlu1 %3459 }
 0x63c   : > { %v11418_v57 = vpop.xlane.xlu0 %3462 }
 0x63d   : > { %6851 = vrot.lane.b32.xlu2 %v6850_v30, %s7746_s11  ;;  %6404 = vmatmul.msk.f32.gmra.mxu0 %vm2401_vm2, %v3686_v27  ;;  %v6885_v30 = vpack.i.bf16 %v13873_v42, %v13872_v12  ;;  %v13876_v12 = vld [vmem:[#allocation264_spill] sm:$0xff] }
 0x63e   : > { %6856 = vrot.lane.b32.xlu0 %v6855_v11, %s7746_s11 }
 0x63f   : > { %v11415_v19 = vpop.xlane.xlu2 %3465 }
 0x640   : > { %6861 = vrot.lane.b32.xlu1 %v6860_v52, %s7746_s11 }
 0x645   : > { %6866 = vrot.lane.b32.xlu2 %v6865_v59, %s7746_s11  ;;  %6405 = vmatmul.msk.f32.gmra.mxu0 %vm2401_vm2, %v3687_v2  ;;  %v13874_v2 = vld [vmem:[#allocation183_spill] sm:$0xff] }
 0x646   : > { %6871 = vrot.lane.b32.xlu0 %v6870_v9, %s7746_s11  ;;  %7228 = vrcp.f32 %v13874_v2  ;;  %v13881_v2 = vld [vmem:[#allocation153_spill] sm:$0xff] }
 0x647   : > { %v6722_v20 = vpop.permute.xlu2 %6721  ;;  %7230 = vrcp.f32 %v11027_v25  ;;  %v13878_v25 = vld [vmem:[#allocation265_spill] sm:$0xff] }
 0x648   : > { %6876 = vrot.lane.b32.xlu1 %v6875_v63, %s7746_s11  ;;  %v6724_v0 = vunpack.i.h.bf16 %v6722_v20  ;;  %v6723_v62 = vunpack.i.l.bf16 %v6722_v20  ;;  %7232 = vrcp.f32 %v10841_v31 }
 0x649   : > { %7234 = vrcp.f32 %v11033_v39 }
 0x64c   : > { %v7229_v15 = vpop.eup %7228 }
 0x64d   : > { %6881 = vrot.lane.b32.xlu2 %v6880_v13, %s7746_s11  ;;  %v13875_v13 = vld [vmem:[#allocation152_spill] sm:$0xff]  ;;  %v7231_v20 = vpop.eup %7230 }
 0x64e   : > { %6886 = vrot.lane.b32.xlu0 %v6885_v30, %s7746_s11  ;;  %v2886_v42 = vsub.f32 %v13876_v12, %v13875_v13  ;;  %v13883_v13 = vld [vmem:[#allocation185_spill] sm:$0xff] }
 0x64f   : > { %v6717_v27 = vpop.permute.xlu0 %6716  ;;  %v6737_v22 = vpop.permute.xlu2 %6736  ;;  %v13884_v12 = vld [vmem:[#allocation149_spill] sm:$0xff] }
 0x650   : > { %v6719_v56 = vunpack.i.h.bf16 %v6717_v27  ;;  %v6718_v52 = vunpack.i.l.bf16 %v6717_v27  ;;  %v6739_v17 = vunpack.i.h.bf16 %v6737_v22  ;;  %v6738_v63 = vunpack.i.l.bf16 %v6737_v22  ;;  %v13882_v22 = vld [vmem:[#allocation267_spill] sm:$0xff] }
 0x652   : > { %v6712_v45 = vpop.permute.xlu1 %6711 }
 0x653   : > { %v6714_v11 = vunpack.i.h.bf16 %v6712_v45  ;;  %v6713_v54 = vunpack.i.l.bf16 %v6712_v45  ;;  %v13877_v45 = vld [vmem:[#allocation308_spill] sm:$0xff] }
 0x655   : > { %3955 = vmatpush.msra.mxu1 %v6713_v54  ;;  %4222 = vmatpush.msrb.mxu0 %v6714_v11  ;;  %v2887_v11 = vsub.f32 %v13878_v25, %v13877_v45  ;;  %v13886_v25 = vld [vmem:[#allocation155_spill] sm:$0xff] }
 0x657   : > { %3956 = vmatpush.msra.mxu1 %v6718_v52  ;;  %4223 = vmatpush.msrb.mxu0 %v6719_v56  ;;  %v6727_v24 = vpop.permute.xlu0 %6726 }
 0x658   : > { %v6729_v59 = vunpack.i.h.bf16 %v6727_v24  ;;  %v6728_v29 = vunpack.i.l.bf16 %v6727_v24 }
 0x659   : > { %3957 = vmatpush.msra.mxu1 %v6723_v62  ;;  %4224 = vmatpush.msrb.mxu0 %v6724_v0  ;;  %v3114_v0 = vmul.f32 1.442695, %v2886_v42  ;;  %v13879_v62 = vld [vmem:[#allocation148_spill] sm:$0xff] }
 0x65a   : > { %v6732_v16 = vpop.permute.xlu1 %6731  ;;  %v3690_v24 = vmul.f32 %v7229_v15, %v13879_v62 }
 0x65b   : > { %v6734_v9 = vunpack.i.h.bf16 %v6732_v16  ;;  %v6733_v55 = vunpack.i.l.bf16 %v6732_v16  ;;  %3958 = vmatpush.msra.mxu1 %v6728_v29  ;;  %4225 = vmatpush.msrb.mxu0 %v6729_v59  ;;  %v13880_v59 = vld [vmem:[#allocation228_spill] sm:$0xff]  ;;  %v2888_v16 = vsub.f32 %v13882_v22, %v13881_v2  ;;  %7236 = vpow2.f32 %v3114_v0 }
 0x65c   : > { %v3714_v29 = vmul.f32 %v7231_v20, %v13880_v59 }
 0x65d   : > { %3959 = vmatpush.msra.mxu1 %v6733_v55  ;;  %4226 = vmatpush.msrb.mxu0 %v6734_v9  ;;  %v3116_v9 = vmul.f32 1.442695, %v2887_v11  ;;  %v7233_v55 = vpop.eup %7232  ;;  %v13887_v11 = vld [vmem:[#allocation271_spill] sm:$0xff] }
 0x65e   : > { %v3691_v42 = vmul.f32 %v7233_v55, %v13884_v12 }
 0x65f   : > { %3960 = vmatpush.msra.mxu1 %v6738_v63  ;;  %4227 = vmatpush.msrb.mxu0 %v6739_v17  ;;  %v6742_v5 = vpop.permute.xlu0 %6741  ;;  %v7235_v17 = vpop.eup %7234  ;;  %v3118_v63 = vmul.f32 1.442695, %v2888_v16  ;;  %7238 = vpow2.f32 %v3116_v9  ;;  %v13888_v16 = vld [vmem:[#allocation266_spill] sm:$0xff] }
 0x660   : > { %v6744_v30 = vunpack.i.h.bf16 %v6742_v5  ;;  %v6743_v27 = vunpack.i.l.bf16 %v6742_v5  ;;  %7240 = vrcp.f32 %v13883_v13 }
 0x661   : > { %7242 = vrcp.f32 %v11031_v47  ;;  %v11447_v45 = vpop.eup %7236 }
 0x662   : > { %v6747_v54 = vpop.permute.xlu1 %6746  ;;  %3961 = vmatpush.msra.mxu1 %v6743_v27  ;;  %4228 = vmatpush.msrb.mxu0 %v6744_v30  ;;  %v13885_v30 = vld [vmem:[#allocation227_spill] sm:$0xff]  ;;  %7244 = vpow2.f32 %v3118_v63  ;;  %v3470_v59 = vsel %vm2401_vm2, %v11447_v45, 0.0 }
 0x663   : > { %v6749_v56 = vunpack.i.h.bf16 %v6747_v54  ;;  %v6748_v52 = vunpack.i.l.bf16 %v6747_v54  ;;  %v3715_v27 = vmul.f32 %v7235_v17, %v13885_v30  ;;  %v2889_v54 = vsub.f32 %v13887_v11, %v13886_v25 }
 0x664   : > { %7246 = vrcp.f32 %v13888_v16 }
 0x665   : > { %3962 = vmatpush.msra.mxu1 %v6748_v52  ;;  %4229 = vmatpush.msrb.mxu0 %v6749_v56  ;;  %v11453_v47 = vpop.eup %7238  ;;  %v3120_v2 = vmul.f32 1.442695, %v2889_v54  ;;  %7248 = vrcp.f32 %v11051_v60 }
 0x666   : > { %6408 = vmatmul.msk.f32.vlgmr.msra.gmra.mxu1 %vm2401_vm2, %v3690_v24  ;;  %6432 = vmatmul.msk.f32.vlgmr.msrb.gmra.mxu0 %vm2401_vm2, %v3714_v29  ;;  %v7241_v24 = vpop.eup %7240  ;;  %v3473_v63 = vsel %vm2401_vm2, %v11453_v47, 0.0 }
 0x667   : > { %v6752_v31 = vpop.permute.xlu0 %6751  ;;  %v7243_v29 = vpop.eup %7242  ;;  %7250 = vpow2.f32 %v3120_v2 }
 0x668   : > { %v6753_v39 = vunpack.i.l.bf16 %v6752_v31  ;;  %v6754_v5 = vunpack.i.h.bf16 %v6752_v31  ;;  %v11458_v55 = vpop.eup %7244  ;;  %7252 = vrcp.f32 %v10865_v7 }
 0x669   : > { %v3476_v13 = vsel %vm2401_vm2, %v11458_v55, 0.0  ;;  %7254 = vrcp.f32 %v10887_v49 }
 0x66a   : > { %v6757_v15 = vpop.permute.xlu1 %6756  ;;  %4044 = vmatpush.msra.mxu2 %v6753_v39  ;;  %v13889_v39 = vld [vmem:[#allocation150_spill] sm:$0xff]  ;;  %v7247_v30 = vpop.eup %7246  ;;  %7256 = vrcp.f32 %v11057_v6 }
 0x66b   : > { %v6758_v20 = vunpack.i.l.bf16 %v6757_v15  ;;  %v6759_v56 = vunpack.i.h.bf16 %v6757_v15  ;;  %v3692_v17 = vmul.f32 %v7241_v24, %v13889_v39  ;;  %v13894_v39 = vld [vmem:[#allocation307_spill] sm:$0xff] }
 0x66c   : > { %4045 = vmatpush.msra.mxu2 %v6754_v5  ;;  %v13890_v5 = vld [vmem:[#allocation168_spill] sm:$0xff] }
 0x66d   : > { %v3716_v15 = vmul.f32 %v7243_v29, %v13890_v5 }
 0x66e   : > { %6409 = vmatmul.msk.f32.gmra.mxu1 %vm2401_vm2, %v3691_v42  ;;  %6433 = vmatmul.msk.f32.gmra.mxu0 %vm2401_vm2, %v3715_v27  ;;  %v7249_v27 = vpop.eup %7248 }
 0x66f   : > { %4046 = vmatpush.msra.mxu2 %v6758_v20  ;;  %v6762_v52 = vpop.permute.xlu0 %6761  ;;  %v11471_v54 = vpop.eup %7250 }
 0x670   : > { %v6764_v0 = vunpack.i.h.bf16 %v6762_v52  ;;  %v6763_v62 = vunpack.i.l.bf16 %v6762_v52  ;;  %v3479_v7 = vsel %vm2401_vm2, %v11471_v54, 0.0  ;;  %v7253_v24 = vpop.eup %7252 }
 0x671   : > { %4047 = vmatpush.msra.mxu2 %v6759_v56  ;;  %v13891_v56 = vld [vmem:[#allocation303_spill] sm:$0xff]  ;;  %v7255_v2 = vpop.eup %7254 }
 0x672   : > { %3471 = vadd.xlane.f32.xlu1 %v3470_v59  ;;  %v6767_v22 = vpop.permute.xlu1 %6766  ;;  %4311 = vmatpush.msrb.mxu1 %v6763_v62  ;;  %v3693_v52 = vmul.f32 %v7247_v30, %v13891_v56  ;;  %v7257_v6 = vpop.eup %7256 }
 0x673   : > { %v6769_v9 = vunpack.i.h.bf16 %v6767_v22  ;;  %v6768_v31 = vunpack.i.l.bf16 %v6767_v22  ;;  %4578 = vmatpush.msra.mxu0 %v6764_v0  ;;  %v13892_v0 = vld [vmem:[#allocation234_spill] sm:$0xff]  ;;  %v13893_v22 = vld [vmem:[#allocation268_spill] sm:$0xff] }
 0x674   : > { %v3717_v62 = vmul.f32 %v7249_v27, %v13892_v0  ;;  %7258 = vrcp.f32 %v13893_v22  ;;  %v13904_v22 = vld [vmem:[#allocation310_spill] sm:$0xff] }
 0x675   : > { %4048 = vmatpush.msra.mxu2 %v6768_v31  ;;  %4312 = vmatpush.msrb.mxu1 %v6769_v9  ;;  %7260 = vrcp.f32 %v10907_v58 }
 0x676   : > { %3474 = vadd.xlane.f32.xlu2 %v3473_v63  ;;  %6410 = vmatmul.msk.f32.gmra.mxu1 %vm2401_vm2, %v3692_v17  ;;  %v3698_v17 = vmul.f32 %v7255_v2, %v13894_v39  ;;  %7262 = vrcp.f32 %v11055_v10  ;;  %v13895_v63 = vld [vmem:[#allocation151_spill] sm:$0xff]  ;;  %v13897_v10 = vld [vmem:[#allocation96_spill] sm:$0xff]  ;;  %v13903_v2 = vld [vmem:[#allocation201_spill] sm:$0xff] }
 0x677   : > { %6434 = vmatmul.msk.f32.gmra.mxu0 %vm2401_vm2, %v3716_v15  ;;  %v6772_v12 = vpop.permute.xlu0 %6771  ;;  %v3694_v5 = vmul.f32 %v7253_v24, %v13895_v63  ;;  %v13896_v15 = vld [vmem:[#allocation233_spill] sm:$0xff]  ;;  %v13905_v39 = vld [vmem:[#allocation54_spill] sm:$0xff] }
 0x678   : > { %3477 = vadd.xlane.f32.xlu0 %v3476_v13  ;;  %v6774_v60 = vunpack.i.h.bf16 %v6772_v12  ;;  %v6773_v42 = vunpack.i.l.bf16 %v6772_v12  ;;  %v3718_v13 = vmul.f32 %v7257_v6, %v13896_v15 }
 0x67a   : > { %v6777_v20 = vpop.permute.xlu1 %6776  ;;  %4049 = vmatpush.msra.mxu2 %v6774_v60  ;;  %4579 = vmatpush.msra.mxu0 %v6773_v42  ;;  %v7259_v58 = vpop.eup %7258 }
 0x67b   : > { %v6779_v25 = vunpack.i.h.bf16 %v6777_v20  ;;  %v6778_v11 = vunpack.i.l.bf16 %v6777_v20  ;;  %v7261_v27 = vpop.eup %7260  ;;  %v13898_v20 = vld [vmem:[#allocation99_spill] sm:$0xff] }
 0x67c   : > { %v3699_v6 = vmul.f32 %v7261_v27, %v13903_v2  ;;  %v13909_v27 = vld [vmem:[#allocation189_spill] sm:$0xff] }
 0x67d   : > { %4313 = vmatpush.msrb.mxu1 %v6778_v11  ;;  %4580 = vmatpush.msra.mxu0 %v6779_v25  ;;  %v6890_v25 = vpack.i.bf16 %v13898_v20, %v13897_v10  ;;  %v7263_v11 = vpop.eup %7262 }
 0x67e   : > { %6411 = vmatmul.msk.f32.gmra.mxu1 %vm2401_vm2, %v3693_v52  ;;  %v13899_v52 = vld [vmem:[#allocation186_spill] sm:$0xff] }
 0x67f   : > { %6435 = vmatmul.msk.f32.gmra.mxu0 %vm2401_vm2, %v3717_v62  ;;  %v6782_v49 = vpop.permute.xlu0 %6781  ;;  %7264 = vrcp.f32 %v13899_v52  ;;  %v13911_v52 = vld [vmem:[#allocation105_spill] sm:$0xff] }
 0x680   : > { %3480 = vadd.xlane.f32.xlu0 %v3479_v7  ;;  %v6784_v59 = vunpack.i.h.bf16 %v6782_v49  ;;  %v6783_v29 = vunpack.i.l.bf16 %v6782_v49  ;;  %v13900_v7 = vld [vmem:[#allocation89_spill] sm:$0xff]  ;;  %v13901_v49 = vld [vmem:[#allocation92_spill] sm:$0xff]  ;;  %7266 = vrcp.f32 %v10913_v4 }
 0x681   : > { %v6895_v24 = vpack.i.bf16 %v13901_v49, %v13900_v7  ;;  %7268 = vrcp.f32 %v11075_v41  ;;  %v13913_v7 = vld [vmem:[#allocation306_spill] sm:$0xff] }
 0x682   : > { %v6787_v16 = vpop.permute.xlu1 %6786  ;;  %4050 = vmatpush.msra.mxu2 %v6783_v29  ;;  %4314 = vmatpush.msrb.mxu1 %v6784_v59  ;;  %v13902_v59 = vld [vmem:[#allocation304_spill] sm:$0xff]  ;;  %7270 = vrcp.f32 %v13909_v27  ;;  %v13922_v27 = vld [vmem:[#allocation114_spill] sm:$0xff] }
 0x683   : > { %v6789_v9 = vunpack.i.h.bf16 %v6787_v16  ;;  %v6788_v31 = vunpack.i.l.bf16 %v6787_v16  ;;  %v3695_v29 = vmul.f32 %v7259_v58, %v13902_v59  ;;  %v3719_v16 = vmul.f32 %v7263_v11, %v13904_v22  ;;  %v13910_v11 = vld [vmem:[#allocation190_spill] sm:$0xff]  ;;  %v13916_v22 = vld [vmem:[#allocation52_spill] sm:$0xff] }
 0x684   : > { %7272 = vrcp.f32 %v13910_v11  ;;  %v13924_v11 = vld [vmem:[#allocation309_spill] sm:$0xff] }
 0x685   : > { %4051 = vmatpush.msra.mxu2 %v6789_v9  ;;  %4581 = vmatpush.msra.mxu0 %v6788_v31  ;;  %v7265_v31 = vpop.eup %7264  ;;  %7274 = vrcp.f32 %v11081_v37 }
 0x686   : > { %6412 = vmatmul.msk.f32.gmra.mxu1 %vm2401_vm2, %v3694_v5  ;;  %6416 = vmatmul.msk.f32.vlgmr.msra.gmra.mxu2 %vm2401_vm2, %v3698_v17  ;;  %v13906_v17 = vld [vmem:[#allocation59_spill] sm:$0xff]  ;;  %v7267_v15 = vpop.eup %7266  ;;  %v3696_v49 = vmul.f32 %v7265_v31, %v13913_v7 }
 0x687   : > { %6436 = vmatmul.msk.f32.gmra.mxu0 %vm2401_vm2, %v3718_v13  ;;  %v6792_v12 = vpop.permute.xlu0 %6791  ;;  %v6905_v41 = vpack.i.bf16 %v13906_v17, %v13905_v39  ;;  %v13907_v13 = vld [vmem:[#allocation55_spill] sm:$0xff]  ;;  %v13918_v17 = vld [vmem:[#allocation112_spill] sm:$0xff] }
 0x688   : > { %v11489_v60 = vpop.xlane.xlu2 %3468  ;;  %v6794_v42 = vunpack.i.h.bf16 %v6792_v12  ;;  %v6793_v30 = vunpack.i.l.bf16 %v6792_v12  ;;  %v13908_v12 = vld [vmem:[#allocation60_spill] sm:$0xff] }
 0x689   : > { %v6900_v58 = vpack.i.bf16 %v13908_v12, %v13907_v13  ;;  %v13920_v13 = vld [vmem:[#allocation280_spill] sm:$0xff] }
 0x68a   : > { %v6797_v56 = vpop.permute.xlu1 %6796  ;;  %4315 = vmatpush.msrb.mxu1 %v6793_v30  ;;  %4582 = vmatpush.msra.mxu0 %v6794_v42  ;;  %v7269_v30 = vpop.eup %7268  ;;  %7276 = vrcp.f32 %v13920_v13 }
 0x68b   : > { %v6799_v0 = vunpack.i.h.bf16 %v6797_v56  ;;  %v6798_v62 = vunpack.i.l.bf16 %v6797_v56  ;;  %6891 = vrot.lane.b32.xlu1 %v6890_v25, %s7746_s11  ;;  %v7271_v37 = vpop.eup %7270  ;;  %7278 = vrcp.f32 %v11079_v38 }
 0x68c   : > { %v7273_v39 = vpop.eup %7272  ;;  %7280 = vrcp.f32 %v11201_v28 }
 0x68d   : > { %4316 = vmatpush.msrb.mxu1 %v6798_v62  ;;  %4583 = vmatpush.msra.mxu0 %v6799_v0  ;;  %v13912_v0 = vld [vmem:[#allocation48_spill] sm:$0xff]  ;;  %7282 = vrcp.f32 %v10937_v34  ;;  %v13931_v34 = vld [vmem:[#allocation278_spill] sm:$0xff] }
 0x68e   : > { %6896 = vrot.lane.b32.xlu2 %v6895_v24, %s7746_s11  ;;  %6413 = vmatmul.msk.f32.gmra.mxu1 %vm2401_vm2, %v3695_v29  ;;  %v6910_v62 = vpack.i.bf16 %v13912_v0, %v13911_v52  ;;  %v13914_v24 = vld [vmem:[#allocation198_spill] sm:$0xff]  ;;  %v13915_v29 = vld [vmem:[#allocation239_spill] sm:$0xff]  ;;  %7284 = vrcp.f32 %v11099_v36 }
 0x68f   : > { %6417 = vmatmul.msk.f32.gmra.mxu2 %vm2401_vm2, %v3699_v6  ;;  %6437 = vmatmul.msk.f32.gmra.mxu0 %vm2401_vm2, %v3719_v16  ;;  %v3700_v59 = vmul.f32 %v7267_v15, %v13914_v24  ;;  %v3720_v2 = vmul.f32 %v7269_v30, %v13915_v29  ;;  %v13917_v16 = vld [vmem:[#allocation98_spill] sm:$0xff]  ;;  %v7275_v15 = vpop.eup %7274  ;;  %v13921_v30 = vld [vmem:[#allocation68_spill] sm:$0xff]  ;;  %7286 = vrcp.f32 %v11205_v1 }
 0x690   : > { %v6802_v9 = vpop.permute.xlu2 %6801  ;;  %v6807_v4 = vpop.permute.xlu0 %6806  ;;  %v13925_v52 = vld [vmem:[#allocation238_spill] sm:$0xff]  ;;  %v13926_v24 = vld [vmem:[#allocation120_spill] sm:$0xff] }
 0x691   : > { %v6804_v63 = vunpack.i.h.bf16 %v6802_v9  ;;  %v6803_v5 = vunpack.i.l.bf16 %v6802_v9  ;;  %v6808_v10 = vunpack.i.l.bf16 %v6807_v4  ;;  %v6809_v56 = vunpack.i.h.bf16 %v6807_v4 }
 0x692   : > { %v6812_v42 = vpop.permute.xlu1 %6811  ;;  %v6915_v9 = vpack.i.bf16 %v13917_v16, %v13916_v22  ;;  %v3721_v0 = vmul.f32 %v7275_v15, %v13925_v52  ;;  %v13932_v15 = vld [vmem:[#allocation204_spill] sm:$0xff] }
 0x693   : > { %v6814_v20 = vunpack.i.h.bf16 %v6812_v42  ;;  %v6813_v25 = vunpack.i.l.bf16 %v6812_v42  ;;  %6906 = vrot.lane.b32.xlu1 %v6905_v41, %s7746_s11  ;;  %4317 = vmatpush.msrb.mxu1 %v6803_v5  ;;  %v13919_v41 = vld [vmem:[#allocation118_spill] sm:$0xff] }
 0x694   : > { %4584 = vmatpush.msra.mxu0 %v6804_v63  ;;  %6901 = vrot.lane.b32.xlu0 %v6900_v58, %s7746_s11  ;;  %v6920_v63 = vpack.i.bf16 %v13919_v41, %v13918_v17  ;;  %v13930_v17 = vld [vmem:[#allocation174_spill] sm:$0xff] }
 0x695   : > { %4133 = vmatpush.msrb.mxu3 %v6813_v25  ;;  %4318 = vmatpush.msrb.mxu1 %v6808_v10  ;;  %v6925_v10 = vpack.i.bf16 %v13922_v27, %v13921_v30  ;;  %v13933_v27 = vld [vmem:[#allocation64_spill] sm:$0xff] }
 0x696   : > { %4400 = vmatpush.msrb.mxu2 %v6814_v20  ;;  %4585 = vmatpush.msra.mxu0 %v6809_v56  ;;  %v13923_v20 = vld [vmem:[#allocation305_spill] sm:$0xff]  ;;  %v3701_v56 = vmul.f32 %v7273_v39, %v13924_v11 }
 0x697   : > { %6911 = vrot.lane.b32.xlu2 %v6910_v62, %s7746_s11  ;;  %6414 = vmatmul.msk.f32.gmra.mxu1 %vm2401_vm2, %v3696_v49  ;;  %v3697_v25 = vmul.f32 %v7271_v37, %v13923_v20  ;;  %v7277_v62 = vpop.eup %7276 }
 0x698   : > { %6418 = vmatmul.msk.f32.gmra.mxu2 %vm2401_vm2, %v3700_v59  ;;  %6438 = vmatmul.msk.f32.gmra.mxu0 %vm2401_vm2, %v3720_v2  ;;  %v6817_v6 = vpop.permute.xlu0 %6816  ;;  %v6837_v42 = vpop.permute.xlu2 %6836  ;;  %v13927_v59 = vld [vmem:[#allocation71_spill] sm:$0xff]  ;;  %v3702_v13 = vmul.f32 %v7277_v62, %v13932_v15 }
 0x699   : > { %v6819_v4 = vunpack.i.h.bf16 %v6817_v6  ;;  %v6818_v31 = vunpack.i.l.bf16 %v6817_v6  ;;  %v7279_v49 = vpop.eup %7278  ;;  %v6930_v29 = vpack.i.bf16 %v13927_v59, %v13926_v24  ;;  %v6839_v37 = vunpack.i.h.bf16 %v6837_v42  ;;  %v13938_v24 = vld [vmem:[#allocation245_spill] sm:$0xff] }
 0x69a   : > { %v6822_v5 = vpop.permute.xlu1 %6821  ;;  %v7281_v6 = vpop.eup %7280  ;;  %v6838_v22 = vunpack.i.l.bf16 %v6837_v42  ;;  %v3722_v41 = vmul.f32 %v7279_v49, %v13930_v17 }
 0x69b   : > { %v6824_v12 = vunpack.i.h.bf16 %v6822_v5  ;;  %v6823_v58 = vunpack.i.l.bf16 %v6822_v5  ;;  %6916 = vrot.lane.b32.xlu1 %v6915_v9, %s7746_s11  ;;  %4134 = vmatpush.msrb.mxu3 %v6818_v31  ;;  %v13929_v31 = vld [vmem:[#allocation116_spill] sm:$0xff]  ;;  %v7283_v36 = vpop.eup %7282  ;;  %v11557_v1 = vpop.f32.mrf.mxu0 }
 0x69c   : > { %4401 = vmatpush.msrb.mxu2 %v6819_v4  ;;  %6921 = vrot.lane.b32.xlu0 %v6920_v63, %s7746_s11  ;;  %v13928_v4 = vld [vmem:[#allocation110_spill] sm:$0xff]  ;;  %v3746_v63 = vmul.f32 %v7281_v6, %v13931_v34  ;;  %v7285_v30 = vpop.eup %7284 }
 0x69d   : > { %4135 = vmatpush.msrb.mxu3 %v6823_v58  ;;  %v6935_v39 = vpack.i.bf16 %v13929_v31, %v13928_v4  ;;  %v3723_v59 = vmul.f32 %v7285_v30, %v13938_v24  ;;  %v13945_v30 = vld [vmem:[#allocation156_spill] sm:$0xff] }
 0x69e   : > { %4402 = vmatpush.msrb.mxu2 %v6824_v12 }
 0x69f   : > { %6926 = vrot.lane.b32.xlu2 %v6925_v10, %s7746_s11  ;;  %6415 = vmatmul.msk.f32.gmra.mxu1 %vm2401_vm2, %v3697_v25  ;;  %v13934_v10 = vld [vmem:[#allocation33_spill] sm:$0xff]  ;;  %v13935_v25 = vld [vmem:[#allocation194_spill] sm:$0xff] }
 0x6a0   : > { %6419 = vmatmul.msk.f32.gmra.mxu2 %vm2401_vm2, %v3701_v56  ;;  %6439 = vmatmul.msk.f32.gmra.mxu0 %vm2401_vm2, %v3721_v0  ;;  %v6827_v38 = vpop.permute.xlu0 %6826  ;;  %v6852_v5 = vpop.permute.xlu2 %6851  ;;  %v6940_v20 = vpack.i.bf16 %v13934_v10, %v13933_v27  ;;  %7288 = vrcp.f32 %v13935_v25  ;;  %v13946_v10 = vld [vmem:[#allocation192_spill] sm:$0xff] }
 0x6a1   : > { %v6829_v7 = vunpack.i.h.bf16 %v6827_v38  ;;  %v6828_v28 = vunpack.i.l.bf16 %v6827_v38  ;;  %v7287_v56 = vpop.eup %7286  ;;  %7290 = vrcp.f32 %v10961_v23  ;;  %v6854_v38 = vunpack.i.h.bf16 %v6852_v5  ;;  %v13939_v23 = vld [vmem:[#allocation203_spill] sm:$0xff] }
 0x6a2   : > { %v6832_v2 = vpop.permute.xlu1 %6831  ;;  %7292 = vrcp.f32 %v11105_v40  ;;  %v6853_v62 = vunpack.i.l.bf16 %v6852_v5 }
 0x6a3   : > { %v6834_v16 = vunpack.i.h.bf16 %v6832_v2  ;;  %v6833_v9 = vunpack.i.l.bf16 %v6832_v2  ;;  %4136 = vmatpush.msrb.mxu3 %v6828_v28  ;;  %4403 = vmatpush.msrb.mxu2 %v6829_v7  ;;  %v13936_v7 = vld [vmem:[#allocation129_spill] sm:$0xff]  ;;  %v13937_v28 = vld [vmem:[#allocation128_spill] sm:$0xff]  ;;  %7294 = vrcp.f32 %v11209_v8  ;;  %v3747_v2 = vmul.f32 %v7287_v56, %v10933_v35  ;;  %v11579_v34 = vpop.f32.mrf.mxu0 }
 0x6a4   : > { %6931 = vrot.lane.b32.xlu0 %v6930_v29, %s7746_s11  ;;  %v6945_v49 = vpack.i.bf16 %v13937_v28, %v13936_v7  ;;  %v3703_v29 = vmul.f32 %v7283_v36, %v13939_v23  ;;  %7296 = vrcp.f32 %v10955_v26  ;;  %v13948_v56 = vld [vmem:[#allocation277_spill] sm:$0xff] }
 0x6a5   : > { %4137 = vmatpush.msrb.mxu3 %v6838_v22  ;;  %4404 = vmatpush.msrb.mxu2 %v6839_v37  ;;  %v13940_v22 = vld [vmem:[#allocation207_spill] sm:$0xff] }
 0x6a6   : > { %4667 = vmatpush.msra.mxu1 %v6833_v9  ;;  %4934 = vmatpush.msrb.mxu0 %v6834_v16  ;;  %v7289_v40 = vpop.eup %7288  ;;  %v13941_v16 = vld [vmem:[#allocation270_spill] sm:$0xff] }
 0x6a7   : > { %6936 = vrot.lane.b32.xlu2 %v6935_v39, %s7746_s11  ;;  %6440 = vmatmul.msk.f32.vlgmr.msrb.gmra.mxu1 %vm2401_vm2, %v3722_v41  ;;  %v7291_v37 = vpop.eup %7290  ;;  %v2890_v9 = vsub.f32 %v13941_v16, %v13940_v22  ;;  %v13942_v39 = vld [vmem:[#allocation197_spill] sm:$0xff]  ;;  %v3704_v27 = vmul.f32 %v7289_v40, %v13945_v30  ;;  %v13957_v30 = vld [vmem:[#allocation216_spill] sm:$0xff] }
 0x6a8   : > { %6420 = vmatmul.msk.f32.gmra.mxu2 %vm2401_vm2, %v3702_v13  ;;  %6464 = vmatmul.msk.f32.vlgmr.msra.gmra.mxu0 %vm2401_vm2, %v3746_v63  ;;  %v6842_v12 = vpop.permute.xlu0 %6841  ;;  %v6867_v6 = vpop.permute.xlu2 %6866  ;;  %7298 = vrcp.f32 %v13942_v39  ;;  %v13950_v40 = vld [vmem:[#allocation177_spill] sm:$0xff] }
 0x6a9   : > { %v6844_v58 = vunpack.i.h.bf16 %v6842_v12  ;;  %v6843_v42 = vunpack.i.l.bf16 %v6842_v12  ;;  %v7293_v35 = vpop.eup %7292  ;;  %v6869_v63 = vunpack.i.h.bf16 %v6867_v6  ;;  %v6868_v5 = vunpack.i.l.bf16 %v6867_v6  ;;  %v13943_v12 = vld [vmem:[#allocation209_spill] sm:$0xff] }
 0x6aa   : > { %v6847_v11 = vpop.permute.xlu1 %6846  ;;  %v7295_v41 = vpop.eup %7294  ;;  %7300 = vrcp.f32 %v11103_v48  ;;  %v3122_v36 = vmul.f32 1.442695, %v2890_v9  ;;  %v3706_v26 = vmul.f32 %v7291_v37, %v13943_v12  ;;  %v13952_v37 = vld [vmem:[#allocation281_spill] sm:$0xff] }
 0x6ab   : > { %v6849_v52 = vunpack.i.h.bf16 %v6847_v11  ;;  %v6848_v0 = vunpack.i.l.bf16 %v6847_v11  ;;  %4668 = vmatpush.msra.mxu1 %v6843_v42  ;;  %4935 = vmatpush.msrb.mxu0 %v6844_v58  ;;  %7302 = vrcp.f32 %v11207_v18  ;;  %v13944_v58 = vld [vmem:[#allocation244_spill] sm:$0xff]  ;;  %v7297_v25 = vpop.eup %7296  ;;  %v13947_v11 = vld [vmem:[#allocation213_spill] sm:$0xff] }
 0x6ac   : > { %6941 = vrot.lane.b32.xlu0 %v6940_v20, %s7746_s11  ;;  %v3724_v42 = vmul.f32 %v7293_v35, %v13944_v58  ;;  %v3748_v20 = vmul.f32 %v7295_v41, %v13946_v10  ;;  %7304 = vpow2.f32 %v3122_v36  ;;  %v13955_v41 = vld [vmem:[#allocation157_spill] sm:$0xff]  ;;  %v13958_v10 = vld [vmem:[#allocation251_spill] sm:$0xff] }
 0x6ad   : > { %4138 = vmatpush.msrb.mxu3 %v6848_v0  ;;  %4405 = vmatpush.msrb.mxu2 %v6849_v52  ;;  %v2893_v52 = vsub.f32 %v13948_v56, %v13947_v11  ;;  %7306 = vrcp.f32 %v10979_v33  ;;  %v13961_v11 = vld [vmem:[#allocation158_spill] sm:$0xff]  ;;  %v13962_v56 = vld [vmem:[#allocation276_spill] sm:$0xff] }
 0x6ae   : > { %4669 = vmatpush.msra.mxu1 %v6853_v62  ;;  %4936 = vmatpush.msrb.mxu0 %v6854_v38  ;;  %v7299_v48 = vpop.eup %7298  ;;  %7308 = vrcp.f32 %v11123_v32 }
 0x6af   : > { %6946 = vrot.lane.b32.xlu2 %v6945_v49, %s7746_s11  ;;  %6441 = vmatmul.msk.f32.gmra.mxu1 %vm2401_vm2, %v3723_v59  ;;  %7310 = vrcp.f32 %v11149_v21  ;;  %v3128_v23 = vmul.f32 1.442695, %v2893_v52 }
 0x6b0   : > { %6421 = vmatmul.msk.f32.gmra.mxu2 %vm2401_vm2, %v3703_v29  ;;  %6465 = vmatmul.msk.f32.gmra.mxu0 %vm2401_vm2, %v3747_v2  ;;  %v6857_v8 = vpop.permute.xlu0 %6856  ;;  %v7301_v62 = vpop.eup %7300  ;;  %7312 = vrcp.f32 %v11213_v14  ;;  %v13949_v2 = vld [vmem:[#allocation159_spill] sm:$0xff] }
 0x6b1   : > { %v6859_v4 = vunpack.i.h.bf16 %v6857_v8  ;;  %v6858_v31 = vunpack.i.l.bf16 %v6857_v8  ;;  %v7303_v28 = vpop.eup %7302  ;;  %v6882_v59 = vpop.permute.xlu2 %6881  ;;  %v3707_v33 = vmul.f32 %v7299_v48, %v13949_v2  ;;  %v3725_v6 = vmul.f32 %v7301_v62, %v13950_v40  ;;  %v13951_v8 = vld [vmem:[#allocation210_spill] sm:$0xff]  ;;  %v13960_v48 = vld [vmem:[#allocation195_spill] sm:$0xff]  ;;  %v13968_v40 = vld [vmem:[#allocation237_spill] sm:$0xff] }
 0x6b2   : > { %v6862_v17 = vpop.permute.xlu1 %6861  ;;  %v11597_v29 = vpop.f32.mrf.mxu0  ;;  %v3705_v32 = vmul.f32 %v7297_v25, %v13951_v8  ;;  %v3749_v22 = vmul.f32 %v7303_v28, %v13952_v37  ;;  %v6884_v9 = vunpack.i.h.bf16 %v6882_v59  ;;  %v6883_v21 = vunpack.i.l.bf16 %v6882_v59  ;;  %v13965_v28 = vld [vmem:[#allocation219_spill] sm:$0xff]  ;;  %v13969_v8 = vld [vmem:[#allocation249_spill] sm:$0xff] }
 0x6b3   : > { %v6864_v15 = vunpack.i.h.bf16 %v6862_v17  ;;  %v6863_v13 = vunpack.i.l.bf16 %v6862_v17  ;;  %4139 = vmatpush.msrb.mxu3 %v6858_v31  ;;  %4406 = vmatpush.msrb.mxu2 %v6859_v4  ;;  %v11603_v16 = vpop.eup %7304  ;;  %v13953_v4 = vld [vmem:[#allocation154_spill] sm:$0xff]  ;;  %v13954_v31 = vld [vmem:[#allocation273_spill] sm:$0xff]  ;;  %7314 = vpow2.f32 %v3128_v23 }
 0x6b4   : > { %v7307_v14 = vpop.eup %7306  ;;  %v2891_v35 = vsub.f32 %v13954_v31, %v13953_v4  ;;  %7316 = vrcp.f32 %v10985_v53  ;;  %v3482_v58 = vsel %vm2401_vm2, %v11603_v16, 0.0  ;;  %v13959_v53 = vld [vmem:[#allocation254_spill] sm:$0xff]  ;;  %v13967_v23 = vld [vmem:[#allocation289_spill] sm:$0xff] }
 0x6b5   : > { %4140 = vmatpush.msrb.mxu3 %v6868_v5  ;;  %4407 = vmatpush.msrb.mxu2 %v6869_v63  ;;  %v7309_v17 = vpop.eup %7308  ;;  %v13956_v63 = vld [vmem:[#allocation279_spill] sm:$0xff]  ;;  %7318 = vrcp.f32 %v11129_v51 }
 0x6b6   : > { %4670 = vmatpush.msra.mxu1 %v6863_v13  ;;  %4937 = vmatpush.msrb.mxu0 %v6864_v15  ;;  %v2894_v5 = vsub.f32 %v13956_v63, %v13955_v41  ;;  %v7311_v36 = vpop.eup %7310  ;;  %7320 = vrcp.f32 %v11147_v46  ;;  %v2892_v46 = vsub.f32 %v13962_v56, %v13961_v11  ;;  %v13981_v11 = vld [vmem:[#allocation163_spill] sm:$0xff] }
 0x6b7   : > { %6424 = vmatmul.msk.f32.vlgmr.msrb.gmra.mxu3 %vm2401_vm2, %v3706_v26  ;;  %6442 = vmatmul.msk.f32.gmra.mxu1 %vm2401_vm2, %v3724_v42  ;;  %v7313_v12 = vpop.eup %7312  ;;  %v3124_v26 = vmul.f32 1.442695, %v2891_v35  ;;  %7322 = vrcp.f32 %v11219_v61  ;;  %v3730_v25 = vmul.f32 %v7311_v36, %v13959_v53  ;;  %v13973_v35 = vld [vmem:[#allocation256_spill] sm:$0xff] }
 0x6b8   : > { %6422 = vmatmul.msk.f32.gmra.mxu2 %vm2401_vm2, %v3704_v27  ;;  %6466 = vmatmul.msk.f32.gmra.mxu0 %vm2401_vm2, %v3748_v20  ;;  %v6872_v18 = vpop.permute.xlu0 %6871  ;;  %v3130_v42 = vmul.f32 1.442695, %v2894_v5  ;;  %v3708_v27 = vmul.f32 %v7307_v14, %v13957_v30  ;;  %v3726_v20 = vmul.f32 %v7309_v17, %v13958_v10  ;;  %v3750_v51 = vmul.f32 %v7313_v12, %v13960_v48  ;;  %v13972_v14 = vld [vmem:[#allocation250_spill] sm:$0xff]  ;;  %v13974_v17 = vld [vmem:[#allocation193_spill] sm:$0xff]  ;;  %v13976_v36 = vld [vmem:[#allocation284_spill] sm:$0xff] }
 0x6b9   : > { %v6874_v0 = vunpack.i.h.bf16 %v6872_v18  ;;  %v6873_v38 = vunpack.i.l.bf16 %v6872_v18  ;;  %v11623_v18 = vpop.eup %7314  ;;  %7324 = vpow2.f32 %v3124_v26  ;;  %v13979_v10 = vld [vmem:[#allocation253_spill] sm:$0xff] }
 0x6ba   : > { %v6877_v7 = vpop.permute.xlu1 %6876  ;;  %v11627_v52 = vpop.f32.mrf.mxu0  ;;  %7326 = vpow2.f32 %v3130_v42  ;;  %v13977_v42 = vld [vmem:[#allocation200_spill] sm:$0xff] }
 0x6bb   : > { %v6879_v49 = vunpack.i.h.bf16 %v6877_v7  ;;  %v6878_v24 = vunpack.i.l.bf16 %v6877_v7  ;;  %4671 = vmatpush.msra.mxu1 %v6873_v38  ;;  %4938 = vmatpush.msrb.mxu0 %v6874_v0  ;;  %v7317_v61 = vpop.eup %7316  ;;  %v13963_v0 = vld [vmem:[#allocation161_spill] sm:$0xff]  ;;  %v13964_v38 = vld [vmem:[#allocation282_spill] sm:$0xff]  ;;  %7328 = vrcp.f32 %v13967_v23 }
 0x6bc   : > { %v2895_v62 = vsub.f32 %v13964_v38, %v13963_v0  ;;  %v7319_v7 = vpop.eup %7318  ;;  %7330 = vrcp.f32 %v13968_v40  ;;  %v13983_v38 = vld [vmem:[#allocation257_spill] sm:$0xff] }
 0x6bd   : > { %4672 = vmatpush.msra.mxu1 %v6878_v24  ;;  %4939 = vmatpush.msrb.mxu0 %v6879_v49  ;;  %v13966_v49 = vld [vmem:[#allocation283_spill] sm:$0xff]  ;;  %v7321_v59 = vpop.eup %7320  ;;  %7332 = vrcp.f32 %v13969_v8  ;;  %v3727_v4 = vmul.f32 %v7319_v7, %v13972_v14  ;;  %v13984_v7 = vld [vmem:[#allocation285_spill] sm:$0xff]  ;;  %v13989_v14 = vld [vmem:[#allocation180_spill] sm:$0xff] }
 0x6be   : > { %v2896_v24 = vsub.f32 %v13966_v49, %v13965_v28  ;;  %v7323_v2 = vpop.eup %7322 }
 0x6bf   : > { %6425 = vmatmul.msk.f32.gmra.mxu3 %vm2401_vm2, %v3707_v33  ;;  %6443 = vmatmul.msk.f32.gmra.mxu1 %vm2401_vm2, %v3725_v6  ;;  %v3126_v33 = vmul.f32 1.442695, %v2892_v46  ;;  %v3132_v6 = vmul.f32 1.442695, %v2895_v62  ;;  %v11645_v31 = vpop.eup %7324  ;;  %v3751_v41 = vmul.f32 %v7323_v2, %v13974_v17  ;;  %v13982_v46 = vld [vmem:[#allocation178_spill] sm:$0xff]  ;;  %v13991_v17 = vld [vmem:[#allocation199_spill] sm:$0xff] }
 0x6c0   : > { %6423 = vmatmul.msk.f32.gmra.mxu2 %vm2401_vm2, %v3705_v32  ;;  %6467 = vmatmul.msk.f32.gmra.mxu0 %vm2401_vm2, %v3749_v22  ;;  %v6887_v39 = vpop.permute.xlu0 %6886  ;;  %v3491_v32 = vsel %vm2401_vm2, %v11623_v18, 0.0  ;;  %v3134_v37 = vmul.f32 1.442695, %v2896_v24  ;;  %v13970_v22 = vld [vmem:[#allocation24_spill] sm:$0xff]  ;;  %v11649_v63 = vpop.eup %7326  ;;  %v3485_v53 = vsel %vm2401_vm2, %v11645_v31, 0.0 }
 0x6c1   : > { %4673 = vmatpush.msra.mxu1 %v6883_v21  ;;  %4940 = vmatpush.msrb.mxu0 %v6884_v9  ;;  %v6889_v15 = vunpack.i.h.bf16 %v6887_v39  ;;  %v6888_v13 = vunpack.i.l.bf16 %v6887_v39  ;;  %7334 = vrcp.f32 %v13970_v22  ;;  %v13971_v9 = vld [vmem:[#allocation215_spill] sm:$0xff]  ;;  %v3731_v39 = vmul.f32 %v7321_v59, %v13973_v35  ;;  %v7329_v5 = vpop.eup %7328  ;;  %v13990_v35 = vld [vmem:[#allocation182_spill] sm:$0xff] }
 0x6c2   : > { %v3709_v21 = vmul.f32 %v7317_v61, %v13971_v9  ;;  %7336 = vpow2.f32 %v3126_v33  ;;  %v11657_v26 = vpop.f32.mrf.mxu0  ;;  %v3710_v56 = vmul.f32 %v7329_v5, %v13981_v11  ;;  %v13985_v33 = vld [vmem:[#allocation208_spill] sm:$0xff]  ;;  %v13988_v9 = vld [vmem:[#allocation222_spill] sm:$0xff] }
 0x6c3   : > { %4674 = vmatpush.msra.mxu1 %v6888_v13  ;;  %4941 = vmatpush.msrb.mxu0 %v6889_v15  ;;  %7338 = vpow2.f32 %v3132_v6  ;;  %v7331_v15 = vpop.eup %7330  ;;  %v13975_v13 = vld [vmem:[#allocation160_spill] sm:$0xff] }
 0x6c4   : > { %v2897_v12 = vsub.f32 %v13976_v36, %v13975_v13  ;;  %7340 = vpow2.f32 %v3134_v37  ;;  %v3728_v61 = vmul.f32 %v7331_v15, %v13982_v46  ;;  %v13986_v6 = vld [vmem:[#allocation252_spill] sm:$0xff]  ;;  %v13992_v36 = vld [vmem:[#allocation294_spill] sm:$0xff] }
 0x6c5   : > { %3483 = vadd.xlane.f32.xlu1 %v3482_v58  ;;  %v7333_v58 = vpop.eup %7332  ;;  %7342 = vrcp.f32 %v13977_v42 }
 0x6c6   : > { %v3136_v48 = vmul.f32 1.442695, %v2897_v12  ;;  %v3732_v62 = vmul.f32 %v7333_v58, %v13983_v38  ;;  %v13993_v58 = vld [vmem:[#allocation311_spill] sm:$0xff] }
 0x6c7   : > { %6426 = vmatmul.msk.f32.gmra.mxu3 %vm2401_vm2, %v3708_v27  ;;  %6444 = vmatmul.msk.f32.gmra.mxu1 %vm2401_vm2, %v3726_v20  ;;  %v7335_v30 = vpop.eup %7334  ;;  %v13978_v27 = vld [vmem:[#allocation243_spill] sm:$0xff]  ;;  %v3494_v20 = vsel %vm2401_vm2, %v11649_v63, 0.0 }
 0x6c8   : > { %6448 = vmatmul.msk.f32.vlgmr.msrb.gmra.mxu2 %vm2401_vm2, %v3730_v25  ;;  %6468 = vmatmul.msk.f32.gmra.mxu0 %vm2401_vm2, %v3750_v51  ;;  %7344 = vrcp.f32 %v13978_v27  ;;  %v11666_v25 = vpop.eup %7336  ;;  %v13980_v51 = vld [vmem:[#allocation255_spill] sm:$0xff]  ;;  %v3752_v28 = vmul.f32 %v7335_v30, %v13984_v7  ;;  %v13995_v27 = vld [vmem:[#allocation196_spill] sm:$0xff] }
 0x6c9   : > { %7346 = vrcp.f32 %v13979_v10  ;;  %v11671_v0 = vpop.eup %7338  ;;  %v3488_v59 = vsel %vm2401_vm2, %v11666_v25, 0.0  ;;  %v13994_v30 = vld [vmem:[#allocation259_spill] sm:$0xff] }
 0x6ca   : > { %7348 = vrcp.f32 %v13980_v51  ;;  %v11675_v49 = vpop.eup %7340  ;;  %v11685_v8 = vpop.f32.mrf.mxu0  ;;  %v3497_v37 = vsel %vm2401_vm2, %v11671_v0, 0.0  ;;  %v13997_v51 = vld [vmem:[#allocation315_spill] sm:$0xff] }
 0x6cb   : > { %v7343_v24 = vpop.eup %7342  ;;  %7350 = vpow2.f32 %v3136_v48  ;;  %v3500_v22 = vsel %vm2401_vm2, %v11675_v49, 0.0 }
 0x6cc   : > { %7352 = vrcp.f32 %v13985_v33  ;;  %v14002_v33 = vld [vmem:[#allocation202_spill] sm:$0xff] }
 0x6cd   : > { %3492 = vadd.xlane.f32.xlu1 %v3491_v32  ;;  %7354 = vrcp.f32 %v13986_v6  ;;  %v13987_v32 = vld [vmem:[#allocation258_spill] sm:$0xff] }
 0x6ce   : > { %v7345_v23 = vpop.eup %7344  ;;  %7356 = vrcp.f32 %v13987_v32  ;;  %v14003_v6 = vld [vmem:[#allocation262_spill] sm:$0xff] }
 0x6cf   : > { %6427 = vmatmul.msk.f32.gmra.mxu3 %vm2401_vm2, %v3709_v21  ;;  %6445 = vmatmul.msk.f32.gmra.mxu1 %vm2401_vm2, %v3727_v4  ;;  %v7347_v2 = vpop.eup %7346  ;;  %7358 = vrcp.f32 %v11421_v43  ;;  %v3711_v21 = vmul.f32 %v7343_v24, %v13988_v9  ;;  %v3729_v4 = vmul.f32 %v7345_v23, %v13989_v14  ;;  %v14000_v24 = vld [vmem:[#allocation317_spill] sm:$0xff] }
 0x6d0   : > { %6449 = vmatmul.msk.f32.gmra.mxu2 %vm2401_vm2, %v3731_v39  ;;  %6469 = vmatmul.msk.f32.gmra.mxu0 %vm2401_vm2, %v3751_v41  ;;  %v7349_v40 = vpop.eup %7348  ;;  %v3733_v39 = vmul.f32 %v7347_v2, %v13990_v35  ;;  %7360 = vrcp.f32 %v13992_v36  ;;  %v14001_v23 = vld [vmem:[#allocation165_spill] sm:$0xff] }
 0x6d1   : > { %v3753_v41 = vmul.f32 %v7349_v40, %v13991_v17  ;;  %v11697_v5 = vpop.eup %7350  ;;  %7362 = vrcp.f32 %v13993_v58  ;;  %v14005_v9 = vld [vmem:[#allocation101_spill] sm:$0xff]  ;;  %v14007_v17 = vld [vmem:[#allocation312_spill] sm:$0xff] }
 0x6d2   : > { %v7353_v43 = vpop.eup %7352  ;;  %7364 = vrcp.f32 %v13994_v30  ;;  %v14011_v30 = vld [vmem:[#allocation205_spill] sm:$0xff] }
 0x6d3   : > { %v7355_v15 = vpop.eup %7354  ;;  %7366 = vrcp.f32 %v11418_v57 }
 0x6d4   : > { %v7357_v13 = vpop.eup %7356 }
 0x6d5   : > { %3495 = vadd.xlane.f32.xlu1 %v3494_v20  ;;  %v7359_v12 = vpop.eup %7358  ;;  %v3754_v10 = vmul.f32 %v7357_v13, %v13995_v27  ;;  %v3503_v20 = vsel %vm2401_vm2, %v11697_v5, 0.0  ;;  %v14010_v13 = vld [vmem:[#allocation318_spill] sm:$0xff] }
 0x6d6   : > { %3486 = vadd.xlane.f32.xlu0 %v3485_v53  ;;  %v13996_v53 = vld [vmem:[#allocation221_spill] sm:$0xff]  ;;  %v3778_v11 = vmul.f32 %v7359_v12, %v13997_v51  ;;  %v14014_v51 = vld [vmem:[#allocation75_spill] sm:$0xff] }
 0x6d7   : > { %6428 = vmatmul.msk.f32.gmra.mxu3 %vm2401_vm2, %v3710_v56  ;;  %6446 = vmatmul.msk.f32.gmra.mxu1 %vm2401_vm2, %v3728_v61  ;;  %v3712_v48 = vmul.f32 %v7353_v43, %v13996_v53  ;;  %v13998_v56 = vld [vmem:[#allocation181_spill] sm:$0xff]  ;;  %v7361_v61 = vpop.eup %7360  ;;  %v14009_v43 = vld [vmem:[#allocation127_spill] sm:$0xff] }
 0x6d8   : > { %6450 = vmatmul.msk.f32.gmra.mxu2 %vm2401_vm2, %v3732_v62  ;;  %6470 = vmatmul.msk.f32.gmra.mxu0 %vm2401_vm2, %v3752_v28  ;;  %v3734_v46 = vmul.f32 %v7355_v15, %v13998_v56  ;;  %v7363_v57 = vpop.eup %7362  ;;  %v13999_v28 = vld [vmem:[#allocation313_spill] sm:$0xff]  ;;  %v3713_v2 = vmul.f32 %v7361_v61, %v14001_v23  ;;  %v14013_v53 = vld [vmem:[#allocation319_spill] sm:$0xff]  ;;  %v14018_v23 = vld [vmem:[#allocation320_spill] sm:$0xff] }
 0x6d9   : > { %3489 = vadd.xlane.f32.xlu2 %v3488_v59  ;;  %v7365_v62 = vpop.eup %7364  ;;  %7368 = vrcp.f32 %v13999_v28  ;;  %v3735_v32 = vmul.f32 %v7363_v57, %v14003_v6  ;;  %v14017_v28 = vld [vmem:[#allocation137_spill] sm:$0xff] }
 0x6da   : > { %v7367_v7 = vpop.eup %7366  ;;  %7370 = vrcp.f32 %v14000_v24  ;;  %v3755_v40 = vmul.f32 %v7365_v62, %v14002_v33 }
 0x6db   : > { %7372 = vrcp.f32 %v11415_v19 }
 0x6dc   : > { %7374 = vrcp.f32 %v14007_v17 }
 0x6dd   : > { %3498 = vadd.xlane.f32.xlu1 %v3497_v37  ;;  %v14004_v37 = vld [vmem:[#allocation316_spill] sm:$0xff]  ;;  %7376 = vrcp.f32 %v14010_v13 }
 0x6de   : > { %3501 = vadd.xlane.f32.xlu0 %v3500_v22  ;;  %v3779_v22 = vmul.f32 %v7367_v7, %v14004_v37  ;;  %7378 = vrcp.f32 %v11489_v60  ;;  %v14016_v7 = vld [vmem:[#allocation69_spill] sm:$0xff]  ;;  %v14024_v13 = vld [vmem:[#allocation132_spill] sm:$0xff] }
 0x6df   : > { %6429 = vmatmul.msk.f32.gmra.mxu3 %vm2401_vm2, %v3711_v21  ;;  %6447 = vmatmul.msk.f32.gmra.mxu1 %vm2401_vm2, %v3729_v4  ;;  %v14006_v21 = vld [vmem:[#allocation139_spill] sm:$0xff]  ;;  %v7369_v19 = vpop.eup %7368  ;;  %v6965_v24 = vpack.i.bf16 %v14017_v28, %v14016_v7  ;;  %7380 = vrcp.f32 %v14018_v23  ;;  %v14030_v7 = vld [vmem:[#allocation286_spill] sm:$0xff] }
 0x6e0   : > { %6451 = vmatmul.msk.f32.gmra.mxu2 %vm2401_vm2, %v3733_v39  ;;  %6471 = vmatmul.msk.f32.gmra.mxu0 %vm2401_vm2, %v3753_v41  ;;  %v6950_v14 = vpack.i.bf16 %v14006_v21, %v14005_v9  ;;  %v7371_v35 = vpop.eup %7370  ;;  %v14008_v41 = vld [vmem:[#allocation72_spill] sm:$0xff]  ;;  %v14020_v9 = vld [vmem:[#allocation263_spill] sm:$0xff] }
 0x6e1   : > { %v7373_v39 = vpop.eup %7372  ;;  %v6955_v15 = vpack.i.bf16 %v14009_v43, %v14008_v41  ;;  %v3756_v27 = vmul.f32 %v7371_v35, %v14011_v30  ;;  %v14022_v35 = vld [vmem:[#allocation124_spill] sm:$0xff]  ;;  %v14025_v30 = vld [vmem:[#allocation321_spill] sm:$0xff] }
 0x6e3   : > { %v11705_v42 = vpop.f32.mrf.mxu0 }
 0x6e5   : > { %v3472_v58 = vpop.xlane.xlu1 %3471 }
 0x6e6   : > { %3504 = vadd.xlane.f32.xlu0 %v3503_v20  ;;  %7382 = vrcp.f32 %v3472_v58 }
 0x6e7   : > { %6430 = vmatmul.msk.f32.gmra.mxu3 %vm2401_vm2, %v3712_v48  ;;  %6472 = vmatmul.msk.f32.vlgmr.msra.gmra.mxu1 %vm2401_vm2, %v3754_v10  ;;  %v14012_v10 = vld [vmem:[#allocation260_spill] sm:$0xff]  ;;  %v3780_v48 = vmul.f32 %v7373_v39, %v14013_v53  ;;  %7384 = vrcp.f32 %v14025_v30 }
 0x6e8   : > { %6452 = vmatmul.msk.f32.gmra.mxu2 %vm2401_vm2, %v3734_v46  ;;  %6496 = vmatmul.msk.f32.vlgmr.msrb.gmra.mxu0 %vm2401_vm2, %v3778_v11  ;;  %v3736_v20 = vmul.f32 %v7369_v19, %v14012_v10  ;;  %v14015_v11 = vld [vmem:[#allocation135_spill] sm:$0xff]  ;;  %v7375_v46 = vpop.eup %7374  ;;  %v14021_v19 = vld [vmem:[#allocation36_spill] sm:$0xff] }
 0x6e9   : > { %v11719_v38 = vpop.xlane.xlu2 %3474  ;;  %v6960_v56 = vpack.i.bf16 %v14015_v11, %v14014_v51  ;;  %v7377_v61 = vpop.eup %7376  ;;  %v3737_v21 = vmul.f32 %v7375_v46, %v14020_v9  ;;  %v6970_v39 = vpack.i.bf16 %v14022_v35, %v14021_v19  ;;  %v14027_v46 = vld [vmem:[#allocation119_spill] sm:$0xff] }
 0x6ea   : > { %v7379_v62 = vpop.eup %7378  ;;  %7386 = vrcp.f32 %v11719_v38 }
 0x6eb   : > { %v11723_v59 = vpop.f32.mrf.mxu0  ;;  %v11741_v36 = vpop.xlane.xlu0 %3477 }
 0x6ec   : > { %v7381_v43 = vpop.eup %7380 }
 0x6ef   : > { %6431 = vmatmul.msk.f32.gmra.mxu3 %vm2401_vm2, %v3713_v2  ;;  %6473 = vmatmul.msk.f32.gmra.mxu1 %vm2401_vm2, %v3755_v40  ;;  %v14019_v40 = vld [vmem:[#allocation290_spill] sm:$0xff] }
 0x6f0   : > { %6453 = vmatmul.msk.f32.gmra.mxu2 %vm2401_vm2, %v3735_v32  ;;  %6497 = vmatmul.msk.f32.gmra.mxu0 %vm2401_vm2, %v3779_v22  ;;  %v3757_v6 = vmul.f32 %v7377_v61, %v14019_v40  ;;  %v14028_v61 = vld [vmem:[#allocation134_spill] sm:$0xff] }
 0x6f1   : > { %6951 = vrot.lane.b32.xlu2 %v6950_v14, %s7746_s11  ;;  %v6897_v4 = vpop.permute.xlu2 %6896  ;;  %v3781_v14 = vmul.f32 %v7379_v62, %v11335_v44  ;;  %v14023_v44 = vld [vmem:[#allocation123_spill] sm:$0xff]  ;;  %v14029_v62 = vld [vmem:[#allocation164_spill] sm:$0xff] }
 0x6f2   : > { %v6899_v17 = vunpack.i.h.bf16 %v6897_v4  ;;  %v6898_v41 = vunpack.i.l.bf16 %v6897_v4  ;;  %v6975_v58 = vpack.i.bf16 %v14024_v13, %v14023_v44  ;;  %v2898_v28 = vsub.f32 %v14030_v7, %v14029_v62  ;;  %v14036_v13 = vld [vmem:[#allocation167_spill] sm:$0xff]  ;;  %v14042_v7 = vld [vmem:[#allocation206_spill] sm:$0xff] }
 0x6f3   : > { %v11765_v32 = vpop.xlane.xlu0 %3480  ;;  %v14041_v62 = vld [vmem:[#allocation323_spill] sm:$0xff] }
 0x6f4   : > { %v11743_v12 = vpop.f32.mrf.mxu0 }
 0x6f6   : > { %6956 = vrot.lane.b32.xlu1 %v6955_v15, %s7746_s11  ;;  %v7383_v15 = vpop.eup %7382 }
 0x6f7   : > { %6474 = vmatmul.msk.f32.gmra.mxu1 %vm2401_vm2, %v3756_v27  ;;  %v3782_v51 = vmul.f32 %v7383_v15, %v11447_v45  ;;  %v7385_v23 = vpop.eup %7384  ;;  %v14035_v15 = vld [vmem:[#allocation103_spill] sm:$0xff] }
 0x6f8   : > { %6454 = vmatmul.msk.f32.gmra.mxu2 %vm2401_vm2, %v3736_v20  ;;  %6498 = vmatmul.msk.f32.gmra.mxu0 %vm2401_vm2, %v3780_v48  ;;  %v14026_v20 = vld [vmem:[#allocation295_spill] sm:$0xff]  ;;  %v7387_v45 = vpop.eup %7386 }
 0x6f9   : > { %v11755_v60 = vpop.permute.xlu2 %6911  ;;  %v3758_v4 = vmul.f32 %v7381_v43, %v14026_v20  ;;  %v14034_v43 = vld [vmem:[#allocation97_spill] sm:$0xff]  ;;  %v14038_v20 = vld [vmem:[#allocation324_spill] sm:$0xff] }
 0x6fa   : > { %v6913_v57 = vunpack.i.l.bf16 %v11755_v60  ;;  %6961 = vrot.lane.b32.xlu0 %v6960_v56, %s7746_s11  ;;  %v6914_v40 = vunpack.i.h.bf16 %v11755_v60  ;;  %v6985_v44 = vpack.i.bf16 %v14035_v15, %v14034_v43  ;;  %v14048_v43 = vld [vmem:[#allocation184_spill] sm:$0xff] }
 0x6fc   : > { %v11762_v2 = vpop.f32.mrf.mxu0  ;;  %5023 = vmatpush.msrb.mxu1 %v6913_v57  ;;  %v6980_v57 = vpack.i.bf16 %v14028_v61, %v14027_v46  ;;  %v14040_v61 = vld [vmem:[#allocation187_spill] sm:$0xff] }
 0x6fd   : > { %v6892_v33 = vpop.permute.xlu1 %6891 }
 0x6fe   : > { %v6894_v37 = vunpack.i.h.bf16 %v6892_v33  ;;  %v6893_v22 = vunpack.i.l.bf16 %v6892_v33  ;;  %6966 = vrot.lane.b32.xlu1 %v6965_v24, %s7746_s11  ;;  %v14031_v33 = vld [vmem:[#allocation70_spill] sm:$0xff] }
 0x6ff   : > { %6475 = vmatmul.msk.f32.gmra.mxu1 %vm2401_vm2, %v3757_v6  ;;  %7388 = vrcp.f32 %v14031_v33  ;;  %v3138_v6 = vmul.f32 1.442695, %v2898_v28 }
 0x700   : > { %6455 = vmatmul.msk.f32.gmra.mxu2 %vm2401_vm2, %v3737_v21  ;;  %6499 = vmatmul.msk.f32.gmra.mxu0 %vm2401_vm2, %v3781_v14  ;;  %v14033_v21 = vld [vmem:[#allocation211_spill] sm:$0xff] }
 0x701   : > { %4489 = vmatpush.msra.mxu3 %v6893_v22  ;;  %4756 = vmatpush.msra.mxu2 %v6894_v37  ;;  %v6927_v53 = vpop.permute.xlu2 %6926  ;;  %v14032_v37 = vld [vmem:[#allocation322_spill] sm:$0xff]  ;;  %v3759_v14 = vmul.f32 %v7385_v23, %v14033_v21  ;;  %v14045_v21 = vld [vmem:[#allocation325_spill] sm:$0xff] }
 0x702   : > { %6971 = vrot.lane.b32.xlu0 %v6970_v39, %s7746_s11  ;;  %7390 = vrcp.f32 %v14032_v37 }
 0x703   : > { %4490 = vmatpush.msra.mxu3 %v6898_v41  ;;  %4757 = vmatpush.msra.mxu2 %v6899_v17  ;;  %7392 = vrcp.f32 %v11741_v36  ;;  %v3783_v17 = vmul.f32 %v7387_v45, %v11453_v47  ;;  %v6928_v47 = vunpack.i.l.bf16 %v6927_v53 }
 0x704   : > { %v11779_v27 = vpop.f32.mrf.mxu0  ;;  %7394 = vpow2.f32 %v3138_v6  ;;  %v14043_v6 = vld [vmem:[#allocation231_spill] sm:$0xff] }
 0x705   : > { %v6907_v10 = vpop.permute.xlu1 %6906  ;;  %7396 = vrcp.f32 %v14038_v20 }
 0x706   : > { %6976 = vrot.lane.b32.xlu1 %v6975_v58, %s7746_s11  ;;  %v6902_v48 = vpop.permute.xlu0 %6901  ;;  %v6909_v38 = vunpack.i.h.bf16 %v6907_v10  ;;  %v6908_v24 = vunpack.i.l.bf16 %v6907_v10  ;;  %v14037_v58 = vld [vmem:[#allocation291_spill] sm:$0xff]  ;;  %v7389_v10 = vpop.eup %7388 }
 0x707   : > { %v6904_v11 = vunpack.i.h.bf16 %v6902_v48  ;;  %v6903_v56 = vunpack.i.l.bf16 %v6902_v48  ;;  %6476 = vmatmul.msk.f32.gmra.mxu1 %vm2401_vm2, %v3758_v4  ;;  %v2901_v36 = vsub.f32 %v14037_v58, %v14036_v13  ;;  %v6929_v4 = vunpack.i.h.bf16 %v6927_v53  ;;  %v14049_v13 = vld [vmem:[#allocation214_spill] sm:$0xff] }
 0x708   : > { %6500 = vmatmul.msk.f32.gmra.mxu0 %vm2401_vm2, %v3782_v51  ;;  %v7391_v48 = vpop.eup %7390 }
 0x709   : > { %4491 = vmatpush.msra.mxu3 %v6903_v56  ;;  %4758 = vmatpush.msra.mxu2 %v6904_v11  ;;  %v6937_v30 = vpop.permute.xlu2 %6936  ;;  %v7393_v51 = vpop.eup %7392  ;;  %v14039_v11 = vld [vmem:[#allocation314_spill] sm:$0xff]  ;;  %v3144_v46 = vmul.f32 1.442695, %v2901_v36  ;;  %v3760_v28 = vmul.f32 %v7391_v48, %v14042_v7 }
 0x70a   : > { %6981 = vrot.lane.b32.xlu0 %v6980_v57, %s7746_s11  ;;  %7398 = vrcp.f32 %v14039_v11  ;;  %v6938_v56 = vunpack.i.l.bf16 %v6937_v30  ;;  %v3738_v57 = vmul.f32 %v7389_v10, %v14040_v61  ;;  %v3784_v23 = vmul.f32 %v7393_v51, %v11458_v55  ;;  %v14051_v10 = vld [vmem:[#allocation287_spill] sm:$0xff]  ;;  %v14052_v11 = vld [vmem:[#allocation166_spill] sm:$0xff] }
 0x70b   : > { %4492 = vmatpush.msra.mxu3 %v6908_v24  ;;  %4759 = vmatpush.msra.mxu2 %v6909_v38  ;;  %7400 = vrcp.f32 %v14041_v62  ;;  %v11815_v38 = vpop.eup %7394  ;;  %v14054_v62 = vld [vmem:[#allocation35_spill] sm:$0xff] }
 0x70c   : > { %v11795_v22 = vpop.f32.mrf.mxu0  ;;  %7402 = vrcp.f32 %v11765_v32  ;;  %v7397_v45 = vpop.eup %7396  ;;  %v14044_v32 = vld [vmem:[#allocation292_spill] sm:$0xff] }
 0x70d   : > { %v6917_v9 = vpop.permute.xlu1 %6916  ;;  %4493 = vmatpush.msra.mxu3 %v6914_v40  ;;  %7404 = vpow2.f32 %v3144_v46  ;;  %v2902_v37 = vsub.f32 %v14044_v32, %v14043_v6  ;;  %v14057_v6 = vld [vmem:[#allocation188_spill] sm:$0xff] }
 0x70e   : > { %v6919_v19 = vunpack.i.h.bf16 %v6917_v9  ;;  %v6918_v35 = vunpack.i.l.bf16 %v6917_v9  ;;  %v6922_v39 = vpop.permute.xlu0 %6921  ;;  %7406 = vrcp.f32 %v14045_v21 }
 0x70f   : > { %v6924_v41 = vunpack.i.h.bf16 %v6922_v39  ;;  %v6923_v60 = vunpack.i.l.bf16 %v6922_v39  ;;  %6477 = vmatmul.msk.f32.gmra.mxu1 %vm2401_vm2, %v3759_v14  ;;  %v6939_v14 = vunpack.i.h.bf16 %v6937_v30  ;;  %v14050_v30 = vld [vmem:[#allocation225_spill] sm:$0xff] }
 0x710   : > { %6501 = vmatmul.msk.f32.gmra.mxu0 %vm2401_vm2, %v3783_v17  ;;  %4760 = vmatpush.msra.mxu2 %v6918_v35  ;;  %v7399_v9 = vpop.eup %7398  ;;  %v14046_v35 = vld [vmem:[#allocation217_spill] sm:$0xff]  ;;  %v2899_v20 = vsub.f32 %v14051_v10, %v14050_v30  ;;  %v14064_v10 = vld [vmem:[#allocation22_spill] sm:$0xff] }
 0x711   : > { %5024 = vmatpush.msrb.mxu1 %v6919_v19  ;;  %4494 = vmatpush.msra.mxu3 %v6923_v60  ;;  %v3506_v19 = vsel %vm2401_vm2, %v11815_v38, 0.0  ;;  %v7401_v55 = vpop.eup %7400  ;;  %v3762_v39 = vmul.f32 %v7397_v45, %v14046_v35  ;;  %v3146_v60 = vmul.f32 1.442695, %v2902_v37  ;;  %v3739_v15 = vmul.f32 %v7399_v9, %v14048_v43  ;;  %v6947_v61 = vpop.permute.xlu2 %6946  ;;  %v14056_v45 = vld [vmem:[#allocation45_spill] sm:$0xff]  ;;  %v14062_v43 = vld [vmem:[#allocation288_spill] sm:$0xff] }
 0x712   : > { %6986 = vrot.lane.b32.xlu0 %v6985_v44, %s7746_s11  ;;  %4761 = vmatpush.msra.mxu2 %v6924_v41  ;;  %v7403_v17 = vpop.eup %7402  ;;  %v14047_v41 = vld [vmem:[#allocation57_spill] sm:$0xff]  ;;  %v3761_v58 = vmul.f32 %v7401_v55, %v14049_v13  ;;  %v6949_v37 = vunpack.i.h.bf16 %v6947_v61 }
 0x713   : > { %5025 = vmatpush.msrb.mxu1 %v6928_v47  ;;  %4495 = vmatpush.msra.mxu3 %v6929_v4  ;;  %7408 = vrcp.f32 %v14047_v41  ;;  %v11833_v36 = vpop.eup %7404  ;;  %v3785_v47 = vmul.f32 %v7403_v17, %v11471_v54  ;;  %v3140_v54 = vmul.f32 1.442695, %v2899_v20  ;;  %v14060_v17 = vld [vmem:[#allocation113_spill] sm:$0xff] }
 0x714   : > { %v7407_v48 = vpop.eup %7406  ;;  %7410 = vpow2.f32 %v3146_v60  ;;  %v14061_v60 = vld [vmem:[#allocation162_spill] sm:$0xff] }
 0x715   : > { %v11812_v53 = vpop.f32.mrf.mxu0  ;;  %4496 = vmatpush.msra.mxu3 %v6938_v56  ;;  %v14053_v56 = vld [vmem:[#allocation293_spill] sm:$0xff]  ;;  %7412 = vrcp.f32 %v14054_v62 }
 0x716   : > { %v6932_v24 = vpop.permute.xlu0 %6931  ;;  %6456 = vmatmul.msk.f32.vlgmr.msra.gmra.mxu3 %vm2401_vm2, %v3738_v57  ;;  %v2903_v46 = vsub.f32 %v14053_v56, %v14052_v11  ;;  %7414 = vrcp.f32 %v14056_v45 }
 0x717   : > { %v6934_v33 = vunpack.i.h.bf16 %v6932_v24  ;;  %v6933_v40 = vunpack.i.l.bf16 %v6932_v24  ;;  %6478 = vmatmul.msk.f32.gmra.mxu1 %vm2401_vm2, %v3760_v28  ;;  %v3515_v28 = vsel %vm2401_vm2, %v11833_v36, 0.0  ;;  %v14055_v24 = vld [vmem:[#allocation212_spill] sm:$0xff]  ;;  %7416 = vpow2.f32 %v3140_v54 }
 0x718   : > { %6502 = vmatmul.msk.f32.gmra.mxu0 %vm2401_vm2, %v3784_v23  ;;  %v3763_v23 = vmul.f32 %v7407_v48, %v14055_v24  ;;  %v14068_v54 = vld [vmem:[#allocation32_spill] sm:$0xff] }
 0x719   : > { %4762 = vmatpush.msra.mxu2 %v6933_v40  ;;  %5026 = vmatpush.msrb.mxu1 %v6934_v33  ;;  %v7409_v57 = vpop.eup %7408  ;;  %v6948_v33 = vunpack.i.l.bf16 %v6947_v61  ;;  %v3148_v40 = vmul.f32 1.442695, %v2903_v46 }
 0x71a   : > { %3507 = vadd.xlane.f32.xlu2 %v3506_v19  ;;  %v3740_v32 = vmul.f32 %v7409_v57, %v14057_v6  ;;  %v11852_v21 = vpop.eup %7410  ;;  %v14059_v19 = vld [vmem:[#allocation296_spill] sm:$0xff]  ;;  %v14066_v57 = vld [vmem:[#allocation49_spill] sm:$0xff] }
 0x71b   : > { %4763 = vmatpush.msra.mxu2 %v6939_v14  ;;  %v14058_v14 = vld [vmem:[#allocation170_spill] sm:$0xff]  ;;  %v7413_v35 = vpop.eup %7412  ;;  %7418 = vpow2.f32 %v3148_v40  ;;  %v3518_v41 = vsel %vm2401_vm2, %v11852_v21, 0.0 }
 0x71c   : > { %6480 = vmatmul.msk.f32.vlgmr.msra.gmra.mxu2 %vm2401_vm2, %v3762_v39  ;;  %v2904_v55 = vsub.f32 %v14059_v19, %v14058_v14  ;;  %v7415_v39 = vpop.eup %7414  ;;  %7420 = vrcp.f32 %v14060_v17 }
 0x71d   : > { %v11830_v44 = vpop.f32.mrf.mxu0  ;;  %7422 = vrcp.f32 %v14064_v10  ;;  %v11864_v20 = vpop.eup %7416 }
 0x71e   : > { %v6942_v4 = vpop.permute.xlu0 %6941  ;;  %6457 = vmatmul.msk.f32.gmra.mxu3 %vm2401_vm2, %v3739_v15  ;;  %v2900_v15 = vsub.f32 %v14062_v43, %v14061_v60  ;;  %v3150_v13 = vmul.f32 1.442695, %v2904_v55  ;;  %v3509_v46 = vsel %vm2401_vm2, %v11864_v20, 0.0  ;;  %v14071_v55 = vld [vmem:[#allocation218_spill] sm:$0xff] }
 0x71f   : > { %v6943_v51 = vunpack.i.l.bf16 %v6942_v4  ;;  %6479 = vmatmul.msk.f32.gmra.mxu1 %vm2401_vm2, %v3761_v58  ;;  %v6944_v7 = vunpack.i.h.bf16 %v6942_v4  ;;  %v14063_v58 = vld [vmem:[#allocation220_spill] sm:$0xff] }
 0x720   : > { %6503 = vmatmul.msk.f32.gmra.mxu0 %vm2401_vm2, %v3785_v47  ;;  %v3764_v30 = vmul.f32 %v7413_v35, %v14063_v58  ;;  %v14065_v4 = vld [vmem:[#allocation272_spill] sm:$0xff]  ;;  %v3142_v11 = vmul.f32 1.442695, %v2900_v15  ;;  %7424 = vpow2.f32 %v3150_v13  ;;  %v11900_v13 = vpop.f32.mrf.mxu1 }
 0x721   : > { %5027 = vmatpush.msrb.mxu1 %v6943_v51  ;;  %v3741_v47 = vmul.f32 %v7415_v39, %v14065_v4  ;;  %v11870_v51 = vpop.eup %7418  ;;  %7426 = vrcp.f32 %v14066_v57  ;;  %v14072_v39 = vld [vmem:[#allocation16_spill] sm:$0xff]  ;;  %v14074_v4 = vld [vmem:[#allocation29_spill] sm:$0xff] }
 0x722   : > { %3516 = vadd.xlane.f32.xlu2 %v3515_v28  ;;  %v7421_v56 = vpop.eup %7420  ;;  %v3521_v62 = vsel %vm2401_vm2, %v11870_v51, 0.0  ;;  %7428 = vpow2.f32 %v3142_v11 }
 0x723   : > { %5028 = vmatpush.msrb.mxu1 %v6944_v7  ;;  %v7423_v61 = vpop.eup %7422  ;;  %v14067_v7 = vld [vmem:[#allocation224_spill] sm:$0xff]  ;;  %7430 = vrcp.f32 %v14068_v54 }
 0x724   : > { %6481 = vmatmul.msk.f32.gmra.mxu2 %vm2401_vm2, %v3763_v23  ;;  %v3765_v28 = vmul.f32 %v7421_v56, %v14067_v7  ;;  %v14069_v23 = vld [vmem:[#allocation269_spill] sm:$0xff]  ;;  %v14076_v56 = vld [vmem:[#allocation28_spill] sm:$0xff] }
 0x725   : > { %v11850_v9 = vpop.f32.mrf.mxu0  ;;  %5029 = vmatpush.msrb.mxu1 %v6948_v33  ;;  %v3742_v45 = vmul.f32 %v7423_v61, %v14069_v23  ;;  %v14079_v23 = vld [vmem:[#allocation229_spill] sm:$0xff] }
 0x726   : > { %6458 = vmatmul.msk.f32.gmra.mxu3 %vm2401_vm2, %v3740_v32  ;;  %v11880_v24 = vpop.eup %7424 }
 0x727   : > { %5030 = vmatpush.msrb.mxu1 %v6949_v37  ;;  %v7427_v40 = vpop.eup %7426  ;;  %v3524_v6 = vsel %vm2401_vm2, %v11880_v24, 0.0  ;;  %v14070_v37 = vld [vmem:[#allocation117_spill] sm:$0xff] }
 0x728   : > { %v11889_v32 = vpop.eup %7428  ;;  %7432 = vrcp.f32 %v14070_v37  ;;  %v3766_v35 = vmul.f32 %v7427_v40, %v14071_v55  ;;  %v11913_v7 = vpop.f32.mrf.mxu1  ;;  %v14080_v37 = vld [vmem:[#allocation191_spill] sm:$0xff] }
 0x729   : > { %v7431_v19 = vpop.eup %7430  ;;  %v3512_v17 = vsel %vm2401_vm2, %v11889_v32, 0.0 }
 0x72a   : > { %3519 = vadd.xlane.f32.xlu2 %v3518_v41  ;;  %v14073_v41 = vld [vmem:[#allocation274_spill] sm:$0xff] }
 0x72b   : > { %v3743_v60 = vmul.f32 %v7431_v19, %v14073_v41 }
 0x72c   : > { %6482 = vmatmul.msk.f32.gmra.mxu2 %vm2401_vm2, %v3764_v30 }
 0x72d   : > { %v11868_v48 = vpop.f32.mrf.mxu0 }
 0x72e   : > { %6459 = vmatmul.msk.f32.gmra.mxu3 %vm2401_vm2, %v3741_v47  ;;  %v7433_v15 = vpop.eup %7432  ;;  %v14075_v47 = vld [vmem:[#allocation226_spill] sm:$0xff] }
 0x72f   : > { %v3767_v11 = vmul.f32 %v7433_v15, %v14075_v47 }
 0x730   : > { %3510 = vadd.xlane.f32.xlu1 %v3509_v46  ;;  %v14077_v46 = vld [vmem:[#allocation275_spill] sm:$0xff] }
 0x732   : > { %3522 = vadd.xlane.f32.xlu2 %v3521_v62 }
 0x734   : > { %6483 = vmatmul.msk.f32.gmra.mxu2 %vm2401_vm2, %v3765_v28  ;;  %v14078_v28 = vld [vmem:[#allocation91_spill] sm:$0xff] }
 0x735   : > { %v11884_v33 = vpop.f32.mrf.mxu0 }
 0x736   : > { %6460 = vmatmul.msk.f32.gmra.mxu3 %vm2401_vm2, %v3742_v45 }
 0x738   : > { %v3484_v14 = vpop.xlane.xlu1 %3483  ;;  %3525 = vadd.xlane.f32.xlu1 %v3524_v6 }
 0x739   : > { %7434 = vrcp.f32 %v3484_v14 }
 0x73a   : > { %7436 = vrcp.f32 %v14072_v39  ;;  %v11927_v39 = vpop.f32.mrf.mxu1 }
 0x73b   : > { %7438 = vrcp.f32 %v14074_v4 }
 0x73c   : > { %3513 = vadd.xlane.f32.xlu0 %v3512_v17  ;;  %6484 = vmatmul.msk.f32.gmra.mxu2 %vm2401_vm2, %v3766_v35  ;;  %7440 = vrcp.f32 %v14076_v56  ;;  %v14081_v17 = vld [vmem:[#allocation223_spill] sm:$0xff] }
 0x73d   : > { %v11898_v43 = vpop.f32.mrf.mxu0  ;;  %7442 = vrcp.f32 %v14078_v28 }
 0x73e   : > { %6461 = vmatmul.msk.f32.gmra.mxu3 %vm2401_vm2, %v3743_v60 }
 0x73f   : > { %v7435_v58 = vpop.eup %7434 }
 0x740   : > { %v3786_v30 = vmul.f32 %v7435_v58, %v11603_v16  ;;  %v7437_v10 = vpop.eup %7436  ;;  %v3493_v40 = vpop.xlane.xlu1 %3492 }
 0x741   : > { %v3744_v61 = vmul.f32 %v7437_v10, %v14077_v46  ;;  %v7439_v62 = vpop.eup %7438  ;;  %v14082_v46 = vld [vmem:[#allocation171_spill] sm:$0xff] }
 0x742   : > { %6504 = vmatmul.msk.f32.vlgmr.msrb.gmra.mxu1 %vm2401_vm2, %v3786_v30  ;;  %v7441_v16 = vpop.eup %7440  ;;  %v3768_v45 = vmul.f32 %v7439_v62, %v14079_v23  ;;  %v11938_v47 = vpop.f32.mrf.mxu1 }
 0x743   : > { %v3745_v14 = vmul.f32 %v7441_v16, %v14080_v37  ;;  %v7443_v55 = vpop.eup %7442 }
 0x744   : > { %6485 = vmatmul.msk.f32.gmra.mxu2 %vm2401_vm2, %v3767_v11  ;;  %v3769_v41 = vmul.f32 %v7443_v55, %v14081_v17  ;;  %v14085_v55 = vld [vmem:[#allocation142_spill] sm:$0xff] }
 0x745   : > { %v11910_v57 = vpop.f32.mrf.mxu0 }
 0x746   : > { %6462 = vmatmul.msk.f32.gmra.mxu3 %vm2401_vm2, %v3744_v61  ;;  %v14083_v61 = vld [vmem:[#allocation297_spill] sm:$0xff] }
 0x747   : > { %v2905_v62 = vsub.f32 %v14083_v61, %v14082_v46 }
 0x748   : > { %v3496_v4 = vpop.xlane.xlu1 %3495 }
 0x749   : > { %v3487_v54 = vpop.xlane.xlu0 %3486 }
 0x74a   : > { %5266 = vrot.lane.b32.xlu2 %v11705_v42, %s7747_s28  ;;  %7444 = vrcp.f32 %v3487_v54 }
 0x74c   : > { %v3490_v6 = vpop.xlane.xlu2 %3489  ;;  %6486 = vmatmul.msk.f32.gmra.mxu2 %vm2401_vm2, %v3768_v45  ;;  %v11946_v45 = vpop.f32.mrf.mxu1 }
 0x74d   : > { %v11921_v19 = vpop.f32.mrf.mxu0  ;;  %7446 = vrcp.f32 %v3490_v6 }
 0x74e   : > { %6463 = vmatmul.msk.f32.gmra.mxu3 %vm2401_vm2, %v3745_v14  ;;  %7448 = vrcp.f32 %v3493_v40 }
 0x74f   : > { %7450 = vrcp.f32 %v3496_v4 }
 0x750   : > { %v7445_v35 = vpop.eup %7444  ;;  %v3499_v16 = vpop.xlane.xlu1 %3498 }
 0x751   : > { %5394 = vrot.lane.b32.xlu1 %v11850_v9, %s7748_s9  ;;  %v3787_v42 = vmul.f32 %v7445_v35, %v11645_v31  ;;  %v3502_v9 = vpop.xlane.xlu0 %3501 }
 0x753   : > { %6505 = vmatmul.msk.f32.gmra.mxu1 %vm2401_vm2, %v3787_v42  ;;  %v7447_v10 = vpop.eup %7446 }
 0x754   : > { %v6952_v60 = vpop.permute.xlu2 %6951  ;;  %6487 = vmatmul.msk.f32.gmra.mxu2 %vm2401_vm2, %v3769_v41  ;;  %v3788_v31 = vmul.f32 %v7447_v10, %v11666_v25  ;;  %v7449_v56 = vpop.eup %7448 }
 0x755   : > { %v6954_v15 = vunpack.i.h.bf16 %v6952_v60  ;;  %v6953_v58 = vunpack.i.l.bf16 %v6952_v60  ;;  %v11932_v30 = vpop.f32.mrf.mxu0  ;;  %v3789_v28 = vmul.f32 %v7449_v56, %v11623_v18  ;;  %v7451_v23 = vpop.eup %7450  ;;  %v14084_v18 = vld [vmem:[#allocation136_spill] sm:$0xff] }
 0x756   : > { %v3790_v14 = vmul.f32 %v7451_v23, %v11649_v63  ;;  %v6990_v35 = vpack.i.bf16 %v14085_v55, %v14084_v18  ;;  %v11957_v63 = vpop.f32.mrf.mxu1 }
 0x757   : > { %4845 = vmatpush.msrb.mxu3 %v6953_v58  ;;  %5112 = vmatpush.msrb.mxu2 %v6954_v15 }
 0x759   : > { %5268 = vrot.lane.b32.xlu1 %v11723_v59, %s7747_s28  ;;  %v3152_v59 = vmul.f32 1.442695, %v2905_v62  ;;  %v3505_v54 = vpop.xlane.xlu0 %3504 }
 0x75b   : > { %6506 = vmatmul.msk.f32.gmra.mxu1 %vm2401_vm2, %v3788_v31  ;;  %7452 = vpow2.f32 %v3152_v59 }
 0x75c   : > { %7454 = vrcp.f32 %v3499_v16 }
 0x75d   : > { %v11940_v11 = vpop.f32.mrf.mxu0  ;;  %7456 = vrcp.f32 %v3502_v9 }
 0x75e   : > { %7458 = vrcp.f32 %v3505_v54  ;;  %v11965_v23 = vpop.f32.mrf.mxu1 }
 0x761   : > { %v11953_v15 = vpop.eup %7452 }
 0x762   : > { %v7455_v58 = vpop.eup %7454  ;;  %v3527_v56 = vsel %vm2401_vm2, %v11953_v15, 0.0 }
 0x763   : > { %6507 = vmatmul.msk.f32.gmra.mxu1 %vm2401_vm2, %v3789_v28  ;;  %v3791_v46 = vmul.f32 %v7455_v58, %v11671_v0  ;;  %v7457_v28 = vpop.eup %7456  ;;  %v14092_v58 = vld [vmem:[#allocation298_spill] sm:$0xff] }
 0x764   : > { %v3792_v0 = vmul.f32 %v7457_v28, %v11675_v49  ;;  %v7459_v54 = vpop.eup %7458 }
 0x765   : > { %v4943_v25 = vpop.f32.mrf.mxu0 }
 0x766   : > { %5522 = vrot.lane.b32.xlu0 %v4943_v25, %s7749_s13 }
 0x768   : > { %v6957_v40 = vpop.permute.xlu1 %6956 }
 0x769   : > { %v6959_v6 = vunpack.i.h.bf16 %v6957_v40  ;;  %v6958_v37 = vunpack.i.l.bf16 %v6957_v40  ;;  %v14086_v40 = vld [vmem:[#allocation143_spill] sm:$0xff] }
 0x76b   : > { %4846 = vmatpush.msrb.mxu3 %v6958_v37  ;;  %6508 = vmatmul.msk.f32.gmra.mxu1 %vm2401_vm2, %v3790_v14 }
 0x76c   : > { %5113 = vmatpush.msrb.mxu2 %v6959_v6  ;;  %v6962_v42 = vpop.permute.xlu0 %6961  ;;  %v14087_v6 = vld [vmem:[#allocation133_spill] sm:$0xff] }
 0x76d   : > { %v4946_v17 = vpop.f32.mrf.mxu0  ;;  %v6964_v41 = vunpack.i.h.bf16 %v6962_v42  ;;  %v6963_v60 = vunpack.i.l.bf16 %v6962_v42  ;;  %v6995_v37 = vpack.i.bf16 %v14087_v6, %v14086_v40  ;;  %v14089_v42 = vld [vmem:[#allocation140_spill] sm:$0xff]  ;;  %v11991_v40 = vpop.f32.mrf.mxu2 }
 0x76e   : > { %6991 = vrot.lane.b32.xlu0 %v6990_v35, %s7746_s11  ;;  %5524 = vrot.lane.b32.xlu1 %v4946_v17, %s7749_s13  ;;  %v3793_v35 = vmul.f32 %v7459_v54, %v11697_v5  ;;  %v14090_v17 = vld [vmem:[#allocation141_spill] sm:$0xff] }
 0x76f   : > { %4847 = vmatpush.msrb.mxu3 %v6963_v60  ;;  %5114 = vmatpush.msrb.mxu2 %v6964_v41  ;;  %v7000_v41 = vpack.i.bf16 %v14090_v17, %v14089_v42  ;;  %v14091_v60 = vld [vmem:[#allocation169_spill] sm:$0xff]  ;;  %v14100_v17 = vld [vmem:[#allocation138_spill] sm:$0xff] }
 0x770   : > { %v6967_v10 = vpop.permute.xlu1 %6966 }
 0x771   : > { %v6969_v4 = vunpack.i.h.bf16 %v6967_v10  ;;  %v6968_v31 = vunpack.i.l.bf16 %v6967_v10  ;;  %v2906_v10 = vsub.f32 %v14092_v58, %v14091_v60  ;;  %v14101_v60 = vld [vmem:[#allocation17_spill] sm:$0xff]  ;;  %v14102_v58 = vld [vmem:[#allocation236_spill] sm:$0xff] }
 0x773   : > { %3528 = vadd.xlane.f32.xlu2 %v3527_v56  ;;  %4848 = vmatpush.msrb.mxu3 %v6968_v31  ;;  %v14093_v56 = vld [vmem:[#allocation76_spill] sm:$0xff]  ;;  %v3154_v5 = vmul.f32 1.442695, %v2906_v10 }
 0x774   : > { %6509 = vmatmul.msk.f32.gmra.mxu1 %vm2401_vm2, %v3791_v46  ;;  %5115 = vmatpush.msrb.mxu2 %v6969_v4  ;;  %v6972_v61 = vpop.permute.xlu0 %6971  ;;  %v11978_v4 = vpop.f32.mrf.mxu1 }
 0x775   : > { %v6974_v62 = vunpack.i.h.bf16 %v6972_v61  ;;  %v6973_v16 = vunpack.i.l.bf16 %v6972_v61  ;;  %v4949_v6 = vpop.f32.mrf.mxu0 }
 0x776   : > { %5396 = vrot.lane.b32.xlu0 %v11868_v48, %s7748_s9  ;;  %v14088_v48 = vld [vmem:[#allocation25_spill] sm:$0xff] }
 0x777   : > { %4849 = vmatpush.msrb.mxu3 %v6973_v16  ;;  %5116 = vmatpush.msrb.mxu2 %v6974_v62  ;;  %7460 = vrcp.f32 %v14088_v48  ;;  %v14094_v62 = vld [vmem:[#allocation232_spill] sm:$0xff] }
 0x778   : > { %v6977_v9 = vpop.permute.xlu1 %6976  ;;  %7462 = vrcp.f32 %v14093_v56  ;;  %v14097_v48 = vld [vmem:[#allocation80_spill] sm:$0xff] }
 0x779   : > { %v6979_v59 = vunpack.i.h.bf16 %v6977_v9  ;;  %v6978_v25 = vunpack.i.l.bf16 %v6977_v9  ;;  %7464 = vpow2.f32 %v3154_v5  ;;  %v14095_v9 = vld [vmem:[#allocation20_spill] sm:$0xff] }
 0x77a   : > { %7466 = vrcp.f32 %v14095_v9 }
 0x77b   : > { %4850 = vmatpush.msrb.mxu3 %v6978_v25  ;;  %5117 = vmatpush.msrb.mxu2 %v6979_v59  ;;  %v14096_v25 = vld [vmem:[#allocation235_spill] sm:$0xff] }
 0x77c   : > { %6510 = vmatmul.msk.f32.gmra.mxu1 %vm2401_vm2, %v3792_v0  ;;  %v6982_v14 = vpop.permute.xlu0 %6981 }
 0x77d   : > { %v6984_v18 = vunpack.i.h.bf16 %v6982_v14  ;;  %v6983_v55 = vunpack.i.l.bf16 %v6982_v14  ;;  %v7461_v49 = vpop.eup %7460 }
 0x77e   : > { %6996 = vrot.lane.b32.xlu0 %v6995_v37, %s7746_s11  ;;  %v3770_v16 = vmul.f32 %v7461_v49, %v14094_v62  ;;  %v7463_v28 = vpop.eup %7462  ;;  %v4952_v49 = vpop.f32.mrf.mxu0  ;;  %v14103_v62 = vld [vmem:[#allocation62_spill] sm:$0xff] }
 0x77f   : > { %4851 = vmatpush.msrb.mxu3 %v6983_v55  ;;  %5118 = vmatpush.msrb.mxu2 %v6984_v18  ;;  %v3771_v0 = vmul.f32 %v7463_v28, %v14096_v25  ;;  %v11994_v37 = vpop.eup %7464  ;;  %v12000_v55 = vpop.f32.mrf.mxu1 }
 0x780   : > { %v7467_v14 = vpop.eup %7466 }
 0x784   : > { %6511 = vmatmul.msk.f32.gmra.mxu1 %vm2401_vm2, %v3793_v35  ;;  %v6987_v31 = vpop.permute.xlu0 %6986  ;;  %v3530_v35 = vsel %vm2401_vm2, %v11994_v37, 0.0 }
 0x785   : > { %v6989_v46 = vunpack.i.h.bf16 %v6987_v31  ;;  %v6988_v61 = vunpack.i.l.bf16 %v6987_v31 }
 0x786   : > { %7001 = vrot.lane.b32.xlu0 %v7000_v41, %s7746_s11 }
 0x787   : > { %4852 = vmatpush.msrb.mxu3 %v6988_v61  ;;  %5119 = vmatpush.msrb.mxu2 %v6989_v46  ;;  %v12016_v31 = vpop.f32.mrf.mxu1 }
 0x788   : > { %6488 = vmatmul.msk.f32.vlgmr.msrb.gmra.mxu3 %vm2401_vm2, %v3770_v16  ;;  %v14104_v16 = vld [vmem:[#allocation241_spill] sm:$0xff] }
 0x78b   : > { %5398 = vrot.lane.b32.xlu2 %v11884_v33, %s7748_s9 }
 0x78d   : > { %v3508_v59 = vpop.xlane.xlu2 %3507 }
 0x78e   : > { %7468 = vrcp.f32 %v3508_v59  ;;  %5270 = vrot.lane.b32.xlu0 %v11743_v12, %s7747_s28  ;;  %v14098_v12 = vld [vmem:[#allocation230_spill] sm:$0xff] }
 0x78f   : > { %7470 = vrcp.f32 %v14097_v48  ;;  %v3772_v54 = vmul.f32 %v7467_v14, %v14098_v12  ;;  %v12024_v9 = vpop.f32.mrf.mxu1  ;;  %v5718_v12 = vld [vmem:[#allocation8 + $0x10] sm:$0xff] }
 0x790   : > { %6489 = vmatmul.msk.f32.gmra.mxu3 %vm2401_vm2, %v3771_v0  ;;  %7472 = vrcp.f32 %v14101_v60 }
 0x793   : > { %5272 = vrot.lane.b32.xlu2 %v11762_v2, %s7747_s28  ;;  %v12008_v2 = vpop.f32.mrf.mxu2 }
 0x794   : > { %v7469_v33 = vpop.eup %7468 }
 0x795   : > { %v3794_v18 = vmul.f32 %v7469_v33, %v11815_v38  ;;  %v7471_v42 = vpop.eup %7470  ;;  %v14099_v38 = vld [vmem:[#allocation130_spill] sm:$0xff]  ;;  %v3517_v33 = vpop.xlane.xlu2 %3516 }
 0x796   : > { %5526 = vrot.lane.b32.xlu0 %v4949_v6, %s7749_s13  ;;  %v7005_v41 = vpack.i.bf16 %v14100_v17, %v14099_v38  ;;  %v3773_v10 = vmul.f32 %v7471_v42, %v14102_v58  ;;  %v7473_v56 = vpop.eup %7472  ;;  %v14105_v6 = vld [vmem:[#allocation240_spill] sm:$0xff]  ;;  %v14108_v38 = vld [vmem:[#allocation173_spill] sm:$0xff]  ;;  %v14109_v17 = vld [vmem:[#allocation299_spill] sm:$0xff] }
 0x797   : > { %6512 = vmatmul.msk.f32.vlgmr.msrb.gmra.mxu2 %vm2401_vm2, %v3794_v18  ;;  %v3774_v5 = vmul.f32 %v7473_v56, %v14104_v16  ;;  %v5719_v18 = vld [vmem:[#allocation8 + $0x18] sm:$0xff]  ;;  %v12037_v42 = vpop.f32.mrf.mxu1  ;;  %v5716_v16 = vld [vmem:[#allocation8] sm:$0xff] }
 0x798   : > { %3531 = vadd.xlane.f32.xlu1 %v3530_v35  ;;  %6490 = vmatmul.msk.f32.gmra.mxu3 %vm2401_vm2, %v3772_v54  ;;  %v14106_v54 = vld [vmem:[#allocation242_spill] sm:$0xff] }
 0x799   : > { %5832 = vmatpush.msra.mxu0 %v5719_v18 }
 0x79b   : > { %5528 = vrot.lane.b32.xlu2 %v4952_v49, %s7749_s13  ;;  %v12019_v61 = vpop.f32.mrf.mxu2  ;;  %v5717_v49 = vld [vmem:[#allocation8 + $0x8] sm:$0xff]  ;;  %5833 = vmatpush.msra.mxu0 %v5718_v12 }
 0x79d   : > { %5834 = vmatpush.msra.mxu0 %v5717_v49 }
 0x79e   : > { %7006 = vrot.lane.b32.xlu0 %v7005_v41, %s7746_s11  ;;  %v2907_v41 = vsub.f32 %v14109_v17, %v14108_v38  ;;  %s7664_s11 = scalar_lea.hbm %s12679_s6, 512 }
 0x79f   : > { %5835 = vmatpush.msra.mxu0 %v5716_v16  ;;  %p7666_p12 = scmp.lt.s32.totalorder %s7664_s11, %s7660_s7 }
 0x7a0   : > { %6491 = vmatmul.msk.f32.gmra.mxu3 %vm2401_vm2, %v3773_v10  ;;  %v12042_v10 = vpop.f32.mrf.mxu3 }
 0x7a1   : > { %p7667_p13 = por %p7666_p12, %p7665_p10 }
 0x7a3   : > { %v3511_v46 = vpop.xlane.xlu1 %3510  ;;  %v12029_v0 = vpop.f32.mrf.mxu2  ;;  %p7668_p0 = pnand %p7667_p13, %p7663_p8 }
 0x7a4   : > { %7474 = vrcp.f32 %v3511_v46 }
 0x7a5   : > { %7476 = vrcp.f32 %v14103_v62 }
 0x7a6   : > { %7478 = vrcp.f32 %v11324_v50 }
 0x7a8   : > { %6492 = vmatmul.msk.f32.gmra.mxu3 %vm2401_vm2, %v3774_v5  ;;  %v3156_v5 = vmul.f32 1.442695, %v2907_v41 }
 0x7aa   : > { %v7475_v28 = vpop.eup %7474 }
 0x7ab   : > { %v7477_v59 = vpop.eup %7476  ;;  %v3795_v25 = vmul.f32 %v7475_v28, %v11864_v20  ;;  %v14107_v20 = vld [vmem:[#allocation300_spill] sm:$0xff]  ;;  %v12046_v62 = vpop.f32.mrf.mxu2 }
 0x7ac   : > { %v3775_v14 = vmul.f32 %v7477_v59, %v14105_v6  ;;  %v2908_v35 = vsub.f32 %v14107_v20, %v14106_v54  ;;  %v7479_v50 = vpop.eup %7478  ;;  %v3520_v28 = vpop.xlane.xlu2 %3519 }
 0x7ad   : > { %6513 = vmatmul.msk.f32.gmra.mxu2 %vm2401_vm2, %v3795_v25  ;;  %v12052_v25 = vpop.f32.mrf.mxu1 }
 0x7ae   : > { %v3158_v58 = vmul.f32 1.442695, %v2908_v35 }
 0x7af   : > { %v3514_v48 = vpop.xlane.xlu0 %3513 }
 0x7b0   : > { %7480 = vrcp.f32 %v3514_v48  ;;  %6493 = vmatmul.msk.f32.gmra.mxu3 %vm2401_vm2, %v3775_v14  ;;  %v12058_v48 = vpop.f32.mrf.mxu3 }
 0x7b1   : > { %5400 = vrot.lane.b32.xlu1 %v11898_v43, %s7748_s9  ;;  %7482 = vrcp.f32 %v11326_v3  ;;  %v14110_v43 = vld [vmem:[#allocation246_spill] sm:$0xff] }
 0x7b2   : > { %7484 = vrcp.f32 %v3517_v33  ;;  %v3776_v56 = vmul.f32 %v7479_v50, %v14110_v43 }
 0x7b3   : > { %7486 = vpow2.f32 %v3158_v58 }
 0x7b4   : > { %7488 = vpow2.f32 %v3156_v5  ;;  %v3523_v12 = vpop.xlane.xlu2 %3522 }
 0x7b5   : > { %7490 = vrcp.f32 %v3520_v28  ;;  %v12073_v50 = vpop.f32.mrf.mxu1 }
 0x7b6   : > { %v7481_v60 = vpop.eup %7480  ;;  %7492 = vrcp.f32 %v3523_v12 }
 0x7b7   : > { %v3796_v46 = vmul.f32 %v7481_v60, %v11889_v32  ;;  %v7483_v3 = vpop.eup %7482  ;;  %v14111_v32 = vld [vmem:[#allocation247_spill] sm:$0xff] }
 0x7b8   : > { %6494 = vmatmul.msk.f32.gmra.mxu3 %vm2401_vm2, %v3776_v56  ;;  %v7485_v59 = vpop.eup %7484  ;;  %v3777_v6 = vmul.f32 %v7483_v3, %v14111_v32  ;;  %v4955_v56 = vpop.f32.mrf.mxu0  ;;  %v14114_v3 = vld [vmem:[#allocation172_spill] sm:$0xff] }
 0x7b9   : > { %5274 = vrot.lane.b32.xlu1 %v11779_v27, %s7747_s28  ;;  %6514 = vmatmul.msk.f32.gmra.mxu2 %vm2401_vm2, %v3796_v46  ;;  %v3797_v14 = vmul.f32 %v7485_v59, %v11833_v36  ;;  %v12056_v33 = vpop.eup %7486  ;;  %v12064_v27 = vpop.f32.mrf.mxu2  ;;  %v14115_v59 = vld [vmem:[#allocation301_spill] sm:$0xff] }
 0x7ba   : > { %v12066_v18 = vpop.eup %7488  ;;  %v3536_v54 = vsel %vm2401_vm2, %v12056_v33, 0.0  ;;  %v12087_v5 = vpop.f32.mrf.mxu3  ;;  %v2909_v32 = vsub.f32 %v14115_v59, %v14114_v3 }
 0x7bb   : > { %v7491_v36 = vpop.eup %7490  ;;  %v3533_v20 = vsel %vm2401_vm2, %v12066_v18, 0.0  ;;  %14113 = vst [vmem:[#allocation56_spill] sm:$0xff] %v12087_v5 }
 0x7bc   : > { %v3798_v35 = vmul.f32 %v7491_v36, %v11852_v21  ;;  %v7493_v49 = vpop.eup %7492  ;;  %v5267_v58 = vpop.permute.xlu2 %5266 }
 0x7bd   : > { %v3799_v17 = vmul.f32 %v7493_v49, %v11870_v51  ;;  %v12080_v41 = vpop.f32.mrf.mxu1  ;;  %v5618_v46 = vsel %vm832_vm1, %v11557_v1, %v5267_v58  ;;  %v3160_v1 = vmul.f32 1.442695, %v2909_v32 }
 0x7c0   : > { %6495 = vmatmul.msk.f32.gmra.mxu3 %vm2401_vm2, %v3777_v6 }
 0x7c1   : > { %5402 = vrot.lane.b32.xlu1 %v11910_v57, %s7748_s9  ;;  %6515 = vmatmul.msk.f32.gmra.mxu2 %vm2401_vm2, %v3797_v14  ;;  %v3526_v57 = vpop.xlane.xlu1 %3525  ;;  %v12076_v38 = vpop.f32.mrf.mxu2 }
 0x7c2   : > { %7494 = vrcp.f32 %v3526_v57 }
 0x7c3   : > { %7496 = vpow2.f32 %v3160_v1 }
 0x7c4   : > { %3537 = vadd.xlane.f32.xlu2 %v3536_v54  ;;  %v4958_v54 = vpop.f32.mrf.mxu0 }
 0x7c5   : > { %v12095_v14 = vpop.f32.mrf.mxu1 }
 0x7c8   : > { %3534 = vadd.xlane.f32.xlu0 %v3533_v20  ;;  %v7495_v60 = vpop.eup %7494 }
 0x7c9   : > { %6516 = vmatmul.msk.f32.gmra.mxu2 %vm2401_vm2, %v3798_v35  ;;  %v5395_v21 = vpop.permute.xlu1 %5394  ;;  %v12082_v43 = vpop.f32.mrf.mxu2  ;;  %v3800_v16 = vmul.f32 %v7495_v60, %v11880_v24 }
 0x7ca   : > { %14112 = vst [vmem:[#allocation86_spill] sm:$0xff] %v12082_v43  ;;  %v5651_v51 = vsel %vm5650_vm3, %v5618_v46, %v5395_v21  ;;  %v12102_v35 = vpop.f32.mrf.mxu3 }
 0x7cb   : > { %14116 = vst [vmem:[#allocation79_spill] sm:$0xff] %v12102_v35 }
 0x7d1   : > { %6517 = vmatmul.msk.f32.gmra.mxu2 %vm2401_vm2, %v3799_v17  ;;  %v12100_v24 = vpop.f32.mrf.mxu2  ;;  %v5269_v36 = vpop.permute.xlu1 %5268 }
 0x7d2   : > { %v12110_v17 = vpop.eup %7496  ;;  %v5619_v60 = vsel %vm832_vm1, %v11579_v34, %v5269_v36 }
 0x7d8   : > { %v5523_v28 = vpop.permute.xlu0 %5522 }
 0x7d9   : > { %v5684_v6 = vsel %vm5683_vm4, %v5651_v51, %v5523_v28  ;;  %6518 = vmatmul.msk.f32.gmra.mxu2 %vm2401_vm2, %v3800_v16  ;;  %v12115_v46 = vpop.f32.mrf.mxu2  ;;  %v4961_v16 = vpop.f32.mrf.mxu0 }
 0x7da   : > { %6528 = vmatmul.msk.f32.vlgmr.msra.gmra.mxu0 %vm382_vm0, %v5684_v6  ;;  %v12121_v51 = vpop.f32.mrf.mxu3 }
 0x7db   : > { %14117 = vst [vmem:[#allocation39_spill] sm:$0xff] %v12121_v51 }
 0x7dc   : > { %5276 = vrot.lane.b32.xlu2 %v11795_v22, %s7747_s28  ;;  %5530 = vrot.lane.b32.xlu0 %v4955_v56, %s7749_s13  ;;  %v12108_v22 = vpop.f32.mrf.mxu1 }
 0x7e0   : > { %v6992_v12 = vpop.permute.xlu0 %6991  ;;  %v5525_v21 = vpop.permute.xlu1 %5524 }
 0x7e1   : > { %v6993_v20 = vunpack.i.l.bf16 %v6992_v12  ;;  %v6994_v57 = vunpack.i.h.bf16 %v6992_v12  ;;  %v12129_v1 = vpop.f32.mrf.mxu2 }
 0x7e2   : > { %v12131_v12 = vpop.f32.mrf.mxu3 }
 0x7e3   : > { %5201 = vmatpush.msra.mxu3 %v6993_v20  ;;  %14118 = vst [vmem:[#allocation41_spill] sm:$0xff] %v12131_v12 }
 0x7e4   : > { %5278 = vrot.lane.b32.xlu2 %v11812_v53, %s7747_s28  ;;  %5404 = vrot.lane.b32.xlu0 %v11921_v19, %s7748_s9  ;;  %v3539_v53 = vsel %vm2401_vm2, %v12110_v17, 0.0  ;;  %v12126_v3 = vpop.f32.mrf.mxu1 }
 0x7e5   : > { %5202 = vmatpush.msra.mxu3 %v6994_v57 }
 0x7e6   : > { %v3529_v49 = vpop.xlane.xlu2 %3528 }
 0x7e7   : > { %7498 = vrcp.f32 %v3529_v49 }
 0x7e8   : > { %v5397_v58 = vpop.permute.xlu0 %5396 }
 0x7e9   : > { %v5652_v56 = vsel %vm5650_vm3, %v5619_v60, %v5397_v58  ;;  %v14120_v58 = vld [vmem:[#allocation176_spill] sm:$0xff] }
 0x7ea   : > { %v5685_v19 = vsel %vm5683_vm4, %v5652_v56, %v5525_v21  ;;  %v12137_v49 = vpop.f32.mrf.mxu3  ;;  %v14121_v21 = vld [vmem:[#allocation144_spill] sm:$0xff] }
 0x7eb   : > { %3540 = vadd.xlane.f32.xlu1 %v3539_v53  ;;  %6529 = vmatmul.msk.f32.gmra.mxu0 %vm382_vm0, %v5685_v19  ;;  %14119 = vst [vmem:[#allocation34_spill] sm:$0xff] %v12137_v49  ;;  %v2910_v56 = vsub.f32 %v14121_v21, %v14120_v58  ;;  %v14122_v53 = vld [vmem:[#allocation248_spill] sm:$0xff]  ;;  %v14123_v19 = vld [vmem:[#allocation145_spill] sm:$0xff] }
 0x7ec   : > { %5532 = vrot.lane.b32.xlu0 %v4958_v54, %s7749_s13  ;;  %5534 = vrot.lane.b32.xlu2 %v4961_v16, %s7749_s13  ;;  %v12133_v20 = vpop.f32.mrf.mxu1  ;;  %v2911_v16 = vsub.f32 %v14123_v19, %v14122_v53 }
 0x7ed   : > { %v7499_v34 = vpop.eup %7498 }
 0x7ee   : > { %v3801_v28 = vmul.f32 %v7499_v34, %v11953_v15  ;;  %v12135_v15 = vpop.f32.mrf.mxu2 }
 0x7f0   : > { %6519 = vmatmul.msk.f32.gmra.mxu2 %vm2401_vm2, %v3801_v28  ;;  %v6997_v59 = vpop.permute.xlu0 %6996 }
 0x7f1   : > { %v6998_v32 = vunpack.i.l.bf16 %v6997_v59  ;;  %v6999_v6 = vunpack.i.h.bf16 %v6997_v59  ;;  %v3162_v59 = vmul.f32 1.442695, %v2910_v56 }
 0x7f2   : > { %v12153_v21 = vpop.f32.mrf.mxu3 }
 0x7f3   : > { %5203 = vmatpush.msra.mxu3 %v6998_v32  ;;  %v3164_v32 = vmul.f32 1.442695, %v2911_v16  ;;  %7500 = vpow2.f32 %v3162_v59  ;;  %14124 = vst [vmem:[#allocation27_spill] sm:$0xff] %v12153_v21  ;;  %v14128_v21 = vld [vmem:[#allocation302_spill] sm:$0xff] }
 0x7f4   : > { %v12143_v34 = vpop.f32.mrf.mxu1 }
 0x7f5   : > { %5204 = vmatpush.msra.mxu3 %v6999_v6  ;;  %v5399_v6 = vpop.permute.xlu2 %5398  ;;  %7502 = vpow2.f32 %v3164_v32 }
 0x7f8   : > { %v7002_v36 = vpop.permute.xlu0 %7001 }
 0x7f9   : > { %v7003_v54 = vunpack.i.l.bf16 %v7002_v36  ;;  %v7004_v57 = vunpack.i.h.bf16 %v7002_v36  ;;  %v12149_v36 = vpop.f32.mrf.mxu2 }
 0x7fa   : > { %v12167_v32 = vpop.f32.mrf.mxu3 }
 0x7fb   : > { %5205 = vmatpush.msra.mxu3 %v7003_v54  ;;  %14125 = vst [vmem:[#allocation23_spill] sm:$0xff] %v12167_v32  ;;  %v4964_v32 = vpop.f32.mrf.mxu0 }
 0x7fd   : > { %5206 = vmatpush.msra.mxu3 %v7004_v57 }
 0x800   : > { %v5271_v60 = vpop.permute.xlu0 %5270 }
 0x801   : > { %v5620_v28 = vsel %vm832_vm1, %v11597_v29, %v5271_v60  ;;  %v12158_v29 = vpop.f32.mrf.mxu1  ;;  %v12160_v60 = vpop.eup %7500 }
 0x802   : > { %v5653_v54 = vsel %vm5650_vm3, %v5620_v28, %v5399_v6  ;;  %v12162_v53 = vpop.eup %7502  ;;  %v12164_v28 = vpop.f32.mrf.mxu2 }
 0x804   : > { %5406 = vrot.lane.b32.xlu1 %v11932_v30, %s7748_s9 }
 0x808   : > { %v5527_v57 = vpop.permute.xlu0 %5526 }
 0x809   : > { %v5686_v58 = vsel %vm5683_vm4, %v5653_v54, %v5527_v57  ;;  %v3542_v54 = vsel %vm2401_vm2, %v12160_v60, 0.0  ;;  %v12176_v57 = vpop.f32.mrf.mxu1 }
 0x80a   : > { %6530 = vmatmul.msk.f32.gmra.mxu0 %vm382_vm0, %v5686_v58  ;;  %v12178_v58 = vpop.f32.mrf.mxu2 }
 0x80b   : > { %v3532_v30 = vpop.xlane.xlu1 %3531 }
 0x80c   : > { %7504 = vrcp.f32 %v3532_v30  ;;  %5280 = vrot.lane.b32.xlu1 %v11830_v44, %s7747_s28  ;;  %v3545_v44 = vsel %vm2401_vm2, %v12162_v53, 0.0  ;;  %v12180_v30 = vpop.f32.mrf.mxu3 }
 0x80d   : > { %14126 = vst [vmem:[#allocation104_spill] sm:$0xff] %v12180_v30  ;;  %v14127_v30 = vld [vmem:[#allocation175_spill] sm:$0xff] }
 0x80e   : > { %v2912_v49 = vsub.f32 %v14128_v21, %v14127_v30 }
 0x810   : > { %v7007_v56 = vpop.permute.xlu0 %7006 }
 0x811   : > { %v7008_v19 = vunpack.i.l.bf16 %v7007_v56  ;;  %v7009_v6 = vunpack.i.h.bf16 %v7007_v56  ;;  %v12182_v56 = vpop.f32.mrf.mxu1 }
 0x812   : > { %v7505_v16 = vpop.eup %7504 }
 0x813   : > { %v3802_v59 = vmul.f32 %v7505_v16, %v11994_v37  ;;  %5207 = vmatpush.msra.mxu3 %v7008_v19  ;;  %v5273_v37 = vpop.permute.xlu2 %5272 }
 0x814   : > { %5408 = vrot.lane.b32.xlu1 %v11940_v11, %s7748_s9  ;;  %v5621_v11 = vsel %vm832_vm1, %v11627_v52, %v5273_v37  ;;  %v3166_v37 = vmul.f32 1.442695, %v2912_v49 }
 0x815   : > { %5208 = vmatpush.msra.mxu3 %v7009_v6  ;;  %3546 = vadd.xlane.f32.xlu2 %v3545_v44 }
 0x816   : > { %6520 = vmatmul.msk.f32.vlgmr.msra.gmra.mxu3 %vm2401_vm2, %v3802_v59  ;;  %3543 = vadd.xlane.f32.xlu0 %v3542_v54  ;;  %v12188_v59 = vpop.f32.mrf.mxu2  ;;  %v12190_v54 = vpop.f32.mrf.mxu3  ;;  %7506 = vpow2.f32 %v3166_v37 }
 0x819   : > { %v12196_v12 = vpop.f32.mrf.mxu1 }
 0x81b   : > { %v5529_v16 = vpop.permute.xlu2 %5528 }
 0x81c   : > { %v12210_v21 = vpop.eup %7506 }
 0x81e   : > { %v12200_v52 = vpop.f32.mrf.mxu2 }
 0x823   : > { %v5401_v19 = vpop.permute.xlu1 %5400 }
 0x824   : > { %v5654_v6 = vsel %vm5650_vm3, %v5621_v11, %v5401_v19  ;;  %v12202_v11 = vpop.f32.mrf.mxu3  ;;  %v5032_v19 = vpop.f32.mrf.mxu1 }
 0x825   : > { %v5687_v44 = vsel %vm5683_vm4, %v5654_v6, %v5529_v16 }
 0x826   : > { %6531 = vmatmul.msk.f32.gmra.mxu0 %vm382_vm0, %v5687_v44 }
 0x82a   : > { %5536 = vrot.lane.b32.xlu0 %v4964_v32, %s7749_s13  ;;  %v12208_v32 = vpop.f32.mrf.mxu2 }
 0x82b   : > { %v5275_v6 = vpop.permute.xlu1 %5274 }
 0x82c   : > { %v12212_v30 = vpop.f32.mrf.mxu3  ;;  %v5035_v49 = vpop.f32.mrf.mxu1  ;;  %v5622_v5 = vsel %vm832_vm1, %v11657_v26, %v5275_v6  ;;  %v12244_v26 = vld [vmem:[%s12678_s5] ss:$0 sm:$0xff] }
 0x82d   : > { %5282 = vrot.lane.b32.xlu2 %v12000_v55, %s7747_s28 }
 0x832   : > { %5410 = vrot.lane.b32.xlu0 %v12108_v22, %s7748_s9  ;;  %v3548_v22 = vsel %vm2401_vm2, %v12210_v21, 0.0  ;;  %v12218_v44 = vpop.f32.mrf.mxu2 }
 0x834   : > { %v12221_v51 = vpop.f32.mrf.mxu3 }
 0x835   : > { %5284 = vrot.lane.b32.xlu2 %v12016_v31, %s7747_s28 }
 0x837   : > { %v3538_v16 = vpop.xlane.xlu2 %3537 }
 0x83a   : > { %5538 = vrot.lane.b32.xlu0 %v5032_v19, %s7749_s13  ;;  %v12227_v35 = vpop.f32.mrf.mxu2 }
 0x83b   : > { %v3535_v55 = vpop.xlane.xlu0 %3534 }
 0x83c   : > { %7508 = vrcp.f32 %v3535_v55  ;;  %v5038_v55 = vpop.f32.mrf.mxu1 }
 0x83d   : > { %5540 = vrot.lane.b32.xlu2 %v5035_v49, %s7749_s13  ;;  %7510 = vrcp.f32 %v3538_v16  ;;  %v5403_v49 = vpop.permute.xlu1 %5402 }
 0x83e   : > { %3549 = vadd.xlane.f32.xlu1 %v3548_v22  ;;  %v5655_v16 = vsel %vm5650_vm3, %v5622_v5, %v5403_v49 }
 0x842   : > { %v7509_v31 = vpop.eup %7508  ;;  %v12248_v5 = vpop.f32.mrf.mxu2 }
 0x843   : > { %v3803_v37 = vmul.f32 %v7509_v31, %v12066_v18  ;;  %v7511_v19 = vpop.eup %7510  ;;  %v12234_v18 = vpop.f32.mrf.mxu3 }
 0x844   : > { %v3804_v22 = vmul.f32 %v7511_v19, %v12056_v33  ;;  %v14129_v33 = vld [vmem:[#allocation179_spill] sm:$0xff]  ;;  %v5041_v43 = vpop.f32.mrf.mxu1 }
 0x845   : > { %6521 = vmatmul.msk.f32.gmra.mxu3 %vm2401_vm2, %v3803_v37  ;;  %5286 = vrot.lane.b32.xlu2 %v12024_v9, %s7747_s28  ;;  %v14130_v37 = vld [vmem:[#allocation146_spill] sm:$0xff] }
 0x846   : > { %v2913_v19 = vsub.f32 %v14130_v37, %v14129_v33 }
 0x84d   : > { %6522 = vmatmul.msk.f32.gmra.mxu3 %vm2401_vm2, %v3804_v22  ;;  %5414 = vrot.lane.b32.xlu2 %v12133_v20, %s7748_s9  ;;  %v3168_v20 = vmul.f32 1.442695, %v2913_v19  ;;  %v12252_v22 = vpop.f32.mrf.mxu3 }
 0x84e   : > { %v5531_v9 = vpop.permute.xlu0 %5530 }
 0x84f   : > { %v5688_v31 = vsel %vm5683_vm4, %v5655_v16, %v5531_v9  ;;  %7512 = vpow2.f32 %v3168_v20  ;;  %v5277_v9 = vpop.permute.xlu2 %5276 }
 0x850   : > { %6532 = vmatmul.msk.f32.gmra.mxu0 %vm382_vm0, %v5688_v31  ;;  %v5623_v31 = vsel %vm832_vm1, %v11685_v8, %v5277_v9 }
 0x855   : > { %5288 = vrot.lane.b32.xlu2 %v12037_v42, %s7747_s28  ;;  %v5044_v42 = vpop.f32.mrf.mxu1  ;;  %v12268_v20 = vpop.eup %7512 }
 0x856   : > { %v5405_v6 = vpop.permute.xlu0 %5404  ;;  %v12273_v8 = vpop.f32.mrf.mxu3 }
 0x857   : > { %5412 = vrot.lane.b32.xlu1 %v12126_v3, %s7748_s9  ;;  %v5837_v49 = vpop.f32.mrf.mxu0  ;;  %v5656_v3 = vsel %vm5650_vm3, %v5623_v31, %v5405_v6 }
 0x858   : > { %v5838_v16 = vadd.f32 %v12244_v26, %v5837_v49  ;;  %v12270_v49 = vpop.f32.mrf.mxu2 }
 0x85a   : > { %5933 = vst.msk [vmem:[%s12257_s30] sm:$0xff] %vm382_vm0, %v5838_v16 }
 0x85d   : > { %5290 = vrot.lane.b32.xlu2 %v12052_v25, %s7747_s28  ;;  %v3551_v25 = vsel %vm2401_vm2, %v12268_v20, 0.0 }
 0x85e   : > { %v3541_v33 = vpop.xlane.xlu1 %3540  ;;  %v5533_v37 = vpop.permute.xlu0 %5532 }
 0x85f   : > { %7514 = vrcp.f32 %v3541_v33  ;;  %v5689_v19 = vsel %vm5683_vm4, %v5656_v3, %v5533_v37  ;;  %5542 = vrot.lane.b32.xlu1 %v5038_v55, %s7749_s13  ;;  %v5047_v55 = vpop.f32.mrf.mxu1  ;;  %v12286_v33 = vpop.f32.mrf.mxu3 }
 0x860   : > { %6533 = vmatmul.msk.f32.gmra.mxu0 %vm382_vm0, %v5689_v19  ;;  %v12282_v3 = vpop.f32.mrf.mxu2  ;;  %v5279_v37 = vpop.permute.xlu2 %5278 }
 0x861   : > { %v5624_v19 = vsel %vm832_vm1, %v12042_v10, %v5279_v37 }
 0x864   : > { %3552 = vadd.xlane.f32.xlu0 %v3551_v25 }
 0x865   : > { %v7515_v6 = vpop.eup %7514  ;;  %5546 = vrot.lane.b32.xlu2 %v5044_v42, %s7749_s13 }
 0x866   : > { %v3805_v16 = vmul.f32 %v7515_v6, %v12110_v17 }
 0x867   : > { %5544 = vrot.lane.b32.xlu1 %v5041_v43, %s7749_s13  ;;  %v5050_v17 = vpop.f32.mrf.mxu1  ;;  %v12293_v42 = vpop.f32.mrf.mxu3 }
 0x868   : > { %6523 = vmatmul.msk.f32.gmra.mxu3 %vm2401_vm2, %v3805_v16  ;;  %v5840_v9 = vpop.f32.mrf.mxu0  ;;  %v12291_v43 = vpop.f32.mrf.mxu2 }
 0x869   : > { %v5841_v31 = vadd.f32 %v12244_v26, %v5840_v9  ;;  %v5535_v6 = vpop.permute.xlu2 %5534 }
 0x86b   : > { %5934 = vst.msk [vmem:[%s12257_s30 + $0x8] sm:$0xff] %vm382_vm0, %v5841_v31 }
 0x86d   : > { %5548 = vrot.lane.b32.xlu2 %v5047_v55, %s7749_s13 }
 0x86f   : > { %5418 = vrot.lane.b32.xlu1 %v12158_v29, %s7748_s9  ;;  %v5053_v55 = vpop.f32.mrf.mxu1  ;;  %v12306_v10 = vpop.f32.mrf.mxu3 }
 0x870   : > { %v5121_v9 = vpop.f32.mrf.mxu2 }
 0x875   : > { %5550 = vrot.lane.b32.xlu2 %v5050_v17, %s7749_s13 }
 0x876   : > { %v5407_v25 = vpop.permute.xlu1 %5406 }
 0x877   : > { %v5657_v16 = vsel %vm5650_vm3, %v5624_v19, %v5407_v25  ;;  %5420 = vrot.lane.b32.xlu1 %v12176_v57, %s7748_s9  ;;  %v12315_v31 = vpop.f32.mrf.mxu3 }
 0x878   : > { %5416 = vrot.lane.b32.xlu0 %v12143_v34, %s7748_s9  ;;  %v5690_v29 = vsel %vm5683_vm4, %v5657_v16, %v5535_v6  ;;  %v5124_v57 = vpop.f32.mrf.mxu2 }
 0x879   : > { %6534 = vmatmul.msk.f32.gmra.mxu0 %vm382_vm0, %v5690_v29 }
 0x87d   : > { %5552 = vrot.lane.b32.xlu2 %v5053_v55, %s7749_s13 }
 0x87f   : > { %5422 = vrot.lane.b32.xlu1 %v12182_v56, %s7748_s9  ;;  %v5281_v56 = vpop.permute.xlu1 %5280 }
 0x880   : > { %5292 = vrot.lane.b32.xlu0 %v12073_v50, %s7747_s28  ;;  %v5127_v50 = vpop.f32.mrf.mxu2 }
 0x885   : > { %5554 = vrot.lane.b32.xlu2 %v5121_v9, %s7749_s13 }
 0x887   : > { %5424 = vrot.lane.b32.xlu1 %v12196_v12, %s7748_s9  ;;  %v5843_v34 = vpop.f32.mrf.mxu0 }
 0x888   : > { %v5844_v37 = vadd.f32 %v12244_v26, %v5843_v34  ;;  %v3547_v17 = vpop.xlane.xlu2 %3546  ;;  %5294 = vrot.lane.b32.xlu0 %v12080_v41, %s7747_s28  ;;  %v12328_v41 = vpop.f32.mrf.mxu3 }
 0x889   : > { %v3544_v19 = vpop.xlane.xlu0 %3543  ;;  %v5130_v29 = vpop.f32.mrf.mxu2 }
 0x88a   : > { %5935 = vst.msk [vmem:[%s12257_s30 + $0x10] sm:$0xff] %vm382_vm0, %v5844_v37  ;;  %7516 = vrcp.f32 %v3544_v19 }
 0x88b   : > { %7518 = vrcp.f32 %v3547_v17 }
 0x88d   : > { %5556 = vrot.lane.b32.xlu2 %v5124_v57, %s7749_s13 }
 0x88f   : > { %5426 = vrot.lane.b32.xlu1 %v12200_v52, %s7748_s9  ;;  %v5409_v52 = vpop.permute.xlu1 %5408 }
 0x890   : > { %v7517_v12 = vpop.eup %7516  ;;  %v5283_v25 = vpop.permute.xlu2 %5282  ;;  %5296 = vrot.lane.b32.xlu0 %v12095_v14, %s7747_s28 }
 0x891   : > { %v3806_v6 = vmul.f32 %v7517_v12, %v12160_v60  ;;  %v7519_v16 = vpop.eup %7518  ;;  %v5625_v60 = vsel %vm832_vm1, %v12058_v48, %v5281_v56  ;;  %v12340_v9 = vpop.f32.mrf.mxu3 }
 0x892   : > { %v3807_v14 = vmul.f32 %v7519_v16, %v12162_v53  ;;  %v5658_v57 = vsel %vm5650_vm3, %v5625_v60, %v5409_v52 }
 0x893   : > { %6524 = vmatmul.msk.f32.gmra.mxu3 %vm2401_vm2, %v3806_v6 }
 0x895   : > { %5558 = vrot.lane.b32.xlu2 %v5127_v50, %s7749_s13 }
 0x897   : > { %5428 = vrot.lane.b32.xlu1 %v12208_v32, %s7748_s9 }
 0x898   : > { %5298 = vrot.lane.b32.xlu0 %v12100_v24, %s7747_s28  ;;  %v5285_v55 = vpop.permute.xlu2 %5284  ;;  %v5133_v24 = vpop.f32.mrf.mxu2 }
 0x899   : > { %v12352_v19 = vpop.f32.mrf.mxu3 }
 0x89b   : > { %6525 = vmatmul.msk.f32.gmra.mxu3 %vm2401_vm2, %v3807_v14 }
 0x89c   : > { %v5537_v34 = vpop.permute.xlu0 %5536 }
 0x89d   : > { %v5691_v32 = vsel %vm5683_vm4, %v5658_v57, %v5537_v34  ;;  %5560 = vrot.lane.b32.xlu2 %v5130_v29, %s7749_s13 }
 0x89e   : > { %6535 = vmatmul.msk.f32.gmra.mxu0 %vm382_vm0, %v5691_v32 }
 0x89f   : > { %5430 = vrot.lane.b32.xlu1 %v12218_v44, %s7748_s9 }
 0x8a0   : > { %5300 = vrot.lane.b32.xlu0 %v12115_v46, %s7747_s28  ;;  %v5541_v48 = vpop.permute.xlu2 %5540  ;;  %v5136_v44 = vpop.f32.mrf.mxu2  ;;  %v5626_v46 = vsel %vm832_vm1, %v11900_v13, %v5283_v25 }
 0x8a3   : > { %v5846_v53 = vpop.f32.mrf.mxu0 }
 0x8a4   : > { %v5847_v37 = vadd.f32 %v12244_v26, %v5846_v53  ;;  %v5411_v17 = vpop.permute.xlu0 %5410 }
 0x8a5   : > { %5562 = vrot.lane.b32.xlu2 %v5133_v24, %s7749_s13  ;;  %v5659_v50 = vsel %vm5650_vm3, %v5626_v46, %v5411_v17 }
 0x8a6   : > { %5936 = vst.msk [vmem:[%s12257_s30 + $0x18] sm:$0xff] %vm382_vm0, %v5847_v37 }
 0x8a7   : > { %5432 = vrot.lane.b32.xlu1 %v12227_v35, %s7748_s9  ;;  %v12368_v35 = vpop.f32.mrf.mxu3 }
 0x8a8   : > { %5302 = vrot.lane.b32.xlu0 %v12129_v1, %s7747_s28  ;;  %v5287_v12 = vpop.permute.xlu2 %5286  ;;  %v5139_v13 = vpop.f32.mrf.mxu2 }
 0x8ac   : > { %v5539_v56 = vpop.permute.xlu0 %5538 }
 0x8ad   : > { %v5692_v6 = vsel %vm5683_vm4, %v5659_v50, %v5539_v56  ;;  %5564 = vrot.lane.b32.xlu2 %v5136_v44, %s7749_s13 }
 0x8ae   : > { %6536 = vmatmul.msk.f32.gmra.mxu0 %vm382_vm0, %v5692_v6 }
 0x8af   : > { %5434 = vrot.lane.b32.xlu1 %v12248_v5, %s7748_s9  ;;  %v12378_v29 = vpop.f32.mrf.mxu3 }
 0x8b0   : > { %5304 = vrot.lane.b32.xlu0 %v12135_v15, %s7747_s28  ;;  %v5415_v25 = vpop.permute.xlu2 %5414  ;;  %v5142_v15 = vpop.f32.mrf.mxu2 }
 0x8b1   : > { %v3550_v1 = vpop.xlane.xlu1 %3549 }
 0x8b2   : > { %7520 = vrcp.f32 %v3550_v1 }
 0x8b5   : > { %5566 = vrot.lane.b32.xlu2 %v5139_v13, %s7749_s13 }
 0x8b7   : > { %5436 = vrot.lane.b32.xlu1 %v12270_v49, %s7748_s9  ;;  %v5210_v52 = vpop.f32.mrf.mxu3 }
 0x8b8   : > { %v7521_v16 = vpop.eup %7520  ;;  %5306 = vrot.lane.b32.xlu0 %v12149_v36, %s7747_s28  ;;  %v5289_v49 = vpop.permute.xlu2 %5288  ;;  %v5627_v36 = vsel %vm832_vm1, %v11913_v7, %v5285_v55  ;;  %v5628_v7 = vsel %vm832_vm1, %v11927_v39, %v5287_v12 }
 0x8b9   : > { %v3808_v5 = vmul.f32 %v7521_v16, %v12210_v21 }
 0x8bb   : > { %6526 = vmatmul.msk.f32.gmra.mxu3 %vm2401_vm2, %v3808_v5 }
 0x8bd   : > { %5568 = vrot.lane.b32.xlu2 %v5142_v15, %s7749_s13 }
 0x8bf   : > { %5438 = vrot.lane.b32.xlu1 %v12282_v3, %s7748_s9 }
 0x8c0   : > { %5308 = vrot.lane.b32.xlu0 %v12164_v28, %s7747_s28  ;;  %v5291_v60 = vpop.permute.xlu2 %5290 }
 0x8c5   : > { %5570 = vrot.lane.b32.xlu2 %v5210_v52, %s7749_s13 }
 0x8c7   : > { %5440 = vrot.lane.b32.xlu1 %v12291_v43, %s7748_s9 }
 0x8c8   : > { %5310 = vrot.lane.b32.xlu0 %v12178_v58, %s7747_s28  ;;  %v5213_v14 = vpop.f32.mrf.mxu3  ;;  %v5661_v58 = vsel %vm5650_vm3, %v5628_v7, %v5415_v25  ;;  %v5547_v24 = vpop.permute.xlu2 %5546 }
 0x8c9   : > { %v5413_v21 = vpop.permute.xlu1 %5412 }
 0x8ca   : > { %v5660_v3 = vsel %vm5650_vm3, %v5627_v36, %v5413_v21 }
 0x8cb   : > { %v5693_v28 = vsel %vm5683_vm4, %v5660_v3, %v5541_v48 }
 0x8cc   : > { %6537 = vmatmul.msk.f32.gmra.mxu0 %vm382_vm0, %v5693_v28 }
 0x8cd   : > { %5572 = vrot.lane.b32.xlu2 %v5213_v14, %s7749_s13  ;;  %v5849_v57 = vpop.f32.mrf.mxu0 }
 0x8ce   : > { %v5850_v43 = vadd.f32 %v12244_v26, %v5849_v57 }
 0x8cf   : > { %5442 = vrot.lane.b32.xlu1 %v12293_v42, %s7748_s9 }
 0x8d0   : > { %5937 = vst.msk [vmem:[%s12257_s30 + $0x20] sm:$0xff] %vm382_vm0, %v5850_v43  ;;  %5312 = vrot.lane.b32.xlu0 %v12188_v59, %s7747_s28  ;;  %v5216_v32 = vpop.f32.mrf.mxu3  ;;  %v5549_v37 = vpop.permute.xlu2 %5548 }
 0x8d1   : > { %v5543_v55 = vpop.permute.xlu1 %5542 }
 0x8d2   : > { %v5694_v34 = vsel %vm5683_vm4, %v5661_v58, %v5543_v55 }
 0x8d4   : > { %6538 = vmatmul.msk.f32.gmra.mxu0 %vm382_vm0, %v5694_v34 }
 0x8d5   : > { %5574 = vrot.lane.b32.xlu2 %v5216_v32, %s7749_s13 }
 0x8d7   : > { %5444 = vrot.lane.b32.xlu1 %v12306_v10, %s7748_s9  ;;  %v3553_v39 = vpop.xlane.xlu0 %3552 }
 0x8d8   : > { %7522 = vrcp.f32 %v3553_v39  ;;  %5314 = vrot.lane.b32.xlu0 %v12190_v54, %s7747_s28  ;;  %v5551_v54 = vpop.permute.xlu2 %5550 }
 0x8d9   : > { %v5545_v59 = vpop.permute.xlu1 %5544 }
 0x8dd   : > { %v5852_v42 = vpop.f32.mrf.mxu0 }
 0x8de   : > { %v7523_v48 = vpop.eup %7522  ;;  %v5853_v53 = vadd.f32 %v12244_v26, %v5852_v42 }
 0x8df   : > { %5446 = vrot.lane.b32.xlu1 %v12315_v31, %s7748_s9  ;;  %v3809_v17 = vmul.f32 %v7523_v48, %v12268_v20  ;;  %v5629_v31 = vsel %vm832_vm1, %v11938_v47, %v5289_v49 }
 0x8e0   : > { %5938 = vst.msk [vmem:[%s12257_s30 + $0x28] sm:$0xff] %vm382_vm0, %v5853_v53  ;;  %5316 = vrot.lane.b32.xlu0 %v12202_v11, %s7747_s28  ;;  %v5553_v12 = vpop.permute.xlu2 %5552 }
 0x8e1   : > { %v5419_v10 = vpop.permute.xlu1 %5418  ;;  %6527 = vmatmul.msk.f32.gmra.mxu3 %vm2401_vm2, %v3809_v17 }
 0x8e7   : > { %5448 = vrot.lane.b32.xlu1 %v12328_v41, %s7748_s9 }
 0x8e8   : > { %5318 = vrot.lane.b32.xlu0 %v12212_v30, %s7747_s28  ;;  %v5630_v30 = vsel %vm832_vm1, %v11946_v45, %v5291_v60  ;;  %v5555_v5 = vpop.permute.xlu2 %5554 }
 0x8e9   : > { %v5421_v44 = vpop.permute.xlu1 %5420  ;;  %v5663_v47 = vsel %vm5650_vm3, %v5630_v30, %v5419_v10 }
 0x8ea   : > { %v5417_v20 = vpop.permute.xlu0 %5416  ;;  %v5696_v6 = vsel %vm5683_vm4, %v5663_v47, %v5547_v24 }
 0x8eb   : > { %v5662_v46 = vsel %vm5650_vm3, %v5629_v31, %v5417_v20  ;;  %v5219_v50 = vpop.f32.mrf.mxu3 }
 0x8ec   : > { %5576 = vrot.lane.b32.xlu2 %v5219_v50, %s7749_s13  ;;  %v5695_v11 = vsel %vm5683_vm4, %v5662_v46, %v5545_v59 }
 0x8ed   : > { %6539 = vmatmul.msk.f32.gmra.mxu0 %vm382_vm0, %v5695_v11 }
 0x8ef   : > { %5450 = vrot.lane.b32.xlu1 %v12340_v9, %s7748_s9 }
 0x8f0   : > { %5320 = vrot.lane.b32.xlu0 %v12221_v51, %s7747_s28  ;;  %v5557_v36 = vpop.permute.xlu2 %5556 }
 0x8f1   : > { %v5423_v41 = vpop.permute.xlu1 %5422 }
 0x8f2   : > { %v5293_v56 = vpop.permute.xlu0 %5292 }
 0x8f3   : > { %v5631_v1 = vsel %vm832_vm1, %v11957_v63, %v5293_v56 }
 0x8f4   : > { %v5664_v45 = vsel %vm5650_vm3, %v5631_v1, %v5421_v44 }
 0x8f5   : > { %6540 = vmatmul.msk.f32.gmra.mxu0 %vm382_vm0, %v5696_v6  ;;  %v5697_v16 = vsel %vm5683_vm4, %v5664_v45, %v5549_v37 }
 0x8f6   : > { %v5855_v13 = vpop.f32.mrf.mxu0 }
 0x8f7   : > { %v5856_v9 = vadd.f32 %v12244_v26, %v5855_v13  ;;  %5452 = vrot.lane.b32.xlu1 %v12352_v19, %s7748_s9 }
 0x8f8   : > { %5322 = vrot.lane.b32.xlu0 %v12234_v18, %s7747_s28 }
 0x8f9   : > { %5939 = vst.msk [vmem:[%s12257_s30 + $0x30] sm:$0xff] %vm382_vm0, %v5856_v9  ;;  %v5425_v51 = vpop.permute.xlu1 %5424 }
 0x8fa   : > { %v5295_v25 = vpop.permute.xlu0 %5294 }
 0x8fb   : > { %v5632_v63 = vsel %vm832_vm1, %v11965_v23, %v5295_v25 }
 0x8fc   : > { %v5665_v18 = vsel %vm5650_vm3, %v5632_v63, %v5423_v41 }
 0x8fd   : > { %6541 = vmatmul.msk.f32.gmra.mxu0 %vm382_vm0, %v5697_v16  ;;  %v5698_v49 = vsel %vm5683_vm4, %v5665_v18, %v5551_v54 }
 0x8ff   : > { %5454 = vrot.lane.b32.xlu1 %v12368_v35, %s7748_s9 }
 0x900   : > { %5324 = vrot.lane.b32.xlu0 %v12252_v22, %s7747_s28 }
 0x901   : > { %v5427_v19 = vpop.permute.xlu1 %5426 }
 0x902   : > { %v5297_v15 = vpop.permute.xlu0 %5296 }
 0x903   : > { %v5633_v52 = vsel %vm832_vm1, %v11978_v4, %v5297_v15  ;;  %v5559_v4 = vpop.permute.xlu2 %5558 }
 0x904   : > { %v5666_v23 = vsel %vm5650_vm3, %v5633_v52, %v5425_v51  ;;  %v14131_v51 = vld [vmem:[#allocation86_spill] sm:$0xff] }
 0x905   : > { %6542 = vmatmul.msk.f32.gmra.mxu0 %vm382_vm0, %v5698_v49  ;;  %v5699_v21 = vsel %vm5683_vm4, %v5666_v23, %v5553_v12  ;;  %v14132_v49 = vld [vmem:[#allocation56_spill] sm:$0xff] }
 0x907   : > { %5456 = vrot.lane.b32.xlu1 %v12378_v29, %s7748_s9 }
 0x908   : > { %5326 = vrot.lane.b32.xlu0 %v12273_v8, %s7747_s28 }
 0x909   : > { %v5429_v22 = vpop.permute.xlu1 %5428 }
 0x90a   : > { %v5299_v35 = vpop.permute.xlu0 %5298 }
 0x90b   : > { %v5634_v14 = vsel %vm832_vm1, %v11991_v40, %v5299_v35  ;;  %v5561_v7 = vpop.permute.xlu2 %5560 }
 0x90c   : > { %v5667_v29 = vsel %vm5650_vm3, %v5634_v14, %v5427_v19 }
 0x90d   : > { %6543 = vmatmul.msk.f32.gmra.mxu0 %vm382_vm0, %v5699_v21  ;;  %v5700_v60 = vsel %vm5683_vm4, %v5667_v29, %v5555_v5 }
 0x910   : > { %5328 = vrot.lane.b32.xlu0 %v12286_v33, %s7747_s28 }
 0x911   : > { %v5431_v3 = vpop.permute.xlu1 %5430 }
 0x912   : > { %v5301_v8 = vpop.permute.xlu0 %5300 }
 0x913   : > { %v5635_v28 = vsel %vm832_vm1, %v12008_v2, %v5301_v8  ;;  %v5563_v48 = vpop.permute.xlu2 %5562 }
 0x914   : > { %v5668_v40 = vsel %vm5650_vm3, %v5635_v28, %v5429_v22 }
 0x915   : > { %6544 = vmatmul.msk.f32.gmra.mxu0 %vm382_vm0, %v5700_v60  ;;  %v5701_v34 = vsel %vm5683_vm4, %v5668_v40, %v5557_v36  ;;  %v14134_v40 = vld [vmem:[#allocation39_spill] sm:$0xff] }
 0x916   : > { %v5222_v57 = vpop.f32.mrf.mxu3 }
 0x917   : > { %5578 = vrot.lane.b32.xlu2 %v5222_v57, %s7749_s13 }
 0x919   : > { %v5433_v43 = vpop.permute.xlu1 %5432 }
 0x91a   : > { %v5303_v33 = vpop.permute.xlu0 %5302 }
 0x91b   : > { %v5858_v58 = vpop.f32.mrf.mxu0  ;;  %v5636_v32 = vsel %vm832_vm1, %v12019_v61, %v5303_v33  ;;  %v5565_v20 = vpop.permute.xlu2 %5564 }
 0x91c   : > { %v5859_v55 = vadd.f32 %v12244_v26, %v5858_v58  ;;  %v5669_v24 = vsel %vm5650_vm3, %v5636_v32, %v5431_v3 }
 0x91d   : > { %6545 = vmatmul.msk.f32.gmra.mxu0 %vm382_vm0, %v5701_v34  ;;  %v5702_v42 = vsel %vm5683_vm4, %v5669_v24, %v5559_v4  ;;  %v14133_v4 = vld [vmem:[#allocation79_spill] sm:$0xff] }
 0x91e   : > { %5940 = vst.msk [vmem:[%s12257_s30 + $0x38] sm:$0xff] %vm382_vm0, %v5859_v55  ;;  %v5225_v2 = vpop.f32.mrf.mxu3 }
 0x91f   : > { %5580 = vrot.lane.b32.xlu2 %v5225_v2, %s7749_s13  ;;  %v14135_v2 = vld [vmem:[#allocation41_spill] sm:$0xff] }
 0x921   : > { %v5435_v39 = vpop.permute.xlu1 %5434 }
 0x922   : > { %v5305_v59 = vpop.permute.xlu0 %5304 }
 0x923   : > { %v5637_v53 = vsel %vm832_vm1, %v12029_v0, %v5305_v59  ;;  %v5567_v47 = vpop.permute.xlu2 %5566 }
 0x924   : > { %v5670_v61 = vsel %vm5650_vm3, %v5637_v53, %v5433_v43 }
 0x925   : > { %6546 = vmatmul.msk.f32.gmra.mxu0 %vm382_vm0, %v5702_v42  ;;  %v5703_v44 = vsel %vm5683_vm4, %v5670_v61, %v5561_v7 }
 0x929   : > { %v5437_v37 = vpop.permute.xlu1 %5436 }
 0x92a   : > { %v5307_v17 = vpop.permute.xlu0 %5306 }
 0x92b   : > { %v5861_v10 = vpop.f32.mrf.mxu0  ;;  %v5638_v31 = vsel %vm832_vm1, %v12046_v62, %v5307_v17  ;;  %v14136_v17 = vld [vmem:[#allocation34_spill] sm:$0xff] }
 0x92c   : > { %v5862_v54 = vadd.f32 %v12244_v26, %v5861_v10  ;;  %v5671_v46 = vsel %vm5650_vm3, %v5638_v31, %v5435_v39 }
 0x92d   : > { %6547 = vmatmul.msk.f32.gmra.mxu0 %vm382_vm0, %v5703_v44  ;;  %v5704_v11 = vsel %vm5683_vm4, %v5671_v46, %v5563_v48 }
 0x92e   : > { %5941 = vst.msk [vmem:[%s12257_s30 + $0x40] sm:$0xff] %vm382_vm0, %v5862_v54 }
 0x931   : > { %v5439_v50 = vpop.permute.xlu1 %5438 }
 0x932   : > { %v5309_v0 = vpop.permute.xlu0 %5308 }
 0x933   : > { %v5639_v30 = vsel %vm832_vm1, %v12064_v27, %v5309_v0  ;;  %v5569_v27 = vpop.permute.xlu2 %5568 }
 0x934   : > { %v5672_v41 = vsel %vm5650_vm3, %v5639_v30, %v5437_v37 }
 0x935   : > { %6548 = vmatmul.msk.f32.gmra.mxu0 %vm382_vm0, %v5704_v11  ;;  %v5705_v62 = vsel %vm5683_vm4, %v5672_v41, %v5565_v20 }
 0x939   : > { %v5441_v12 = vpop.permute.xlu1 %5440 }
 0x93a   : > { %v5311_v56 = vpop.permute.xlu0 %5310 }
 0x93b   : > { %v5640_v6 = vsel %vm832_vm1, %v12076_v38, %v5311_v56  ;;  %v5571_v15 = vpop.permute.xlu2 %5570 }
 0x93c   : > { %v5673_v13 = vsel %vm5650_vm3, %v5640_v6, %v5439_v50  ;;  %v14137_v50 = vld [vmem:[#allocation27_spill] sm:$0xff] }
 0x93d   : > { %6549 = vmatmul.msk.f32.gmra.mxu0 %vm382_vm0, %v5705_v62  ;;  %v5706_v45 = vsel %vm5683_vm4, %v5673_v13, %v5567_v47 }
 0x93e   : > { %v5228_v1 = vpop.f32.mrf.mxu3 }
 0x93f   : > { %5582 = vrot.lane.b32.xlu2 %v5228_v1, %s7749_s13 }
 0x941   : > { %v5443_v16 = vpop.permute.xlu1 %5442 }
 0x942   : > { %v5313_v9 = vpop.permute.xlu0 %5312 }
 0x943   : > { %v5641_v25 = vsel %vm832_vm1, %v14131_v51, %v5313_v9  ;;  %v5573_v3 = vpop.permute.xlu2 %5572 }
 0x944   : > { %v5674_v5 = vsel %vm5650_vm3, %v5641_v25, %v5441_v12  ;;  %v14138_v25 = vld [vmem:[#allocation23_spill] sm:$0xff] }
 0x945   : > { %6550 = vmatmul.msk.f32.gmra.mxu0 %vm382_vm0, %v5706_v45  ;;  %v5707_v19 = vsel %vm5683_vm4, %v5674_v5, %v5569_v27 }
 0x949   : > { %v5864_v63 = vpop.f32.mrf.mxu0  ;;  %v5445_v22 = vpop.permute.xlu1 %5444 }
 0x94a   : > { %v5865_v38 = vadd.f32 %v12244_v26, %v5864_v63  ;;  %v5315_v18 = vpop.permute.xlu0 %5314 }
 0x94b   : > { %v5642_v52 = vsel %vm832_vm1, %v14132_v49, %v5315_v18  ;;  %v5575_v33 = vpop.permute.xlu2 %5574 }
 0x94c   : > { %5942 = vst.msk [vmem:[%s12257_s30 + $0x48] sm:$0xff] %vm382_vm0, %v5865_v38  ;;  %v5675_v36 = vsel %vm5650_vm3, %v5642_v52, %v5443_v16 }
 0x94d   : > { %6551 = vmatmul.msk.f32.gmra.mxu0 %vm382_vm0, %v5707_v19  ;;  %v5708_v14 = vsel %vm5683_vm4, %v5675_v36, %v5571_v15 }
 0x951   : > { %v5867_v23 = vpop.f32.mrf.mxu0  ;;  %v5447_v28 = vpop.permute.xlu1 %5446 }
 0x952   : > { %v5868_v35 = vadd.f32 %v12244_v26, %v5867_v23  ;;  %v5317_v21 = vpop.permute.xlu0 %5316 }
 0x953   : > { %v5643_v29 = vsel %vm832_vm1, %v14133_v4, %v5317_v21  ;;  %v5577_v39 = vpop.permute.xlu2 %5576 }
 0x954   : > { %5943 = vst.msk [vmem:[%s12257_s30 + $0x50] sm:$0xff] %vm382_vm0, %v5868_v35  ;;  %v5676_v8 = vsel %vm5650_vm3, %v5643_v29, %v5445_v22  ;;  %v14139_v29 = vld [vmem:[#allocation104_spill] sm:$0xff] }
 0x955   : > { %6552 = vmatmul.msk.f32.gmra.mxu0 %vm382_vm0, %v5708_v14  ;;  %v5709_v57 = vsel %vm5683_vm4, %v5676_v8, %v5573_v3 }
 0x959   : > { %v5449_v32 = vpop.permute.xlu1 %5448 }
 0x95a   : > { %v5319_v60 = vpop.permute.xlu0 %5318 }
 0x95b   : > { %v5644_v43 = vsel %vm832_vm1, %v14134_v40, %v5319_v60 }
 0x95c   : > { %v5677_v7 = vsel %vm5650_vm3, %v5644_v43, %v5447_v28 }
 0x95d   : > { %6553 = vmatmul.msk.f32.gmra.mxu0 %vm382_vm0, %v5709_v57  ;;  %v5710_v34 = vsel %vm5683_vm4, %v5677_v7, %v5575_v33 }
 0x961   : > { %v5451_v37 = vpop.permute.xlu1 %5450 }
 0x962   : > { %v5321_v58 = vpop.permute.xlu0 %5320 }
 0x963   : > { %v5645_v24 = vsel %vm832_vm1, %v14135_v2, %v5321_v58 }
 0x964   : > { %v5231_v55 = vpop.f32.mrf.mxu3  ;;  %v5678_v59 = vsel %vm5650_vm3, %v5645_v24, %v5449_v32 }
 0x965   : > { %5584 = vrot.lane.b32.xlu2 %v5231_v55, %s7749_s13  ;;  %6554 = vmatmul.msk.f32.gmra.mxu0 %vm382_vm0, %v5710_v34  ;;  %v5711_v61 = vsel %vm5683_vm4, %v5678_v59, %v5577_v39 }
 0x969   : > { %v5453_v47 = vpop.permute.xlu1 %5452 }
 0x96a   : > { %v5870_v42 = vpop.f32.mrf.mxu0  ;;  %v5323_v48 = vpop.permute.xlu0 %5322 }
 0x96b   : > { %v5871_v53 = vadd.f32 %v12244_v26, %v5870_v42  ;;  %v5646_v10 = vsel %vm832_vm1, %v14136_v17, %v5323_v48 }
 0x96c   : > { %v5679_v31 = vsel %vm5650_vm3, %v5646_v10, %v5451_v37 }
 0x96d   : > { %5944 = vst.msk [vmem:[%s12257_s30 + $0x58] sm:$0xff] %vm382_vm0, %v5871_v53  ;;  %6555 = vmatmul.msk.f32.gmra.mxu0 %vm382_vm0, %v5711_v61 }
 0x971   : > { %v5579_v54 = vpop.permute.xlu2 %5578  ;;  %v5455_v5 = vpop.permute.xlu1 %5454 }
 0x972   : > { %v5873_v44 = vpop.f32.mrf.mxu0  ;;  %v5712_v46 = vsel %vm5683_vm4, %v5679_v31, %v5579_v54  ;;  %v5325_v0 = vpop.permute.xlu0 %5324 }
 0x973   : > { %v5874_v20 = vadd.f32 %v12244_v26, %v5873_v44  ;;  %v5647_v11 = vsel %vm832_vm1, %v14137_v50, %v5325_v0 }
 0x974   : > { %v5680_v56 = vsel %vm5650_vm3, %v5647_v11, %v5453_v47 }
 0x975   : > { %5945 = vst.msk [vmem:[%s12257_s30 + $0x60] sm:$0xff] %vm382_vm0, %v5874_v20  ;;  %6556 = vmatmul.msk.f32.gmra.mxu0 %vm382_vm0, %v5712_v46 }
 0x979   : > { %v5581_v30 = vpop.permute.xlu2 %5580  ;;  %v5457_v8 = vpop.permute.xlu1 %5456 }
 0x97a   : > { %v5876_v41 = vpop.f32.mrf.mxu0  ;;  %v5713_v12 = vsel %vm5683_vm4, %v5680_v56, %v5581_v30  ;;  %v5327_v45 = vpop.permute.xlu0 %5326 }
 0x97b   : > { %v5877_v62 = vadd.f32 %v12244_v26, %v5876_v41  ;;  %v5648_v16 = vsel %vm832_vm1, %v14138_v25, %v5327_v45 }
 0x97c   : > { %v5681_v38 = vsel %vm5650_vm3, %v5648_v16, %v5455_v5 }
 0x97d   : > { %5946 = vst.msk [vmem:[%s12257_s30 + $0x68] sm:$0xff] %vm382_vm0, %v5877_v62  ;;  %6557 = vmatmul.msk.f32.gmra.mxu0 %vm382_vm0, %v5713_v12 }
 0x982   : > { %v5879_v6 = vpop.f32.mrf.mxu0  ;;  %v5329_v21 = vpop.permute.xlu0 %5328 }
 0x983   : > { %v5880_v1 = vadd.f32 %v12244_v26, %v5879_v6  ;;  %v5649_v3 = vsel %vm832_vm1, %v14139_v29, %v5329_v21 }
 0x984   : > { %v5682_v28 = vsel %vm5650_vm3, %v5649_v3, %v5457_v8 }
 0x985   : > { %5947 = vst.msk [vmem:[%s12257_s30 + $0x70] sm:$0xff] %vm382_vm0, %v5880_v1 }
 0x98a   : > { %v5882_v13 = vpop.f32.mrf.mxu0 }
 0x98b   : > { %v5883_v9 = vadd.f32 %v12244_v26, %v5882_v13 }
 0x98d   : > { %5948 = vst.msk [vmem:[%s12257_s30 + $0x78] sm:$0xff] %vm382_vm0, %v5883_v9 }
 0x992   : > { %v5885_v27 = vpop.f32.mrf.mxu0 }
 0x993   : > { %v5886_v51 = vadd.f32 %v12244_v26, %v5885_v27 }
 0x995   : > { %5949 = vst.msk [vmem:[%s12257_s30 + $0x80] sm:$0xff] %vm382_vm0, %v5886_v51 }
 0x999   : > { %v5583_v63 = vpop.permute.xlu2 %5582 }
 0x99a   : > { %v5714_v18 = vsel %vm5683_vm4, %v5681_v38, %v5583_v63  ;;  %v5888_v19 = vpop.f32.mrf.mxu0 }
 0x99b   : > { %v5889_v15 = vadd.f32 %v12244_v26, %v5888_v19  ;;  %6558 = vmatmul.msk.f32.gmra.mxu0 %vm382_vm0, %v5714_v18 }
 0x99d   : > { %5950 = vst.msk [vmem:[%s12257_s30 + $0x88] sm:$0xff] %vm382_vm0, %v5889_v15 }
 0x9a2   : > { %v5891_v49 = vpop.f32.mrf.mxu0 }
 0x9a3   : > { %v5892_v52 = vadd.f32 %v12244_v26, %v5891_v49 }
 0x9a5   : > { %5951 = vst.msk [vmem:[%s12257_s30 + $0x90] sm:$0xff] %vm382_vm0, %v5892_v52 }
 0x9aa   : > { %v5894_v36 = vpop.f32.mrf.mxu0 }
 0x9ab   : > { %v5895_v23 = vadd.f32 %v12244_v26, %v5894_v36 }
 0x9ad   : > { %5952 = vst.msk [vmem:[%s12257_s30 + $0x98] sm:$0xff] %vm382_vm0, %v5895_v23 }
 0x9b2   : > { %v5897_v22 = vpop.f32.mrf.mxu0 }
 0x9b3   : > { %v5898_v35 = vadd.f32 %v12244_v26, %v5897_v22 }
 0x9b5   : > { %5953 = vst.msk [vmem:[%s12257_s30 + $0xa0] sm:$0xff] %vm382_vm0, %v5898_v35 }
 0x9ba   : > { %v5900_v14 = vpop.f32.mrf.mxu0 }
 0x9bb   : > { %v5901_v4 = vadd.f32 %v12244_v26, %v5900_v14 }
 0x9bd   : > { %5954 = vst.msk [vmem:[%s12257_s30 + $0xa8] sm:$0xff] %vm382_vm0, %v5901_v4 }
 0x9bf   : > { %v5585_v60 = vpop.permute.xlu2 %5584 }
 0x9c0   : > { %v5715_v57 = vsel %vm5683_vm4, %v5682_v28, %v5585_v60 }
 0x9c1   : > { %6559 = vmatmul.msk.f32.gmra.mxu0 %vm382_vm0, %v5715_v57 }
 0x9c2   : > { %v5903_v40 = vpop.f32.mrf.mxu0 }
 0x9c3   : > { %v5904_v43 = vadd.f32 %v12244_v26, %v5903_v40 }
 0x9c5   : > { %5955 = vst.msk [vmem:[%s12257_s30 + $0xb0] sm:$0xff] %vm382_vm0, %v5904_v43 }
 0x9ca   : > { %v5906_v33 = vpop.f32.mrf.mxu0 }
 0x9cb   : > { %v5907_v7 = vadd.f32 %v12244_v26, %v5906_v33 }
 0x9cd   : > { %5956 = vst.msk [vmem:[%s12257_s30 + $0xb8] sm:$0xff] %vm382_vm0, %v5907_v7 }
 0x9d2   : > { %v5909_v58 = vpop.f32.mrf.mxu0 }
 0x9d3   : > { %v5910_v55 = vadd.f32 %v12244_v26, %v5909_v58 }
 0x9d5   : > { %5957 = vst.msk [vmem:[%s12257_s30 + $0xc0] sm:$0xff] %vm382_vm0, %v5910_v55 }
 0x9da   : > { %v5912_v34 = vpop.f32.mrf.mxu0 }
 0x9db   : > { %v5913_v32 = vadd.f32 %v12244_v26, %v5912_v34 }
 0x9dd   : > { %5958 = vst.msk [vmem:[%s12257_s30 + $0xc8] sm:$0xff] %vm382_vm0, %v5913_v32 }
 0x9e2   : > { %v5915_v2 = vpop.f32.mrf.mxu0 }
 0x9e3   : > { %v5916_v24 = vadd.f32 %v12244_v26, %v5915_v2 }
 0x9e5   : > { %5959 = vst.msk [vmem:[%s12257_s30 + $0xd0] sm:$0xff] %vm382_vm0, %v5916_v24 }
 0x9ea   : > { %v5918_v39 = vpop.f32.mrf.mxu0 }
 0x9eb   : > { %v5919_v59 = vadd.f32 %v12244_v26, %v5918_v39 }
 0x9ed   : > { %5960 = vst.msk [vmem:[%s12257_s30 + $0xd8] sm:$0xff] %vm382_vm0, %v5919_v59 }
 0x9f2   : > { %v5921_v42 = vpop.f32.mrf.mxu0 }
 0x9f3   : > { %v5922_v48 = vadd.f32 %v12244_v26, %v5921_v42 }
 0x9f5   : > { %5961 = vst.msk [vmem:[%s12257_s30 + $0xe0] sm:$0xff] %vm382_vm0, %v5922_v48 }
 0x9fa   : > { %v5924_v53 = vpop.f32.mrf.mxu0 }
 0x9fb   : > { %v5925_v61 = vadd.f32 %v12244_v26, %v5924_v53 }
 0x9fd   : > { %5962 = vst.msk [vmem:[%s12257_s30 + $0xe8] sm:$0xff] %vm382_vm0, %v5925_v61 }
 0xa18   : > { %v5927_v37 = vpop.f32.mrf.mxu0 }
 0xa19   : > { %v5928_v17 = vadd.f32 %v12244_v26, %v5927_v37 }
 0xa1b   : > { %5963 = vst.msk [vmem:[%s12257_s30 + $0xf0] sm:$0xff] %vm382_vm0, %v5928_v17 }
 0xa3e   : > { %v5930_v10 = vpop.f32.mrf.mxu0 }
 0xa3f   : > { %v5931_v54 = vadd.f32 %v12244_v26, %v5930_v10 }
 0xa41   : > { %5964 = vst.msk [vmem:[%s12257_s30 + $0xf8] sm:$0xff] %vm382_vm0, %v5931_v54 }
 0xa42   : > { %7671 = shalt.err (!%p7668_p0)
}
 0xa43   : > { %s7750_s14 = smov 128   ;;  %s7751_s16 = smov 256  }
 0xa44   : > { %6598 = dma.vmem_to_hbm [thread:$0]  (%p7891_p5), %s5981_s1, 4096, %s5983_s3, %s5966_s4, %s7750_s14, %s7751_s16, %s7747_s28  }
 0xa45 PF: > { %s5997_s17 = sand.u32 1, %s7714_s21   ;;  %p6615_p3 = pnand %p6103_p11, %p7836_p6 }
 0xa46   : > { %s5998_s30 = scalar_lea.sflag [#allocation4], %s5997_s17 }
 0xa47   : > { %p6616_p7 = pneg %p6615_p3 }
 0xa49   : > { %7709 = dma.done.wait (%p6616_p7), %s5998_s30, 4096  }
 0xa4a   : > { %7711 = vsyncadd (%p6616_p7), %s5998_s30, 4294963200  ;;  %s24_s26 = sadd.s32 1, %s7734_s26   ;;  %s14140_s15 = sld [smem:[#allocation15_spill]] }
 0xa4b   : > { %p21_p9 = scmp.ge.s32.totalorder %s24_s26, 4   ;;  %s14141_s21 = smov %s7718_s22 }
 0xa4c   : > { %s14142_s22 = smov %s7722_s23  ;;  %s14143_s23 = smov %s7900_s10 }
 0xa4d   : > { %s14144_s24 = smov %s7730_s25  ;;  %23 = sbr.rel (!%p21_p9) target bundleno = 12 (0xc), region = 101 }
 0xa50   : > { %s14145_s25 = smov %s14140_s15 }
 0xa52   :  { %6004 = vsyncpa [#allocation3], 1 }
 0xa53   :  { %6006 = vsyncpa [#allocation3 + $0x1], 1 }
 0xa54   :  { %6007 = vsyncpa [#allocation6], 1 }
 0xa55   :  { %6008 = vsyncpa [#allocation9], 1 }
 0xa56   :  { %6009 = vsyncpa [#allocation4], 1 }
 0xa57   :  { %6011 = vsyncpa [#allocation4 + $0x1], 1 }

</bundles_post_ra>
